<compile_context>
chip_gen: v7x
topology: tpu7x:2x2x1
jax: 0.10.0
libtpu: 0.0.40
codegen_flags: <defaults>
</compile_context>

<pallas_src>
import math
import functools

import jax
import jax.numpy as jnp
from jax.experimental import pallas as pl
from jax.experimental.pallas import tpu as pltpu


# ----------------------------------------------------------------------------
# Packed parameter layout (all float32 arrays, no strings -> jit-safe pytree)
# ----------------------------------------------------------------------------
_PARAM_ORDER = (
    # encoder
    "enc_t1_w", "enc_t1_b", "enc_t2_w", "enc_t2_b",
    "enc_ysh1_w", "enc_ysh1_b", "enc_ysh2_w", "enc_ysh2_b",
    "enc_yh1_w", "enc_yh1_b", "enc_yh2_w", "enc_yh2_b",
    "enc_zsh1x_w", "enc_zsh1y_w", "enc_zsh1_b",
    "enc_zsh2_w", "enc_zsh2_b", "enc_zsh3_w", "enc_zsh3_b",
    "enc_zbr_w", "enc_zbr_b", "enc_zhead_w", "enc_zhead_b",
    # decoder
    "dec_t1_w", "dec_t1_b", "dec_t2_w", "dec_t2_b",
    "dec_xsh1_w", "dec_xsh1_b", "dec_xsh2_w", "dec_xsh2_b",
    "dec_xcon_w", "dec_xcon_b", "dec_xconh_w", "dec_xconh_b",
    "dec_xdis1_w", "dec_xdis1_b", "dec_xdis2_w", "dec_xdis2_b",
    "dec_y1_w", "dec_y1_b", "dec_y2_w", "dec_y2_b",
    "dec_y3_w", "dec_y3_b", "dec_y4_w", "dec_y4_b",
)


# ----------------------------------------------------------------------------
# The fused kernel: entire encoder + decoder forward in one pallas_call body.
# ----------------------------------------------------------------------------
def _cevae_kernel(x_ref, noise_ref, *refs, n_params, z_dim, num_con_x):
    pref = dict(zip(_PARAM_ORDER, refs[:n_params]))
    (q_t_ref, q_y_ref, z_mu_ref, z_var_ref, p_t_ref,
     x_con_mu_ref, x_con_var_ref, p_x_dis_ref, p_y_ref, y_hat_ref) = refs[n_params:]

    # --- activation helpers (kept to exp/log/sqrt for safe Mosaic lowering) --
    def elu(h):                     # torch.nn.ELU(alpha=1)
        return jnp.where(h > 0.0, h, jnp.exp(jnp.minimum(h, 0.0)) - 1.0)

    def sigmoid(h):
        return 1.0 / (1.0 + jnp.exp(-h))

    def softplus(h):                # numerically stable log(1+exp(h))
        return jnp.maximum(h, 0.0) + jnp.log(1.0 + jnp.exp(-jnp.abs(h)))

    def lin(h, name, act=None):     # fused Linear (+ optional ELU) on the MXU
        y = jnp.dot(h, pref[name + "_w"][...],
                    preferred_element_type=jnp.float32)
        y = y + pref[name + "_b"][...]
        if act == "elu":
            y = elu(y)
        return y

    x = x_ref[...]
    noise = noise_ref[...]
    logi_t_enc = noise[:, 0:1]          # Logistic(0,1) == gumbel0 - gumbel1
    logi_y_enc = noise[:, 1:2]
    logi_t_dec = noise[:, 2:3]
    u_bern = noise[:, 3:4]              # Uniform[0,1)
    eps = noise[:, 4:4 + z_dim]         # N(0,1)

    # ---------------------------- encoder ------------------------------------
    # t-encoder (logit-space gumbel-hard: argmax over [log q + g0, log(1-q)+g1])
    a_t = lin(lin(x, "enc_t1", "elu"), "enc_t2")                 # (B, 1) logit
    q_t = sigmoid(a_t)
    t_enc = (a_t + logi_t_enc > 0.0).astype(jnp.float32)         # t_hat_enc

    # shared y-encoder trunk, then stacked y1/y0 heads
    y_sh = lin(lin(x, "enc_ysh1", "elu"), "enc_ysh2", "elu")
    hy = lin(y_sh, "enc_yh1", "elu")                             # (B, 400) = [y1 | y0]
    a_y = lin(hy, "enc_yh2")                                     # (B, 2) block-diag heads
    a_y_mix = a_y[:, 0:1] * t_enc + a_y[:, 1:2] * (1.0 - t_enc)  # t binary -> exact
    q_y = sigmoid(a_y_mix)
    y_enc = (a_y_mix + logi_y_enc > 0.0).astype(jnp.float32)     # y_hat_enc

    # z-encoder; first layer consumes concat([x, y_hat_enc]) (weight pre-split)
    h = jnp.dot(x, pref["enc_zsh1x_w"][...], preferred_element_type=jnp.float32)
    h = h + y_enc * pref["enc_zsh1y_w"][...] + pref["enc_zsh1_b"][...]
    h = elu(h)
    z_sh = lin(lin(h, "enc_zsh2", "elu"), "enc_zsh3", "elu")
    hz = lin(z_sh, "enc_zbr", "elu")                             # (B, 400) = [z1 | z0]
    zo = lin(hz, "enc_zhead")                                    # (B, 4*z_dim)
    z1_mu = zo[:, 0:z_dim]
    z1_var = softplus(zo[:, z_dim:2 * z_dim])
    z0_mu = zo[:, 2 * z_dim:3 * z_dim]
    z0_var = softplus(zo[:, 3 * z_dim:4 * z_dim])
    z_mu = z1_mu * t_enc + z0_mu * (1.0 - t_enc)
    z_var = z1_var * t_enc + z0_var * (1.0 - t_enc)
    z = z_mu + eps * jnp.sqrt(z_var)                             # reparam

    # ---------------------------- decoder ------------------------------------
    a_pt = lin(lin(z, "dec_t1", "elu"), "dec_t2")                # (B, 1)
    p_t = sigmoid(a_pt)
    t_dec = (a_pt + logi_t_dec > 0.0).astype(jnp.float32)        # t_hat_dec

    x_sh = lin(lin(z, "dec_xsh1", "elu"), "dec_xsh2", "elu")
    hc = lin(x_sh, "dec_xcon", "elu")
    xo = lin(hc, "dec_xconh")                                    # (B, 2*num_con_x)
    x_con_mu = xo[:, 0:num_con_x]
    x_con_var = softplus(xo[:, num_con_x:2 * num_con_x])
    p_x_dis = sigmoid(lin(lin(x_sh, "dec_xdis1", "elu"), "dec_xdis2"))

    # stacked / block-diagonal y1/y0 decoder chain
    hy2 = lin(z, "dec_y1", "elu")                                # (B, 400) = [y1 | y0]
    hy2 = lin(hy2, "dec_y2", "elu")
    hy2 = lin(hy2, "dec_y3", "elu")
    a_py = lin(hy2, "dec_y4")                                    # (B, 2)
    a_py_mix = a_py[:, 0:1] * t_dec + a_py[:, 1:2] * (1.0 - t_dec)
    p_y = sigmoid(a_py_mix)
    y_hat_dec = (u_bern < p_y).astype(jnp.float32)               # bernoulli(p_y)

    # ---------------------------- outputs ------------------------------------
    q_t_ref[...] = q_t
    q_y_ref[...] = q_y
    z_mu_ref[...] = z_mu
    z_var_ref[...] = z_var
    p_t_ref[...] = p_t
    x_con_mu_ref[...] = x_con_mu
    x_con_var_ref[...] = x_con_var
    p_x_dis_ref[...] = p_x_dis
    p_y_ref[...] = p_y
    y_hat_ref[...] = y_hat_dec


# ----------------------------------------------------------------------------
# Forward wrapper: one pallas_call, whole-array VMEM operands, no grid.
# ----------------------------------------------------------------------------
def _vmem_spec():
    return pl.BlockSpec(memory_space=pltpu.MemorySpace.VMEM)


def cevae_forward(params, x, key):
    B = x.shape[0]
    z_dim = params["enc_zhead_w"].shape[1] // 4
    num_con_x = params["dec_xconh_w"].shape[1] // 2
    num_dis_x = params["dec_xdis2_w"].shape[1]

    # All randomness depends only on the key, so it is drawn up-front and fed
    # to the fused kernel as one small noise tensor.
    k1, k2, k3, k4, k5 = jax.random.split(key, 5)
    noise = jnp.concatenate([
        jax.random.logistic(k1, (B, 1), jnp.float32),    # gumbel-hard: t_hat_enc
        jax.random.logistic(k2, (B, 1), jnp.float32),    # gumbel-hard: y_hat_enc
        jax.random.logistic(k3, (B, 1), jnp.float32),    # gumbel-hard: t_hat_dec
        jax.random.uniform(k4, (B, 1), jnp.float32),     # bernoulli(y_hat_dec)
        jax.random.normal(k5, (B, z_dim), jnp.float32),  # reparam eps
    ], axis=1)

    f32 = jnp.float32
    out_shape = (
        jax.ShapeDtypeStruct((B, 1), f32),           # q_t
        jax.ShapeDtypeStruct((B, 1), f32),           # q_y
        jax.ShapeDtypeStruct((B, z_dim), f32),       # z_mu
        jax.ShapeDtypeStruct((B, z_dim), f32),       # z_var
        jax.ShapeDtypeStruct((B, 1), f32),           # p_t
        jax.ShapeDtypeStruct((B, num_con_x), f32),   # x_con_mu
        jax.ShapeDtypeStruct((B, num_con_x), f32),   # x_con_var
        jax.ShapeDtypeStruct((B, num_dis_x), f32),   # p_x_dis
        jax.ShapeDtypeStruct((B, 1), f32),           # p_y
        jax.ShapeDtypeStruct((B, 1), f32),           # y_hat_dec
    )

    param_list = [params[name] for name in _PARAM_ORDER]
    kernel = functools.partial(_cevae_kernel, n_params=len(_PARAM_ORDER),
                               z_dim=z_dim, num_con_x=num_con_x)

    return pl.pallas_call(
        kernel,
        out_shape=out_shape,
        in_specs=[_vmem_spec() for _ in range(2 + len(param_list))],
        out_specs=tuple(_vmem_spec() for _ in range(len(out_shape))),
    )(x, noise, *param_list)


# ----------------------------------------------------------------------------
# Parameter init: each original torch.nn.Linear gets its default init
# (uniform +-1/sqrt(fan_in)), then parallel heads are packed / block-diagonalised.
# ----------------------------------------------------------------------------
def _init_linear(key, fan_in, fan_out):
    kw, kb = jax.random.split(key)
    bound = 1.0 / math.sqrt(fan_in)
    w = jax.random.uniform(kw, (fan_in, fan_out), jnp.float32, -bound, bound)
    b = jax.random.uniform(kb, (fan_out,), jnp.float32, -bound, bound)
    return w, b


def init_cevae_params(key, x_dim, num_con_x, t_dim=1, y_dim=1, z_dim=20):
    assert t_dim == 1 and y_dim == 1, "binary treatment/outcome expected"
    num_dis_x = x_dim - num_con_x
    H = 200

    shapes = {
        "t_enc_1": (x_dim, H), "t_enc_2": (H, t_dim),
        "y_sh_1": (x_dim, H), "y_sh_2": (H, H),
        "y1_1": (H, H), "y1_2": (H, y_dim),
        "y0_1": (H, H), "y0_2": (H, y_dim),
        "z_sh_1": (x_dim + y_dim, H), "z_sh_2": (H, H), "z_sh_3": (H, H),
        "z1_br": (H, H), "z1_mu": (H, z_dim), "z1_var": (H, z_dim),
        "z0_br": (H, H), "z0_mu": (H, z_dim), "z0_var": (H, z_dim),
        "t_dec_1": (z_dim, H), "t_dec_2": (H, t_dim),
        "x_sh_1": (z_dim, H), "x_sh_2": (H, H),
        "x_con": (H, H), "x_con_mu": (H, num_con_x), "x_con_var": (H, num_con_x),
        "x_dis_1": (H, H), "x_dis_2": (H, num_dis_x),
        "y1d_1": (z_dim, H), "y1d_2": (H, H), "y1d_3": (H, H), "y1d_4": (H, y_dim),
        "y0d_1": (z_dim, H), "y0d_2": (H, H), "y0d_3": (H, H), "y0d_4": (H, y_dim),
    }
    keys = jax.random.split(key, len(shapes))
    raw = {name: _init_linear(k, fi, fo)
           for k, (name, (fi, fo)) in zip(keys, shapes.items())}

    def stack(n1, n0):  # two heads consuming the SAME input -> wider matmul
        (w1, b1), (w0, b0) = raw[n1], raw[n0]
        return jnp.concatenate([w1, w0], axis=1), jnp.concatenate([b1, b0])

    def blkdiag(n1, n0):  # two independent branches on disjoint input halves
        (w1, b1), (w0, b0) = raw[n1], raw[n0]
        z10 = jnp.zeros((w1.shape[0], w0.shape[1]), jnp.float32)
        z01 = jnp.zeros((w0.shape[0], w1.shape[1]), jnp.float32)
        w = jnp.concatenate([jnp.concatenate([w1, z10], axis=1),
                             jnp.concatenate([z01, w0], axis=1)], axis=0)
        return w, jnp.concatenate([b1, b0])

    p = {}

    def put(name, wb):
        w, b = wb
        p[name + "_w"] = w
        p[name + "_b"] = b.reshape(1, -1)

    # --- encoder ---
    put("enc_t1", raw["t_enc_1"]); put("enc_t2", raw["t_enc_2"])
    put("enc_ysh1", raw["y_sh_1"]); put("enc_ysh2", raw["y_sh_2"])
    put("enc_yh1", stack("y1_1", "y0_1"))
    put("enc_yh2", blkdiag("y1_2", "y0_2"))
    w_zsh1, b_zsh1 = raw["z_sh_1"]
    p["enc_zsh1x_w"] = w_zsh1[:x_dim]            # rows for x features
    p["enc_zsh1y_w"] = w_zsh1[x_dim:]            # row for y_hat_enc (1, 200)
    p["enc_zsh1_b"] = b_zsh1.reshape(1, -1)
    put("enc_zsh2", raw["z_sh_2"]); put("enc_zsh3", raw["z_sh_3"])
    put("enc_zbr", stack("z1_br", "z0_br"))
    w_zh = jnp.zeros((2 * H, 4 * z_dim), jnp.float32)
    w_zh = w_zh.at[:H, 0:z_dim].set(raw["z1_mu"][0])
    w_zh = w_zh.at[:H, z_dim:2 * z_dim].set(raw["z1_var"][0])
    w_zh = w_zh.at[H:, 2 * z_dim:3 * z_dim].set(raw["z0_mu"][0])
    w_zh = w_zh.at[H:, 3 * z_dim:4 * z_dim].set(raw["z0_var"][0])
    b_zh = jnp.concatenate([raw["z1_mu"][1], raw["z1_var"][1],
                            raw["z0_mu"][1], raw["z0_var"][1]])
    p["enc_zhead_w"] = w_zh
    p["enc_zhead_b"] = b_zh.reshape(1, -1)

    # --- decoder ---
    put("dec_t1", raw["t_dec_1"]); put("dec_t2", raw["t_dec_2"])
    put("dec_xsh1", raw["x_sh_1"]); put("dec_xsh2", raw["x_sh_2"])
    put("dec_xcon", raw["x_con"])
    put("dec_xconh", stack("x_con_mu", "x_con_var"))
    put("dec_xdis1", raw["x_dis_1"]); put("dec_xdis2", raw["x_dis_2"])
    put("dec_y1", stack("y1d_1", "y0d_1"))
    put("dec_y2", blkdiag("y1d_2", "y0d_2"))
    put("dec_y3", blkdiag("y1d_3", "y0d_3"))
    put("dec_y4", blkdiag("y1d_4", "y0d_4"))

    assert set(p.keys()) == set(_PARAM_ORDER)
    return p


# ----------------------------------------------------------------------------
if __name__ == "__main__":
    batch, x_dim, num_con_x, z_dim = 8, 25, 6, 20

    root = jax.random.PRNGKey(0)
    k_params, k_x, k_fwd = jax.random.split(root, 3)

    params = init_cevae_params(k_params, x_dim=x_dim, num_con_x=num_con_x, z_dim=z_dim)
    x = jax.random.normal(k_x, (batch, x_dim), jnp.float32)

    fwd = jax.jit(cevae_forward)
    out = jax.block_until_ready(fwd(params, x, k_fwd))

    expected_shapes = [
        (batch, 1), (batch, 1), (batch, z_dim), (batch, z_dim), (batch, 1),
        (batch, num_con_x), (batch, num_con_x), (batch, x_dim - num_con_x),
        (batch, 1), (batch, 1),
    ]
    assert [tuple(o.shape) for o in out] == expected_shapes
    assert all(bool(jnp.all(jnp.isfinite(o))) for o in out)
    # probabilities in [0,1]; sampled treatment/outcome strictly binary
    assert bool(jnp.all((out[0] >= 0.0) & (out[0] <= 1.0)))
    assert bool(jnp.all((out[-1] == 0.0) | (out[-1] == 1.0)))
    print("KERNEL_OK")
</pallas_src>

<mosaic_0001>
module attributes {stable_mosaic.version = 11 : i64} {
  func.func @_cevae_kernel(%arg0: memref<8x25xf32, #tpu.memory_space<vmem>>, %arg1: memref<8x24xf32, #tpu.memory_space<vmem>>, %arg2: memref<25x200xf32, #tpu.memory_space<vmem>>, %arg3: memref<1x200xf32, #tpu.memory_space<vmem>>, %arg4: memref<200x1xf32, #tpu.memory_space<vmem>>, %arg5: memref<1x1xf32, #tpu.memory_space<vmem>>, %arg6: memref<25x200xf32, #tpu.memory_space<vmem>>, %arg7: memref<1x200xf32, #tpu.memory_space<vmem>>, %arg8: memref<200x200xf32, #tpu.memory_space<vmem>>, %arg9: memref<1x200xf32, #tpu.memory_space<vmem>>, %arg10: memref<200x400xf32, #tpu.memory_space<vmem>>, %arg11: memref<1x400xf32, #tpu.memory_space<vmem>>, %arg12: memref<400x2xf32, #tpu.memory_space<vmem>>, %arg13: memref<1x2xf32, #tpu.memory_space<vmem>>, %arg14: memref<25x200xf32, #tpu.memory_space<vmem>>, %arg15: memref<1x200xf32, #tpu.memory_space<vmem>>, %arg16: memref<1x200xf32, #tpu.memory_space<vmem>>, %arg17: memref<200x200xf32, #tpu.memory_space<vmem>>, %arg18: memref<1x200xf32, #tpu.memory_space<vmem>>, %arg19: memref<200x200xf32, #tpu.memory_space<vmem>>, %arg20: memref<1x200xf32, #tpu.memory_space<vmem>>, %arg21: memref<200x400xf32, #tpu.memory_space<vmem>>, %arg22: memref<1x400xf32, #tpu.memory_space<vmem>>, %arg23: memref<400x80xf32, #tpu.memory_space<vmem>>, %arg24: memref<1x80xf32, #tpu.memory_space<vmem>>, %arg25: memref<20x200xf32, #tpu.memory_space<vmem>>, %arg26: memref<1x200xf32, #tpu.memory_space<vmem>>, %arg27: memref<200x1xf32, #tpu.memory_space<vmem>>, %arg28: memref<1x1xf32, #tpu.memory_space<vmem>>, %arg29: memref<20x200xf32, #tpu.memory_space<vmem>>, %arg30: memref<1x200xf32, #tpu.memory_space<vmem>>, %arg31: memref<200x200xf32, #tpu.memory_space<vmem>>, %arg32: memref<1x200xf32, #tpu.memory_space<vmem>>, %arg33: memref<200x200xf32, #tpu.memory_space<vmem>>, %arg34: memref<1x200xf32, #tpu.memory_space<vmem>>, %arg35: memref<200x12xf32, #tpu.memory_space<vmem>>, %arg36: memref<1x12xf32, #tpu.memory_space<vmem>>, %arg37: memref<200x200xf32, #tpu.memory_space<vmem>>, %arg38: memref<1x200xf32, #tpu.memory_space<vmem>>, %arg39: memref<200x19xf32, #tpu.memory_space<vmem>>, %arg40: memref<1x19xf32, #tpu.memory_space<vmem>>, %arg41: memref<20x400xf32, #tpu.memory_space<vmem>>, %arg42: memref<1x400xf32, #tpu.memory_space<vmem>>, %arg43: memref<400x400xf32, #tpu.memory_space<vmem>>, %arg44: memref<1x400xf32, #tpu.memory_space<vmem>>, %arg45: memref<400x400xf32, #tpu.memory_space<vmem>>, %arg46: memref<1x400xf32, #tpu.memory_space<vmem>>, %arg47: memref<400x2xf32, #tpu.memory_space<vmem>>, %arg48: memref<1x2xf32, #tpu.memory_space<vmem>>, %arg49: memref<8x1xf32, #tpu.memory_space<vmem>>, %arg50: memref<8x1xf32, #tpu.memory_space<vmem>>, %arg51: memref<8x20xf32, #tpu.memory_space<vmem>>, %arg52: memref<8x20xf32, #tpu.memory_space<vmem>>, %arg53: memref<8x1xf32, #tpu.memory_space<vmem>>, %arg54: memref<8x6xf32, #tpu.memory_space<vmem>>, %arg55: memref<8x6xf32, #tpu.memory_space<vmem>>, %arg56: memref<8x19xf32, #tpu.memory_space<vmem>>, %arg57: memref<8x1xf32, #tpu.memory_space<vmem>>, %arg58: memref<8x1xf32, #tpu.memory_space<vmem>>) attributes {dimension_semantics = [], scalar_prefetch = 0 : i64, scratch_operands = 0 : i64, tpu.core_type = #tpu.core_type<tc>} {
    %c0 = arith.constant 0 : index
    %c0_0 = arith.constant 0 : index
    %0 = vector.load %arg0[%c0, %c0_0] : memref<8x25xf32, #tpu.memory_space<vmem>>, vector<8x25xf32>
    %c0_1 = arith.constant 0 : index
    %c0_2 = arith.constant 0 : index
    %1 = vector.load %arg1[%c0_1, %c0_2] : memref<8x24xf32, #tpu.memory_space<vmem>>, vector<8x24xf32>
    %2 = vector.extract_strided_slice %1 {offsets = [0, 0], sizes = [8, 1], strides = [1, 1]} : vector<8x24xf32> to vector<8x1xf32>
    %3 = vector.extract_strided_slice %1 {offsets = [0, 1], sizes = [8, 1], strides = [1, 1]} : vector<8x24xf32> to vector<8x1xf32>
    %4 = vector.extract_strided_slice %1 {offsets = [0, 2], sizes = [8, 1], strides = [1, 1]} : vector<8x24xf32> to vector<8x1xf32>
    %5 = vector.extract_strided_slice %1 {offsets = [0, 3], sizes = [8, 1], strides = [1, 1]} : vector<8x24xf32> to vector<8x1xf32>
    %6 = vector.extract_strided_slice %1 {offsets = [0, 4], sizes = [8, 20], strides = [1, 1]} : vector<8x24xf32> to vector<8x20xf32>
    %c0_3 = arith.constant 0 : index
    %c0_4 = arith.constant 0 : index
    %7 = vector.load %arg2[%c0_3, %c0_4] : memref<25x200xf32, #tpu.memory_space<vmem>>, vector<25x200xf32>
    %cst = arith.constant dense<0.000000e+00> : vector<8x200xf32>
    %8 = tpu.matmul %0, %7, %cst {dimension_numbers = #tpu.dot_dimension_numbers<[1], [0], [0], [1], [0, 0, 1, 1], [], []>} : vector<8x25xf32>, vector<25x200xf32>, vector<8x200xf32> -> vector<8x200xf32>
    %c0_5 = arith.constant 0 : index
    %c0_6 = arith.constant 0 : index
    %9 = vector.load %arg3[%c0_5, %c0_6] : memref<1x200xf32, #tpu.memory_space<vmem>>, vector<1x200xf32>
    %10 = vector.broadcast %9 : vector<1x200xf32> to vector<8x200xf32>
    %11 = arith.addf %8, %10 : vector<8x200xf32>
    %cst_7 = arith.constant 0.000000e+00 : f32
    %12 = vector.broadcast %cst_7 : f32 to vector<8x200xf32>
    %13 = arith.cmpf ogt, %11, %12 : vector<8x200xf32>
    %cst_8 = arith.constant 0.000000e+00 : f32
    %14 = vector.broadcast %cst_8 : f32 to vector<8x200xf32>
    %15 = arith.minimumf %11, %14 : vector<8x200xf32>
    %16 = math.exp %15 : vector<8x200xf32>
    %cst_9 = arith.constant 1.000000e+00 : f32
    %17 = vector.broadcast %cst_9 : f32 to vector<8x200xf32>
    %18 = arith.subf %16, %17 : vector<8x200xf32>
    %19 = arith.select %13, %11, %18 : vector<8x200xi1>, vector<8x200xf32>
    %c0_10 = arith.constant 0 : index
    %c0_11 = arith.constant 0 : index
    %20 = vector.load %arg4[%c0_10, %c0_11] : memref<200x1xf32, #tpu.memory_space<vmem>>, vector<200x1xf32>
    %cst_12 = arith.constant dense<0.000000e+00> : vector<8x1xf32>
    %21 = tpu.matmul %19, %20, %cst_12 {dimension_numbers = #tpu.dot_dimension_numbers<[1], [0], [0], [1], [0, 0, 1, 1], [], []>} : vector<8x200xf32>, vector<200x1xf32>, vector<8x1xf32> -> vector<8x1xf32>
    %c0_13 = arith.constant 0 : index
    %c0_14 = arith.constant 0 : index
    %22 = vector.load %arg5[%c0_13, %c0_14] : memref<1x1xf32, #tpu.memory_space<vmem>>, vector<1x1xf32>
    %23 = vector.broadcast %22 : vector<1x1xf32> to vector<8x1xf32>
    %24 = arith.addf %21, %23 : vector<8x1xf32>
    %cst_15 = arith.constant 0.000000e+00 : f32
    %25 = vector.broadcast %cst_15 : f32 to vector<8x1xf32>
    %26 = arith.subf %25, %24 : vector<8x1xf32>
    %27 = math.exp %26 : vector<8x1xf32>
    %cst_16 = arith.constant 1.000000e+00 : f32
    %28 = vector.broadcast %cst_16 : f32 to vector<8x1xf32>
    %29 = arith.addf %28, %27 : vector<8x1xf32>
    %cst_17 = arith.constant 1.000000e+00 : f32
    %30 = vector.broadcast %cst_17 : f32 to vector<8x1xf32>
    %31 = arith.divf %30, %29 : vector<8x1xf32>
    %32 = arith.addf %24, %2 : vector<8x1xf32>
    %cst_18 = arith.constant 0.000000e+00 : f32
    %33 = vector.broadcast %cst_18 : f32 to vector<8x1xf32>
    %34 = arith.cmpf ogt, %32, %33 : vector<8x1xf32>
    %35 = arith.extui %34 : vector<8x1xi1> to vector<8x1xi32>
    %36 = arith.sitofp %35 : vector<8x1xi32> to vector<8x1xf32>
    %c0_19 = arith.constant 0 : index
    %c0_20 = arith.constant 0 : index
    %37 = vector.load %arg6[%c0_19, %c0_20] : memref<25x200xf32, #tpu.memory_space<vmem>>, vector<25x200xf32>
    %cst_21 = arith.constant dense<0.000000e+00> : vector<8x200xf32>
    %38 = tpu.matmul %0, %37, %cst_21 {dimension_numbers = #tpu.dot_dimension_numbers<[1], [0], [0], [1], [0, 0, 1, 1], [], []>} : vector<8x25xf32>, vector<25x200xf32>, vector<8x200xf32> -> vector<8x200xf32>
    %c0_22 = arith.constant 0 : index
    %c0_23 = arith.constant 0 : index
    %39 = vector.load %arg7[%c0_22, %c0_23] : memref<1x200xf32, #tpu.memory_space<vmem>>, vector<1x200xf32>
    %40 = vector.broadcast %39 : vector<1x200xf32> to vector<8x200xf32>
    %41 = arith.addf %38, %40 : vector<8x200xf32>
    %cst_24 = arith.constant 0.000000e+00 : f32
    %42 = vector.broadcast %cst_24 : f32 to vector<8x200xf32>
    %43 = arith.cmpf ogt, %41, %42 : vector<8x200xf32>
    %cst_25 = arith.constant 0.000000e+00 : f32
    %44 = vector.broadcast %cst_25 : f32 to vector<8x200xf32>
    %45 = arith.minimumf %41, %44 : vector<8x200xf32>
    %46 = math.exp %45 : vector<8x200xf32>
    %cst_26 = arith.constant 1.000000e+00 : f32
    %47 = vector.broadcast %cst_26 : f32 to vector<8x200xf32>
    %48 = arith.subf %46, %47 : vector<8x200xf32>
    %49 = arith.select %43, %41, %48 : vector<8x200xi1>, vector<8x200xf32>
    %c0_27 = arith.constant 0 : index
    %c0_28 = arith.constant 0 : index
    %50 = vector.load %arg8[%c0_27, %c0_28] : memref<200x200xf32, #tpu.memory_space<vmem>>, vector<200x200xf32>
    %cst_29 = arith.constant dense<0.000000e+00> : vector<8x200xf32>
    %51 = tpu.matmul %49, %50, %cst_29 {dimension_numbers = #tpu.dot_dimension_numbers<[1], [0], [0], [1], [0, 0, 1, 1], [], []>} : vector<8x200xf32>, vector<200x200xf32>, vector<8x200xf32> -> vector<8x200xf32>
    %c0_30 = arith.constant 0 : index
    %c0_31 = arith.constant 0 : index
    %52 = vector.load %arg9[%c0_30, %c0_31] : memref<1x200xf32, #tpu.memory_space<vmem>>, vector<1x200xf32>
    %53 = vector.broadcast %52 : vector<1x200xf32> to vector<8x200xf32>
    %54 = arith.addf %51, %53 : vector<8x200xf32>
    %cst_32 = arith.constant 0.000000e+00 : f32
    %55 = vector.broadcast %cst_32 : f32 to vector<8x200xf32>
    %56 = arith.cmpf ogt, %54, %55 : vector<8x200xf32>
    %cst_33 = arith.constant 0.000000e+00 : f32
    %57 = vector.broadcast %cst_33 : f32 to vector<8x200xf32>
    %58 = arith.minimumf %54, %57 : vector<8x200xf32>
    %59 = math.exp %58 : vector<8x200xf32>
    %cst_34 = arith.constant 1.000000e+00 : f32
    %60 = vector.broadcast %cst_34 : f32 to vector<8x200xf32>
    %61 = arith.subf %59, %60 : vector<8x200xf32>
    %62 = arith.select %56, %54, %61 : vector<8x200xi1>, vector<8x200xf32>
    %c0_35 = arith.constant 0 : index
    %c0_36 = arith.constant 0 : index
    %63 = vector.load %arg10[%c0_35, %c0_36] : memref<200x400xf32, #tpu.memory_space<vmem>>, vector<200x400xf32>
    %cst_37 = arith.constant dense<0.000000e+00> : vector<8x400xf32>
    %64 = tpu.matmul %62, %63, %cst_37 {dimension_numbers = #tpu.dot_dimension_numbers<[1], [0], [0], [1], [0, 0, 1, 1], [], []>} : vector<8x200xf32>, vector<200x400xf32>, vector<8x400xf32> -> vector<8x400xf32>
    %c0_38 = arith.constant 0 : index
    %c0_39 = arith.constant 0 : index
    %65 = vector.load %arg11[%c0_38, %c0_39] : memref<1x400xf32, #tpu.memory_space<vmem>>, vector<1x400xf32>
    %66 = vector.broadcast %65 : vector<1x400xf32> to vector<8x400xf32>
    %67 = arith.addf %64, %66 : vector<8x400xf32>
    %cst_40 = arith.constant 0.000000e+00 : f32
    %68 = vector.broadcast %cst_40 : f32 to vector<8x400xf32>
    %69 = arith.cmpf ogt, %67, %68 : vector<8x400xf32>
    %cst_41 = arith.constant 0.000000e+00 : f32
    %70 = vector.broadcast %cst_41 : f32 to vector<8x400xf32>
    %71 = arith.minimumf %67, %70 : vector<8x400xf32>
    %72 = math.exp %71 : vector<8x400xf32>
    %cst_42 = arith.constant 1.000000e+00 : f32
    %73 = vector.broadcast %cst_42 : f32 to vector<8x400xf32>
    %74 = arith.subf %72, %73 : vector<8x400xf32>
    %75 = arith.select %69, %67, %74 : vector<8x400xi1>, vector<8x400xf32>
    %c0_43 = arith.constant 0 : index
    %c0_44 = arith.constant 0 : index
    %76 = vector.load %arg12[%c0_43, %c0_44] : memref<400x2xf32, #tpu.memory_space<vmem>>, vector<400x2xf32>
    %cst_45 = arith.constant dense<0.000000e+00> : vector<8x2xf32>
    %77 = tpu.matmul %75, %76, %cst_45 {dimension_numbers = #tpu.dot_dimension_numbers<[1], [0], [0], [1], [0, 0, 1, 1], [], []>} : vector<8x400xf32>, vector<400x2xf32>, vector<8x2xf32> -> vector<8x2xf32>
    %c0_46 = arith.constant 0 : index
    %c0_47 = arith.constant 0 : index
    %78 = vector.load %arg13[%c0_46, %c0_47] : memref<1x2xf32, #tpu.memory_space<vmem>>, vector<1x2xf32>
    %79 = vector.broadcast %78 : vector<1x2xf32> to vector<8x2xf32>
    %80 = arith.addf %77, %79 : vector<8x2xf32>
    %81 = vector.extract_strided_slice %80 {offsets = [0, 0], sizes = [8, 1], strides = [1, 1]} : vector<8x2xf32> to vector<8x1xf32>
    %82 = arith.mulf %81, %36 : vector<8x1xf32>
    %83 = vector.extract_strided_slice %80 {offsets = [0, 1], sizes = [8, 1], strides = [1, 1]} : vector<8x2xf32> to vector<8x1xf32>
    %cst_48 = arith.constant 1.000000e+00 : f32
    %84 = vector.broadcast %cst_48 : f32 to vector<8x1xf32>
    %85 = arith.subf %84, %36 : vector<8x1xf32>
    %86 = arith.mulf %83, %85 : vector<8x1xf32>
    %87 = arith.addf %82, %86 : vector<8x1xf32>
    %cst_49 = arith.constant 0.000000e+00 : f32
    %88 = vector.broadcast %cst_49 : f32 to vector<8x1xf32>
    %89 = arith.subf %88, %87 : vector<8x1xf32>
    %90 = math.exp %89 : vector<8x1xf32>
    %cst_50 = arith.constant 1.000000e+00 : f32
    %91 = vector.broadcast %cst_50 : f32 to vector<8x1xf32>
    %92 = arith.addf %91, %90 : vector<8x1xf32>
    %cst_51 = arith.constant 1.000000e+00 : f32
    %93 = vector.broadcast %cst_51 : f32 to vector<8x1xf32>
    %94 = arith.divf %93, %92 : vector<8x1xf32>
    %95 = arith.addf %87, %3 : vector<8x1xf32>
    %cst_52 = arith.constant 0.000000e+00 : f32
    %96 = vector.broadcast %cst_52 : f32 to vector<8x1xf32>
    %97 = arith.cmpf ogt, %95, %96 : vector<8x1xf32>
    %98 = arith.extui %97 : vector<8x1xi1> to vector<8x1xi32>
    %99 = arith.sitofp %98 : vector<8x1xi32> to vector<8x1xf32>
    %c0_53 = arith.constant 0 : index
    %c0_54 = arith.constant 0 : index
    %100 = vector.load %arg14[%c0_53, %c0_54] : memref<25x200xf32, #tpu.memory_space<vmem>>, vector<25x200xf32>
    %cst_55 = arith.constant dense<0.000000e+00> : vector<8x200xf32>
    %101 = tpu.matmul %0, %100, %cst_55 {dimension_numbers = #tpu.dot_dimension_numbers<[1], [0], [0], [1], [0, 0, 1, 1], [], []>} : vector<8x25xf32>, vector<25x200xf32>, vector<8x200xf32> -> vector<8x200xf32>
    %c0_56 = arith.constant 0 : index
    %c0_57 = arith.constant 0 : index
    %102 = vector.load %arg15[%c0_56, %c0_57] : memref<1x200xf32, #tpu.memory_space<vmem>>, vector<1x200xf32>
    %103 = vector.broadcast %99 : vector<8x1xf32> to vector<8x200xf32>
    %104 = vector.broadcast %102 : vector<1x200xf32> to vector<8x200xf32>
    %105 = arith.mulf %103, %104 : vector<8x200xf32>
    %106 = arith.addf %101, %105 : vector<8x200xf32>
    %c0_58 = arith.constant 0 : index
    %c0_59 = arith.constant 0 : index
    %107 = vector.load %arg16[%c0_58, %c0_59] : memref<1x200xf32, #tpu.memory_space<vmem>>, vector<1x200xf32>
    %108 = vector.broadcast %107 : vector<1x200xf32> to vector<8x200xf32>
    %109 = arith.addf %106, %108 : vector<8x200xf32>
    %cst_60 = arith.constant 0.000000e+00 : f32
    %110 = vector.broadcast %cst_60 : f32 to vector<8x200xf32>
    %111 = arith.cmpf ogt, %109, %110 : vector<8x200xf32>
    %cst_61 = arith.constant 0.000000e+00 : f32
    %112 = vector.broadcast %cst_61 : f32 to vector<8x200xf32>
    %113 = arith.minimumf %109, %112 : vector<8x200xf32>
    %114 = math.exp %113 : vector<8x200xf32>
    %cst_62 = arith.constant 1.000000e+00 : f32
    %115 = vector.broadcast %cst_62 : f32 to vector<8x200xf32>
    %116 = arith.subf %114, %115 : vector<8x200xf32>
    %117 = arith.select %111, %109, %116 : vector<8x200xi1>, vector<8x200xf32>
    %c0_63 = arith.constant 0 : index
    %c0_64 = arith.constant 0 : index
    %118 = vector.load %arg17[%c0_63, %c0_64] : memref<200x200xf32, #tpu.memory_space<vmem>>, vector<200x200xf32>
    %cst_65 = arith.constant dense<0.000000e+00> : vector<8x200xf32>
    %119 = tpu.matmul %117, %118, %cst_65 {dimension_numbers = #tpu.dot_dimension_numbers<[1], [0], [0], [1], [0, 0, 1, 1], [], []>} : vector<8x200xf32>, vector<200x200xf32>, vector<8x200xf32> -> vector<8x200xf32>
    %c0_66 = arith.constant 0 : index
    %c0_67 = arith.constant 0 : index
    %120 = vector.load %arg18[%c0_66, %c0_67] : memref<1x200xf32, #tpu.memory_space<vmem>>, vector<1x200xf32>
    %121 = vector.broadcast %120 : vector<1x200xf32> to vector<8x200xf32>
    %122 = arith.addf %119, %121 : vector<8x200xf32>
    %cst_68 = arith.constant 0.000000e+00 : f32
    %123 = vector.broadcast %cst_68 : f32 to vector<8x200xf32>
    %124 = arith.cmpf ogt, %122, %123 : vector<8x200xf32>
    %cst_69 = arith.constant 0.000000e+00 : f32
    %125 = vector.broadcast %cst_69 : f32 to vector<8x200xf32>
    %126 = arith.minimumf %122, %125 : vector<8x200xf32>
    %127 = math.exp %126 : vector<8x200xf32>
    %cst_70 = arith.constant 1.000000e+00 : f32
    %128 = vector.broadcast %cst_70 : f32 to vector<8x200xf32>
    %129 = arith.subf %127, %128 : vector<8x200xf32>
    %130 = arith.select %124, %122, %129 : vector<8x200xi1>, vector<8x200xf32>
    %c0_71 = arith.constant 0 : index
    %c0_72 = arith.constant 0 : index
    %131 = vector.load %arg19[%c0_71, %c0_72] : memref<200x200xf32, #tpu.memory_space<vmem>>, vector<200x200xf32>
    %cst_73 = arith.constant dense<0.000000e+00> : vector<8x200xf32>
    %132 = tpu.matmul %130, %131, %cst_73 {dimension_numbers = #tpu.dot_dimension_numbers<[1], [0], [0], [1], [0, 0, 1, 1], [], []>} : vector<8x200xf32>, vector<200x200xf32>, vector<8x200xf32> -> vector<8x200xf32>
    %c0_74 = arith.constant 0 : index
    %c0_75 = arith.constant 0 : index
    %133 = vector.load %arg20[%c0_74, %c0_75] : memref<1x200xf32, #tpu.memory_space<vmem>>, vector<1x200xf32>
    %134 = vector.broadcast %133 : vector<1x200xf32> to vector<8x200xf32>
    %135 = arith.addf %132, %134 : vector<8x200xf32>
    %cst_76 = arith.constant 0.000000e+00 : f32
    %136 = vector.broadcast %cst_76 : f32 to vector<8x200xf32>
    %137 = arith.cmpf ogt, %135, %136 : vector<8x200xf32>
    %cst_77 = arith.constant 0.000000e+00 : f32
    %138 = vector.broadcast %cst_77 : f32 to vector<8x200xf32>
    %139 = arith.minimumf %135, %138 : vector<8x200xf32>
    %140 = math.exp %139 : vector<8x200xf32>
    %cst_78 = arith.constant 1.000000e+00 : f32
    %141 = vector.broadcast %cst_78 : f32 to vector<8x200xf32>
    %142 = arith.subf %140, %141 : vector<8x200xf32>
    %143 = arith.select %137, %135, %142 : vector<8x200xi1>, vector<8x200xf32>
    %c0_79 = arith.constant 0 : index
    %c0_80 = arith.constant 0 : index
    %144 = vector.load %arg21[%c0_79, %c0_80] : memref<200x400xf32, #tpu.memory_space<vmem>>, vector<200x400xf32>
    %cst_81 = arith.constant dense<0.000000e+00> : vector<8x400xf32>
    %145 = tpu.matmul %143, %144, %cst_81 {dimension_numbers = #tpu.dot_dimension_numbers<[1], [0], [0], [1], [0, 0, 1, 1], [], []>} : vector<8x200xf32>, vector<200x400xf32>, vector<8x400xf32> -> vector<8x400xf32>
    %c0_82 = arith.constant 0 : index
    %c0_83 = arith.constant 0 : index
    %146 = vector.load %arg22[%c0_82, %c0_83] : memref<1x400xf32, #tpu.memory_space<vmem>>, vector<1x400xf32>
    %147 = vector.broadcast %146 : vector<1x400xf32> to vector<8x400xf32>
    %148 = arith.addf %145, %147 : vector<8x400xf32>
    %cst_84 = arith.constant 0.000000e+00 : f32
    %149 = vector.broadcast %cst_84 : f32 to vector<8x400xf32>
    %150 = arith.cmpf ogt, %148, %149 : vector<8x400xf32>
    %cst_85 = arith.constant 0.000000e+00 : f32
    %151 = vector.broadcast %cst_85 : f32 to vector<8x400xf32>
    %152 = arith.minimumf %148, %151 : vector<8x400xf32>
    %153 = math.exp %152 : vector<8x400xf32>
    %cst_86 = arith.constant 1.000000e+00 : f32
    %154 = vector.broadcast %cst_86 : f32 to vector<8x400xf32>
    %155 = arith.subf %153, %154 : vector<8x400xf32>
    %156 = arith.select %150, %148, %155 : vector<8x400xi1>, vector<8x400xf32>
    %c0_87 = arith.constant 0 : index
    %c0_88 = arith.constant 0 : index
    %157 = vector.load %arg23[%c0_87, %c0_88] : memref<400x80xf32, #tpu.memory_space<vmem>>, vector<400x80xf32>
    %cst_89 = arith.constant dense<0.000000e+00> : vector<8x80xf32>
    %158 = tpu.matmul %156, %157, %cst_89 {dimension_numbers = #tpu.dot_dimension_numbers<[1], [0], [0], [1], [0, 0, 1, 1], [], []>} : vector<8x400xf32>, vector<400x80xf32>, vector<8x80xf32> -> vector<8x80xf32>
    %c0_90 = arith.constant 0 : index
    %c0_91 = arith.constant 0 : index
    %159 = vector.load %arg24[%c0_90, %c0_91] : memref<1x80xf32, #tpu.memory_space<vmem>>, vector<1x80xf32>
    %160 = vector.broadcast %159 : vector<1x80xf32> to vector<8x80xf32>
    %161 = arith.addf %158, %160 : vector<8x80xf32>
    %162 = vector.extract_strided_slice %161 {offsets = [0, 0], sizes = [8, 20], strides = [1, 1]} : vector<8x80xf32> to vector<8x20xf32>
    %163 = vector.extract_strided_slice %161 {offsets = [0, 20], sizes = [8, 20], strides = [1, 1]} : vector<8x80xf32> to vector<8x20xf32>
    %cst_92 = arith.constant 0.000000e+00 : f32
    %164 = vector.broadcast %cst_92 : f32 to vector<8x20xf32>
    %165 = arith.maximumf %163, %164 : vector<8x20xf32>
    %166 = math.absf %163 : vector<8x20xf32>
    %cst_93 = arith.constant 0.000000e+00 : f32
    %167 = vector.broadcast %cst_93 : f32 to vector<8x20xf32>
    %168 = arith.subf %167, %166 : vector<8x20xf32>
    %169 = math.exp %168 : vector<8x20xf32>
    %cst_94 = arith.constant 1.000000e+00 : f32
    %170 = vector.broadcast %cst_94 : f32 to vector<8x20xf32>
    %171 = arith.addf %170, %169 : vector<8x20xf32>
    %172 = math.log %171 : vector<8x20xf32>
    %173 = arith.addf %165, %172 : vector<8x20xf32>
    %174 = vector.extract_strided_slice %161 {offsets = [0, 40], sizes = [8, 20], strides = [1, 1]} : vector<8x80xf32> to vector<8x20xf32>
    %175 = vector.extract_strided_slice %161 {offsets = [0, 60], sizes = [8, 20], strides = [1, 1]} : vector<8x80xf32> to vector<8x20xf32>
    %cst_95 = arith.constant 0.000000e+00 : f32
    %176 = vector.broadcast %cst_95 : f32 to vector<8x20xf32>
    %177 = arith.maximumf %175, %176 : vector<8x20xf32>
    %178 = math.absf %175 : vector<8x20xf32>
    %cst_96 = arith.constant 0.000000e+00 : f32
    %179 = vector.broadcast %cst_96 : f32 to vector<8x20xf32>
    %180 = arith.subf %179, %178 : vector<8x20xf32>
    %181 = math.exp %180 : vector<8x20xf32>
    %cst_97 = arith.constant 1.000000e+00 : f32
    %182 = vector.broadcast %cst_97 : f32 to vector<8x20xf32>
    %183 = arith.addf %182, %181 : vector<8x20xf32>
    %184 = math.log %183 : vector<8x20xf32>
    %185 = arith.addf %177, %184 : vector<8x20xf32>
    %186 = vector.broadcast %36 : vector<8x1xf32> to vector<8x20xf32>
    %187 = arith.mulf %162, %186 : vector<8x20xf32>
    %cst_98 = arith.constant 1.000000e+00 : f32
    %188 = vector.broadcast %cst_98 : f32 to vector<8x1xf32>
    %189 = arith.subf %188, %36 : vector<8x1xf32>
    %190 = vector.broadcast %189 : vector<8x1xf32> to vector<8x20xf32>
    %191 = arith.mulf %174, %190 : vector<8x20xf32>
    %192 = arith.addf %187, %191 : vector<8x20xf32>
    %193 = vector.broadcast %36 : vector<8x1xf32> to vector<8x20xf32>
    %194 = arith.mulf %173, %193 : vector<8x20xf32>
    %cst_99 = arith.constant 1.000000e+00 : f32
    %195 = vector.broadcast %cst_99 : f32 to vector<8x1xf32>
    %196 = arith.subf %195, %36 : vector<8x1xf32>
    %197 = vector.broadcast %196 : vector<8x1xf32> to vector<8x20xf32>
    %198 = arith.mulf %185, %197 : vector<8x20xf32>
    %199 = arith.addf %194, %198 : vector<8x20xf32>
    %200 = math.sqrt %199 : vector<8x20xf32>
    %201 = arith.mulf %6, %200 : vector<8x20xf32>
    %202 = arith.addf %192, %201 : vector<8x20xf32>
    %c0_100 = arith.constant 0 : index
    %c0_101 = arith.constant 0 : index
    %203 = vector.load %arg25[%c0_100, %c0_101] : memref<20x200xf32, #tpu.memory_space<vmem>>, vector<20x200xf32>
    %cst_102 = arith.constant dense<0.000000e+00> : vector<8x200xf32>
    %204 = tpu.matmul %202, %203, %cst_102 {dimension_numbers = #tpu.dot_dimension_numbers<[1], [0], [0], [1], [0, 0, 1, 1], [], []>} : vector<8x20xf32>, vector<20x200xf32>, vector<8x200xf32> -> vector<8x200xf32>
    %c0_103 = arith.constant 0 : index
    %c0_104 = arith.constant 0 : index
    %205 = vector.load %arg26[%c0_103, %c0_104] : memref<1x200xf32, #tpu.memory_space<vmem>>, vector<1x200xf32>
    %206 = vector.broadcast %205 : vector<1x200xf32> to vector<8x200xf32>
    %207 = arith.addf %204, %206 : vector<8x200xf32>
    %cst_105 = arith.constant 0.000000e+00 : f32
    %208 = vector.broadcast %cst_105 : f32 to vector<8x200xf32>
    %209 = arith.cmpf ogt, %207, %208 : vector<8x200xf32>
    %cst_106 = arith.constant 0.000000e+00 : f32
    %210 = vector.broadcast %cst_106 : f32 to vector<8x200xf32>
    %211 = arith.minimumf %207, %210 : vector<8x200xf32>
    %212 = math.exp %211 : vector<8x200xf32>
    %cst_107 = arith.constant 1.000000e+00 : f32
    %213 = vector.broadcast %cst_107 : f32 to vector<8x200xf32>
    %214 = arith.subf %212, %213 : vector<8x200xf32>
    %215 = arith.select %209, %207, %214 : vector<8x200xi1>, vector<8x200xf32>
    %c0_108 = arith.constant 0 : index
    %c0_109 = arith.constant 0 : index
    %216 = vector.load %arg27[%c0_108, %c0_109] : memref<200x1xf32, #tpu.memory_space<vmem>>, vector<200x1xf32>
    %cst_110 = arith.constant dense<0.000000e+00> : vector<8x1xf32>
    %217 = tpu.matmul %215, %216, %cst_110 {dimension_numbers = #tpu.dot_dimension_numbers<[1], [0], [0], [1], [0, 0, 1, 1], [], []>} : vector<8x200xf32>, vector<200x1xf32>, vector<8x1xf32> -> vector<8x1xf32>
    %c0_111 = arith.constant 0 : index
    %c0_112 = arith.constant 0 : index
    %218 = vector.load %arg28[%c0_111, %c0_112] : memref<1x1xf32, #tpu.memory_space<vmem>>, vector<1x1xf32>
    %219 = vector.broadcast %218 : vector<1x1xf32> to vector<8x1xf32>
    %220 = arith.addf %217, %219 : vector<8x1xf32>
    %cst_113 = arith.constant 0.000000e+00 : f32
    %221 = vector.broadcast %cst_113 : f32 to vector<8x1xf32>
    %222 = arith.subf %221, %220 : vector<8x1xf32>
    %223 = math.exp %222 : vector<8x1xf32>
    %cst_114 = arith.constant 1.000000e+00 : f32
    %224 = vector.broadcast %cst_114 : f32 to vector<8x1xf32>
    %225 = arith.addf %224, %223 : vector<8x1xf32>
    %cst_115 = arith.constant 1.000000e+00 : f32
    %226 = vector.broadcast %cst_115 : f32 to vector<8x1xf32>
    %227 = arith.divf %226, %225 : vector<8x1xf32>
    %228 = arith.addf %220, %4 : vector<8x1xf32>
    %cst_116 = arith.constant 0.000000e+00 : f32
    %229 = vector.broadcast %cst_116 : f32 to vector<8x1xf32>
    %230 = arith.cmpf ogt, %228, %229 : vector<8x1xf32>
    %231 = arith.extui %230 : vector<8x1xi1> to vector<8x1xi32>
    %232 = arith.sitofp %231 : vector<8x1xi32> to vector<8x1xf32>
    %c0_117 = arith.constant 0 : index
    %c0_118 = arith.constant 0 : index
    %233 = vector.load %arg29[%c0_117, %c0_118] : memref<20x200xf32, #tpu.memory_space<vmem>>, vector<20x200xf32>
    %cst_119 = arith.constant dense<0.000000e+00> : vector<8x200xf32>
    %234 = tpu.matmul %202, %233, %cst_119 {dimension_numbers = #tpu.dot_dimension_numbers<[1], [0], [0], [1], [0, 0, 1, 1], [], []>} : vector<8x20xf32>, vector<20x200xf32>, vector<8x200xf32> -> vector<8x200xf32>
    %c0_120 = arith.constant 0 : index
    %c0_121 = arith.constant 0 : index
    %235 = vector.load %arg30[%c0_120, %c0_121] : memref<1x200xf32, #tpu.memory_space<vmem>>, vector<1x200xf32>
    %236 = vector.broadcast %235 : vector<1x200xf32> to vector<8x200xf32>
    %237 = arith.addf %234, %236 : vector<8x200xf32>
    %cst_122 = arith.constant 0.000000e+00 : f32
    %238 = vector.broadcast %cst_122 : f32 to vector<8x200xf32>
    %239 = arith.cmpf ogt, %237, %238 : vector<8x200xf32>
    %cst_123 = arith.constant 0.000000e+00 : f32
    %240 = vector.broadcast %cst_123 : f32 to vector<8x200xf32>
    %241 = arith.minimumf %237, %240 : vector<8x200xf32>
    %242 = math.exp %241 : vector<8x200xf32>
    %cst_124 = arith.constant 1.000000e+00 : f32
    %243 = vector.broadcast %cst_124 : f32 to vector<8x200xf32>
    %244 = arith.subf %242, %243 : vector<8x200xf32>
    %245 = arith.select %239, %237, %244 : vector<8x200xi1>, vector<8x200xf32>
    %c0_125 = arith.constant 0 : index
    %c0_126 = arith.constant 0 : index
    %246 = vector.load %arg31[%c0_125, %c0_126] : memref<200x200xf32, #tpu.memory_space<vmem>>, vector<200x200xf32>
    %cst_127 = arith.constant dense<0.000000e+00> : vector<8x200xf32>
    %247 = tpu.matmul %245, %246, %cst_127 {dimension_numbers = #tpu.dot_dimension_numbers<[1], [0], [0], [1], [0, 0, 1, 1], [], []>} : vector<8x200xf32>, vector<200x200xf32>, vector<8x200xf32> -> vector<8x200xf32>
    %c0_128 = arith.constant 0 : index
    %c0_129 = arith.constant 0 : index
    %248 = vector.load %arg32[%c0_128, %c0_129] : memref<1x200xf32, #tpu.memory_space<vmem>>, vector<1x200xf32>
    %249 = vector.broadcast %248 : vector<1x200xf32> to vector<8x200xf32>
    %250 = arith.addf %247, %249 : vector<8x200xf32>
    %cst_130 = arith.constant 0.000000e+00 : f32
    %251 = vector.broadcast %cst_130 : f32 to vector<8x200xf32>
    %252 = arith.cmpf ogt, %250, %251 : vector<8x200xf32>
    %cst_131 = arith.constant 0.000000e+00 : f32
    %253 = vector.broadcast %cst_131 : f32 to vector<8x200xf32>
    %254 = arith.minimumf %250, %253 : vector<8x200xf32>
    %255 = math.exp %254 : vector<8x200xf32>
    %cst_132 = arith.constant 1.000000e+00 : f32
    %256 = vector.broadcast %cst_132 : f32 to vector<8x200xf32>
    %257 = arith.subf %255, %256 : vector<8x200xf32>
    %258 = arith.select %252, %250, %257 : vector<8x200xi1>, vector<8x200xf32>
    %c0_133 = arith.constant 0 : index
    %c0_134 = arith.constant 0 : index
    %259 = vector.load %arg33[%c0_133, %c0_134] : memref<200x200xf32, #tpu.memory_space<vmem>>, vector<200x200xf32>
    %cst_135 = arith.constant dense<0.000000e+00> : vector<8x200xf32>
    %260 = tpu.matmul %258, %259, %cst_135 {dimension_numbers = #tpu.dot_dimension_numbers<[1], [0], [0], [1], [0, 0, 1, 1], [], []>} : vector<8x200xf32>, vector<200x200xf32>, vector<8x200xf32> -> vector<8x200xf32>
    %c0_136 = arith.constant 0 : index
    %c0_137 = arith.constant 0 : index
    %261 = vector.load %arg34[%c0_136, %c0_137] : memref<1x200xf32, #tpu.memory_space<vmem>>, vector<1x200xf32>
    %262 = vector.broadcast %261 : vector<1x200xf32> to vector<8x200xf32>
    %263 = arith.addf %260, %262 : vector<8x200xf32>
    %cst_138 = arith.constant 0.000000e+00 : f32
    %264 = vector.broadcast %cst_138 : f32 to vector<8x200xf32>
    %265 = arith.cmpf ogt, %263, %264 : vector<8x200xf32>
    %cst_139 = arith.constant 0.000000e+00 : f32
    %266 = vector.broadcast %cst_139 : f32 to vector<8x200xf32>
    %267 = arith.minimumf %263, %266 : vector<8x200xf32>
    %268 = math.exp %267 : vector<8x200xf32>
    %cst_140 = arith.constant 1.000000e+00 : f32
    %269 = vector.broadcast %cst_140 : f32 to vector<8x200xf32>
    %270 = arith.subf %268, %269 : vector<8x200xf32>
    %271 = arith.select %265, %263, %270 : vector<8x200xi1>, vector<8x200xf32>
    %c0_141 = arith.constant 0 : index
    %c0_142 = arith.constant 0 : index
    %272 = vector.load %arg35[%c0_141, %c0_142] : memref<200x12xf32, #tpu.memory_space<vmem>>, vector<200x12xf32>
    %cst_143 = arith.constant dense<0.000000e+00> : vector<8x12xf32>
    %273 = tpu.matmul %271, %272, %cst_143 {dimension_numbers = #tpu.dot_dimension_numbers<[1], [0], [0], [1], [0, 0, 1, 1], [], []>} : vector<8x200xf32>, vector<200x12xf32>, vector<8x12xf32> -> vector<8x12xf32>
    %c0_144 = arith.constant 0 : index
    %c0_145 = arith.constant 0 : index
    %274 = vector.load %arg36[%c0_144, %c0_145] : memref<1x12xf32, #tpu.memory_space<vmem>>, vector<1x12xf32>
    %275 = vector.broadcast %274 : vector<1x12xf32> to vector<8x12xf32>
    %276 = arith.addf %273, %275 : vector<8x12xf32>
    %277 = vector.extract_strided_slice %276 {offsets = [0, 0], sizes = [8, 6], strides = [1, 1]} : vector<8x12xf32> to vector<8x6xf32>
    %278 = vector.extract_strided_slice %276 {offsets = [0, 6], sizes = [8, 6], strides = [1, 1]} : vector<8x12xf32> to vector<8x6xf32>
    %cst_146 = arith.constant 0.000000e+00 : f32
    %279 = vector.broadcast %cst_146 : f32 to vector<8x6xf32>
    %280 = arith.maximumf %278, %279 : vector<8x6xf32>
    %281 = math.absf %278 : vector<8x6xf32>
    %cst_147 = arith.constant 0.000000e+00 : f32
    %282 = vector.broadcast %cst_147 : f32 to vector<8x6xf32>
    %283 = arith.subf %282, %281 : vector<8x6xf32>
    %284 = math.exp %283 : vector<8x6xf32>
    %cst_148 = arith.constant 1.000000e+00 : f32
    %285 = vector.broadcast %cst_148 : f32 to vector<8x6xf32>
    %286 = arith.addf %285, %284 : vector<8x6xf32>
    %287 = math.log %286 : vector<8x6xf32>
    %288 = arith.addf %280, %287 : vector<8x6xf32>
    %c0_149 = arith.constant 0 : index
    %c0_150 = arith.constant 0 : index
    %289 = vector.load %arg37[%c0_149, %c0_150] : memref<200x200xf32, #tpu.memory_space<vmem>>, vector<200x200xf32>
    %cst_151 = arith.constant dense<0.000000e+00> : vector<8x200xf32>
    %290 = tpu.matmul %258, %289, %cst_151 {dimension_numbers = #tpu.dot_dimension_numbers<[1], [0], [0], [1], [0, 0, 1, 1], [], []>} : vector<8x200xf32>, vector<200x200xf32>, vector<8x200xf32> -> vector<8x200xf32>
    %c0_152 = arith.constant 0 : index
    %c0_153 = arith.constant 0 : index
    %291 = vector.load %arg38[%c0_152, %c0_153] : memref<1x200xf32, #tpu.memory_space<vmem>>, vector<1x200xf32>
    %292 = vector.broadcast %291 : vector<1x200xf32> to vector<8x200xf32>
    %293 = arith.addf %290, %292 : vector<8x200xf32>
    %cst_154 = arith.constant 0.000000e+00 : f32
    %294 = vector.broadcast %cst_154 : f32 to vector<8x200xf32>
    %295 = arith.cmpf ogt, %293, %294 : vector<8x200xf32>
    %cst_155 = arith.constant 0.000000e+00 : f32
    %296 = vector.broadcast %cst_155 : f32 to vector<8x200xf32>
    %297 = arith.minimumf %293, %296 : vector<8x200xf32>
    %298 = math.exp %297 : vector<8x200xf32>
    %cst_156 = arith.constant 1.000000e+00 : f32
    %299 = vector.broadcast %cst_156 : f32 to vector<8x200xf32>
    %300 = arith.subf %298, %299 : vector<8x200xf32>
    %301 = arith.select %295, %293, %300 : vector<8x200xi1>, vector<8x200xf32>
    %c0_157 = arith.constant 0 : index
    %c0_158 = arith.constant 0 : index
    %302 = vector.load %arg39[%c0_157, %c0_158] : memref<200x19xf32, #tpu.memory_space<vmem>>, vector<200x19xf32>
    %cst_159 = arith.constant dense<0.000000e+00> : vector<8x19xf32>
    %303 = tpu.matmul %301, %302, %cst_159 {dimension_numbers = #tpu.dot_dimension_numbers<[1], [0], [0], [1], [0, 0, 1, 1], [], []>} : vector<8x200xf32>, vector<200x19xf32>, vector<8x19xf32> -> vector<8x19xf32>
    %c0_160 = arith.constant 0 : index
    %c0_161 = arith.constant 0 : index
    %304 = vector.load %arg40[%c0_160, %c0_161] : memref<1x19xf32, #tpu.memory_space<vmem>>, vector<1x19xf32>
    %305 = vector.broadcast %304 : vector<1x19xf32> to vector<8x19xf32>
    %306 = arith.addf %303, %305 : vector<8x19xf32>
    %cst_162 = arith.constant 0.000000e+00 : f32
    %307 = vector.broadcast %cst_162 : f32 to vector<8x19xf32>
    %308 = arith.subf %307, %306 : vector<8x19xf32>
    %309 = math.exp %308 : vector<8x19xf32>
    %cst_163 = arith.constant 1.000000e+00 : f32
    %310 = vector.broadcast %cst_163 : f32 to vector<8x19xf32>
    %311 = arith.addf %310, %309 : vector<8x19xf32>
    %cst_164 = arith.constant 1.000000e+00 : f32
    %312 = vector.broadcast %cst_164 : f32 to vector<8x19xf32>
    %313 = arith.divf %312, %311 : vector<8x19xf32>
    %c0_165 = arith.constant 0 : index
    %c0_166 = arith.constant 0 : index
    %314 = vector.load %arg41[%c0_165, %c0_166] : memref<20x400xf32, #tpu.memory_space<vmem>>, vector<20x400xf32>
    %cst_167 = arith.constant dense<0.000000e+00> : vector<8x400xf32>
    %315 = tpu.matmul %202, %314, %cst_167 {dimension_numbers = #tpu.dot_dimension_numbers<[1], [0], [0], [1], [0, 0, 1, 1], [], []>} : vector<8x20xf32>, vector<20x400xf32>, vector<8x400xf32> -> vector<8x400xf32>
    %c0_168 = arith.constant 0 : index
    %c0_169 = arith.constant 0 : index
    %316 = vector.load %arg42[%c0_168, %c0_169] : memref<1x400xf32, #tpu.memory_space<vmem>>, vector<1x400xf32>
    %317 = vector.broadcast %316 : vector<1x400xf32> to vector<8x400xf32>
    %318 = arith.addf %315, %317 : vector<8x400xf32>
    %cst_170 = arith.constant 0.000000e+00 : f32
    %319 = vector.broadcast %cst_170 : f32 to vector<8x400xf32>
    %320 = arith.cmpf ogt, %318, %319 : vector<8x400xf32>
    %cst_171 = arith.constant 0.000000e+00 : f32
    %321 = vector.broadcast %cst_171 : f32 to vector<8x400xf32>
    %322 = arith.minimumf %318, %321 : vector<8x400xf32>
    %323 = math.exp %322 : vector<8x400xf32>
    %cst_172 = arith.constant 1.000000e+00 : f32
    %324 = vector.broadcast %cst_172 : f32 to vector<8x400xf32>
    %325 = arith.subf %323, %324 : vector<8x400xf32>
    %326 = arith.select %320, %318, %325 : vector<8x400xi1>, vector<8x400xf32>
    %c0_173 = arith.constant 0 : index
    %c0_174 = arith.constant 0 : index
    %327 = vector.load %arg43[%c0_173, %c0_174] : memref<400x400xf32, #tpu.memory_space<vmem>>, vector<400x400xf32>
    %cst_175 = arith.constant dense<0.000000e+00> : vector<8x400xf32>
    %328 = tpu.matmul %326, %327, %cst_175 {dimension_numbers = #tpu.dot_dimension_numbers<[1], [0], [0], [1], [0, 0, 1, 1], [], []>} : vector<8x400xf32>, vector<400x400xf32>, vector<8x400xf32> -> vector<8x400xf32>
    %c0_176 = arith.constant 0 : index
    %c0_177 = arith.constant 0 : index
    %329 = vector.load %arg44[%c0_176, %c0_177] : memref<1x400xf32, #tpu.memory_space<vmem>>, vector<1x400xf32>
    %330 = vector.broadcast %329 : vector<1x400xf32> to vector<8x400xf32>
    %331 = arith.addf %328, %330 : vector<8x400xf32>
    %cst_178 = arith.constant 0.000000e+00 : f32
    %332 = vector.broadcast %cst_178 : f32 to vector<8x400xf32>
    %333 = arith.cmpf ogt, %331, %332 : vector<8x400xf32>
    %cst_179 = arith.constant 0.000000e+00 : f32
    %334 = vector.broadcast %cst_179 : f32 to vector<8x400xf32>
    %335 = arith.minimumf %331, %334 : vector<8x400xf32>
    %336 = math.exp %335 : vector<8x400xf32>
    %cst_180 = arith.constant 1.000000e+00 : f32
    %337 = vector.broadcast %cst_180 : f32 to vector<8x400xf32>
    %338 = arith.subf %336, %337 : vector<8x400xf32>
    %339 = arith.select %333, %331, %338 : vector<8x400xi1>, vector<8x400xf32>
    %c0_181 = arith.constant 0 : index
    %c0_182 = arith.constant 0 : index
    %340 = vector.load %arg45[%c0_181, %c0_182] : memref<400x400xf32, #tpu.memory_space<vmem>>, vector<400x400xf32>
    %cst_183 = arith.constant dense<0.000000e+00> : vector<8x400xf32>
    %341 = tpu.matmul %339, %340, %cst_183 {dimension_numbers = #tpu.dot_dimension_numbers<[1], [0], [0], [1], [0, 0, 1, 1], [], []>} : vector<8x400xf32>, vector<400x400xf32>, vector<8x400xf32> -> vector<8x400xf32>
    %c0_184 = arith.constant 0 : index
    %c0_185 = arith.constant 0 : index
    %342 = vector.load %arg46[%c0_184, %c0_185] : memref<1x400xf32, #tpu.memory_space<vmem>>, vector<1x400xf32>
    %343 = vector.broadcast %342 : vector<1x400xf32> to vector<8x400xf32>
    %344 = arith.addf %341, %343 : vector<8x400xf32>
    %cst_186 = arith.constant 0.000000e+00 : f32
    %345 = vector.broadcast %cst_186 : f32 to vector<8x400xf32>
    %346 = arith.cmpf ogt, %344, %345 : vector<8x400xf32>
    %cst_187 = arith.constant 0.000000e+00 : f32
    %347 = vector.broadcast %cst_187 : f32 to vector<8x400xf32>
    %348 = arith.minimumf %344, %347 : vector<8x400xf32>
    %349 = math.exp %348 : vector<8x400xf32>
    %cst_188 = arith.constant 1.000000e+00 : f32
    %350 = vector.broadcast %cst_188 : f32 to vector<8x400xf32>
    %351 = arith.subf %349, %350 : vector<8x400xf32>
    %352 = arith.select %346, %344, %351 : vector<8x400xi1>, vector<8x400xf32>
    %c0_189 = arith.constant 0 : index
    %c0_190 = arith.constant 0 : index
    %353 = vector.load %arg47[%c0_189, %c0_190] : memref<400x2xf32, #tpu.memory_space<vmem>>, vector<400x2xf32>
    %cst_191 = arith.constant dense<0.000000e+00> : vector<8x2xf32>
    %354 = tpu.matmul %352, %353, %cst_191 {dimension_numbers = #tpu.dot_dimension_numbers<[1], [0], [0], [1], [0, 0, 1, 1], [], []>} : vector<8x400xf32>, vector<400x2xf32>, vector<8x2xf32> -> vector<8x2xf32>
    %c0_192 = arith.constant 0 : index
    %c0_193 = arith.constant 0 : index
    %355 = vector.load %arg48[%c0_192, %c0_193] : memref<1x2xf32, #tpu.memory_space<vmem>>, vector<1x2xf32>
    %356 = vector.broadcast %355 : vector<1x2xf32> to vector<8x2xf32>
    %357 = arith.addf %354, %356 : vector<8x2xf32>
    %358 = vector.extract_strided_slice %357 {offsets = [0, 0], sizes = [8, 1], strides = [1, 1]} : vector<8x2xf32> to vector<8x1xf32>
    %359 = arith.mulf %358, %232 : vector<8x1xf32>
    %360 = vector.extract_strided_slice %357 {offsets = [0, 1], sizes = [8, 1], strides = [1, 1]} : vector<8x2xf32> to vector<8x1xf32>
    %cst_194 = arith.constant 1.000000e+00 : f32
    %361 = vector.broadcast %cst_194 : f32 to vector<8x1xf32>
    %362 = arith.subf %361, %232 : vector<8x1xf32>
    %363 = arith.mulf %360, %362 : vector<8x1xf32>
    %364 = arith.addf %359, %363 : vector<8x1xf32>
    %cst_195 = arith.constant 0.000000e+00 : f32
    %365 = vector.broadcast %cst_195 : f32 to vector<8x1xf32>
    %366 = arith.subf %365, %364 : vector<8x1xf32>
    %367 = math.exp %366 : vector<8x1xf32>
    %cst_196 = arith.constant 1.000000e+00 : f32
    %368 = vector.broadcast %cst_196 : f32 to vector<8x1xf32>
    %369 = arith.addf %368, %367 : vector<8x1xf32>
    %cst_197 = arith.constant 1.000000e+00 : f32
    %370 = vector.broadcast %cst_197 : f32 to vector<8x1xf32>
    %371 = arith.divf %370, %369 : vector<8x1xf32>
    %372 = arith.cmpf olt, %5, %371 : vector<8x1xf32>
    %373 = arith.extui %372 : vector<8x1xi1> to vector<8x1xi32>
    %374 = arith.sitofp %373 : vector<8x1xi32> to vector<8x1xf32>
    %c0_198 = arith.constant 0 : index
    %c0_199 = arith.constant 0 : index
    %375 = vector.load %arg49[%c0_198, %c0_199] : memref<8x1xf32, #tpu.memory_space<vmem>>, vector<8x1xf32>
    tpu.vector_store %arg49[%c0_198, %c0_199], %31 {strides = array<i32>} : memref<8x1xf32, #tpu.memory_space<vmem>>, vector<8x1xf32>,
    %c0_200 = arith.constant 0 : index
    %c0_201 = arith.constant 0 : index
    %376 = vector.load %arg50[%c0_200, %c0_201] : memref<8x1xf32, #tpu.memory_space<vmem>>, vector<8x1xf32>
    tpu.vector_store %arg50[%c0_200, %c0_201], %94 {strides = array<i32>} : memref<8x1xf32, #tpu.memory_space<vmem>>, vector<8x1xf32>,
    %c0_202 = arith.constant 0 : index
    %c0_203 = arith.constant 0 : index
    %377 = vector.load %arg51[%c0_202, %c0_203] : memref<8x20xf32, #tpu.memory_space<vmem>>, vector<8x20xf32>
    tpu.vector_store %arg51[%c0_202, %c0_203], %192 {strides = array<i32>} : memref<8x20xf32, #tpu.memory_space<vmem>>, vector<8x20xf32>,
    %c0_204 = arith.constant 0 : index
    %c0_205 = arith.constant 0 : index
    %378 = vector.load %arg52[%c0_204, %c0_205] : memref<8x20xf32, #tpu.memory_space<vmem>>, vector<8x20xf32>
    tpu.vector_store %arg52[%c0_204, %c0_205], %199 {strides = array<i32>} : memref<8x20xf32, #tpu.memory_space<vmem>>, vector<8x20xf32>,
    %c0_206 = arith.constant 0 : index
    %c0_207 = arith.constant 0 : index
    %379 = vector.load %arg53[%c0_206, %c0_207] : memref<8x1xf32, #tpu.memory_space<vmem>>, vector<8x1xf32>
    tpu.vector_store %arg53[%c0_206, %c0_207], %227 {strides = array<i32>} : memref<8x1xf32, #tpu.memory_space<vmem>>, vector<8x1xf32>,
    %c0_208 = arith.constant 0 : index
    %c0_209 = arith.constant 0 : index
    %380 = vector.load %arg54[%c0_208, %c0_209] : memref<8x6xf32, #tpu.memory_space<vmem>>, vector<8x6xf32>
    tpu.vector_store %arg54[%c0_208, %c0_209], %277 {strides = array<i32>} : memref<8x6xf32, #tpu.memory_space<vmem>>, vector<8x6xf32>,
    %c0_210 = arith.constant 0 : index
    %c0_211 = arith.constant 0 : index
    %381 = vector.load %arg55[%c0_210, %c0_211] : memref<8x6xf32, #tpu.memory_space<vmem>>, vector<8x6xf32>
    tpu.vector_store %arg55[%c0_210, %c0_211], %288 {strides = array<i32>} : memref<8x6xf32, #tpu.memory_space<vmem>>, vector<8x6xf32>,
    %c0_212 = arith.constant 0 : index
    %c0_213 = arith.constant 0 : index
    %382 = vector.load %arg56[%c0_212, %c0_213] : memref<8x19xf32, #tpu.memory_space<vmem>>, vector<8x19xf32>
    tpu.vector_store %arg56[%c0_212, %c0_213], %313 {strides = array<i32>} : memref<8x19xf32, #tpu.memory_space<vmem>>, vector<8x19xf32>,
    %c0_214 = arith.constant 0 : index
    %c0_215 = arith.constant 0 : index
    %383 = vector.load %arg57[%c0_214, %c0_215] : memref<8x1xf32, #tpu.memory_space<vmem>>, vector<8x1xf32>
    tpu.vector_store %arg57[%c0_214, %c0_215], %371 {strides = array<i32>} : memref<8x1xf32, #tpu.memory_space<vmem>>, vector<8x1xf32>,
    %c0_216 = arith.constant 0 : index
    %c0_217 = arith.constant 0 : index
    %384 = vector.load %arg58[%c0_216, %c0_217] : memref<8x1xf32, #tpu.memory_space<vmem>>, vector<8x1xf32>
    tpu.vector_store %arg58[%c0_216, %c0_217], %374 {strides = array<i32>} : memref<8x1xf32, #tpu.memory_space<vmem>>, vector<8x1xf32>,
    return
  }
}

</mosaic_0001>

<bundles_post_ra>
// kernel: cevae_forward.3
= control target key start
LH: loop header
LB: loop body
LE: loop exit
PB: predicated region body
PF: predicated region fallthrough
CT: control target
= control target key end

     0   :  { %s7837_s6 = smov 1   ;;  %s7838_s10 = smov 2   ;;  %s9370_s0 = inlined_call_operand.smem [shape: u32[59], index: -1, kind: input, shape index: {}] }
   0x1   :  { %s7958_s5 = sld [smem:[%s9370_s0]]   ;;  %s7839_s14 = smov 3  }
   0x2   :  { %s7963_s9 = sld [smem:[%s9370_s0 + %s7837_s6]]   ;;  %s7840_s18 = smov 4  }
   0x3   :  { %s7968_s13 = sld [smem:[%s9370_s0 + %s7838_s10]]   ;;  %s7841_s22 = smov 5  }
   0x4   :  { %s7973_s17 = sld [smem:[%s9370_s0 + %s7839_s14]]   ;;  %s7842_s26 = smov 6  }
   0x5   :  { %s7978_s21 = sld [smem:[%s9370_s0 + %s7840_s18]]   ;;  %s7843_s30 = smov 7  }
   0x6   :  { %s5234_s25 = sld [smem:[%s9370_s0 + %s7841_s22]]   ;;  %s7844_s4 = smov 8  }
   0x7   :  { %9405 = sst [smem:[#allocation81_spill]] %s7958_s5  ;;  %s7845_s10 = smov 9  }
   0x8   :  { %9406 = sst [smem:[#allocation82_spill]] %s7963_s9  ;;  %s7846_s15 = smov 10  }
   0x9   :  { %s7986_s29 = sld [smem:[%s9370_s0 + %s7842_s26]]   ;;  %s7847_s20 = smov 11  }
   0xa   :  { %9407 = sst [smem:[#allocation83_spill]] %s7973_s17  ;;  %s7848_s26 = smov 12  }
   0xb   :  { %9408 = sst [smem:[#allocation84_spill]] %s7978_s21  ;;  %s7849_s1 = smov 13  }
   0xc   :  { %s7991_s3 = sld [smem:[%s9370_s0 + %s7843_s30]]   ;;  %v123_v0 = vstv %s5234_s25  ;;  %s7850_s7 = smov 14  }
   0xd   :  { %s7996_s8 = sld [smem:[%s9370_s0 + %s7844_s4]]   ;;  %124 = vst [vmem:[#allocation2] sm:$0x1] %v123_v0  ;;  %s7851_s25 = smov 15  }
   0xe   :  { %s8001_s14 = sld [smem:[%s9370_s0 + %s7845_s10]]   ;;  %s7853_s27 = smov 17  }
   0xf   :  { %9409 = sst [smem:[#allocation85_spill]] %s7986_s29  ;;  %s7854_s4 = smov 18  }
  0x10   :  { %s8006_s19 = sld [smem:[%s9370_s0 + %s7846_s15]]  }
  0x11   :  { %s8011_s24 = sld [smem:[%s9370_s0 + %s7847_s20]]   ;;  %s7852_s20 = smov 16  }
  0x12   :  { %s8016_s30 = sld [smem:[%s9370_s0 + %s7848_s26]]  }
  0x13   :  { %9410 = sst [smem:[#allocation86_spill]] %s7996_s8 }
  0x14   :  { %9411 = sst [smem:[#allocation87_spill]] %s8001_s14 }
  0x15   :  { %s8021_s6 = sld [smem:[%s9370_s0 + %s7849_s1]]  }
  0x16   :  { %9412 = sst [smem:[#allocation88_spill]] %s8006_s19 }
  0x17   :  { %9413 = sst [smem:[#allocation89_spill]] %s8011_s24 }
  0x18   :  { %9414 = sst [smem:[#allocation90_spill]] %s8016_s30 }
  0x19   :  { %s8026_s12 = sld [smem:[%s9370_s0 + %s7850_s7]]  }
  0x1a   :  { %s8031_s18 = sld [smem:[%s9370_s0 + %s7851_s25]]   ;;  %s7855_s25 = smov 19  }
  0x1b   :  { %s8036_s26 = sld [smem:[%s9370_s0 + %s7852_s20]]   ;;  %s7856_s20 = smov 20  }
  0x1c   :  { %s8041_s2 = sld [smem:[%s9370_s0 + %s7853_s27]]   ;;  %s7857_s27 = smov 21  }
  0x1d   :  { %s8046_s11 = sld [smem:[%s9370_s0 + %s7854_s4]]   ;;  %s7858_s4 = smov 22  }
  0x1e   :  { %s8051_s24 = sld [smem:[%s9370_s0 + %s7855_s25]]   ;;  %s7859_s25 = smov 23  }
  0x1f   :  { %9415 = sst [smem:[#allocation91_spill]] %s8026_s12 }
  0x20   :  { %s8056_s9 = sld [smem:[%s9370_s0 + %s7856_s20]]   ;;  %s7860_s20 = smov 24  }
  0x21   :  { %9416 = sst [smem:[#allocation92_spill]] %s8036_s26 }
  0x22   :  { %s8061_s30 = sld [smem:[%s9370_s0 + %s7857_s27]]   ;;  %s7861_s27 = smov 25  }
  0x23   :  { %9417 = sst [smem:[#allocation93_spill]] %s8046_s11 }
  0x24   :  { %s8066_s17 = sld [smem:[%s9370_s0 + %s7858_s4]]   ;;  %s7862_s4 = smov 26  }
  0x25   :  { %s8071_s19 = sld [smem:[%s9370_s0 + %s7859_s25]]   ;;  %s7863_s25 = smov 27  }
  0x26   :  { %9418 = sst [smem:[#allocation94_spill]] %s8056_s9 }
  0x27   :  { %s8076_s8 = sld [smem:[%s9370_s0 + %s7860_s20]]   ;;  %s7864_s20 = smov 29  }
  0x28   :  { %s8081_s21 = sld [smem:[%s9370_s0 + %s7861_s27]]   ;;  %s7865_s27 = smov 30  }
  0x29   :  { %s8096_s9 = sld [smem:[%s9370_s0 + %s7864_s20]]   ;;  %s7868_s20 = smov 33  }
  0x2a   :  { %9419 = sst [smem:[#allocation95_spill]] %s8066_s17 }
  0x2b   :  { %9420 = sst [smem:[#allocation96_spill]] %s8071_s19 }
  0x2c   :  { %s8086_s17 = sld [smem:[%s9370_s0 + %s7862_s4]]   ;;  %s7866_s4 = smov 31  }
  0x2d   :  { %s8091_s19 = sld [smem:[%s9370_s0 + %s7863_s25]]   ;;  %s7867_s25 = smov 32  }
  0x2e   :  { %9421 = sst [smem:[#allocation97_spill]] %s8081_s21 }
  0x2f   :  { %9423 = sst [smem:[#allocation99_spill]] %s8096_s9 }
  0x30   :  { %s8101_s21 = sld [smem:[%s9370_s0 + %s7865_s27]]   ;;  %s7869_s27 = smov 34  }
  0x31   :  { %s8106_s11 = sld [smem:[%s9370_s0 + %s7866_s4]]   ;;  %s7870_s4 = smov 35  }
  0x32   :  { %s8116_s9 = sld [smem:[%s9370_s0 + %s7868_s20]]   ;;  %s7872_s20 = smov 37  }
  0x33   :  { %9422 = sst [smem:[#allocation98_spill]] %s8091_s19 }
  0x34   :  { %s8111_s19 = sld [smem:[%s9370_s0 + %s7867_s25]]   ;;  %s7871_s25 = smov 36  }
  0x35   :  { %s8121_s26 = sld [smem:[%s9370_s0 + %s7869_s27]]   ;;  %s7873_s27 = smov 38  }
  0x36   :  { %s8131_s12 = sld [smem:[%s9370_s0 + %s7871_s25]]   ;;  %s7875_s25 = smov 40  }
  0x37   :  { %9424 = sst [smem:[#allocation100_spill]] %s8106_s11 }
  0x38   :  { %9425 = sst [smem:[#allocation101_spill]] %s8116_s9 }
  0x39   :  { %s8126_s11 = sld [smem:[%s9370_s0 + %s7870_s4]]   ;;  %s7874_s4 = smov 39  }
  0x3a   :  { %s8136_s9 = sld [smem:[%s9370_s0 + %s7872_s20]]   ;;  %s7876_s20 = smov 41  }
  0x3b   :  { %s8141_s14 = sld [smem:[%s9370_s0 + %s7873_s27]]   ;;  %s7877_s27 = smov 42  }
  0x3c   :  { %9427 = sst [smem:[#allocation103_spill]] %s8131_s12 }
  0x3d   :  { %s8151_s12 = sld [smem:[%s9370_s0 + %s7875_s25]]   ;;  %s7879_s25 = smov 44  }
  0x3e   :  { %s8156_s29 = sld [smem:[%s9370_s0 + %s7876_s20]]   ;;  %s7880_s20 = smov 45  }
  0x3f   :  { %9426 = sst [smem:[#allocation102_spill]] %s8126_s11 }
  0x40   :  { %s8146_s11 = sld [smem:[%s9370_s0 + %s7874_s4]]   ;;  %s7878_s4 = smov 43  }
  0x41   :  { %9428 = sst [smem:[#allocation104_spill]] %s8141_s14 }
  0x42   :  { %s8161_s14 = sld [smem:[%s9370_s0 + %s7877_s27]]   ;;  %s7881_s27 = smov 46  }
  0x43   :  { %s8171_s5 = sld [smem:[%s9370_s0 + %s7879_s25]]   ;;  %s7883_s25 = smov 48  }
  0x44   :  { %9430 = sst [smem:[#allocation106_spill]] %s8156_s29 }
  0x45   :  { %s8176_s29 = sld [smem:[%s9370_s0 + %s7880_s20]]   ;;  %s7884_s20 = smov 49  }
  0x46   :  { %9429 = sst [smem:[#allocation105_spill]] %s8146_s11 }
  0x47   :  { %s8166_s11 = sld [smem:[%s9370_s0 + %s7878_s4]]   ;;  %s7882_s4 = smov 47  }
  0x48   :  { %9431 = sst [smem:[#allocation107_spill]] %s8161_s14 }
  0x49   :  { %9433 = sst [smem:[#allocation109_spill]] %s8171_s5 }
  0x4a   :  { %s8181_s14 = sld [smem:[%s9370_s0 + %s7881_s27]]   ;;  %s7885_s27 = smov 50  }
  0x4b   :  { %9434 = sst [smem:[#allocation110_spill]] %s8176_s29 }
  0x4c   :  { %s8191_s5 = sld [smem:[%s9370_s0 + %s7883_s25]]   ;;  %s7887_s25 = smov 52  }
  0x4d   :  { %9432 = sst [smem:[#allocation108_spill]] %s8166_s11 }
  0x4e   :  { %s8186_s11 = sld [smem:[%s9370_s0 + %s7882_s4]]   ;;  %s7886_s4 = smov 51  }
  0x4f   :  { %s8196_s29 = sld [smem:[%s9370_s0 + %s7884_s20]]   ;;  %s7888_s20 = smov 53  }
  0x50   :  { %9435 = sst [smem:[#allocation111_spill]] %s8181_s14 }
  0x51   :  { %s8201_s14 = sld [smem:[%s9370_s0 + %s7885_s27]]   ;;  %s7889_s27 = smov 54  }
  0x52   :  { %9437 = sst [smem:[#allocation113_spill]] %s8191_s5 }
  0x53   :  { %s8211_s5 = sld [smem:[%s9370_s0 + %s7887_s25]]   ;;  %s7891_s25 = smov 56  }
  0x54   :  { %9436 = sst [smem:[#allocation112_spill]] %s8186_s11 }
  0x55   :  { %9438 = sst [smem:[#allocation114_spill]] %s8196_s29 }
  0x56   :  { %s8206_s11 = sld [smem:[%s9370_s0 + %s7886_s4]]   ;;  %s7890_s4 = smov 55  }
  0x57   :  { %9439 = sst [smem:[#allocation115_spill]] %s8201_s14 }
  0x58   :  { %s8216_s29 = sld [smem:[%s9370_s0 + %s7888_s20]]   ;;  %s7892_s20 = smov 57  }
  0x59   :  { %9441 = sst [smem:[#allocation117_spill]] %s8211_s5 }
  0x5a   :  { %s8221_s14 = sld [smem:[%s9370_s0 + %s7889_s27]]   ;;  %s7893_s27 = smov 58  }
  0x5b   :  { %s8231_s5 = sld [smem:[%s9370_s0 + %s7891_s25]]  }
  0x5c   :  { %9440 = sst [smem:[#allocation116_spill]] %s8206_s11 }
  0x5d   :  { %s8226_s11 = sld [smem:[%s9370_s0 + %s7890_s4]]   ;;  %s7894_s4 = smov 28  }
  0x5e   :  { %9442 = sst [smem:[#allocation118_spill]] %s8216_s29 }
  0x5f   :  { %s8236_s29 = sld [smem:[%s9370_s0 + %s7892_s20]]  }
  0x60   :  { %9443 = sst [smem:[#allocation119_spill]] %s8221_s14 }
  0x61   :  { %s8241_s14 = sld [smem:[%s9370_s0 + %s7893_s27]]  }
  0x63   :  { %9444 = sst [smem:[#allocation120_spill]] %s8226_s11 }
  0x64   :  { %s5257_s11 = sld [smem:[%s9370_s0 + %s7894_s4]]  }
  0x6a   :  { %v125_v1 = vstv %s5257_s11 }
  0x6b   :  { %126 = vst [vmem:[#allocation3] sm:$0x1] %v125_v1 }
  0x6c   :  { %127 = vsyncpa [#allocation5], 0 }
  0x6d   :  { %128 = vsyncpa [#allocation8], 0 }
  0x6e   :  { %129 = vsyncpa [#allocation11], 0 }
  0x6f   :  { %130 = vsyncpa [#allocation14], 0 }
  0x70   :  { %131 = vsyncpa [#allocation17], 0 }
  0x71   :  { %132 = vsyncpa [#allocation20], 0 }
  0x72   :  { %133 = vsyncpa [#allocation23], 0 }
  0x73   :  { %134 = vsyncpa [#allocation26], 0 }
  0x74   :  { %135 = vsyncpa [#allocation29], 0 }
  0x75   :  { %136 = vsyncpa [#allocation32], 0 }
  0x76   :  { %137 = vsyncpa [#allocation35], 0 }
  0x77   :  { %138 = vsyncpa [#allocation38], 0 }
  0x78   :  { %139 = vsyncpa [#allocation41], 0 }
  0x79   :  { %140 = vsyncpa [#allocation44], 0 }
  0x7a   :  { %141 = vsyncpa [#allocation47], 0 }
  0x7b   :  { %142 = vsyncpa [#allocation50], 0 }
  0x7c   :  { %143 = vsyncpa [#allocation53], 0 }
  0x7d   :  { %144 = vsyncpa [#allocation6], 0 }
  0x7e   :  { %145 = vsyncpa [#allocation56], 0 }
  0x7f   :  { %146 = vsyncpa [#allocation59], 0  ;;  %s7895_s0 = smov [#allocation7]   ;;  %s6983_s25 = scalar_lea.hbm %s7968_s13, 1024 }
  0x80   :  { %s164_s11 = sshll.u32 %s7895_s0, 4  ;;  %p6984_p0 = scmp.ne.s32.totalorder %s7968_s13, %s6983_s25  ;;  %s165_s11 = int_to_ptr.vmem [resolvable:$true] %s164_s11 }
  0x81   :  { %p6987_p1 = scmp.lt.u32.totalorder %s6983_s25, %s7968_s13 }
  0x83   :  { %p6989_p2 = pnand %p6987_p1, %p6984_p0 }
  0x85   :  { %6992 = shalt.err (!%p6989_p2)
}
  0x86   :  { %s6993_s15 = scalar_lea.vmem %s165_s11, 1024  ;;  %p6998_p4 = scmp.lt.s32.totalorder %s165_s11, %s165_s11 }
  0x87   :  { %p6994_p3 = scmp.ne.s32.totalorder %s165_s11, %s6993_s15  ;;  %p6999_p5 = scmp.lt.s32.totalorder %s6993_s15, %s6993_s15 }
  0x89   :  { %p7000_p6 = por %p6999_p5, %p6998_p4 }
  0x8b   :  { %p7001_p7 = pnand %p7000_p6, %p6994_p3 }
  0x8d   :  { %7004 = shalt.err (!%p7001_p7)
}
  0x8e   :  { %s7896_s16 = smov 256   ;;  %s7897_s20 = smov 16  }
  0x8f   :  { %170 = dma.hbm_to_vmem [thread:$0]  %s7968_s13, 1024, %s165_s11, [#allocation8], %s7896_s16, %s7896_s16, %s7897_s20  }
  0x90   :  { %s7898_s22 = smov [#allocation10]   ;;  %s7899_s27 = smov [#allocation13]  }
  0x91   :  { %s195_s23 = sshll.u32 %s7898_s22, 4  ;;  %s223_s28 = sshll.u32 %s7899_s27, 4  ;;  %s196_s23 = int_to_ptr.vmem [resolvable:$true] %s195_s23  ;;  %s224_s28 = int_to_ptr.vmem [resolvable:$true] %s223_s28 }
  0x92   :  { %s7005_s1 = scalar_lea.hbm %s7991_s3, 32 }
  0x93   :  { %p7006_p8 = scmp.ne.s32.totalorder %s7991_s3, %s7005_s1  ;;  %p7009_p9 = scmp.lt.u32.totalorder %s7005_s1, %s7991_s3 }
  0x95   :  { %p7011_p10 = pnand %p7009_p9, %p7006_p8 }
  0x97   :  { %7014 = shalt.err (!%p7011_p10)
}
  0x98   :  { %s7015_s4 = scalar_lea.vmem %s196_s23, 32  ;;  %p7020_p12 = scmp.lt.s32.totalorder %s196_s23, %s196_s23 }
  0x99   :  { %p7016_p11 = scmp.ne.s32.totalorder %s196_s23, %s7015_s4  ;;  %p7021_p13 = scmp.lt.s32.totalorder %s7015_s4, %s7015_s4 }
  0x9b   :  { %p7022_p0 = por %p7021_p13, %p7020_p12 }
  0x9d   :  { %p7023_p1 = pnand %p7022_p0, %p7016_p11 }
  0x9f   :  { %7026 = shalt.err (!%p7023_p1)
}
  0xa0   :  { %198 = dma.hbm_to_vmem [thread:$0]  %s7991_s3, 32, %s196_s23, [#allocation11]  }
  0xa1   :  { %s7027_s13 = scalar_lea.hbm %s8021_s6, 16 }
  0xa2   :  { %p7028_p2 = scmp.ne.s32.totalorder %s8021_s6, %s7027_s13  ;;  %p7031_p3 = scmp.lt.u32.totalorder %s7027_s13, %s8021_s6 }
  0xa4   :  { %p7033_p4 = pnand %p7031_p3, %p7028_p2 }
  0xa6   :  { %7036 = shalt.err (!%p7033_p4)
}
  0xa7   :  { %s7037_s7 = scalar_lea.vmem %s224_s28, 16  ;;  %s7041_s10 = scalar_lea.vmem %s224_s28, 32 }
  0xa8   :  { %p7038_p5 = scmp.ne.s32.totalorder %s224_s28, %s7037_s7  ;;  %p7042_p6 = scmp.lt.s32.totalorder %s224_s28, %s224_s28 }
  0xa9   :  { %p7043_p7 = scmp.lt.s32.totalorder %s7041_s10, %s7037_s7 }
  0xab   :  { %p7044_p8 = por %p7043_p7, %p7042_p6 }
  0xad   :  { %p7045_p9 = pnand %p7044_p8, %p7038_p5 }
  0xaf   :  { %7048 = shalt.err (!%p7045_p9)
}
  0xb0   :  { %226 = dma.hbm_to_vmem [thread:$0]  %s8021_s6, 16, %s224_s28, [#allocation14]  }
  0xb1   :  { %s7900_s3 = smov [#allocation16]   ;;  %s7901_s11 = smov [#allocation19]  }
  0xb2   :  { %s245_s0 = sshll.u32 %s7900_s3, 4  ;;  %s264_s25 = sshll.u32 %s7901_s11, 4  ;;  %s246_s0 = int_to_ptr.vmem [resolvable:$true] %s245_s0  ;;  %s265_s25 = int_to_ptr.vmem [resolvable:$true] %s264_s25 }
  0xb3   :  { %s7049_s15 = scalar_lea.hbm %s8031_s18, 32 }
  0xb4   :  { %p7050_p10 = scmp.ne.s32.totalorder %s8031_s18, %s7049_s15  ;;  %p7053_p11 = scmp.lt.u32.totalorder %s7049_s15, %s8031_s18 }
  0xb6   :  { %p7055_p12 = pnand %p7053_p11, %p7050_p10 }
  0xb8   :  { %7058 = shalt.err (!%p7055_p12)
}
  0xb9   :  { %s7059_s22 = scalar_lea.vmem %s246_s0, 32  ;;  %p7064_p0 = scmp.lt.s32.totalorder %s246_s0, %s246_s0 }
  0xba   :  { %p7060_p13 = scmp.ne.s32.totalorder %s246_s0, %s7059_s22  ;;  %p7065_p1 = scmp.lt.s32.totalorder %s7059_s22, %s7059_s22 }
  0xbc   :  { %p7066_p2 = por %p7065_p1, %p7064_p0 }
  0xbe   :  { %p7067_p3 = pnand %p7066_p2, %p7060_p13 }
  0xc0   :  { %7070 = shalt.err (!%p7067_p3)
}
  0xc1   :  { %248 = dma.hbm_to_vmem [thread:$0]  %s8031_s18, 32, %s246_s0, [#allocation17]  }
  0xc2   :  { %s7071_s6 = scalar_lea.hbm %s8041_s2, 6400 }
  0xc3   :  { %p7072_p4 = scmp.ne.s32.totalorder %s8041_s2, %s7071_s6  ;;  %p7075_p5 = scmp.lt.u32.totalorder %s7071_s6, %s8041_s2 }
  0xc5   :  { %p7077_p6 = pnand %p7075_p5, %p7072_p4 }
  0xc7   :  { %7080 = shalt.err (!%p7077_p6)
}
  0xc8   :  { %s7081_s23 = scalar_lea.vmem %s265_s25, 6400  ;;  %p7086_p8 = scmp.lt.s32.totalorder %s265_s25, %s265_s25 }
  0xc9   :  { %p7082_p7 = scmp.ne.s32.totalorder %s265_s25, %s7081_s23  ;;  %p7087_p9 = scmp.lt.s32.totalorder %s7081_s23, %s7081_s23 }
  0xcb   :  { %p7088_p10 = por %p7087_p9, %p7086_p8 }
  0xcd   :  { %p7089_p11 = pnand %p7088_p10, %p7082_p7 }
  0xcf   :  { %7092 = shalt.err (!%p7089_p11)
}
  0xd0   :  { %270 = dma.hbm_to_vmem [thread:$0]  %s8041_s2, 6400, %s265_s25, [#allocation20], %s7896_s16, %s7896_s16, %s7897_s20  }
  0xd1   :  { %s7902_s18 = smov [#allocation22]   ;;  %s7903_s28 = smov [#allocation25]  }
  0xd2   :  { %s286_s27 = sshll.u32 %s7902_s18, 4  ;;  %s308_s1 = sshll.u32 %s7903_s28, 4  ;;  %s287_s27 = int_to_ptr.vmem [resolvable:$true] %s286_s27  ;;  %s309_s1 = int_to_ptr.vmem [resolvable:$true] %s308_s1 }
  0xd3   :  { %s7093_s4 = scalar_lea.hbm %s8051_s24, 6400 }
  0xd4   :  { %p7094_p12 = scmp.ne.s32.totalorder %s8051_s24, %s7093_s4  ;;  %p7097_p13 = scmp.lt.u32.totalorder %s7093_s4, %s8051_s24 }
  0xd6   :  { %p7099_p0 = pnand %p7097_p13, %p7094_p12 }
  0xd8   :  { %7102 = shalt.err (!%p7099_p0)
}
  0xd9   :  { %s7103_s13 = scalar_lea.vmem %s287_s27, 6400  ;;  %p7108_p2 = scmp.lt.s32.totalorder %s287_s27, %s287_s27 }
  0xda   :  { %p7104_p1 = scmp.ne.s32.totalorder %s287_s27, %s7103_s13  ;;  %p7109_p3 = scmp.lt.s32.totalorder %s7103_s13, %s7103_s13 }
  0xdc   :  { %p7110_p4 = por %p7109_p3, %p7108_p2 }
  0xde   :  { %p7111_p5 = pnand %p7110_p4, %p7104_p1 }
  0xe0   :  { %7114 = shalt.err (!%p7111_p5)
}
  0xe1   :  { %292 = dma.hbm_to_vmem [thread:$0]  %s8051_s24, 6400, %s287_s27, [#allocation23], %s7896_s16, %s7896_s16, %s7897_s20  }
  0xe2   :  { %s7115_s2 = scalar_lea.hbm %s8061_s30, 12800 }
  0xe3   :  { %p7116_p6 = scmp.ne.s32.totalorder %s8061_s30, %s7115_s2  ;;  %p7119_p7 = scmp.lt.u32.totalorder %s7115_s2, %s8061_s30 }
  0xe5   :  { %p7121_p8 = pnand %p7119_p7, %p7116_p6 }
  0xe7   :  { %7124 = shalt.err (!%p7121_p8)
}
  0xe8   :  { %s7125_s7 = scalar_lea.vmem %s309_s1, 12800  ;;  %p7130_p10 = scmp.lt.s32.totalorder %s309_s1, %s309_s1 }
  0xe9   :  { %p7126_p9 = scmp.ne.s32.totalorder %s309_s1, %s7125_s7  ;;  %p7131_p11 = scmp.lt.s32.totalorder %s7125_s7, %s7125_s7 }
  0xeb   :  { %p7132_p12 = por %p7131_p11, %p7130_p10 }
  0xed   :  { %p7133_p13 = pnand %p7132_p12, %p7126_p9 }
  0xef   :  { %7136 = shalt.err (!%p7133_p13)
}
  0xf0   :  { %s7904_s10 = smov 512   ;;  %s7905_s3 = smov 32  }
  0xf1   :  { %314 = dma.hbm_to_vmem [thread:$0]  %s8061_s30, 12800, %s309_s1, [#allocation26], %s7904_s10, %s7904_s10, %s7905_s3  }
  0xf2   :  { %s7906_s24 = smov [#allocation28]   ;;  %s7907_s11 = smov [#allocation31]  }
  0xf3   :  { %s333_s0 = sshll.u32 %s7906_s24, 4  ;;  %s355_s25 = sshll.u32 %s7907_s11, 4  ;;  %s334_s0 = int_to_ptr.vmem [resolvable:$true] %s333_s0  ;;  %s356_s25 = int_to_ptr.vmem [resolvable:$true] %s355_s25 }
  0xf4   :  { %s7137_s15 = scalar_lea.hbm %s8076_s8, 16 }
  0xf5   :  { %p7138_p0 = scmp.ne.s32.totalorder %s8076_s8, %s7137_s15  ;;  %p7141_p1 = scmp.lt.u32.totalorder %s7137_s15, %s8076_s8 }
  0xf7   :  { %p7143_p2 = pnand %p7141_p1, %p7138_p0 }
  0xf9   :  { %7146 = shalt.err (!%p7143_p2)
}
  0xfa   :  { %s7147_s22 = scalar_lea.vmem %s334_s0, 16  ;;  %s7151_s6 = scalar_lea.vmem %s334_s0, 32 }
  0xfb   :  { %p7148_p3 = scmp.ne.s32.totalorder %s334_s0, %s7147_s22  ;;  %p7152_p4 = scmp.lt.s32.totalorder %s334_s0, %s334_s0 }
  0xfc   :  { %p7153_p5 = scmp.lt.s32.totalorder %s7151_s6, %s7147_s22 }
  0xfe   :  { %p7154_p6 = por %p7153_p5, %p7152_p4 }
 0x100   :  { %p7155_p7 = pnand %p7154_p6, %p7148_p3 }
 0x102   :  { %7158 = shalt.err (!%p7155_p7)
}
 0x103   :  { %336 = dma.hbm_to_vmem [thread:$0]  %s8076_s8, 16, %s334_s0, [#allocation29]  }
 0x104   :  { %s7159_s30 = scalar_lea.hbm %s8086_s17, 32 }
 0x105   :  { %p7160_p8 = scmp.ne.s32.totalorder %s8086_s17, %s7159_s30  ;;  %p7163_p9 = scmp.lt.u32.totalorder %s7159_s30, %s8086_s17 }
 0x107   :  { %p7165_p10 = pnand %p7163_p9, %p7160_p8 }
 0x109   :  { %7168 = shalt.err (!%p7165_p10)
}
 0x10a   :  { %s7169_s23 = scalar_lea.vmem %s356_s25, 32  ;;  %p7174_p12 = scmp.lt.s32.totalorder %s356_s25, %s356_s25 }
 0x10b   :  { %p7170_p11 = scmp.ne.s32.totalorder %s356_s25, %s7169_s23  ;;  %p7175_p13 = scmp.lt.s32.totalorder %s7169_s23, %s7169_s23 }
 0x10d   :  { %p7176_p0 = por %p7175_p13, %p7174_p12 }
 0x10f   :  { %p7177_p1 = pnand %p7176_p0, %p7170_p11 }
 0x111   :  { %7180 = shalt.err (!%p7177_p1)
}
 0x112   :  { %358 = dma.hbm_to_vmem [thread:$0]  %s8086_s17, 32, %s356_s25, [#allocation32]  }
 0x113   :  { %s7908_s18 = smov [#allocation34]   ;;  %s7909_s27 = smov [#allocation37]  }
 0x114   :  { %s381_s8 = sshll.u32 %s7908_s18, 4  ;;  %s403_s28 = sshll.u32 %s7909_s27, 4  ;;  %s382_s8 = int_to_ptr.vmem [resolvable:$true] %s381_s8  ;;  %s404_s28 = int_to_ptr.vmem [resolvable:$true] %s403_s28 }
 0x115   :  { %s7181_s1 = scalar_lea.hbm %s8101_s21, 32 }
 0x116   :  { %p7182_p2 = scmp.ne.s32.totalorder %s8101_s21, %s7181_s1  ;;  %p7185_p3 = scmp.lt.u32.totalorder %s7181_s1, %s8101_s21 }
 0x118   :  { %p7187_p4 = pnand %p7185_p3, %p7182_p2 }
 0x11a   :  { %7190 = shalt.err (!%p7187_p4)
}
 0x11b   :  { %s7191_s4 = scalar_lea.vmem %s382_s8, 32  ;;  %p7196_p6 = scmp.lt.s32.totalorder %s382_s8, %s382_s8 }
 0x11c   :  { %p7192_p5 = scmp.ne.s32.totalorder %s382_s8, %s7191_s4  ;;  %p7197_p7 = scmp.lt.s32.totalorder %s7191_s4, %s7191_s4 }
 0x11e   :  { %p7198_p8 = por %p7197_p7, %p7196_p6 }
 0x120   :  { %p7199_p9 = pnand %p7198_p8, %p7192_p5 }
 0x122   :  { %7202 = shalt.err (!%p7199_p9)
}
 0x123   :  { %384 = dma.hbm_to_vmem [thread:$0]  %s8101_s21, 32, %s382_s8, [#allocation35]  }
 0x124   :  { %s7203_s17 = scalar_lea.hbm %s8111_s19, 32 }
 0x125   :  { %p7204_p10 = scmp.ne.s32.totalorder %s8111_s19, %s7203_s17  ;;  %p7207_p11 = scmp.lt.u32.totalorder %s7203_s17, %s8111_s19 }
 0x127   :  { %p7209_p12 = pnand %p7207_p11, %p7204_p10 }
 0x129   :  { %7212 = shalt.err (!%p7209_p12)
}
 0x12a   :  { %s7213_s13 = scalar_lea.vmem %s404_s28, 32  ;;  %p7218_p0 = scmp.lt.s32.totalorder %s404_s28, %s404_s28 }
 0x12b   :  { %p7214_p13 = scmp.ne.s32.totalorder %s404_s28, %s7213_s13  ;;  %p7219_p1 = scmp.lt.s32.totalorder %s7213_s13, %s7213_s13 }
 0x12d   :  { %p7220_p2 = por %p7219_p1, %p7218_p0 }
 0x12f   :  { %p7221_p3 = pnand %p7220_p2, %p7214_p13 }
 0x131   :  { %7224 = shalt.err (!%p7221_p3)
}
 0x132   :  { %406 = dma.hbm_to_vmem [thread:$0]  %s8111_s19, 32, %s404_s28, [#allocation38]  }
 0x133   :  { %s7910_s2 = smov [#allocation40]   ;;  %s7911_s7 = smov [#allocation43]  }
 0x134   :  { %s425_s21 = sshll.u32 %s7910_s2, 4  ;;  %s446_s24 = sshll.u32 %s7911_s7, 4  ;;  %s426_s21 = int_to_ptr.vmem [resolvable:$true] %s425_s21  ;;  %s447_s24 = int_to_ptr.vmem [resolvable:$true] %s446_s24 }
 0x135   :  { %s7225_s0 = scalar_lea.hbm %s8121_s26, 32 }
 0x136   :  { %p7226_p4 = scmp.ne.s32.totalorder %s8121_s26, %s7225_s0  ;;  %p7229_p5 = scmp.lt.u32.totalorder %s7225_s0, %s8121_s26 }
 0x138   :  { %p7231_p6 = pnand %p7229_p5, %p7226_p4 }
 0x13a   :  { %7234 = shalt.err (!%p7231_p6)
}
 0x13b   :  { %s7235_s11 = scalar_lea.vmem %s426_s21, 32  ;;  %p7240_p8 = scmp.lt.s32.totalorder %s426_s21, %s426_s21 }
 0x13c   :  { %p7236_p7 = scmp.ne.s32.totalorder %s426_s21, %s7235_s11  ;;  %p7241_p9 = scmp.lt.s32.totalorder %s7235_s11, %s7235_s11 }
 0x13e   :  { %p7242_p10 = por %p7241_p9, %p7240_p8 }
 0x140   :  { %p7243_p11 = pnand %p7242_p10, %p7236_p7 }
 0x142   :  { %7246 = shalt.err (!%p7243_p11)
}
 0x143   :  { %428 = dma.hbm_to_vmem [thread:$0]  %s8121_s26, 32, %s426_s21, [#allocation41]  }
 0x144   :  { %s7247_s19 = scalar_lea.hbm %s8136_s9, 6400 }
 0x145   :  { %p7248_p12 = scmp.ne.s32.totalorder %s8136_s9, %s7247_s19  ;;  %p7251_p13 = scmp.lt.u32.totalorder %s7247_s19, %s8136_s9 }
 0x147   :  { %p7253_p0 = pnand %p7251_p13, %p7248_p12 }
 0x149   :  { %7256 = shalt.err (!%p7253_p0)
}
 0x14a   :  { %s7257_s25 = scalar_lea.vmem %s447_s24, 6400  ;;  %p7262_p2 = scmp.lt.s32.totalorder %s447_s24, %s447_s24 }
 0x14b   :  { %p7258_p1 = scmp.ne.s32.totalorder %s447_s24, %s7257_s25  ;;  %p7263_p3 = scmp.lt.s32.totalorder %s7257_s25, %s7257_s25 }
 0x14d   :  { %p7264_p4 = por %p7263_p3, %p7262_p2 }
 0x14f   :  { %p7265_p5 = pnand %p7264_p4, %p7258_p1 }
 0x151   :  { %7268 = shalt.err (!%p7265_p5)
}
 0x152   :  { %452 = dma.hbm_to_vmem [thread:$0]  %s8136_s9, 6400, %s447_s24, [#allocation44], %s7896_s16, %s7896_s16, %s7897_s20  }
 0x153   :  { %s7912_s26 = smov [#allocation46]   ;;  %s7913_s22 = smov [#allocation49]  }
 0x154   :  { %s471_s15 = sshll.u32 %s7912_s26, 4  ;;  %s495_s6 = sshll.u32 %s7913_s22, 4  ;;  %s472_s15 = int_to_ptr.vmem [resolvable:$true] %s471_s15  ;;  %s496_s6 = int_to_ptr.vmem [resolvable:$true] %s495_s6 }
 0x155   :  { %s7269_s30 = scalar_lea.hbm %s8151_s12, 16 }
 0x156   :  { %p7270_p6 = scmp.ne.s32.totalorder %s8151_s12, %s7269_s30  ;;  %p7273_p7 = scmp.lt.u32.totalorder %s7269_s30, %s8151_s12 }
 0x158   :  { %p7275_p8 = pnand %p7273_p7, %p7270_p6 }
 0x15a   :  { %7278 = shalt.err (!%p7275_p8)
}
 0x15b   :  { %s7279_s23 = scalar_lea.vmem %s472_s15, 16  ;;  %s7283_s18 = scalar_lea.vmem %s472_s15, 32 }
 0x15c   :  { %p7280_p9 = scmp.ne.s32.totalorder %s472_s15, %s7279_s23  ;;  %p7284_p10 = scmp.lt.s32.totalorder %s472_s15, %s472_s15 }
 0x15d   :  { %p7285_p11 = scmp.lt.s32.totalorder %s7283_s18, %s7279_s23 }
 0x15f   :  { %p7286_p12 = por %p7285_p11, %p7284_p10 }
 0x161   :  { %p7287_p13 = pnand %p7286_p12, %p7280_p9 }
 0x163   :  { %7290 = shalt.err (!%p7287_p13)
}
 0x164   :  { %s9445_s9 = sld [smem:[#allocation109_spill]] }
 0x165   :  { %474 = dma.hbm_to_vmem [thread:$0]  %s8151_s12, 16, %s472_s15, [#allocation47]  }
 0x16a   :  { %s7291_s8 = scalar_lea.hbm %s9445_s9, 64 }
 0x16b   :  { %p7292_p0 = scmp.ne.s32.totalorder %s9445_s9, %s7291_s8  ;;  %p7295_p1 = scmp.lt.u32.totalorder %s7291_s8, %s9445_s9 }
 0x16d   :  { %p7297_p2 = pnand %p7295_p1, %p7292_p0 }
 0x16f   :  { %7300 = shalt.err (!%p7297_p2)
}
 0x170   :  { %s7301_s27 = scalar_lea.vmem %s496_s6, 64  ;;  %p7306_p4 = scmp.lt.s32.totalorder %s496_s6, %s496_s6 }
 0x171   :  { %p7302_p3 = scmp.ne.s32.totalorder %s496_s6, %s7301_s27  ;;  %p7307_p5 = scmp.lt.s32.totalorder %s7301_s27, %s7301_s27 }
 0x173   :  { %p7308_p6 = por %p7307_p5, %p7306_p4 }
 0x175   :  { %p7309_p7 = pnand %p7308_p6, %p7302_p3 }
 0x177   :  { %7312 = shalt.err (!%p7309_p7)
}
 0x178   :  { %s9446_s28 = sld [smem:[#allocation81_spill]]  ;;  %s7914_s1 = smov [#allocation4]  }
 0x179   :  { %498 = dma.hbm_to_vmem [thread:$0]  %s9445_s9, 64, %s496_s6, [#allocation50]  }
 0x17a   :  { %s153_s12 = sshll.u32 %s7914_s1, 4  ;;  %s7915_s4 = smov [#allocation9]   ;;  %s154_s12 = int_to_ptr.vmem [resolvable:$true] %s153_s12 }
 0x17b   :  { %s182_s17 = sshll.u32 %s7915_s4, 4  ;;  %s183_s17 = int_to_ptr.vmem [resolvable:$true] %s182_s17 }
 0x17e   :  { %s7313_s13 = scalar_lea.hbm %s9446_s28, 128 }
 0x17f   :  { %p7314_p8 = scmp.ne.s32.totalorder %s9446_s28, %s7313_s13  ;;  %p7317_p9 = scmp.lt.u32.totalorder %s7313_s13, %s9446_s28 }
 0x181   :  { %p7319_p10 = pnand %p7317_p9, %p7314_p8 }
 0x183   :  { %7322 = shalt.err (!%p7319_p10)
}
 0x184   :  { %s7323_s2 = scalar_lea.vmem %s154_s12, 128  ;;  %p7328_p12 = scmp.lt.s32.totalorder %s154_s12, %s154_s12 }
 0x185   :  { %p7324_p11 = scmp.ne.s32.totalorder %s154_s12, %s7323_s2  ;;  %p7329_p13 = scmp.lt.s32.totalorder %s7323_s2, %s7323_s2 }
 0x187   :  { %p7330_p0 = por %p7329_p13, %p7328_p12 }
 0x189   :  { %p7331_p1 = pnand %p7330_p0, %p7324_p11 }
 0x18b   :  { %7334 = shalt.err (!%p7331_p1)
}
 0x18c   :  { %s9447_s21 = sld [smem:[#allocation85_spill]] }
 0x18d   :  { %156 = dma.hbm_to_vmem [thread:$0]  %s9446_s28, 128, %s154_s12, [#allocation5]  }
 0x192   :  { %s7335_s7 = scalar_lea.hbm %s9447_s21, 1024 }
 0x193   :  { %p7336_p2 = scmp.ne.s32.totalorder %s9447_s21, %s7335_s7  ;;  %p7339_p3 = scmp.lt.u32.totalorder %s7335_s7, %s9447_s21 }
 0x195   :  { %p7341_p4 = pnand %p7339_p3, %p7336_p2 }
 0x197   :  { %7344 = shalt.err (!%p7341_p4)
}
 0x198   :  { %s7345_s24 = scalar_lea.vmem %s183_s17, 1024  ;;  %p7350_p6 = scmp.lt.s32.totalorder %s183_s17, %s183_s17 }
 0x199   :  { %p7346_p5 = scmp.ne.s32.totalorder %s183_s17, %s7345_s24  ;;  %p7351_p7 = scmp.lt.s32.totalorder %s7345_s24, %s7345_s24 }
 0x19b   :  { %p7352_p8 = por %p7351_p7, %p7350_p6 }
 0x19d   :  { %p7353_p9 = pnand %p7352_p8, %p7346_p5 }
 0x19f   :  { %7356 = shalt.err (!%p7353_p9)
}
 0x1a0   :  { %s9448_s0 = sld [smem:[#allocation87_spill]]  ;;  %s7916_s11 = smov [#allocation12]  }
 0x1a1   :  { %188 = dma.hbm_to_vmem [thread:$0]  %s9447_s21, 1024, %s183_s17, [#allocation8], %s7896_s16, %s7896_s16, %s7897_s20  }
 0x1a2   :  { %s207_s19 = sshll.u32 %s7916_s11, 4  ;;  %s7917_s25 = smov [#allocation15]   ;;  %s208_s19 = int_to_ptr.vmem [resolvable:$true] %s207_s19 }
 0x1a3   :  { %s232_s26 = sshll.u32 %s7917_s25, 4  ;;  %s233_s26 = int_to_ptr.vmem [resolvable:$true] %s232_s26 }
 0x1a6   :  { %s7357_s15 = scalar_lea.hbm %s9448_s0, 32 }
 0x1a7   :  { %p7358_p10 = scmp.ne.s32.totalorder %s9448_s0, %s7357_s15  ;;  %p7361_p11 = scmp.lt.u32.totalorder %s7357_s15, %s9448_s0 }
 0x1a9   :  { %p7363_p12 = pnand %p7361_p11, %p7358_p10 }
 0x1ab   :  { %7366 = shalt.err (!%p7363_p12)
}
 0x1ac   :  { %s7367_s22 = scalar_lea.vmem %s208_s19, 32  ;;  %p7372_p0 = scmp.lt.s32.totalorder %s208_s19, %s208_s19 }
 0x1ad   :  { %p7368_p13 = scmp.ne.s32.totalorder %s208_s19, %s7367_s22  ;;  %p7373_p1 = scmp.lt.s32.totalorder %s7367_s22, %s7367_s22 }
 0x1af   :  { %p7374_p2 = por %p7373_p1, %p7372_p0 }
 0x1b1   :  { %p7375_p3 = pnand %p7374_p2, %p7368_p13 }
 0x1b3   :  { %7378 = shalt.err (!%p7375_p3)
}
 0x1b4   :  { %s9449_s6 = sld [smem:[#allocation91_spill]] }
 0x1b5   :  { %210 = dma.hbm_to_vmem [thread:$0]  %s9448_s0, 32, %s208_s19, [#allocation11]  }
 0x1ba   :  { %s7379_s30 = scalar_lea.hbm %s9449_s6, 1024 }
 0x1bb   :  { %p7380_p4 = scmp.ne.s32.totalorder %s9449_s6, %s7379_s30  ;;  %p7383_p5 = scmp.lt.u32.totalorder %s7379_s30, %s9449_s6 }
 0x1bd   :  { %p7385_p6 = pnand %p7383_p5, %p7380_p4 }
 0x1bf   :  { %7388 = shalt.err (!%p7385_p6)
}
 0x1c0   :  { %s7389_s23 = scalar_lea.vmem %s233_s26, 1024  ;;  %p7394_p8 = scmp.lt.s32.totalorder %s233_s26, %s233_s26 }
 0x1c1   :  { %p7390_p7 = scmp.ne.s32.totalorder %s233_s26, %s7389_s23  ;;  %p7395_p9 = scmp.lt.s32.totalorder %s7389_s23, %s7389_s23 }
 0x1c3   :  { %p7396_p10 = por %p7395_p9, %p7394_p8 }
 0x1c5   :  { %p7397_p11 = pnand %p7396_p10, %p7390_p7 }
 0x1c7   :  { %7400 = shalt.err (!%p7397_p11)
}
 0x1c8   :  { %s9450_s18 = sld [smem:[#allocation92_spill]]  ;;  %s7918_s9 = smov [#allocation18]  }
 0x1c9   :  { %238 = dma.hbm_to_vmem [thread:$0]  %s9449_s6, 1024, %s233_s26, [#allocation14], %s7896_s16, %s7896_s16, %s7897_s20  }
 0x1ca   :  { %s255_s8 = sshll.u32 %s7918_s9, 4  ;;  %s7919_s27 = smov [#allocation21]   ;;  %s256_s8 = int_to_ptr.vmem [resolvable:$true] %s255_s8 }
 0x1cb   :  { %s277_s28 = sshll.u32 %s7919_s27, 4  ;;  %s278_s28 = int_to_ptr.vmem [resolvable:$true] %s277_s28 }
 0x1ce   :  { %s7401_s1 = scalar_lea.hbm %s9450_s18, 32 }
 0x1cf   :  { %p7402_p12 = scmp.ne.s32.totalorder %s9450_s18, %s7401_s1  ;;  %p7405_p13 = scmp.lt.u32.totalorder %s7401_s1, %s9450_s18 }
 0x1d1   :  { %p7407_p0 = pnand %p7405_p13, %p7402_p12 }
 0x1d3   :  { %7410 = shalt.err (!%p7407_p0)
}
 0x1d4   :  { %s7411_s12 = scalar_lea.vmem %s256_s8, 32  ;;  %p7416_p2 = scmp.lt.s32.totalorder %s256_s8, %s256_s8 }
 0x1d5   :  { %p7412_p1 = scmp.ne.s32.totalorder %s256_s8, %s7411_s12  ;;  %p7417_p3 = scmp.lt.s32.totalorder %s7411_s12, %s7411_s12 }
 0x1d7   :  { %p7418_p4 = por %p7417_p3, %p7416_p2 }
 0x1d9   :  { %p7419_p5 = pnand %p7418_p4, %p7412_p1 }
 0x1db   :  { %7422 = shalt.err (!%p7419_p5)
}
 0x1dc   :  { %s9451_s4 = sld [smem:[#allocation93_spill]] }
 0x1dd   :  { %258 = dma.hbm_to_vmem [thread:$0]  %s9450_s18, 32, %s256_s8, [#allocation17]  }
 0x1e2   :  { %s7423_s17 = scalar_lea.hbm %s9451_s4, 32 }
 0x1e3   :  { %p7424_p6 = scmp.ne.s32.totalorder %s9451_s4, %s7423_s17  ;;  %p7427_p7 = scmp.lt.u32.totalorder %s7423_s17, %s9451_s4 }
 0x1e5   :  { %p7429_p8 = pnand %p7427_p7, %p7424_p6 }
 0x1e7   :  { %7432 = shalt.err (!%p7429_p8)
}
 0x1e8   :  { %s7433_s13 = scalar_lea.vmem %s278_s28, 32  ;;  %p7438_p10 = scmp.lt.s32.totalorder %s278_s28, %s278_s28 }
 0x1e9   :  { %p7434_p9 = scmp.ne.s32.totalorder %s278_s28, %s7433_s13  ;;  %p7439_p11 = scmp.lt.s32.totalorder %s7433_s13, %s7433_s13 }
 0x1eb   :  { %p7440_p12 = por %p7439_p11, %p7438_p10 }
 0x1ed   :  { %p7441_p13 = pnand %p7440_p12, %p7434_p9 }
 0x1ef   :  { %7444 = shalt.err (!%p7441_p13)
}
 0x1f0   :  { %s9452_s2 = sld [smem:[#allocation94_spill]]  ;;  %s7920_s21 = smov [#allocation24]  }
 0x1f1   :  { %280 = dma.hbm_to_vmem [thread:$0]  %s9451_s4, 32, %s278_s28, [#allocation20]  }
 0x1f2   :  { %s299_s7 = sshll.u32 %s7920_s21, 4  ;;  %s7921_s24 = smov [#allocation27]   ;;  %s300_s7 = int_to_ptr.vmem [resolvable:$true] %s299_s7 }
 0x1f3   :  { %s321_s0 = sshll.u32 %s7921_s24, 4  ;;  %s322_s0 = int_to_ptr.vmem [resolvable:$true] %s321_s0 }
 0x1f6   :  { %s7445_s11 = scalar_lea.hbm %s9452_s2, 32 }
 0x1f7   :  { %p7446_p0 = scmp.ne.s32.totalorder %s9452_s2, %s7445_s11  ;;  %p7449_p1 = scmp.lt.u32.totalorder %s7445_s11, %s9452_s2 }
 0x1f9   :  { %p7451_p2 = pnand %p7449_p1, %p7446_p0 }
 0x1fb   :  { %7454 = shalt.err (!%p7451_p2)
}
 0x1fc   :  { %s7455_s19 = scalar_lea.vmem %s300_s7, 32  ;;  %p7460_p4 = scmp.lt.s32.totalorder %s300_s7, %s300_s7 }
 0x1fd   :  { %p7456_p3 = scmp.ne.s32.totalorder %s300_s7, %s7455_s19  ;;  %p7461_p5 = scmp.lt.s32.totalorder %s7455_s19, %s7455_s19 }
 0x1ff   :  { %p7462_p6 = por %p7461_p5, %p7460_p4 }
 0x201   :  { %p7463_p7 = pnand %p7462_p6, %p7456_p3 }
 0x203   :  { %7466 = shalt.err (!%p7463_p7)
}
 0x204   :  { %s9453_s25 = sld [smem:[#allocation95_spill]] }
 0x205   :  { %302 = dma.hbm_to_vmem [thread:$0]  %s9452_s2, 32, %s300_s7, [#allocation23]  }
 0x20a   :  { %s7467_s26 = scalar_lea.hbm %s9453_s25, 64 }
 0x20b   :  { %p7468_p8 = scmp.ne.s32.totalorder %s9453_s25, %s7467_s26  ;;  %p7471_p9 = scmp.lt.u32.totalorder %s7467_s26, %s9453_s25 }
 0x20d   :  { %p7473_p10 = pnand %p7471_p9, %p7468_p8 }
 0x20f   :  { %7476 = shalt.err (!%p7473_p10)
}
 0x210   :  { %s7477_s15 = scalar_lea.vmem %s322_s0, 64  ;;  %p7482_p12 = scmp.lt.s32.totalorder %s322_s0, %s322_s0 }
 0x211   :  { %p7478_p11 = scmp.ne.s32.totalorder %s322_s0, %s7477_s15  ;;  %p7483_p13 = scmp.lt.s32.totalorder %s7477_s15, %s7477_s15 }
 0x213   :  { %p7484_p0 = por %p7483_p13, %p7482_p12 }
 0x215   :  { %p7485_p1 = pnand %p7484_p0, %p7478_p11 }
 0x217   :  { %7488 = shalt.err (!%p7485_p1)
}
 0x218   :  { %s9454_s22 = sld [smem:[#allocation97_spill]]  ;;  %s7922_s6 = smov [#allocation30]  }
 0x219   :  { %324 = dma.hbm_to_vmem [thread:$0]  %s9453_s25, 64, %s322_s0, [#allocation26]  }
 0x21a   :  { %s342_s30 = sshll.u32 %s7922_s6, 4  ;;  %s7923_s23 = smov [#allocation33]   ;;  %s343_s30 = int_to_ptr.vmem [resolvable:$true] %s342_s30 }
 0x21b   :  { %s368_s18 = sshll.u32 %s7923_s23, 4  ;;  %s369_s18 = int_to_ptr.vmem [resolvable:$true] %s368_s18 }
 0x21e   :  { %s7489_s9 = scalar_lea.hbm %s9454_s22, 768 }
 0x21f   :  { %p7490_p2 = scmp.ne.s32.totalorder %s9454_s22, %s7489_s9  ;;  %p7493_p3 = scmp.lt.u32.totalorder %s7489_s9, %s9454_s22 }
 0x221   :  { %p7495_p4 = pnand %p7493_p3, %p7490_p2 }
 0x223   :  { %7498 = shalt.err (!%p7495_p4)
}
 0x224   :  { %s7499_s8 = scalar_lea.vmem %s343_s30, 768  ;;  %p7504_p6 = scmp.lt.s32.totalorder %s343_s30, %s343_s30 }
 0x225   :  { %p7500_p5 = scmp.ne.s32.totalorder %s343_s30, %s7499_s8  ;;  %p7505_p7 = scmp.lt.s32.totalorder %s7499_s8, %s7499_s8 }
 0x227   :  { %p7506_p8 = por %p7505_p7, %p7504_p6 }
 0x229   :  { %p7507_p9 = pnand %p7506_p8, %p7500_p5 }
 0x22b   :  { %7510 = shalt.err (!%p7507_p9)
}
 0x22c   :  { %s9455_s27 = sld [smem:[#allocation99_spill]] }
 0x22d   :  { %348 = dma.hbm_to_vmem [thread:$0]  %s9454_s22, 768, %s343_s30, [#allocation29], %s7896_s16, %s7896_s16, %s7897_s20  }
 0x232   :  { %s7511_s28 = scalar_lea.hbm %s9455_s27, 768 }
 0x233   :  { %p7512_p10 = scmp.ne.s32.totalorder %s9455_s27, %s7511_s28  ;;  %p7515_p11 = scmp.lt.u32.totalorder %s7511_s28, %s9455_s27 }
 0x235   :  { %p7517_p12 = pnand %p7515_p11, %p7512_p10 }
 0x237   :  { %7520 = shalt.err (!%p7517_p12)
}
 0x238   :  { %s7521_s1 = scalar_lea.vmem %s369_s18, 768  ;;  %p7526_p0 = scmp.lt.s32.totalorder %s369_s18, %s369_s18 }
 0x239   :  { %p7522_p13 = scmp.ne.s32.totalorder %s369_s18, %s7521_s1  ;;  %p7527_p1 = scmp.lt.s32.totalorder %s7521_s1, %s7521_s1 }
 0x23b   :  { %p7528_p2 = por %p7527_p1, %p7526_p0 }
 0x23d   :  { %p7529_p3 = pnand %p7528_p2, %p7522_p13 }
 0x23f   :  { %7532 = shalt.err (!%p7529_p3)
}
 0x240   :  { %s9456_s12 = sld [smem:[#allocation100_spill]]  ;;  %s7924_s4 = smov [#allocation36]  }
 0x241   :  { %374 = dma.hbm_to_vmem [thread:$0]  %s9455_s27, 768, %s369_s18, [#allocation32], %s7896_s16, %s7896_s16, %s7897_s20  }
 0x242   :  { %s390_s17 = sshll.u32 %s7924_s4, 4  ;;  %s7925_s13 = smov [#allocation39]   ;;  %s391_s17 = int_to_ptr.vmem [resolvable:$true] %s390_s17 }
 0x243   :  { %s412_s2 = sshll.u32 %s7925_s13, 4  ;;  %s413_s2 = int_to_ptr.vmem [resolvable:$true] %s412_s2 }
 0x246   :  { %s7533_s21 = scalar_lea.hbm %s9456_s12, 6400 }
 0x247   :  { %p7534_p4 = scmp.ne.s32.totalorder %s9456_s12, %s7533_s21  ;;  %p7537_p5 = scmp.lt.u32.totalorder %s7533_s21, %s9456_s12 }
 0x249   :  { %p7539_p6 = pnand %p7537_p5, %p7534_p4 }
 0x24b   :  { %7542 = shalt.err (!%p7539_p6)
}
 0x24c   :  { %s7543_s7 = scalar_lea.vmem %s391_s17, 6400  ;;  %p7548_p8 = scmp.lt.s32.totalorder %s391_s17, %s391_s17 }
 0x24d   :  { %p7544_p7 = scmp.ne.s32.totalorder %s391_s17, %s7543_s7  ;;  %p7549_p9 = scmp.lt.s32.totalorder %s7543_s7, %s7543_s7 }
 0x24f   :  { %p7550_p10 = por %p7549_p9, %p7548_p8 }
 0x251   :  { %p7551_p11 = pnand %p7550_p10, %p7544_p7 }
 0x253   :  { %7554 = shalt.err (!%p7551_p11)
}
 0x254   :  { %s9457_s24 = sld [smem:[#allocation101_spill]] }
 0x255   :  { %396 = dma.hbm_to_vmem [thread:$0]  %s9456_s12, 6400, %s391_s17, [#allocation35], %s7896_s16, %s7896_s16, %s7897_s20  }
 0x25a   :  { %s7555_s0 = scalar_lea.hbm %s9457_s24, 6400 }
 0x25b   :  { %p7556_p12 = scmp.ne.s32.totalorder %s9457_s24, %s7555_s0  ;;  %p7559_p13 = scmp.lt.u32.totalorder %s7555_s0, %s9457_s24 }
 0x25d   :  { %p7561_p0 = pnand %p7559_p13, %p7556_p12 }
 0x25f   :  { %7564 = shalt.err (!%p7561_p0)
}
 0x260   :  { %s7565_s11 = scalar_lea.vmem %s413_s2, 6400  ;;  %p7570_p2 = scmp.lt.s32.totalorder %s413_s2, %s413_s2 }
 0x261   :  { %p7566_p1 = scmp.ne.s32.totalorder %s413_s2, %s7565_s11  ;;  %p7571_p3 = scmp.lt.s32.totalorder %s7565_s11, %s7565_s11 }
 0x263   :  { %p7572_p4 = por %p7571_p3, %p7570_p2 }
 0x265   :  { %p7573_p5 = pnand %p7572_p4, %p7566_p1 }
 0x267   :  { %7576 = shalt.err (!%p7573_p5)
}
 0x268   :  { %s9458_s19 = sld [smem:[#allocation103_spill]]  ;;  %s7926_s25 = smov [#allocation42]  }
 0x269   :  { %418 = dma.hbm_to_vmem [thread:$0]  %s9457_s24, 6400, %s413_s2, [#allocation38], %s7896_s16, %s7896_s16, %s7897_s20  }
 0x26a   :  { %s437_s26 = sshll.u32 %s7926_s25, 4  ;;  %s7927_s15 = smov [#allocation45]   ;;  %s438_s26 = int_to_ptr.vmem [resolvable:$true] %s437_s26 }
 0x26b   :  { %s459_s22 = sshll.u32 %s7927_s15, 4  ;;  %s460_s22 = int_to_ptr.vmem [resolvable:$true] %s459_s22 }
 0x26e   :  { %s7577_s6 = scalar_lea.hbm %s9458_s19, 16 }
 0x26f   :  { %p7578_p6 = scmp.ne.s32.totalorder %s9458_s19, %s7577_s6  ;;  %p7581_p7 = scmp.lt.u32.totalorder %s7577_s6, %s9458_s19 }
 0x271   :  { %p7583_p8 = pnand %p7581_p7, %p7578_p6 }
 0x273   :  { %7586 = shalt.err (!%p7583_p8)
}
 0x274   :  { %s7587_s30 = scalar_lea.vmem %s438_s26, 16  ;;  %s7591_s23 = scalar_lea.vmem %s438_s26, 32 }
 0x275   :  { %p7588_p9 = scmp.ne.s32.totalorder %s438_s26, %s7587_s30  ;;  %p7592_p10 = scmp.lt.s32.totalorder %s438_s26, %s438_s26 }
 0x276   :  { %p7593_p11 = scmp.lt.s32.totalorder %s7591_s23, %s7587_s30 }
 0x278   :  { %p7594_p12 = por %p7593_p11, %p7592_p10 }
 0x27a   :  { %p7595_p13 = pnand %p7594_p12, %p7588_p9 }
 0x27c   :  { %7598 = shalt.err (!%p7595_p13)
}
 0x27d   :  { %s9459_s16 = sld [smem:[#allocation104_spill]] }
 0x27e   :  { %440 = dma.hbm_to_vmem [thread:$0]  %s9458_s19, 16, %s438_s26, [#allocation41]  }
 0x283   :  { %s7599_s20 = scalar_lea.hbm %s9459_s16, 32 }
 0x284   :  { %p7600_p0 = scmp.ne.s32.totalorder %s9459_s16, %s7599_s20  ;;  %p7603_p1 = scmp.lt.u32.totalorder %s7599_s20, %s9459_s16 }
 0x286   :  { %p7605_p2 = pnand %p7603_p1, %p7600_p0 }
 0x288   :  { %7608 = shalt.err (!%p7605_p2)
}
 0x289   :  { %s7609_s18 = scalar_lea.vmem %s460_s22, 32  ;;  %p7614_p4 = scmp.lt.s32.totalorder %s460_s22, %s460_s22 }
 0x28a   :  { %p7610_p3 = scmp.ne.s32.totalorder %s460_s22, %s7609_s18  ;;  %p7615_p5 = scmp.lt.s32.totalorder %s7609_s18, %s7609_s18 }
 0x28c   :  { %p7616_p6 = por %p7615_p5, %p7614_p4 }
 0x28e   :  { %p7617_p7 = pnand %p7616_p6, %p7610_p3 }
 0x290   :  { %7620 = shalt.err (!%p7617_p7)
}
 0x291   :  { %s9460_s9 = sld [smem:[#allocation107_spill]]  ;;  %s7928_s8 = smov [#allocation48]  }
 0x292   :  { %462 = dma.hbm_to_vmem [thread:$0]  %s9459_s16, 32, %s460_s22, [#allocation44]  }
 0x293   :  { %s483_s27 = sshll.u32 %s7928_s8, 4  ;;  %s7929_s28 = smov [#allocation51]   ;;  %s484_s27 = int_to_ptr.vmem [resolvable:$true] %s483_s27 }
 0x294   :  { %s504_s1 = sshll.u32 %s7929_s28, 4  ;;  %s505_s1 = int_to_ptr.vmem [resolvable:$true] %s504_s1 }
 0x297   :  { %s7621_s12 = scalar_lea.hbm %s9460_s9, 64 }
 0x298   :  { %p7622_p8 = scmp.ne.s32.totalorder %s9460_s9, %s7621_s12  ;;  %p7625_p9 = scmp.lt.u32.totalorder %s7621_s12, %s9460_s9 }
 0x29a   :  { %p7627_p10 = pnand %p7625_p9, %p7622_p8 }
 0x29c   :  { %7630 = shalt.err (!%p7627_p10)
}
 0x29d   :  { %s7631_s4 = scalar_lea.vmem %s484_s27, 64  ;;  %p7636_p12 = scmp.lt.s32.totalorder %s484_s27, %s484_s27 }
 0x29e   :  { %p7632_p11 = scmp.ne.s32.totalorder %s484_s27, %s7631_s4  ;;  %p7637_p13 = scmp.lt.s32.totalorder %s7631_s4, %s7631_s4 }
 0x2a0   :  { %p7638_p0 = por %p7637_p13, %p7636_p12 }
 0x2a2   :  { %p7639_p1 = pnand %p7638_p0, %p7632_p11 }
 0x2a4   :  { %7642 = shalt.err (!%p7639_p1)
}
 0x2a5   :  { %s9461_s17 = sld [smem:[#allocation110_spill]] }
 0x2a6   :  { %486 = dma.hbm_to_vmem [thread:$0]  %s9460_s9, 64, %s484_s27, [#allocation47]  }
 0x2ab   :  { %s7643_s13 = scalar_lea.hbm %s9461_s17, 25600 }
 0x2ac   :  { %p7644_p2 = scmp.ne.s32.totalorder %s9461_s17, %s7643_s13  ;;  %p7647_p3 = scmp.lt.u32.totalorder %s7643_s13, %s9461_s17 }
 0x2ae   :  { %p7649_p4 = pnand %p7647_p3, %p7644_p2 }
 0x2b0   :  { %7652 = shalt.err (!%p7649_p4)
}
 0x2b1   :  { %s7653_s2 = scalar_lea.vmem %s505_s1, 25600  ;;  %p7658_p6 = scmp.lt.s32.totalorder %s505_s1, %s505_s1 }
 0x2b2   :  { %p7654_p5 = scmp.ne.s32.totalorder %s505_s1, %s7653_s2  ;;  %p7659_p7 = scmp.lt.s32.totalorder %s7653_s2, %s7653_s2 }
 0x2b4   :  { %p7660_p8 = por %p7659_p7, %p7658_p6 }
 0x2b6   :  { %p7661_p9 = pnand %p7660_p8, %p7654_p5 }
 0x2b8   :  { %7664 = shalt.err (!%p7661_p9)
}
 0x2b9   :  { %s9462_s21 = sld [smem:[#allocation111_spill]]  ;;  %s7930_s7 = smov [#allocation52]  }
 0x2ba   :  { %510 = dma.hbm_to_vmem [thread:$0]  %s9461_s17, 25600, %s505_s1, [#allocation50], %s7904_s10, %s7904_s10, %s7905_s3  }
 0x2bb   :  { %s517_s24 = sshll.u32 %s7930_s7, 4  ;;  %s518_s24 = int_to_ptr.vmem [resolvable:$true] %s517_s24 }
 0x2bf   :  { %s7665_s0 = scalar_lea.hbm %s9462_s21, 64 }
 0x2c0   :  { %p7666_p10 = scmp.ne.s32.totalorder %s9462_s21, %s7665_s0  ;;  %p7669_p11 = scmp.lt.u32.totalorder %s7665_s0, %s9462_s21 }
 0x2c2   :  { %p7671_p12 = pnand %p7669_p11, %p7666_p10 }
 0x2c4   :  { %7674 = shalt.err (!%p7671_p12)
}
 0x2c5   :  { %s7675_s11 = scalar_lea.vmem %s518_s24, 64  ;;  %p7680_p0 = scmp.lt.s32.totalorder %s518_s24, %s518_s24 }
 0x2c6   :  { %p7676_p13 = scmp.ne.s32.totalorder %s518_s24, %s7675_s11  ;;  %p7681_p1 = scmp.lt.s32.totalorder %s7675_s11, %s7675_s11 }
 0x2c8   :  { %p7682_p2 = por %p7681_p1, %p7680_p0 }
 0x2ca   :  { %p7683_p3 = pnand %p7682_p2, %p7676_p13 }
 0x2cc   :  { %7686 = shalt.err (!%p7683_p3)
}
 0x2cd   :  { %520 = dma.hbm_to_vmem [thread:$0]  %s9462_s21, 64, %s518_s24, [#allocation53]  }
 0x2ce   :  { %7797 = dma.done.wait [#allocation5], 128  }
 0x2cf   :  { %7798 = vsyncadd [#allocation5], 4294967168 }
 0x2d0   :  { %7799 = dma.done.wait [#allocation8], 2048  }
 0x2d1   :  { %7800 = vsyncadd [#allocation8], 4294965248 }
 0x2d2   :  { %7801 = dma.done.wait [#allocation11], 64  }
 0x2d3   :  { %7802 = vsyncadd [#allocation11], 4294967232 }
 0x2d4   :  { %7803 = dma.done.wait [#allocation14], 1040  }
 0x2d5   :  { %7804 = vsyncadd [#allocation14], 4294966256 }
 0x2d6   :  { %7805 = dma.done.wait [#allocation17], 64  }
 0x2d7   :  { %7806 = vsyncadd [#allocation17], 4294967232 }
 0x2d8   :  { %7807 = dma.done.wait [#allocation20], 6432  }
 0x2d9   :  { %7808 = vsyncadd [#allocation20], 4294960864 }
 0x2da   :  { %7809 = dma.done.wait [#allocation23], 6432  }
 0x2db   :  { %7810 = vsyncadd [#allocation23], 4294960864 }
 0x2dc   :  { %7811 = dma.done.wait [#allocation26], 12864  }
 0x2dd   :  { %7812 = vsyncadd [#allocation26], 4294954432 }
 0x2de   :  { %7813 = dma.done.wait [#allocation29], 784  }
 0x2df   :  { %7814 = vsyncadd [#allocation29], 4294966512 }
 0x2e0   :  { %7815 = dma.done.wait [#allocation32], 800  }
 0x2e1   :  { %7816 = vsyncadd [#allocation32], 4294966496 }
 0x2e2   :  { %7817 = dma.done.wait [#allocation35], 6432  }
 0x2e3   :  { %7818 = vsyncadd [#allocation35], 4294960864 }
 0x2e4   :  { %7819 = dma.done.wait [#allocation38], 6432  }
 0x2e5   :  { %7820 = vsyncadd [#allocation38], 4294960864 }
 0x2e6   :  { %7821 = dma.done.wait [#allocation41], 48  }
 0x2e7   :  { %7822 = vsyncadd [#allocation41], 4294967248 }
 0x2e8   :  { %7823 = dma.done.wait [#allocation44], 6432  }
 0x2e9   :  { %7824 = vsyncadd [#allocation44], 4294960864 }
 0x2ea   :  { %7825 = dma.done.wait [#allocation47], 80  }
 0x2eb   :  { %7826 = vsyncadd [#allocation47], 4294967216 }
 0x2ec   :  { %7827 = dma.done.wait [#allocation50], 25664  }
 0x2ed   :  { %7828 = vsyncadd [#allocation50], 4294941632 }
 0x2ee   :  { %7829 = dma.done.wait [#allocation53], 64  }
 0x2ef   :  { %7830 = vsyncadd [#allocation53], 4294967232  ;;  %v7931_v2 = vmov 0.0   ;;  %v7932_v3 = vmov 0.0|0.0   ;;  %vm647_vm0 = vcmask 1040384   ;;  %v624_v4 = vld [vmem:[#allocation7 + $0x8] sm:$0xff] }
 0x2f0   :  { %718 = vmatprep.mubr.f32.mxu0 %v7931_v2  ;;  %5498 = vmatprep.subr.bf16.mxu1 %v7932_v3  ;;  %v626_v5 = vld [vmem:[#allocation7 + $0x18] sm:$0xff]  ;;  %v623_v6 = vld [vmem:[#allocation7] sm:$0xff]  ;;  %v625_v8 = vld [vmem:[#allocation7 + $0x10] sm:$0xff]  ;;  %s9463_s10 = sld [smem:[#allocation84_spill]]  ;;  %vm7933_vm1 = vmmov 1   ;;  %s9466_s3 = sld [smem:[#allocation86_spill]] }
 0x2f1   :  { %v5488_v7 = vpack.c.bf16 %v626_v5, %v624_v4  ;;  %v628_v9 = vld [vmem:[#allocation7 + $0x28] sm:$0xff]  ;;  %v630_v10 = vld [vmem:[#allocation7 + $0x38] sm:$0x1]  ;;  %v5490_v11 = vpack.c.bf16 %v625_v8, %v623_v6  ;;  %vm8412_vm2 = vmpackc.low %vm647_vm0, %vm7933_vm1  ;;  %vm643_vm3 = vcmask 203776   ;;  %s9467_s19 = sld [smem:[#allocation88_spill]]  ;;  %s9468_s25 = sld [smem:[#allocation83_spill]] }
 0x2f2   :  { %v5492_v12 = vpack.c.bf16 %v630_v10, %v628_v9  ;;  %v627_v14 = vld [vmem:[#allocation7 + $0x20] sm:$0xff]  ;;  %v629_v15 = vld [vmem:[#allocation7 + $0x30] sm:$0x1]  ;;  %v854_v16 = vld [vmem:[#allocation9 + $0x8] sm:$0xff]  ;;  %vm769_vm4 = vcmask 588800   ;;  %s9469_s26 = sld [smem:[#allocation90_spill]] }
 0x2f3   :  { %5489 = vmatprep.subr.bf16.mxu0 %v5488_v7  ;;  %v856_v17 = vld [vmem:[#allocation9 + $0x18] sm:$0xff]  ;;  %v5495_v18 = vpack.c.bf16 %v629_v15, %v627_v14  ;;  %v853_v19 = vld [vmem:[#allocation9] sm:$0xff]  ;;  %v855_v20 = vld [vmem:[#allocation9 + $0x10] sm:$0xff]  ;;  %s9470_s15 = sld [smem:[#allocation82_spill]]  ;;  %s7934_s22 = smov 1   ;;  %vm5100_vm11 = vcmask 7168  }
 0x2f4   :  { %5491 = vmatpush1.bf16.msra.mxu0 %v5490_v11  ;;  %v5534_v21 = vpack.c.bf16 %v856_v17, %v854_v16  ;;  %v858_v22 = vld [vmem:[#allocation9 + $0x28] sm:$0xff]  ;;  %v860_v23 = vld [vmem:[#allocation9 + $0x38] sm:$0x1]  ;;  %v5536_v30 = vpack.c.bf16 %v855_v20, %v853_v19  ;;  %v857_v32 = vld [vmem:[#allocation9 + $0x20] sm:$0xff]  ;;  %s9471_s6 = sld [smem:[#allocation114_spill]]  ;;  %s9472_s30 = sld [smem:[#allocation89_spill]] }
 0x2f5   :  { %5494 = vmatprep.subr.msk.bf16.mxu0 %vm8412_vm2, %v5492_v12  ;;  %v621_v29 = vld [vmem:[#allocation4] sm:$0xff]  ;;  %v5538_v31 = vpack.c.bf16 %v860_v23, %v858_v22  ;;  %v859_v33 = vld [vmem:[#allocation9 + $0x30] sm:$0x1]  ;;  %vm1458_vm14 = vcmask 130048   ;;  %s7935_s23 = smov 127   ;;  %s9473_s16 = sld [smem:[#allocation115_spill]] }
 0x2f6   :  { %v737_v24 = vld [vmem:[%s9463_s10] sm:$0xff]  ;;  %v738_v25 = vld [vmem:[%s9463_s10 + $0x8] sm:$0xff]  ;;  %v739_v26 = vld [vmem:[%s9463_s10 + $0x10] sm:$0xff]  ;;  %v5541_v39 = vpack.c.bf16 %v859_v33, %v857_v32  ;;  %s9474_s20 = sld [smem:[#allocation96_spill]]  ;;  %s7937_s18 = smov 88  }
 0x2f7   :  { %v740_v27 = vld [vmem:[%s9463_s10 + $0x18] sm:$0xff]  ;;  %v5499_v28 = vpack.c.bf16 %v738_v25, %v737_v24  ;;  %v963_v35 = vld [vmem:[%s9466_s3 + $0x8] sm:$0xff]  ;;  %v741_v37 = vld [vmem:[%s9463_s10 + $0x20] sm:$0xff]  ;;  %s9475_s9 = sld [smem:[#allocation98_spill]]  ;;  %s7938_s8 = smov 112  }
 0x2f8   :  { %5497 = vmatpush1.bf16.msk.msra.mxu0 %vm8412_vm2, %v5495_v18  ;;  %v5502_v34 = vpack.c.bf16 %v740_v27, %v739_v26  ;;  %v965_v36 = vld [vmem:[%s9466_s3 + $0x18] sm:$0xff]  ;;  %v742_v38 = vld [vmem:[%s9463_s10 + $0x28] sm:$0xff]  ;;  %v962_v42 = vld [vmem:[%s9466_s3] sm:$0xff]  ;;  %s7939_s27 = smov 124   ;;  %s7940_s28 = smov 126  }
 0x2f9   :  { %5535 = vmatprep.subr.bf16.mxu0 %v5534_v21  ;;  %5500 = vmatpush1.bf16.msra.mxu1 %v5499_v28  ;;  %v5544_v40 = vpack.c.bf16 %v965_v36, %v963_v35  ;;  %v5505_v41 = vpack.c.bf16 %v742_v38, %v741_v37  ;;  %v964_v43 = vld [vmem:[%s9466_s3 + $0x10] sm:$0xff]  ;;  %v967_v44 = vld [vmem:[%s9466_s3 + $0x28] sm:$0xff]  ;;  %v969_v45 = vld [vmem:[%s9466_s3 + $0x38] sm:$0xff]  ;;  %s9476_s1 = sld [smem:[#allocation118_spill]]  ;;  %s9478_s4 = sld [smem:[#allocation106_spill]] }
 0x2fa   :  { %5501 = vmatprep.subr.bf16.mxu1 %v7932_v3  ;;  %v743_v46 = vld [vmem:[%s9463_s10 + $0x30] sm:$0xff]  ;;  %v744_v47 = vld [vmem:[%s9463_s10 + $0x38] sm:$0xff]  ;;  %v5546_v48 = vpack.c.bf16 %v964_v43, %v962_v42  ;;  %v5548_v49 = vpack.c.bf16 %v969_v45, %v967_v44  ;;  %v966_v51 = vld [vmem:[%s9466_s3 + $0x20] sm:$0xff]  ;;  %s9477_s12 = sld [smem:[#allocation102_spill]]  ;;  %s9479_s17 = sld [smem:[#allocation108_spill]] }
 0x2fb   :  { %5290 = vmatmul.mubr.msk.f32.vlgmr.msra.gmra.mrb[0].mxu0 %vm643_vm3, %v621_v29  ;;  %v5508_v50 = vpack.c.bf16 %v744_v47, %v743_v46  ;;  %v968_v52 = vld [vmem:[%s9466_s3 + $0x30] sm:$0xff]  ;;  %v971_v53 = vld [vmem:[%s9466_s3 + $0x48] sm:$0xff]  ;;  %v973_v54 = vld [vmem:[%s9466_s3 + $0x58] sm:$0xff]  ;;  %s9480_s13 = sld [smem:[#allocation105_spill]]  ;;  %s9481_s2 = sld [smem:[#allocation112_spill]] }
 0x2fc   :  { %5537 = vmatpush1.bf16.msra.mxu0 %v5536_v30  ;;  %943 = vmatprep.mubr.f32.mxu0 %v7931_v2  ;;  %v745_v55 = vld [vmem:[%s9463_s10 + $0x40] sm:$0xff]  ;;  %v746_v56 = vld [vmem:[%s9463_s10 + $0x48] sm:$0xff]  ;;  %v5550_v57 = vpack.c.bf16 %v968_v52, %v966_v51  ;;  %v5552_v58 = vpack.c.bf16 %v973_v54, %v971_v53  ;;  %v972_v61 = vld [vmem:[%s9466_s3 + $0x50] sm:$0xff]  ;;  %s9482_s21 = sld [smem:[#allocation113_spill]]  ;;  %s7941_s7 = smov 108  }
 0x2fd   :  { %5540 = vmatprep.subr.msk.bf16.mxu0 %vm8412_vm2, %v5538_v31  ;;  %5503 = vmatpush1.bf16.msra.mxu1 %v5502_v34  ;;  %v5511_v59 = vpack.c.bf16 %v746_v56, %v745_v55  ;;  %v970_v60 = vld [vmem:[%s9466_s3 + $0x40] sm:$0xff]  ;;  %v975_v62 = vld [vmem:[%s9466_s3 + $0x68] sm:$0xff]  ;;  %v977_v63 = vld [vmem:[%s9466_s3 + $0x78] sm:$0xff]  ;;  %s7942_s24 = smov 3   ;;  %s7943_s0 = smov 122  }
 0x2fe   :  { %5504 = vmatprep.subr.bf16.mxu1 %v7932_v3  ;;  %v747_v0 = vld [vmem:[%s9463_s10 + $0x50] sm:$0xff]  ;;  %v748_v1 = vld [vmem:[%s9463_s10 + $0x58] sm:$0xff]  ;;  %v5554_v4 = vpack.c.bf16 %v972_v61, %v970_v60  ;;  %v5556_v5 = vpack.c.bf16 %v977_v63, %v975_v62  ;;  %v974_v7 = vld [vmem:[%s9466_s3 + $0x60] sm:$0xff]  ;;  %s7944_s11 = smov [#allocation55]  }
 0x2ff   :  { %v5514_v6 = vpack.c.bf16 %v748_v1, %v747_v0  ;;  %v976_v8 = vld [vmem:[%s9466_s3 + $0x70] sm:$0xff]  ;;  %v979_v9 = vld [vmem:[%s9466_s3 + $0x88] sm:$0xff]  ;;  %v981_v10 = vld [vmem:[%s9466_s3 + $0x98] sm:$0xff] }
 0x300   :  { %5543 = vmatpush1.bf16.msk.msra.mxu0 %vm8412_vm2, %v5541_v39  ;;  %v749_v11 = vld [vmem:[%s9463_s10 + $0x60] sm:$0xff]  ;;  %v750_v12 = vld [vmem:[%s9463_s10 + $0x68] sm:$0xff]  ;;  %v5558_v14 = vpack.c.bf16 %v976_v8, %v974_v7  ;;  %v5560_v15 = vpack.c.bf16 %v981_v10, %v979_v9  ;;  %v980_v18 = vld [vmem:[%s9466_s3 + $0x90] sm:$0xff] }
 0x301   :  { %5545 = vmatprep.subr.bf16.mxu0 %v5544_v40  ;;  %5506 = vmatpush1.bf16.msra.mxu1 %v5505_v41  ;;  %v5517_v16 = vpack.c.bf16 %v750_v12, %v749_v11  ;;  %v978_v17 = vld [vmem:[%s9466_s3 + $0x80] sm:$0xff]  ;;  %v983_v20 = vld [vmem:[%s9466_s3 + $0xa8] sm:$0xff]  ;;  %v985_v21 = vld [vmem:[%s9466_s3 + $0xb8] sm:$0xff] }
 0x302   :  { %5507 = vmatprep.subr.bf16.mxu1 %v7932_v3  ;;  %v5562_v19 = vpack.c.bf16 %v980_v18, %v978_v17  ;;  %v5564_v22 = vpack.c.bf16 %v985_v21, %v983_v20  ;;  %v751_v23 = vld [vmem:[%s9463_s10 + $0x70] sm:$0xff]  ;;  %v752_v24 = vld [vmem:[%s9463_s10 + $0x78] sm:$0xff]  ;;  %v982_v25 = vld [vmem:[%s9466_s3 + $0xa0] sm:$0xff] }
 0x303   :  { %5298 = vmatmul.mubr.msk.f32.vlgmr.msra.gmra.mrb[2].mxu0 %vm643_vm3, %v621_v29  ;;  %v5520_v26 = vpack.c.bf16 %v752_v24, %v751_v23  ;;  %v984_v27 = vld [vmem:[%s9466_s3 + $0xb0] sm:$0xff]  ;;  %v987_v29 = vld [vmem:[%s9466_s3 + $0xc8] sm:$0xff]  ;;  %v989_v30 = vld [vmem:[%s9466_s3 + $0xd8] sm:$0xff] }
 0x304   :  { %5547 = vmatpush1.bf16.msra.mxu0 %v5546_v48  ;;  %v5566_v28 = vpack.c.bf16 %v984_v27, %v982_v25  ;;  %v5568_v31 = vpack.c.bf16 %v989_v30, %v987_v29  ;;  %v753_v32 = vld [vmem:[%s9463_s10 + $0x80] sm:$0xff]  ;;  %v754_v33 = vld [vmem:[%s9463_s10 + $0x88] sm:$0xff]  ;;  %v988_v36 = vld [vmem:[%s9466_s3 + $0xd0] sm:$0xff]  ;;  %v633_v25 = vlaneseq }
 0x305   :  { %5549 = vmatprep.subr.bf16.mxu0 %v5548_v49  ;;  %5509 = vmatpush1.bf16.msra.mxu1 %v5508_v50  ;;  %v986_v34 = vld [vmem:[%s9466_s3 + $0xc0] sm:$0xff]  ;;  %v5523_v35 = vpack.c.bf16 %v754_v33, %v753_v32  ;;  %v991_v38 = vld [vmem:[%s9466_s3 + $0xe8] sm:$0xff]  ;;  %v993_v39 = vld [vmem:[%s9466_s3 + $0xf8] sm:$0xff] }
 0x306   :  { %5510 = vmatprep.subr.bf16.mxu1 %v7932_v3  ;;  %v5570_v37 = vpack.c.bf16 %v988_v36, %v986_v34  ;;  %v5572_v40 = vpack.c.bf16 %v993_v39, %v991_v38  ;;  %v755_v41 = vld [vmem:[%s9463_s10 + $0x90] sm:$0xff]  ;;  %v756_v42 = vld [vmem:[%s9463_s10 + $0x98] sm:$0xff]  ;;  %v990_v43 = vld [vmem:[%s9466_s3 + $0xe0] sm:$0xff] }
 0x307   :  { %v5526_v44 = vpack.c.bf16 %v756_v42, %v755_v41  ;;  %v992_v45 = vld [vmem:[%s9466_s3 + $0xf0] sm:$0xff]  ;;  %v995_v47 = vld [vmem:[%s9466_s3 + $0x108] sm:$0xff]  ;;  %v997_v48 = vld [vmem:[%s9466_s3 + $0x118] sm:$0xff] }
 0x308   :  { %5551 = vmatpush1.bf16.msra.mxu0 %v5550_v57  ;;  %v5574_v46 = vpack.c.bf16 %v992_v45, %v990_v43  ;;  %v5576_v49 = vpack.c.bf16 %v997_v48, %v995_v47  ;;  %v757_v50 = vld [vmem:[%s9463_s10 + $0xa0] sm:$0xff]  ;;  %v758_v51 = vld [vmem:[%s9463_s10 + $0xa8] sm:$0xff]  ;;  %v996_v54 = vld [vmem:[%s9466_s3 + $0x110] sm:$0xff] }
 0x309   :  { %5553 = vmatprep.subr.bf16.mxu0 %v5552_v58  ;;  %5512 = vmatpush1.bf16.msra.mxu1 %v5511_v59  ;;  %v994_v52 = vld [vmem:[%s9466_s3 + $0x100] sm:$0xff]  ;;  %v5529_v53 = vpack.c.bf16 %v758_v51, %v757_v50  ;;  %v999_v56 = vld [vmem:[%s9466_s3 + $0x128] sm:$0xff]  ;;  %v1001_v57 = vld [vmem:[%s9466_s3 + $0x138] sm:$0xff] }
 0x30a   :  { %5513 = vmatprep.subr.bf16.mxu1 %v7932_v3  ;;  %v5578_v55 = vpack.c.bf16 %v996_v54, %v994_v52  ;;  %v5580_v58 = vpack.c.bf16 %v1001_v57, %v999_v56  ;;  %v759_v59 = vld [vmem:[%s9463_s10 + $0xb0] sm:$0xff]  ;;  %v760_v60 = vld [vmem:[%s9463_s10 + $0xb8] sm:$0xff]  ;;  %v998_v61 = vld [vmem:[%s9466_s3 + $0x120] sm:$0xff] }
 0x30b   :  { %v5532_v62 = vpack.c.bf16 %v760_v60, %v759_v59  ;;  %v1000_v63 = vld [vmem:[%s9466_s3 + $0x130] sm:$0xff]  ;;  %v1003_v0 = vld [vmem:[%s9466_s3 + $0x148] sm:$0xff]  ;;  %v1005_v1 = vld [vmem:[%s9466_s3 + $0x158] sm:$0xff] }
 0x30c   :  { %5555 = vmatpush1.bf16.msra.mxu0 %v5554_v4  ;;  %v5582_v4 = vpack.c.bf16 %v1000_v63, %v998_v61  ;;  %v1002_v7 = vld [vmem:[%s9466_s3 + $0x140] sm:$0xff]  ;;  %v1004_v8 = vld [vmem:[%s9466_s3 + $0x150] sm:$0xff]  ;;  %v1007_v10 = vld [vmem:[%s9466_s3 + $0x168] sm:$0xff] }
 0x30d   :  { %5557 = vmatprep.subr.bf16.mxu0 %v5556_v5  ;;  %5515 = vmatpush1.bf16.msra.mxu1 %v5514_v6  ;;  %v5584_v5 = vpack.c.bf16 %v1005_v1, %v1003_v0  ;;  %v761_v6 = vld [vmem:[%s9463_s10 + $0xc0] sm:$0xff]  ;;  %v5586_v9 = vpack.c.bf16 %v1004_v8, %v1002_v7  ;;  %v1009_v11 = vld [vmem:[%s9466_s3 + $0x178] sm:$0xff]  ;;  %v1011_v17 = vld [vmem:[%s9466_s3 + $0x188] sm:$0xff]  ;;  %s5145_s10 = sshll.u32 %s7944_s11, 4  ;;  %s5146_s10 = int_to_ptr.vmem [resolvable:$true] %s5145_s10 }
 0x30e   :  { %5516 = vmatprep.subr.bf16.mxu1 %v7932_v3  ;;  %v5588_v12 = vpack.c.bf16 %v1009_v11, %v1007_v10  ;;  %v1010_v18 = vld [vmem:[%s9466_s3 + $0x180] sm:$0xff]  ;;  %v1115_v20 = vld [vmem:[%s9467_s19 + $0x28] sm:$0xff]  ;;  %v1113_v21 = vld [vmem:[%s9467_s19 + $0x18] sm:$0xff]  ;;  %p7692_p5 = scmp.lt.s32.totalorder %s5146_s10, %s5146_s10 }
 0x30f   :  { %v1117_v23 = vld [vmem:[%s9467_s19 + $0x38] sm:$0xff]  ;;  %v861_v36 = vld [vmem:[#allocation10] sm:$0x3]  ;;  %v1110_v52 = vld [vmem:[%s9467_s19] sm:$0xff] }
 0x310   :  { %5559 = vmatpush1.bf16.msra.mxu0 %v5558_v14  ;;  %v1006_v14 = vld [vmem:[%s9466_s3 + $0x160] sm:$0xff]  ;;  %v5640_v24 = vpack.c.bf16 %v1117_v23, %v1113_v21  ;;  %v1119_v56 = vld [vmem:[%s9467_s19 + $0x48] sm:$0xff]  ;;  %v1120_v21 = vld [vmem:[%s9467_s19 + $0x50] sm:$0xff] }
 0x311   :  { %5561 = vmatprep.subr.bf16.mxu0 %v5560_v15  ;;  %5518 = vmatpush1.bf16.msra.mxu1 %v5517_v16  ;;  %v1008_v15 = vld [vmem:[%s9466_s3 + $0x170] sm:$0xff]  ;;  %v1123_v57 = vld [vmem:[%s9467_s19 + $0x68] sm:$0xff]  ;;  %v1122_v63 = vld [vmem:[%s9467_s19 + $0x60] sm:$0xff]  ;;  %s7687_s3 = scalar_lea.vmem %s5146_s10, 128 }
 0x312   :  { %5519 = vmatprep.subr.bf16.mxu1 %v7932_v3  ;;  %v5590_v16 = vpack.c.bf16 %v1008_v15, %v1006_v14  ;;  %v5596_v61 = vpack.c.bf16 %v1123_v57, %v1119_v56  ;;  %v1127_v1 = vld [vmem:[%s9467_s19 + $0x88] sm:$0xff]  ;;  %v1126_v11 = vld [vmem:[%s9467_s19 + $0x80] sm:$0xff]  ;;  %v1144_v56 = vld [vmem:[%s9467_s19 + $0x110] sm:$0xff]  ;;  %p7688_p4 = scmp.ne.s32.totalorder %s5146_s10, %s7687_s3  ;;  %p7693_p6 = scmp.lt.s32.totalorder %s7687_s3, %s7687_s3 }
 0x313   :  { %v1148_v57 = vld [vmem:[%s9467_s19 + $0x130] sm:$0xff]  ;;  %v1759_v13 = vld [vmem:[#allocation19 + $0x8] sm:$0xff] }
 0x314   :  { %5563 = vmatpush1.bf16.msra.mxu0 %v5562_v19  ;;  %v1111_v19 = vld [vmem:[%s9467_s19 + $0x8] sm:$0xff]  ;;  %p7694_p7 = por %p7693_p6, %p7692_p5 }
 0x315   :  { %5565 = vmatprep.subr.bf16.mxu0 %v5564_v22  ;;  %5521 = vmatpush1.bf16.msra.mxu1 %v5520_v26  ;;  %v5592_v22 = vpack.c.bf16 %v1115_v20, %v1111_v19  ;;  %v8518_v26 = vshrl.u32 %v633_v25, 7 }
 0x316   :  { %5522 = vmatprep.subr.bf16.mxu1 %v7932_v3  ;;  %p7695_p8 = pnand %p7694_p7, %p7688_p4 }
 0x317   :  { %v8521_v27 = vsub.s32 0, %v8518_v26  ;;  %v8525_v29 = vsub.s32 1, %v8518_v26 }
 0x318   :  { %5567 = vmatpush1.bf16.msra.mxu0 %v5566_v28  ;;  %v631_v28 = vld [vmem:[%s9468_s25] sm:$0x3] }
 0x319   :  { %5569 = vmatprep.subr.bf16.mxu0 %v5568_v31  ;;  %5524 = vmatpush1.bf16.msra.mxu1 %v5523_v35  ;;  %v636_v30 = vrot.slane %v631_v28, %v8521_v27  ;;  %v640_v31 = vrot.slane %v631_v28, %v8525_v29  ;;  %v870_v42 = vrot.slane %v861_v36, %v8525_v29  ;;  %v1129_v28 = vld [vmem:[%s9467_s19 + $0x98] sm:$0xff] }
 0x31a   :  { %5525 = vmatprep.subr.bf16.mxu1 %v7932_v3 }
 0x31c   :  { %5571 = vmatpush1.bf16.msra.mxu0 %v5570_v37 }
 0x31d   :  { %5573 = vmatprep.subr.bf16.mxu0 %v5572_v40  ;;  %5527 = vmatpush1.bf16.msra.mxu1 %v5526_v44  ;;  %v866_v40 = vrot.slane %v861_v36, %v8521_v27  ;;  %v1147_v36 = vld [vmem:[%s9467_s19 + $0x128] sm:$0xff] }
 0x31e   :  { %5528 = vmatprep.subr.bf16.mxu1 %v7932_v3 }
 0x320   :  { %5575 = vmatpush1.bf16.msra.mxu0 %v5574_v46 }
 0x321   :  { %5577 = vmatprep.subr.bf16.mxu0 %v5576_v49  ;;  %5530 = vmatpush1.bf16.msra.mxu1 %v5529_v53  ;;  %v1114_v53 = vld [vmem:[%s9467_s19 + $0x20] sm:$0xff] }
 0x322   :  { %5531 = vmatprep.subr.bf16.mxu1 %v7932_v3  ;;  %v5594_v59 = vpack.c.bf16 %v1114_v53, %v1110_v52  ;;  %v1145_v52 = vld [vmem:[%s9467_s19 + $0x118] sm:$0xff] }
 0x323   :  { %v1149_v53 = vld [vmem:[%s9467_s19 + $0x138] sm:$0xff] }
 0x324   :  { %5579 = vmatpush1.bf16.msra.mxu0 %v5578_v55 }
 0x325   :  { %5581 = vmatprep.subr.bf16.mxu0 %v5580_v58  ;;  %5533 = vmatpush1.bf16.msra.mxu1 %v5532_v62  ;;  %v1118_v62 = vld [vmem:[%s9467_s19 + $0x40] sm:$0xff] }
 0x326   :  { %821 = vmatprep.subr.mxu1 %v7931_v2  ;;  %v5598_v7 = vpack.c.bf16 %v1122_v63, %v1118_v62  ;;  %v1157_v63 = vld [vmem:[%s9467_s19 + $0x178] sm:$0xff] }
 0x328   :  { %5583 = vmatpush1.bf16.msra.mxu0 %v5582_v4  ;;  %v1131_v4 = vld [vmem:[%s9467_s19 + $0xa8] sm:$0xff] }
 0x329   :  { %5585 = vmatprep.subr.bf16.mxu0 %v5584_v5  ;;  %822 = vmatpush1.msra.mxu1 %v761_v6  ;;  %v1112_v5 = vld [vmem:[%s9467_s19 + $0x10] sm:$0xff]  ;;  %v5600_v10 = vpack.c.bf16 %v1131_v4, %v1127_v1  ;;  %v1154_v1 = vld [vmem:[%s9467_s19 + $0x160] sm:$0xff] }
 0x32a   :  { %5593 = vmatprep.subr.bf16.mxu1 %v5592_v22  ;;  %v1116_v6 = vld [vmem:[%s9467_s19 + $0x30] sm:$0xff] }
 0x32b   :  { %v5642_v20 = vpack.c.bf16 %v1116_v6, %v1112_v5  ;;  %v1124_v22 = vld [vmem:[%s9467_s19 + $0x70] sm:$0xff] }
 0x32c   :  { %5587 = vmatpush1.bf16.msra.mxu0 %v5586_v9  ;;  %v1121_v9 = vld [vmem:[%s9467_s19 + $0x58] sm:$0xff]  ;;  %v1152_v6 = vld [vmem:[%s9467_s19 + $0x150] sm:$0xff] }
 0x32d   :  { %5589 = vmatprep.subr.bf16.mxu0 %v5588_v12  ;;  %v1130_v12 = vld [vmem:[%s9467_s19 + $0xa0] sm:$0xff] }
 0x32e   :  { %v5602_v23 = vpack.c.bf16 %v1130_v12, %v1126_v11  ;;  %v1161_v11 = vld [vmem:[%s9467_s19 + $0x198] sm:$0xff] }
 0x330   :  { %5591 = vmatpush1.bf16.msra.mxu0 %v5590_v16  ;;  %v1125_v16 = vld [vmem:[%s9467_s19 + $0x78] sm:$0xff] }
 0x331   :  { %1075 = vmatprep.subr.mxu0 %v1011_v17  ;;  %v1135_v17 = vld [vmem:[%s9467_s19 + $0xc8] sm:$0xff]  ;;  %v5644_v25 = vpack.c.bf16 %v1125_v16, %v1121_v9  ;;  %v1162_v16 = vld [vmem:[%s9467_s19 + $0x1a0] sm:$0xff] }
 0x332   :  { %v1159_v9 = vld [vmem:[%s9467_s19 + $0x188] sm:$0xff] }
 0x334   :  { %1076 = vmatpush1.msra.mxu0 %v1010_v18  ;;  %v1139_v18 = vld [vmem:[%s9467_s19 + $0xe8] sm:$0xff] }
 0x335   :  { %5641 = vmatprep.subr.bf16.mxu0 %v5640_v24 }
 0x3ce   :  { %v720_v32 = vpop.f32.mrb[0].mxu0 }
 0x3cf   :  { %v721_v33 = vadd.f32 %v720_v32, %v636_v30  ;;  %v722_v34 = vpop.f32.mrb[1].mxu0  ;;  %v5604_v30 = vpack.c.bf16 %v1139_v18, %v1135_v17  ;;  %v1138_v32 = vld [vmem:[%s9467_s19 + $0xe0] sm:$0xff] }
 0x3d0   :  { %v723_v35 = vadd.f32 %v722_v34, %v640_v31  ;;  %v1134_v31 = vld [vmem:[%s9467_s19 + $0xc0] sm:$0xff]  ;;  %v1133_v34 = vld [vmem:[%s9467_s19 + $0xb8] sm:$0xff] }
 0x3d1   :  { %v727_v37 = vmin.f32 %v721_v33, 0.0  ;;  %vm725_vm6 = vcmp.gt.f32.partialorder %v721_v33, 0.0 }
 0x3d2   :  { %v728_v38 = vmin.f32 %v723_v35, 0.0  ;;  %vm726_vm5 = vcmp.gt.f32.partialorder %v723_v35, 0.0 }
 0x3d3   :  { %v729_v39 = vmul.f32 1.442695, %v727_v37  ;;  %v5646_v37 = vpack.c.bf16 %v1124_v22, %v1120_v21  ;;  %v1167_v22 = vld [vmem:[%s9467_s19 + $0x1c8] sm:$0xff] }
 0x3d4   :  { %v731_v41 = vmul.f32 1.442695, %v728_v38  ;;  %v1128_v38 = vld [vmem:[%s9467_s19 + $0x90] sm:$0xff] }
 0x3d5   :  { %6866 = vpow2.f32 %v729_v39  ;;  %v5606_v39 = vpack.c.bf16 %v1138_v32, %v1134_v31  ;;  %v1170_v32 = vld [vmem:[%s9467_s19 + $0x1e0] sm:$0xff] }
 0x3d6   :  { %6868 = vpow2.f32 %v731_v41  ;;  %v945_v43 = vpop.f32.mrb[2].mxu0  ;;  %v1132_v41 = vld [vmem:[%s9467_s19 + $0xb0] sm:$0xff] }
 0x3d7   :  { %v946_v44 = vadd.f32 %v945_v43, %v866_v40  ;;  %v947_v45 = vpop.f32.mrb[3].mxu0  ;;  %v5648_v40 = vpack.c.bf16 %v1133_v34, %v1129_v28  ;;  %v1142_v43 = vld [vmem:[%s9467_s19 + $0x100] sm:$0xff]  ;;  %v1173_v28 = vld [vmem:[%s9467_s19 + $0x1f8] sm:$0xff]  ;;  %v1172_v34 = vld [vmem:[%s9467_s19 + $0x1f0] sm:$0xff] }
 0x3d8   :  { %v948_v46 = vadd.f32 %v947_v45, %v870_v42  ;;  %v1137_v45 = vld [vmem:[%s9467_s19 + $0xd8] sm:$0xff] }
 0x3d9   :  { %v952_v47 = vmin.f32 %v946_v44, 0.0  ;;  %vm950_vm8 = vcmp.gt.f32.partialorder %v946_v44, 0.0 }
 0x3da   :  { %v953_v48 = vmin.f32 %v948_v46, 0.0  ;;  %vm951_vm7 = vcmp.gt.f32.partialorder %v948_v46, 0.0 }
 0x3db   :  { %v954_v49 = vmul.f32 1.442695, %v952_v47  ;;  %v5650_v47 = vpack.c.bf16 %v1132_v41, %v1128_v38  ;;  %v1179_v38 = vld [vmem:[%s9467_s19 + $0x228] sm:$0xff]  ;;  %v1181_v41 = vld [vmem:[%s9467_s19 + $0x238] sm:$0xff] }
 0x3dc   :  { %v956_v50 = vmul.f32 1.442695, %v953_v48 }
 0x3dd   :  { %6870 = vpow2.f32 %v954_v49 }
 0x3de   :  { %6872 = vpow2.f32 %v956_v50  ;;  %v1136_v50 = vld [vmem:[%s9467_s19 + $0xd0] sm:$0xff] }
 0x3df   :  { %v6867_v51 = vpop.eup %6866 }
 0x3e0   :  { %v6869_v54 = vpop.eup %6868  ;;  %v5291_v55 = vadd.f32 -1.0, %v6867_v51  ;;  %v1140_v51 = vld [vmem:[%s9467_s19 + $0xf0] sm:$0xff] }
 0x3e1   :  { %v5292_v58 = vadd.f32 -1.0, %v6869_v54  ;;  %v5654_v54 = vpack.c.bf16 %v1140_v51, %v1136_v50  ;;  %v1187_v50 = vld [vmem:[%s9467_s19 + $0x268] sm:$0xff]  ;;  %v1185_v51 = vld [vmem:[%s9467_s19 + $0x258] sm:$0xff] }
 0x3e2   :  { %v735_v0 = vsel %vm725_vm6, %v721_v33, %v5291_v55  ;;  %v5656_v55 = vpack.c.bf16 %v1149_v53, %v1145_v52  ;;  %v1189_v53 = vld [vmem:[%s9467_s19 + $0x278] sm:$0xff] }
 0x3e3   :  { %v736_v60 = vsel %vm726_vm5, %v723_v35, %v5292_v58  ;;  %v1143_v35 = vld [vmem:[%s9467_s19 + $0x108] sm:$0xff]  ;;  %v5658_v58 = vpack.c.bf16 %v1148_v57, %v1144_v56  ;;  %v5676_v56 = vpack.c.bf16 %v1189_v53, %v1185_v51 }
 0x3e4   :  { %5294 = vmatprep.mubr.msk.f32.mxu1 %vm769_vm4, %v736_v60  ;;  %v5608_v42 = vpack.c.bf16 %v1147_v36, %v1143_v35  ;;  %v1155_v60 = vld [vmem:[%s9467_s19 + $0x168] sm:$0xff] }
 0x3e5   :  { %838 = vmatmul.mubr.f32.vlgmr.msra.gmra.mrb[0].mxu1 %v735_v0  ;;  %v1150_v0 = vld [vmem:[%s9467_s19 + $0x140] sm:$0xff] }
 0x3e6   :  { %5595 = vmatpush1.bf16.msra.mxu1 %v5594_v59  ;;  %v1151_v59 = vld [vmem:[%s9467_s19 + $0x148] sm:$0xff]  ;;  %v5614_v5 = vpack.c.bf16 %v1154_v1, %v1150_v0  ;;  %v1197_v1 = vld [vmem:[%s9467_s19 + $0x2b8] sm:$0xff] }
 0x3e7   :  { %v6871_v8 = vpop.eup %6870  ;;  %5597 = vmatprep.subr.bf16.mxu1 %v5596_v61  ;;  %v1153_v61 = vld [vmem:[%s9467_s19 + $0x158] sm:$0xff]  ;;  %v5612_v62 = vpack.c.bf16 %v1155_v60, %v1151_v59  ;;  %v1188_v59 = vld [vmem:[%s9467_s19 + $0x270] sm:$0xff] }
 0x3e8   :  { %v6873_v14 = vpop.eup %6872  ;;  %v5299_v15 = vadd.f32 -1.0, %v6871_v8  ;;  %v5660_v4 = vpack.c.bf16 %v1157_v63, %v1153_v61  ;;  %v1191_v61 = vld [vmem:[%s9467_s19 + $0x288] sm:$0xff]  ;;  %v1193_v63 = vld [vmem:[%s9467_s19 + $0x298] sm:$0xff] }
 0x3e9   :  { %v5300_v19 = vadd.f32 -1.0, %v6873_v14  ;;  %v1165_v14 = vld [vmem:[%s9467_s19 + $0x1b8] sm:$0xff] }
 0x3ea   :  { %5599 = vmatpush1.bf16.msra.mxu1 %v5598_v7  ;;  %v960_v33 = vsel %vm950_vm8, %v946_v44, %v5299_v15  ;;  %v1146_v44 = vld [vmem:[%s9467_s19 + $0x120] sm:$0xff]  ;;  %v1156_v7 = vld [vmem:[%s9467_s19 + $0x170] sm:$0xff]  ;;  %v5664_v17 = vpack.c.bf16 %v1165_v14, %v1161_v11  ;;  %v1201_v14 = vld [vmem:[%s9467_s19 + $0x2d8] sm:$0xff] }
 0x3eb   :  { %v961_v24 = vsel %vm951_vm7, %v948_v46, %v5300_v19  ;;  %5601 = vmatprep.subr.bf16.mxu1 %v5600_v10  ;;  %v1141_v46 = vld [vmem:[%s9467_s19 + $0xf8] sm:$0xff]  ;;  %v5610_v48 = vpack.c.bf16 %v1146_v44, %v1142_v43  ;;  %v5662_v8 = vpack.c.bf16 %v1156_v7, %v1152_v6  ;;  %v1163_v10 = vld [vmem:[%s9467_s19 + $0x1a8] sm:$0xff]  ;;  %v1158_v15 = vld [vmem:[%s9467_s19 + $0x180] sm:$0xff]  ;;  %v5680_v6 = vpack.c.bf16 %v1197_v1, %v1193_v63 }
 0x3ec   :  { %5301 = vmatprep.mubr.msk.f32.mxu0 %vm769_vm4, %v961_v24  ;;  %v5652_v49 = vpack.c.bf16 %v1141_v46, %v1137_v45  ;;  %v5616_v12 = vpack.c.bf16 %v1163_v10, %v1159_v9  ;;  %v5618_v18 = vpack.c.bf16 %v1162_v16, %v1158_v15  ;;  %v1160_v19 = vld [vmem:[%s9467_s19 + $0x190] sm:$0xff]  ;;  %v1178_v43 = vld [vmem:[%s9467_s19 + $0x220] sm:$0xff]  ;;  %v1199_v10 = vld [vmem:[%s9467_s19 + $0x2c8] sm:$0xff] }
 0x3ed   :  { %1092 = vmatmul.mubr.f32.vlgmr.msra.gmra.mrb[4].mxu0 %v960_v33  ;;  %v1168_v33 = vld [vmem:[%s9467_s19 + $0x1d0] sm:$0xff]  ;;  %v1205_v15 = vld [vmem:[%s9467_s19 + $0x2f8] sm:$0xff] }
 0x3ee   :  { %5643 = vmatpush1.bf16.msra.mxu0 %v5642_v20  ;;  %5603 = vmatpush1.bf16.msra.mxu1 %v5602_v23  ;;  %v1164_v20 = vld [vmem:[%s9467_s19 + $0x1b0] sm:$0xff]  ;;  %v1171_v23 = vld [vmem:[%s9467_s19 + $0x1e8] sm:$0xff]  ;;  %v5670_v36 = vpack.c.bf16 %v1172_v34, %v1168_v33  ;;  %v5293_v34 = vld [vmem:[#allocation2] ss:$0 sm:$0xff] }
 0x3ef   :  { %5645 = vmatprep.subr.bf16.mxu0 %v5644_v25  ;;  %5605 = vmatprep.subr.bf16.mxu1 %v5604_v30  ;;  %v5666_v21 = vpack.c.bf16 %v1164_v20, %v1160_v19  ;;  %v5620_v24 = vpack.c.bf16 %v1171_v23, %v1167_v22  ;;  %v1169_v25 = vld [vmem:[%s9467_s19 + $0x1d8] sm:$0xff]  ;;  %v1166_v30 = vld [vmem:[%s9467_s19 + $0x1c0] sm:$0xff]  ;;  %v1176_v46 = vld [vmem:[%s9467_s19 + $0x210] sm:$0xff] }
 0x3f0   :  { %v5668_v31 = vpack.c.bf16 %v1173_v28, %v1169_v25  ;;  %v5622_v35 = vpack.c.bf16 %v1170_v32, %v1166_v30  ;;  %v1196_v9 = vld [vmem:[%s9467_s19 + $0x2b0] sm:$0xff]  ;;  %v1202_v19 = vld [vmem:[%s9467_s19 + $0x2e0] sm:$0xff]  ;;  %v1209_v25 = vld [vmem:[%s9467_s19 + $0x318] sm:$0xff] }
 0x3f1   :  { %v1200_v20 = vld [vmem:[%s9467_s19 + $0x2d0] sm:$0xff]  ;;  %v1206_v28 = vld [vmem:[%s9467_s19 + $0x300] sm:$0xff]  ;;  %v1418_v32 = vld [vmem:[%s9469_s26 + $0x88] sm:$0xff] }
 0x3f2   :  { %5647 = vmatpush1.bf16.msra.mxu0 %v5646_v37  ;;  %5607 = vmatpush1.bf16.msra.mxu1 %v5606_v39  ;;  %v1175_v37 = vld [vmem:[%s9467_s19 + $0x208] sm:$0xff]  ;;  %v1177_v39 = vld [vmem:[%s9467_s19 + $0x218] sm:$0xff]  ;;  %v1204_v22 = vld [vmem:[%s9467_s19 + $0x2f0] sm:$0xff] }
 0x3f3   :  { %5649 = vmatprep.subr.bf16.mxu0 %v5648_v40  ;;  %5609 = vmatprep.subr.bf16.mxu1 %v5608_v42  ;;  %v5624_v40 = vpack.c.bf16 %v1179_v38, %v1175_v37  ;;  %v1174_v42 = vld [vmem:[%s9467_s19 + $0x200] sm:$0xff]  ;;  %v5672_v44 = vpack.c.bf16 %v1181_v41, %v1177_v39  ;;  %v5686_v23 = vpack.c.bf16 %v1204_v22, %v1200_v20  ;;  %v1208_v30 = vld [vmem:[%s9467_s19 + $0x310] sm:$0xff]  ;;  %v1012_v39 = vld [vmem:[#allocation12] sm:$0x3] }
 0x3f4   :  { %v5626_v45 = vpack.c.bf16 %v1178_v43, %v1174_v42  ;;  %v1017_v43 = vrot.slane %v1012_v39, %v8521_v27  ;;  %v1420_v1 = vld [vmem:[%s9469_s26 + $0x98] sm:$0xff]  ;;  %v1437_v20 = vld [vmem:[%s9469_s26 + $0x120] sm:$0xff] }
 0x3f6   :  { %5651 = vmatpush1.bf16.msra.mxu0 %v5650_v47  ;;  %5611 = vmatpush1.bf16.msra.mxu1 %v5610_v48  ;;  %v1180_v47 = vld [vmem:[%s9467_s19 + $0x230] sm:$0xff] }
 0x3f7   :  { %5653 = vmatprep.subr.bf16.mxu0 %v5652_v49  ;;  %5613 = vmatprep.subr.bf16.mxu1 %v5612_v62  ;;  %v5674_v48 = vpack.c.bf16 %v1180_v47, %v1176_v46  ;;  %v1183_v49 = vld [vmem:[%s9467_s19 + $0x248] sm:$0xff] }
 0x3f8   :  { %v5628_v52 = vpack.c.bf16 %v1187_v50, %v1183_v49  ;;  %v1195_v62 = vld [vmem:[%s9467_s19 + $0x2a8] sm:$0xff] }
 0x3f9   :  { %v5632_v0 = vpack.c.bf16 %v1195_v62, %v1191_v61  ;;  %v1402_v61 = vld [vmem:[%s9469_s26 + $0x8] sm:$0xff] }
 0x3fa   :  { %5655 = vmatpush1.bf16.msra.mxu0 %v5654_v54  ;;  %5615 = vmatpush1.bf16.msra.mxu1 %v5614_v5  ;;  %v1182_v54 = vld [vmem:[%s9467_s19 + $0x240] sm:$0xff] }
 0x3fb   :  { %5657 = vmatprep.subr.bf16.mxu0 %v5656_v55  ;;  %5617 = vmatprep.subr.bf16.mxu1 %v5616_v12  ;;  %v1186_v55 = vld [vmem:[%s9467_s19 + $0x260] sm:$0xff]  ;;  %v1203_v12 = vld [vmem:[%s9467_s19 + $0x2e8] sm:$0xff] }
 0x3fc   :  { %v5630_v57 = vpack.c.bf16 %v1186_v55, %v1182_v54  ;;  %v1194_v5 = vld [vmem:[%s9467_s19 + $0x2a0] sm:$0xff]  ;;  %v5636_v16 = vpack.c.bf16 %v1203_v12, %v1199_v10  ;;  %v1404_v12 = vld [vmem:[%s9469_s26 + $0x18] sm:$0xff] }
 0x3fe   :  { %5659 = vmatpush1.bf16.msra.mxu0 %v5658_v58  ;;  %5619 = vmatpush1.bf16.msra.mxu1 %v5618_v18  ;;  %v1184_v58 = vld [vmem:[%s9467_s19 + $0x250] sm:$0xff]  ;;  %v1198_v18 = vld [vmem:[%s9467_s19 + $0x2c0] sm:$0xff] }
 0x3ff   :  { %5661 = vmatprep.subr.bf16.mxu0 %v5660_v4  ;;  %5621 = vmatprep.subr.bf16.mxu1 %v5620_v24  ;;  %v5678_v60 = vpack.c.bf16 %v1188_v59, %v1184_v58  ;;  %v1190_v4 = vld [vmem:[%s9467_s19 + $0x280] sm:$0xff]  ;;  %v1207_v24 = vld [vmem:[%s9467_s19 + $0x308] sm:$0xff] }
 0x400   :  { %v5634_v7 = vpack.c.bf16 %v1194_v5, %v1190_v4  ;;  %v1434_v59 = vld [vmem:[%s9469_s26 + $0x108] sm:$0xff] }
 0x402   :  { %5663 = vmatpush1.bf16.msra.mxu0 %v5662_v8  ;;  %5623 = vmatpush1.bf16.msra.mxu1 %v5622_v35  ;;  %v1192_v8 = vld [vmem:[%s9467_s19 + $0x290] sm:$0xff]  ;;  %v8633_v35 = vld [vmem:[%s9470_s15] sm:$0xff] }
 0x403   :  { %5665 = vmatprep.subr.bf16.mxu0 %v5664_v17  ;;  %5625 = vmatprep.subr.bf16.mxu1 %v5624_v40  ;;  %v5682_v11 = vpack.c.bf16 %v1196_v9, %v1192_v8  ;;  %v5684_v17 = vpack.c.bf16 %v1205_v15, %v1201_v14  ;;  %v1436_v9 = vld [vmem:[%s9469_s26 + $0x118] sm:$0xff] }
 0x404   :  { %1621 = vrot.lane.b32.xlu1 %v8633_v35, %s7935_s23 }
 0x406   :  { %5667 = vmatpush1.bf16.msra.mxu0 %v5666_v21  ;;  %5627 = vmatpush1.bf16.msra.mxu1 %v5626_v45  ;;  %v5638_v21 = vpack.c.bf16 %v1202_v19, %v1198_v18 }
 0x407   :  { %5669 = vmatprep.subr.bf16.mxu0 %v5668_v31  ;;  %5629 = vmatprep.subr.bf16.mxu1 %v5628_v52  ;;  %v1417_v31 = vld [vmem:[%s9469_s26 + $0x80] sm:$0xff] }
 0x408   :  { %v5688_v33 = vpack.c.bf16 %v1418_v32, %v1417_v31  ;;  %v1440_v31 = vld [vmem:[%s9469_s26 + $0x138] sm:$0xff] }
 0x40a   :  { %5671 = vmatpush1.bf16.msra.mxu0 %v5670_v36  ;;  %5631 = vmatpush1.bf16.msra.mxu1 %v5630_v57  ;;  %v1433_v57 = vld [vmem:[%s9469_s26 + $0x100] sm:$0xff] }
 0x40b   :  { %5673 = vmatprep.subr.bf16.mxu0 %v5672_v44  ;;  %5633 = vmatprep.subr.bf16.mxu1 %v5632_v0  ;;  %v1021_v44 = vrot.slane %v1012_v39, %v8525_v29  ;;  %v1419_v0 = vld [vmem:[%s9469_s26 + $0x90] sm:$0xff]  ;;  %v5721_v5 = vpack.c.bf16 %v1434_v59, %v1433_v57  ;;  %v1441_v39 = vld [vmem:[%s9469_s26 + $0x140] sm:$0xff] }
 0x40c   :  { %v5692_v10 = vpack.c.bf16 %v1420_v1, %v1419_v0  ;;  %v1445_v59 = vld [vmem:[%s9469_s26 + $0x160] sm:$0xff]  ;;  %v1430_v0 = vld [vmem:[%s9469_s26 + $0xe8] sm:$0xff] }
 0x40d   :  { %v1413_v1 = vld [vmem:[%s9469_s26 + $0x60] sm:$0xff] }
 0x40e   :  { %5675 = vmatpush1.bf16.msra.mxu0 %v5674_v48  ;;  %5635 = vmatpush1.bf16.msra.mxu1 %v5634_v7  ;;  %v1435_v7 = vld [vmem:[%s9469_s26 + $0x110] sm:$0xff] }
 0x40f   :  { %5677 = vmatprep.subr.bf16.mxu0 %v5676_v56  ;;  %5637 = vmatprep.subr.bf16.mxu1 %v5636_v16  ;;  %v1421_v16 = vld [vmem:[%s9469_s26 + $0xa0] sm:$0xff]  ;;  %v5724_v18 = vpack.c.bf16 %v1436_v9, %v1435_v7  ;;  %v1448_v7 = vld [vmem:[%s9469_s26 + $0x178] sm:$0xff]  ;;  %v1431_v9 = vld [vmem:[%s9469_s26 + $0xf0] sm:$0xff] }
 0x412   :  { %5679 = vmatpush1.bf16.msra.mxu0 %v5678_v60  ;;  %5639 = vmatpush1.bf16.msra.mxu1 %v5638_v21  ;;  %v1401_v60 = vld [vmem:[%s9469_s26] sm:$0xff]  ;;  %v1438_v21 = vld [vmem:[%s9469_s26 + $0x128] sm:$0xff] }
 0x413   :  { %5681 = vmatprep.subr.bf16.mxu0 %v5680_v6  ;;  %1283 = vmatprep.subr.mxu1 %v1207_v24  ;;  %v5690_v6 = vpack.c.bf16 %v1402_v61, %v1401_v60  ;;  %v1405_v24 = vld [vmem:[%s9469_s26 + $0x20] sm:$0xff]  ;;  %v1446_v60 = vld [vmem:[%s9469_s26 + $0x168] sm:$0xff] }
 0x416   :  { %5683 = vmatpush1.bf16.msra.mxu0 %v5682_v11  ;;  %1284 = vmatpush1.msra.mxu1 %v1206_v28  ;;  %v1403_v11 = vld [vmem:[%s9469_s26 + $0x10] sm:$0xff] }
 0x417   :  { %5685 = vmatprep.subr.bf16.mxu0 %v5684_v17  ;;  %5689 = vmatprep.subr.bf16.mxu1 %v5688_v33  ;;  %v1422_v17 = vld [vmem:[%s9469_s26 + $0xa8] sm:$0xff]  ;;  %v5694_v19 = vpack.c.bf16 %v1404_v12, %v1403_v11  ;;  %v1439_v28 = vld [vmem:[%s9469_s26 + $0x130] sm:$0xff] }
 0x418   :  { %v5696_v22 = vpack.c.bf16 %v1422_v17, %v1421_v16  ;;  %v5730_v32 = vpack.c.bf16 %v1440_v31, %v1439_v28  ;;  %v1423_v33 = vld [vmem:[%s9469_s26 + $0xb0] sm:$0xff]  ;;  %v1449_v16 = vld [vmem:[%s9469_s26 + $0x180] sm:$0xff]  ;;  %v1450_v17 = vld [vmem:[%s9469_s26 + $0x188] sm:$0xff] }
 0x41a   :  { %5687 = vmatpush1.bf16.msra.mxu0 %v5686_v23  ;;  %v5727_v23 = vpack.c.bf16 %v1438_v21, %v1437_v20  ;;  %v8706_v20 = vsub.s32 2, %v8518_v26  ;;  %v1210_v21 = vld [vmem:[%s9472_s30] sm:$0xf] }
 0x41b   :  { %1354 = vmatprep.subr.mxu0 %v1209_v25  ;;  %v1406_v25 = vld [vmem:[%s9469_s26 + $0x28] sm:$0xff] }
 0x41e   :  { %1355 = vmatpush1.msra.mxu0 %v1208_v30  ;;  %v5698_v30 = vpack.c.bf16 %v1406_v25, %v1405_v24  ;;  %v1223_v24 = vrot.slane %v1210_v21, %v8706_v20  ;;  %v1219_v25 = vrot.slane %v1210_v21, %v8525_v29 }
 0x41f   :  { %5720 = vmatprep.subr.bf16.mxu0 %v7932_v3 }
 0x4b8   :  { %v839_v36 = vpop.f32.mrb[0].mxu1 }
 0x4b9   :  { %v840_v37 = vadd.f32 %v5293_v34, %v839_v36  ;;  %v841_v38 = vpop.f32.mrb[1].mxu1  ;;  %v1424_v34 = vld [vmem:[%s9469_s26 + $0xb8] sm:$0xff] }
 0x4ba   :  { %v5700_v36 = vpack.c.bf16 %v1424_v34, %v1423_v33  ;;  %v1408_v38 = vld [vmem:[%s9469_s26 + $0x38] sm:$0xff] }
 0x4bb   :  { %v843_v40 = vsub.f32 0.0, %v840_v37  ;;  %v849_v41 = vadd.f32 %v840_v37, %v8633_v35  ;;  %v1407_v37 = vld [vmem:[%s9469_s26 + $0x30] sm:$0xff]  ;;  %v6980_v35 = vld [vmem:[#allocation4] sm:$0xff] }
 0x4bd   :  { %v844_v42 = vmul.f32 1.442695, %v843_v40  ;;  %vm850_vm9 = vcmp.gt.f32.partialorder %v849_v41, 0.0  ;;  %v5702_v40 = vpack.c.bf16 %v1408_v38, %v1407_v37  ;;  %v1442_v41 = vld [vmem:[%s9469_s26 + $0x148] sm:$0xff] }
 0x4be   :  { %v8639_v45 = vsel %vm850_vm9, 1.0, %v7931_v2 }
 0x4bf   :  { %6874 = vpow2.f32 %v844_v42  ;;  %v1603_v46 = vsub.f32 1.0, %v8639_v45  ;;  %v5733_v42 = vpack.c.bf16 %v1442_v41, %v1441_v39 }
 0x4c0   :  { %v1093_v47 = vpop.f32.mrb[4].mxu0 }
 0x4c1   :  { %v1094_v48 = vadd.f32 %v1093_v47, %v1017_v43  ;;  %v1095_v49 = vpop.f32.mrb[5].mxu0  ;;  %1605 = vrot.lane.b32.xlu0 %v1603_v46, %s7934_s22  ;;  %v1425_v43 = vld [vmem:[%s9469_s26 + $0xc0] sm:$0xff] }
 0x4c2   :  { %v1096_v50 = vadd.f32 %v1095_v49, %v1021_v44  ;;  %v1426_v44 = vld [vmem:[%s9469_s26 + $0xc8] sm:$0xff] }
 0x4c3   :  { %v1100_v51 = vmin.f32 %v1094_v48, 0.0  ;;  %vm1098_vm12 = vcmp.gt.f32.partialorder %v1094_v48, 0.0  ;;  %v5704_v47 = vpack.c.bf16 %v1426_v44, %v1425_v43  ;;  %v1410_v49 = vld [vmem:[%s9469_s26 + $0x48] sm:$0xff] }
 0x4c4   :  { %v1101_v52 = vmin.f32 %v1096_v50, 0.0  ;;  %vm1099_vm10 = vcmp.gt.f32.partialorder %v1096_v50, 0.0 }
 0x4c5   :  { %v1102_v53 = vmul.f32 1.442695, %v1100_v51 }
 0x4c6   :  { %v1104_v54 = vmul.f32 1.442695, %v1101_v52  ;;  %v1444_v52 = vld [vmem:[%s9469_s26 + $0x158] sm:$0xff] }
 0x4c7   :  { %6876 = vpow2.f32 %v1102_v53 }
 0x4c8   :  { %6878 = vpow2.f32 %v1104_v54  ;;  %v1427_v54 = vld [vmem:[%s9469_s26 + $0xd0] sm:$0xff] }
 0x4c9   :  { %v6875_v55 = vpop.eup %6874 }
 0x4ca   :  { %v846_v56 = vadd.f32 1.0, %v6875_v55  ;;  %v1428_v55 = vld [vmem:[%s9469_s26 + $0xd8] sm:$0xff] }
 0x4cb   :  { %v5708_v57 = vpack.c.bf16 %v1428_v55, %v1427_v54 }
 0x4cc   :  { %6880 = vrcp.f32 %v846_v56  ;;  %v1411_v56 = vld [vmem:[%s9469_s26 + $0x50] sm:$0xff] }
 0x4d1   :  { %v6877_v58 = vpop.eup %6876 }
 0x4d2   :  { %v6879_v62 = vpop.eup %6878  ;;  %v5302_v63 = vadd.f32 -1.0, %v6877_v58  ;;  %v1412_v58 = vld [vmem:[%s9469_s26 + $0x58] sm:$0xff] }
 0x4d3   :  { %v5303_v4 = vadd.f32 -1.0, %v6879_v62  ;;  %v5710_v61 = vpack.c.bf16 %v1412_v58, %v1411_v56  ;;  %v5739_v62 = vpack.c.bf16 %v1446_v60, %v1445_v59  ;;  %v7936_v60 = vmov 0  }
 0x4d4   :  { %v1108_v15 = vsel %vm1098_vm12, %v1094_v48, %v5302_v63  ;;  %v1409_v48 = vld [vmem:[%s9469_s26 + $0x40] sm:$0xff]  ;;  %6865 = vset.pattern.permute.xlu0 %v7936_v60  ;;  %6864 = vset.pattern.permute.xlu1 %v7936_v60  ;;  %v1778_v60 = vld [vmem:[#allocation19 + $0xa0] sm:$0xff] }
 0x4d5   :  { %v1109_v8 = vsel %vm1099_vm10, %v1096_v50, %v5303_v4  ;;  %v1443_v50 = vld [vmem:[%s9469_s26 + $0x150] sm:$0xff]  ;;  %v5706_v51 = vpack.c.bf16 %v1410_v49, %v1409_v48  ;;  %v1429_v63 = vld [vmem:[%s9469_s26 + $0xe0] sm:$0xff] }
 0x4d6   :  { %v6881_v14 = vpop.eup %6880  ;;  %5304 = vmatprep.mubr.msk.f32.mxu1 %vm769_vm4, %v1109_v8  ;;  %5305 = vmatprep.mubr.msk.f32.mxu0 %vm769_vm4, %v1109_v8  ;;  %v5736_v53 = vpack.c.bf16 %v1444_v52, %v1443_v50  ;;  %v5712_v4 = vpack.c.bf16 %v1430_v0, %v1429_v63  ;;  %v1628_v63 = vld [vmem:[#allocation15] sm:$0xff] }
 0x4d7   :  { %1300 = vmatmul.mubr.f32.vlgmr.msra.gmra.mrb[2].mxu1 %v1108_v15  ;;  %1371 = vmatmul.mubr.f32.vlgmr.msra.gmra.mrb[6].mxu0 %v1108_v15  ;;  %5101 = vst.msk [vmem:[%s9471_s6] sm:$0xff] %vm5100_vm11, %v6881_v14  ;;  %v1415_v14 = vld [vmem:[%s9469_s26 + $0x70] sm:$0xff]  ;;  %v1416_v15 = vld [vmem:[%s9469_s26 + $0x78] sm:$0xff] }
 0x4d8   :  { %5722 = vmatpush1.bf16.msra.mxu0 %v5721_v5  ;;  %5691 = vmatpush3.bf16.msra.mxu1 %v5690_v6  ;;  %v1414_v5 = vld [vmem:[%s9469_s26 + $0x68] sm:$0xff]  ;;  %v1447_v6 = vld [vmem:[%s9469_s26 + $0x170] sm:$0xff] }
 0x4d9   :  { %5723 = vmatprep.subr.bf16.mxu0 %v7932_v3  ;;  %5693 = vmatprep.subr.bf16.mxu1 %v5692_v10  ;;  %v5714_v8 = vpack.c.bf16 %v1414_v5, %v1413_v1  ;;  %v1432_v10 = vld [vmem:[%s9469_s26 + $0xf8] sm:$0xff]  ;;  %v5742_v11 = vpack.c.bf16 %v1448_v7, %v1447_v6  ;;  %v1630_v1 = vld [vmem:[#allocation15 + $0x10] sm:$0xff]  ;;  %v1635_v5 = vld [vmem:[#allocation15 + $0x38] sm:$0x1] }
 0x4da   :  { %v5716_v12 = vpack.c.bf16 %v1432_v10, %v1431_v9  ;;  %v5749_v6 = vpack.c.bf16 %v1630_v1, %v1628_v63  ;;  %v1634_v9 = vld [vmem:[#allocation15 + $0x30] sm:$0x1]  ;;  %v1785_v63 = vld [vmem:[#allocation19 + $0xd8] sm:$0xff] }
 0x4dc   :  { %5725 = vmatpush1.bf16.msra.mxu0 %v5724_v18  ;;  %5695 = vmatpush3.bf16.msra.mxu1 %v5694_v19  ;;  %v5718_v18 = vpack.c.bf16 %v1416_v15, %v1415_v14  ;;  %v5745_v19 = vpack.c.bf16 %v1450_v17, %v1449_v16  ;;  %v5310_v14 = vld [vmem:[#allocation13] ss:$0 sm:$0xff] }
 0x4dd   :  { %5726 = vmatprep.subr.bf16.mxu0 %v7932_v3  ;;  %5697 = vmatprep.subr.bf16.mxu1 %v5696_v22  ;;  %v8710_v22 = vsub.s32 3, %v8518_v26 }
 0x4df   :  { %v1227_v28 = vrot.slane %v1210_v21, %v8710_v22 }
 0x4e0   :  { %5728 = vmatpush1.bf16.msra.mxu0 %v5727_v23  ;;  %5699 = vmatpush3.bf16.msra.mxu1 %v5698_v30  ;;  %v1215_v23 = vrot.slane %v1210_v21, %v8521_v27 }
 0x4e1   :  { %5729 = vmatprep.subr.bf16.mxu0 %v7932_v3  ;;  %5701 = vmatprep.subr.bf16.mxu1 %v5700_v36 }
 0x4e4   :  { %5731 = vmatpush1.bf16.msra.mxu0 %v5730_v32  ;;  %5703 = vmatpush3.bf16.msra.mxu1 %v5702_v40 }
 0x4e5   :  { %5732 = vmatprep.subr.bf16.mxu0 %v7932_v3  ;;  %5705 = vmatprep.subr.bf16.mxu1 %v5704_v47 }
 0x4e8   :  { %5734 = vmatpush1.bf16.msra.mxu0 %v5733_v42  ;;  %5707 = vmatpush3.bf16.msra.mxu1 %v5706_v51 }
 0x4e9   :  { %5735 = vmatprep.subr.bf16.mxu0 %v7932_v3  ;;  %5709 = vmatprep.subr.bf16.mxu1 %v5708_v57 }
 0x4ec   :  { %5737 = vmatpush1.bf16.msra.mxu0 %v5736_v53  ;;  %5711 = vmatpush3.bf16.msra.mxu1 %v5710_v61  ;;  %v1629_v61 = vld [vmem:[#allocation15 + $0x8] sm:$0xff] }
 0x4ed   :  { %5738 = vmatprep.subr.bf16.mxu0 %v7932_v3  ;;  %5713 = vmatprep.subr.bf16.mxu1 %v5712_v4  ;;  %v1633_v4 = vld [vmem:[#allocation15 + $0x28] sm:$0xff] }
 0x4ee   :  { %v5751_v7 = vpack.c.bf16 %v1635_v5, %v1633_v4 }
 0x4f0   :  { %5740 = vmatpush1.bf16.msra.mxu0 %v5739_v62  ;;  %5715 = vmatpush3.bf16.msra.mxu1 %v5714_v8  ;;  %v1631_v62 = vld [vmem:[#allocation15 + $0x18] sm:$0xff]  ;;  %v1632_v8 = vld [vmem:[#allocation15 + $0x20] sm:$0xff] }
 0x4f1   :  { %5741 = vmatprep.subr.bf16.mxu0 %v7932_v3  ;;  %5717 = vmatprep.subr.bf16.mxu1 %v5716_v12  ;;  %v5747_v0 = vpack.c.bf16 %v1631_v62, %v1629_v61  ;;  %v5754_v10 = vpack.c.bf16 %v1634_v9, %v1632_v8  ;;  %v1780_v61 = vld [vmem:[#allocation19 + $0xb0] sm:$0xff]  ;;  %v1783_v62 = vld [vmem:[#allocation19 + $0xc8] sm:$0xff] }
 0x4f2   :  { %v5781_v1 = vpack.c.bf16 %v1785_v63, %v1783_v62  ;;  %v1913_v62 = vld [vmem:[#allocation22 + $0x38] sm:$0xff] }
 0x4f4   :  { %5743 = vmatpush1.bf16.msra.mxu0 %v5742_v11  ;;  %5719 = vmatpush3.bf16.msra.mxu1 %v5718_v18 }
 0x4f5   :  { %5744 = vmatprep.subr.bf16.mxu0 %v7932_v3  ;;  %5748 = vmatprep.subr.bf16.mxu1 %v5747_v0  ;;  %v5779_v0 = vpack.c.bf16 %v1780_v61, %v1778_v60  ;;  %v1908_v60 = vld [vmem:[#allocation22 + $0x10] sm:$0xff]  ;;  %v1911_v61 = vld [vmem:[#allocation22 + $0x28] sm:$0xff] }
 0x4f8   :  { %5746 = vmatpush1.bf16.msra.mxu0 %v5745_v19 }
 0x533   :  { %v1606_v21 = vpop.permute.xlu0 %1605 }
 0x5aa   :  { %v1301_v30 = vpop.f32.mrb[2].mxu1  ;;  %v1372_v31 = vpop.f32.mrb[6].mxu0 }
 0x5ab   :  { %v1302_v32 = vadd.f32 %v1301_v30, %v1215_v23  ;;  %v1373_v33 = vadd.f32 %v1372_v31, %v1223_v24  ;;  %v1303_v34 = vpop.f32.mrb[3].mxu1  ;;  %v1374_v36 = vpop.f32.mrb[7].mxu0  ;;  %v1761_v24 = vld [vmem:[#allocation19 + $0x18] sm:$0xff]  ;;  %v1760_v30 = vld [vmem:[#allocation19 + $0x10] sm:$0xff]  ;;  %v1763_v31 = vld [vmem:[#allocation19 + $0x28] sm:$0xff] }
 0x5ac   :  { %v1304_v37 = vadd.f32 %v1303_v34, %v1219_v25  ;;  %v1375_v38 = vadd.f32 %v1374_v36, %v1227_v28  ;;  %v1758_v25 = vld [vmem:[#allocation19] sm:$0xff]  ;;  %v5757_v28 = vpack.c.bf16 %v1761_v24, %v1759_v13  ;;  %v1791_v24 = vld [vmem:[#allocation19 + $0x108] sm:$0xff] }
 0x5ad   :  { %v1381_v39 = vmin.f32 %v1302_v32, 0.0  ;;  %v1383_v40 = vmin.f32 %v1373_v33, 0.0  ;;  %vm1377_vm15 = vcmp.gt.f32.partialorder %v1302_v32, 0.0  ;;  %vm1379_vm1 = vcmp.gt.f32.partialorder %v1373_v33, 0.0  ;;  %v1762_v36 = vld [vmem:[#allocation19 + $0x20] sm:$0xff] }
 0x5ae   :  { %v1382_v26 = vmin.f32 %v1304_v37, 0.0  ;;  %v1384_v41 = vmin.f32 %v1375_v38, 0.0  ;;  %vm1378_vm13 = vcmp.gt.f32.partialorder %v1304_v37, 0.0  ;;  %vm1380_vm0 = vcmp.gt.f32.partialorder %v1375_v38, 0.0 }
 0x5af   :  { %v1385_v42 = vmul.f32 1.442695, %v1381_v39  ;;  %v1389_v43 = vmul.f32 1.442695, %v1383_v40  ;;  %v1769_v39 = vld [vmem:[#allocation19 + $0x58] sm:$0xff] }
 0x5b0   :  { %v1387_v44 = vmul.f32 1.442695, %v1382_v26  ;;  %v1391_v47 = vmul.f32 1.442695, %v1384_v41  ;;  %v1766_v41 = vld [vmem:[#allocation19 + $0x40] sm:$0xff] }
 0x5b1   :  { %6882 = vpow2.f32 %v1385_v42  ;;  %v1771_v42 = vld [vmem:[#allocation19 + $0x68] sm:$0xff] }
 0x5b2   :  { %6884 = vpow2.f32 %v1389_v43  ;;  %v1773_v43 = vld [vmem:[#allocation19 + $0x78] sm:$0xff] }
 0x5b3   :  { %6886 = vpow2.f32 %v1387_v44 }
 0x5b4   :  { %6888 = vpow2.f32 %v1391_v47  ;;  %v5769_v47 = vpack.c.bf16 %v1773_v43, %v1771_v42  ;;  %v1800_v42 = vld [vmem:[#allocation19 + $0x150] sm:$0xff] }
 0x5bb   :  { %v6883_v48 = vpop.eup %6882 }
 0x5bc   :  { %v6885_v49 = vpop.eup %6884  ;;  %v5306_v51 = vadd.f32 -1.0, %v6883_v48  ;;  %v1770_v48 = vld [vmem:[#allocation19 + $0x60] sm:$0xff] }
 0x5bd   :  { %v6887_v50 = vpop.eup %6886  ;;  %v5308_v54 = vadd.f32 -1.0, %v6885_v49  ;;  %v1772_v49 = vld [vmem:[#allocation19 + $0x70] sm:$0xff] }
 0x5be   :  { %v6889_v52 = vpop.eup %6888  ;;  %v5307_v53 = vadd.f32 -1.0, %v6887_v50  ;;  %v1397_v58 = vsel %vm1377_vm15, %v1302_v32, %v5306_v51  ;;  %v1765_v32 = vld [vmem:[#allocation19 + $0x38] sm:$0xff]  ;;  %v1775_v50 = vld [vmem:[#allocation19 + $0x88] sm:$0xff] }
 0x5bf   :  { %v5309_v55 = vadd.f32 -1.0, %v6889_v52  ;;  %v1399_v59 = vsel %vm1379_vm1, %v1373_v33, %v5308_v54  ;;  %v5759_v33 = vpack.c.bf16 %v1760_v30, %v1758_v25  ;;  %v5761_v34 = vpack.c.bf16 %v1765_v32, %v1763_v31  ;;  %v1777_v51 = vld [vmem:[#allocation19 + $0x98] sm:$0xff]  ;;  %v1774_v54 = vld [vmem:[#allocation19 + $0x80] sm:$0xff]  ;;  %v1792_v31 = vld [vmem:[#allocation19 + $0x110] sm:$0xff] }
 0x5c0   :  { %v1398_v56 = vsel %vm1378_vm13, %v1304_v37, %v5307_v53  ;;  %v1764_v37 = vld [vmem:[#allocation19 + $0x30] sm:$0xff]  ;;  %v5771_v52 = vpack.c.bf16 %v1772_v49, %v1770_v48  ;;  %v5773_v53 = vpack.c.bf16 %v1777_v51, %v1775_v50  ;;  %v1793_v25 = vld [vmem:[#allocation19 + $0x118] sm:$0xff]  ;;  %v1790_v30 = vld [vmem:[#allocation19 + $0x100] sm:$0xff] }
 0x5c1   :  { %1526 = vmatprep.mubr.f32.mxu1 %v1398_v56  ;;  %v1400_v57 = vsel %vm1380_vm0, %v1375_v38, %v5309_v55  ;;  %v1767_v38 = vld [vmem:[#allocation19 + $0x48] sm:$0xff]  ;;  %v5763_v40 = vpack.c.bf16 %v1764_v37, %v1762_v36  ;;  %v1776_v55 = vld [vmem:[#allocation19 + $0x90] sm:$0xff]  ;;  %v5791_v32 = vpack.c.bf16 %v1792_v31, %v1790_v30  ;;  %v1802_v50 = vld [vmem:[#allocation19 + $0x160] sm:$0xff]  ;;  %vm2612_vm0 = vcmask 162816  }
 0x5c2   :  { %5311 = vmatprep.mubr.msk.f32.mxu0 %vm1458_vm14, %v1400_v57  ;;  %1527 = vmatmul.mubr.f32.vlgmr.msra.gmra.mrb[4].mxu1 %v1397_v58  ;;  %v5765_v26 = vpack.c.bf16 %v1769_v39, %v1767_v38  ;;  %v1779_v56 = vld [vmem:[#allocation19 + $0xa8] sm:$0xff]  ;;  %v1781_v57 = vld [vmem:[#allocation19 + $0xb8] sm:$0xff]  ;;  %v5775_v58 = vpack.c.bf16 %v1776_v55, %v1774_v54  ;;  %v1794_v38 = vld [vmem:[#allocation19 + $0x120] sm:$0xff] }
 0x5c3   :  { %1597 = vmatmul.mubr.f32.vlgmr.msra.gmra.mrb[8].mxu0 %v1399_v59  ;;  %1725 = vmatprep.mubr.f32.mxu1 %v7931_v2  ;;  %v5777_v59 = vpack.c.bf16 %v1781_v57, %v1779_v56  ;;  %v1796_v39 = vld [vmem:[#allocation19 + $0x130] sm:$0xff]  ;;  %v1806_v54 = vld [vmem:[#allocation19 + $0x180] sm:$0xff] }
 0x5c4   :  { %5750 = vmatpush1.bf16.msra.mxu1 %v5749_v6  ;;  %v1804_v51 = vld [vmem:[#allocation19 + $0x170] sm:$0xff]  ;;  %v1907_v56 = vld [vmem:[#allocation22 + $0x8] sm:$0xff] }
 0x5c5   :  { %5753 = vmatprep.subr.msk.bf16.mxu1 %vm8412_vm2, %v5751_v7  ;;  %v1622_v7 = vpop.permute.xlu1 %1621  ;;  %v1909_v57 = vld [vmem:[#allocation22 + $0x18] sm:$0xff] }
 0x5c6   :  { %v1929_v30 = vld [vmem:[#allocation22 + $0xb8] sm:$0xff] }
 0x5c8   :  { %5756 = vmatpush1.bf16.msk.msra.mxu1 %vm8412_vm2, %v5754_v10 }
 0x5c9   :  { %5758 = vmatprep.subr.bf16.mxu1 %v5757_v28  ;;  %v5789_v28 = vpack.c.bf16 %v1793_v25, %v1791_v24  ;;  %v1922_v24 = vld [vmem:[#allocation22 + $0x80] sm:$0xff]  ;;  %v1924_v25 = vld [vmem:[#allocation22 + $0x90] sm:$0xff] }
 0x5ca   :  { %v5823_v31 = vpack.c.bf16 %v1924_v25, %v1922_v24  ;;  %v1946_v24 = vld [vmem:[#allocation22 + $0x140] sm:$0xff]  ;;  %v1948_v25 = vld [vmem:[#allocation22 + $0x150] sm:$0xff] }
 0x5cb   :  { %5315 = vmatmul.mubr.msk.f32.vlgmr.msra.gmra.mrb[6].mxu1 %vm643_vm3, %v6980_v35 }
 0x5cc   :  { %5760 = vmatpush1.bf16.msra.mxu1 %v5759_v33  ;;  %v1795_v33 = vld [vmem:[#allocation19 + $0x128] sm:$0xff] }
 0x5cd   :  { %5762 = vmatprep.subr.bf16.mxu1 %v5761_v34  ;;  %v1797_v34 = vld [vmem:[#allocation19 + $0x138] sm:$0xff] }
 0x5ce   :  { %v5793_v37 = vpack.c.bf16 %v1797_v34, %v1795_v33  ;;  %v1926_v33 = vld [vmem:[#allocation22 + $0xa0] sm:$0xff]  ;;  %v1928_v34 = vld [vmem:[#allocation22 + $0xb0] sm:$0xff] }
 0x5d0   :  { %5764 = vmatpush1.bf16.msra.mxu1 %v5763_v40  ;;  %v1799_v40 = vld [vmem:[#allocation19 + $0x148] sm:$0xff] }
 0x5d1   :  { %5766 = vmatprep.subr.bf16.mxu1 %v5765_v26 }
 0x695   :  { %v5415_v11 = vpop.f32.mrb[4].mxu1 }
 0x696   :  { %v1598_v12 = vpop.f32.mrb[8].mxu0  ;;  %v5416_v15 = vpop.f32.mrb[5].mxu1 }
 0x697   :  { %v5417_v16 = vadd.f32 %v5416_v15, %v5415_v11  ;;  %v1600_v17 = vpop.f32.mrb[9].mxu0  ;;  %v1782_v11 = vld [vmem:[#allocation19 + $0xc0] sm:$0xff] }
 0x698   :  { %v1787_v17 = vld [vmem:[#allocation19 + $0xe8] sm:$0xff] }
 0x699   :  { %v1529_v18 = vadd.f32 %v5417_v16, %v5310_v14 }
 0x69b   :  { %v1599_v19 = vadd.f32 %v1598_v12, %v1529_v18  ;;  %v1784_v12 = vld [vmem:[#allocation19 + $0xd0] sm:$0xff]  ;;  %v1789_v18 = vld [vmem:[#allocation19 + $0xf8] sm:$0xff] }
 0x69c   :  { %v5783_v15 = vpack.c.bf16 %v1784_v12, %v1782_v11  ;;  %v1919_v11 = vld [vmem:[#allocation22 + $0x68] sm:$0xff]  ;;  %v1921_v12 = vld [vmem:[#allocation22 + $0x78] sm:$0xff] }
 0x69d   :  { %v1608_v23 = vmul.f32 %v1606_v21, %v1599_v19  ;;  %v1602_v5 = vmul.f32 %v8639_v45, %v1599_v19  ;;  %v5785_v19 = vpack.c.bf16 %v1789_v18, %v1787_v17  ;;  %v1786_v21 = vld [vmem:[#allocation19 + $0xe0] sm:$0xff]  ;;  %v1918_v17 = vld [vmem:[#allocation22 + $0x60] sm:$0xff] }
 0x69e   :  { %v8728_v4 = vpop.f32.mrb[6].mxu1  ;;  %v1920_v18 = vld [vmem:[#allocation22 + $0x70] sm:$0xff] }
 0x69f   :  { %1610 = vrot.lane.b32.xlu0 %v1608_v23, %s7935_s23  ;;  %v8732_v16 = vpop.f32.mrb[7].mxu1  ;;  %v1788_v23 = vld [vmem:[#allocation19 + $0xf0] sm:$0xff] }
 0x6a0   :  { %v5787_v13 = vpack.c.bf16 %v1788_v23, %v1786_v21  ;;  %v1925_v21 = vld [vmem:[#allocation22 + $0x98] sm:$0xff]  ;;  %v5819_v23 = vpack.c.bf16 %v1920_v18, %v1918_v17  ;;  %v1942_v18 = vld [vmem:[#allocation22 + $0x120] sm:$0xff] }
 0x6a3   :  { %2561 = vperm.xlu0 %6865, %v1603_v46   ;;  %v1768_v46 = vld [vmem:[#allocation19 + $0x50] sm:$0xff] }
 0x6a4   :  { %v5767_v44 = vpack.c.bf16 %v1768_v46, %v1766_v41  ;;  %v5795_v41 = vpack.c.bf16 %v1796_v39, %v1794_v38  ;;  %v1798_v46 = vld [vmem:[#allocation19 + $0x140] sm:$0xff]  ;;  %v5827_v38 = vpack.c.bf16 %v1928_v34, %v1926_v33  ;;  %v1950_v34 = vld [vmem:[#allocation22 + $0x160] sm:$0xff] }
 0x6a5   :  { %v5799_v48 = vpack.c.bf16 %v1800_v42, %v1798_v46 }
 0x6a6   :  { %5768 = vmatpush1.bf16.msra.mxu1 %v5767_v44  ;;  %v1803_v44 = vld [vmem:[#allocation19 + $0x168] sm:$0xff] }
 0x6a7   :  { %5770 = vmatprep.subr.bf16.mxu1 %v5769_v47  ;;  %v1805_v47 = vld [vmem:[#allocation19 + $0x178] sm:$0xff] }
 0x6a8   :  { %v5801_v49 = vpack.c.bf16 %v1805_v47, %v1803_v44 }
 0x6aa   :  { %5772 = vmatpush1.bf16.msra.mxu1 %v5771_v52  ;;  %v5803_v52 = vpack.c.bf16 %v1804_v51, %v1802_v50 }
 0x6ab   :  { %5774 = vmatprep.subr.bf16.mxu1 %v5773_v53  ;;  %v1807_v53 = vld [vmem:[#allocation19 + $0x188] sm:$0xff] }
 0x6ae   :  { %5776 = vmatpush1.bf16.msra.mxu1 %v5775_v58  ;;  %v1906_v58 = vld [vmem:[#allocation22] sm:$0xff] }
 0x6af   :  { %5778 = vmatprep.subr.bf16.mxu1 %v5777_v59  ;;  %v5805_v59 = vpack.c.bf16 %v1909_v57, %v1907_v56  ;;  %v5807_v63 = vpack.c.bf16 %v1908_v60, %v1906_v58 }
 0x6b1   :  { %5806 = vmatprep.subr.bf16.mxu0 %v5805_v59 }
 0x6b2   :  { %5780 = vmatpush1.bf16.msra.mxu1 %v5779_v0  ;;  %v5809_v0 = vpack.c.bf16 %v1913_v62, %v1911_v61  ;;  %5808 = vmatpush1.bf16.msra.mxu0 %v5807_v63 }
 0x6b3   :  { %5782 = vmatprep.subr.bf16.mxu1 %v5781_v1  ;;  %v1910_v1 = vld [vmem:[#allocation22 + $0x20] sm:$0xff] }
 0x6b4   :  { %5810 = vmatprep.subr.bf16.mxu0 %v5809_v0  ;;  %v1937_v0 = vld [vmem:[#allocation22 + $0xf8] sm:$0xff] }
 0x6b6   :  { %5784 = vmatpush1.bf16.msra.mxu1 %v5783_v15  ;;  %v5817_v15 = vpack.c.bf16 %v1921_v12, %v1919_v11  ;;  %v1940_v11 = vld [vmem:[#allocation22 + $0x110] sm:$0xff] }
 0x6b7   :  { %5786 = vmatprep.subr.bf16.mxu1 %v5785_v19  ;;  %v1923_v19 = vld [vmem:[#allocation22 + $0x88] sm:$0xff] }
 0x6ba   :  { %5788 = vmatpush1.bf16.msra.mxu1 %v5787_v13  ;;  %v5821_v13 = vpack.c.bf16 %v1925_v21, %v1923_v19  ;;  %v1944_v19 = vld [vmem:[#allocation22 + $0x130] sm:$0xff]  ;;  %v1947_v21 = vld [vmem:[#allocation22 + $0x148] sm:$0xff] }
 0x6bb   :  { %5790 = vmatprep.subr.bf16.mxu1 %v5789_v28  ;;  %v1927_v28 = vld [vmem:[#allocation22 + $0xa8] sm:$0xff] }
 0x6be   :  { %5792 = vmatpush1.bf16.msra.mxu1 %v5791_v32  ;;  %v5825_v32 = vpack.c.bf16 %v1929_v30, %v1927_v28  ;;  %v1951_v30 = vld [vmem:[#allocation22 + $0x168] sm:$0xff] }
 0x6bf   :  { %5794 = vmatprep.subr.bf16.mxu1 %v5793_v37  ;;  %v1933_v37 = vld [vmem:[#allocation22 + $0xd8] sm:$0xff] }
 0x6c2   :  { %5796 = vmatpush1.bf16.msra.mxu1 %v5795_v41 }
 0x711   :  { %v1611_v6 = vpop.permute.xlu0 %1610 }
 0x712   :  { %v1613_v8 = vadd.f32 %v1611_v6, %v1602_v5  ;;  %v1912_v5 = vld [vmem:[#allocation22 + $0x30] sm:$0xff]  ;;  %v1915_v6 = vld [vmem:[#allocation22 + $0x48] sm:$0xff] }
 0x714   :  { %v1614_v9 = vsub.f32 0.0, %v1613_v8  ;;  %v1624_v10 = vadd.f32 %v1622_v7, %v1613_v8  ;;  %v1917_v7 = vld [vmem:[#allocation22 + $0x58] sm:$0xff]  ;;  %v5811_v8 = vpack.c.bf16 %v1912_v5, %v1910_v1  ;;  %v1934_v5 = vld [vmem:[#allocation22 + $0xe0] sm:$0xff] }
 0x716   :  { %v1615_v35 = vmul.f32 1.442695, %v1614_v9  ;;  %vm1625_vm2 = vcmp.gt.f32.partialorder %v1624_v10, 0.0  ;;  %v5813_v9 = vpack.c.bf16 %v1917_v7, %v1915_v6  ;;  %v1914_v10 = vld [vmem:[#allocation22 + $0x40] sm:$0xff]  ;;  %5812 = vmatpush1.bf16.msra.mxu0 %v5811_v8  ;;  %v1936_v6 = vld [vmem:[#allocation22 + $0xf0] sm:$0xff]  ;;  %v1939_v8 = vld [vmem:[#allocation22 + $0x108] sm:$0xff] }
 0x717   :  { %v5312_v14 = vsel %vm1625_vm2, 1.0, %v7931_v2  ;;  %v5835_v7 = vpack.c.bf16 %v1936_v6, %v1934_v5  ;;  %v2086_v6 = vld [vmem:[#allocation25 + $0x100] sm:$0xff] }
 0x718   :  { %6890 = vpow2.f32 %v1615_v35  ;;  %1639 = vperm.xlu1 %6864, %v5312_v14   ;;  %v1916_v35 = vld [vmem:[#allocation22 + $0x50] sm:$0xff]  ;;  %5814 = vmatprep.subr.bf16.mxu0 %v5813_v9  ;;  %v1941_v9 = vld [vmem:[#allocation22 + $0x118] sm:$0xff] }
 0x719   :  { %v5815_v14 = vpack.c.bf16 %v1916_v35, %v1914_v10  ;;  %v5837_v10 = vpack.c.bf16 %v1941_v9, %v1939_v8  ;;  %v1938_v35 = vld [vmem:[#allocation22 + $0x100] sm:$0xff] }
 0x71a   :  { %v5839_v12 = vpack.c.bf16 %v1940_v11, %v1938_v35  ;;  %v2095_v9 = vld [vmem:[#allocation25 + $0x148] sm:$0xff]  ;;  %v2094_v11 = vld [vmem:[#allocation25 + $0x140] sm:$0xff] }
 0x71b   :  { %5816 = vmatpush1.bf16.msra.mxu0 %v5815_v14  ;;  %v1943_v14 = vld [vmem:[#allocation22 + $0x128] sm:$0xff] }
 0x71c   :  { %2556 = vperm.xlu1 %6864, %v8639_v45   ;;  %v1801_v45 = vld [vmem:[#allocation19 + $0x158] sm:$0xff]  ;;  %5818 = vmatprep.subr.bf16.mxu0 %v5817_v15  ;;  %v1945_v15 = vld [vmem:[#allocation22 + $0x138] sm:$0xff] }
 0x71d   :  { %v5797_v43 = vpack.c.bf16 %v1801_v45, %v1799_v40  ;;  %v1930_v40 = vld [vmem:[#allocation22 + $0xc0] sm:$0xff]  ;;  %v1636_v45 = vld [vmem:[#allocation16] sm:$0x3]  ;;  %v5841_v17 = vpack.c.bf16 %v1945_v15, %v1943_v14 }
 0x71e   :  { %v1646_v46 = vrot.slane %v1636_v45, %v8521_v27  ;;  %v1650_v42 = vrot.slane %v1636_v45, %v8525_v29  ;;  %v2103_v15 = vld [vmem:[#allocation25 + $0x188] sm:$0xff] }
 0x71f   :  { %5798 = vmatprep.subr.bf16.mxu1 %v5797_v43  ;;  %5820 = vmatpush1.bf16.msra.mxu0 %v5819_v23  ;;  %v1732_v43 = vld [vmem:[#allocation18] sm:$0x3]  ;;  %v5843_v23 = vpack.c.bf16 %v1944_v19, %v1942_v18  ;;  %v2102_v19 = vld [vmem:[#allocation25 + $0x180] sm:$0xff] }
 0x720   :  { %5800 = vmatpush1.bf16.msra.mxu1 %v5799_v48  ;;  %5822 = vmatprep.subr.bf16.mxu0 %v5821_v13  ;;  %v1741_v50 = vrot.slane %v1732_v43, %v8525_v29  ;;  %v1949_v13 = vld [vmem:[#allocation22 + $0x158] sm:$0xff] }
 0x721   :  { %5802 = vmatprep.subr.bf16.mxu1 %v5801_v49  ;;  %v1737_v49 = vrot.slane %v1732_v43, %v8521_v27  ;;  %v5845_v28 = vpack.c.bf16 %v1949_v13, %v1947_v21  ;;  %v2058_v43 = vld [vmem:[#allocation25 + $0x20] sm:$0xff]  ;;  %v1808_v13 = vld [vmem:[#allocation21] sm:$0x3] }
 0x722   :  { %v6891_v36 = vpop.eup %6890  ;;  %v2106_v21 = vld [vmem:[#allocation25 + $0x1a0] sm:$0xff] }
 0x723   :  { %v1617_v26 = vadd.f32 1.0, %v6891_v36  ;;  %v1931_v36 = vld [vmem:[#allocation22 + $0xc8] sm:$0xff]  ;;  %5824 = vmatpush1.bf16.msra.mxu0 %v5823_v31  ;;  %v1953_v31 = vld [vmem:[#allocation22 + $0x178] sm:$0xff] }
 0x724   :  { %5804 = vmatpush1.bf16.msra.mxu1 %v5803_v52  ;;  %5826 = vmatprep.subr.bf16.mxu0 %v5825_v32  ;;  %v5829_v39 = vpack.c.bf16 %v1933_v37, %v1931_v36  ;;  %v5847_v32 = vpack.c.bf16 %v1948_v25, %v1946_v24  ;;  %v5849_v33 = vpack.c.bf16 %v1953_v31, %v1951_v30  ;;  %v1952_v36 = vld [vmem:[#allocation22 + $0x170] sm:$0xff] }
 0x725   :  { %6892 = vrcp.f32 %v1617_v26  ;;  %1871 = vmatprep.subr.mxu1 %v1807_v53  ;;  %v1932_v26 = vld [vmem:[#allocation22 + $0xd0] sm:$0xff]  ;;  %v5851_v37 = vpack.c.bf16 %v1952_v36, %v1950_v34  ;;  %v1813_v24 = vrot.slane %v1808_v13, %v8521_v27  ;;  %v1817_v25 = vrot.slane %v1808_v13, %v8525_v29 }
 0x726   :  { %v5831_v41 = vpack.c.bf16 %v1932_v26, %v1930_v40  ;;  %v2055_v40 = vld [vmem:[#allocation25 + $0x8] sm:$0xff]  ;;  %v2113_v13 = vld [vmem:[#allocation25 + $0x1d8] sm:$0xff] }
 0x727   :  { %5828 = vmatpush1.bf16.msra.mxu0 %v5827_v38  ;;  %v1955_v38 = vld [vmem:[#allocation22 + $0x188] sm:$0xff]  ;;  %v2059_v26 = vld [vmem:[#allocation25 + $0x28] sm:$0xff] }
 0x728   :  { %1872 = vmatpush1.msra.mxu1 %v1806_v54  ;;  %5830 = vmatprep.subr.bf16.mxu0 %v5829_v39  ;;  %v1954_v39 = vld [vmem:[#allocation22 + $0x180] sm:$0xff]  ;;  %v5853_v45 = vpack.c.bf16 %v2059_v26, %v2055_v40 }
 0x729   :  { %v2060_v40 = vld [vmem:[#allocation25 + $0x30] sm:$0xff] }
 0x72a   :  { %5854 = vmatprep.subr.bf16.mxu1 %v5853_v45  ;;  %v2065_v45 = vld [vmem:[#allocation25 + $0x58] sm:$0xff] }
 0x72b   :  { %5832 = vmatpush1.bf16.msra.mxu0 %v5831_v41  ;;  %v2057_v41 = vld [vmem:[#allocation25 + $0x18] sm:$0xff] }
 0x72f   :  { %v6893_v55 = vpop.eup %6892 }
 0x730   :  { %5102 = vst.msk [vmem:[%s9473_s16] sm:$0xff] %vm5100_vm11, %v6893_v55 }
 0x797   :  { %v1640_v44 = vpop.permute.xlu1 %1639 }
 0x798   :  { %v1653_v47 = vmul.f32 %v1646_v46, %v1640_v44  ;;  %v1654_v48 = vmul.f32 %v1650_v42, %v1640_v44  ;;  %v2061_v46 = vld [vmem:[#allocation25 + $0x38] sm:$0xff]  ;;  %v2054_v42 = vld [vmem:[#allocation25] sm:$0xff] }
 0x799   :  { %v5901_v44 = vpack.c.bf16 %v2061_v46, %v2057_v41  ;;  %v2069_v46 = vld [vmem:[#allocation25 + $0x78] sm:$0xff] }
 0x79a   :  { %v1728_v51 = vadd.f32 %v8728_v4, %v1653_v47  ;;  %v1730_v52 = vadd.f32 %v8732_v16, %v1654_v48  ;;  %v1935_v16 = vld [vmem:[#allocation22 + $0xe8] sm:$0xff]  ;;  %v5855_v47 = vpack.c.bf16 %v2058_v43, %v2054_v42  ;;  %v2063_v48 = vld [vmem:[#allocation25 + $0x48] sm:$0xff] }
 0x79b   :  { %v5833_v1 = vpack.c.bf16 %v1937_v0, %v1935_v16  ;;  %v2087_v0 = vld [vmem:[#allocation25 + $0x108] sm:$0xff] }
 0x79c   :  { %v1745_v53 = vadd.f32 %v1741_v50, %v1730_v52  ;;  %v1744_v54 = vadd.f32 %v1737_v49, %v1728_v51  ;;  %v2067_v49 = vld [vmem:[#allocation25 + $0x68] sm:$0xff]  ;;  %v2062_v51 = vld [vmem:[#allocation25 + $0x40] sm:$0xff] }
 0x79d   :  { %5834 = vmatprep.subr.bf16.mxu0 %v5833_v1  ;;  %v5857_v50 = vpack.c.bf16 %v2067_v49, %v2063_v48  ;;  %v2066_v52 = vld [vmem:[#allocation25 + $0x60] sm:$0xff]  ;;  %v2091_v1 = vld [vmem:[#allocation25 + $0x128] sm:$0xff]  ;;  %v2064_v48 = vld [vmem:[#allocation25 + $0x50] sm:$0xff] }
 0x79e   :  { %v1749_v55 = vmin.f32 %v1745_v53, 0.0  ;;  %v1748_v56 = vmin.f32 %v1744_v54, 0.0  ;;  %vm1747_vm3 = vcmp.gt.f32.partialorder %v1745_v53, 0.0  ;;  %vm1746_vm5 = vcmp.gt.f32.partialorder %v1744_v54, 0.0  ;;  %5836 = vmatpush1.bf16.msra.mxu0 %v5835_v7  ;;  %v2090_v7 = vld [vmem:[#allocation25 + $0x120] sm:$0xff]  ;;  %v2068_v49 = vld [vmem:[#allocation25 + $0x70] sm:$0xff] }
 0x79f   :  { %5838 = vmatprep.subr.bf16.mxu0 %v5837_v10  ;;  %v5869_v5 = vpack.c.bf16 %v2091_v1, %v2087_v0  ;;  %v5871_v8 = vpack.c.bf16 %v2090_v7, %v2086_v6  ;;  %v2099_v10 = vld [vmem:[#allocation25 + $0x168] sm:$0xff]  ;;  %v2088_v1 = vld [vmem:[#allocation25 + $0x110] sm:$0xff]  ;;  %v2097_v6 = vld [vmem:[#allocation25 + $0x158] sm:$0xff] }
 0x7a0   :  { %v1752_v57 = vmul.f32 1.442695, %v1749_v55  ;;  %v1750_v58 = vmul.f32 1.442695, %v1748_v56  ;;  %v2075_v55 = vld [vmem:[#allocation25 + $0xa8] sm:$0xff]  ;;  %v5873_v35 = vpack.c.bf16 %v2099_v10, %v2095_v9  ;;  %v2101_v7 = vld [vmem:[#allocation25 + $0x178] sm:$0xff] }
 0x7a1   :  { %v5921_v9 = vpack.c.bf16 %v2101_v7, %v2097_v6  ;;  %v2096_v10 = vld [vmem:[#allocation25 + $0x150] sm:$0xff] }
 0x7a2   :  { %6894 = vpow2.f32 %v1752_v57  ;;  %5840 = vmatpush1.bf16.msra.mxu0 %v5839_v12  ;;  %v2070_v57 = vld [vmem:[#allocation25 + $0x80] sm:$0xff]  ;;  %v2140_v7 = vld [vmem:[#allocation25 + $0x2b0] sm:$0xff] }
 0x7a3   :  { %6896 = vpow2.f32 %v1750_v58  ;;  %5842 = vmatprep.subr.bf16.mxu0 %v5841_v17  ;;  %v2074_v58 = vld [vmem:[#allocation25 + $0xa0] sm:$0xff]  ;;  %v2107_v17 = vld [vmem:[#allocation25 + $0x1a8] sm:$0xff] }
 0x7a4   :  { %v2098_v12 = vld [vmem:[#allocation25 + $0x160] sm:$0xff]  ;;  %v5877_v18 = vpack.c.bf16 %v2107_v17, %v2103_v15  ;;  %v2104_v17 = vld [vmem:[#allocation25 + $0x190] sm:$0xff] }
 0x7a5   :  { %v5875_v14 = vpack.c.bf16 %v2098_v12, %v2094_v11  ;;  %v2105_v11 = vld [vmem:[#allocation25 + $0x198] sm:$0xff] }
 0x7a6   :  { %5844 = vmatpush1.bf16.msra.mxu0 %v5843_v23  ;;  %v5879_v23 = vpack.c.bf16 %v2106_v21, %v2102_v19  ;;  %v2109_v12 = vld [vmem:[#allocation25 + $0x1b8] sm:$0xff]  ;;  %v2111_v21 = vld [vmem:[#allocation25 + $0x1c8] sm:$0xff] }
 0x7a7   :  { %5846 = vmatprep.subr.bf16.mxu0 %v5845_v28  ;;  %v5925_v15 = vpack.c.bf16 %v2109_v12, %v2105_v11  ;;  %v2145_v11 = vld [vmem:[#allocation25 + $0x2d8] sm:$0xff] }
 0x7a8   :  { %v2149_v12 = vld [vmem:[#allocation25 + $0x2f8] sm:$0xff] }
 0x7aa   :  { %5848 = vmatpush1.bf16.msra.mxu0 %v5847_v32 }
 0x7ab   :  { %5850 = vmatprep.subr.bf16.mxu0 %v5849_v33 }
 0x7ac   :  { %v6895_v59 = vpop.eup %6894 }
 0x7ad   :  { %v6897_v60 = vpop.eup %6896  ;;  %v5317_v61 = vadd.f32 -1.0, %v6895_v59  ;;  %v5863_v59 = vpack.c.bf16 %v2074_v58, %v2070_v57  ;;  %v2081_v57 = vld [vmem:[#allocation25 + $0xd8] sm:$0xff] }
 0x7ae   :  { %v5316_v62 = vadd.f32 -1.0, %v6897_v60  ;;  %5852 = vmatpush1.bf16.msra.mxu0 %v5851_v37  ;;  %v2079_v60 = vld [vmem:[#allocation25 + $0xc8] sm:$0xff]  ;;  %v2085_v58 = vld [vmem:[#allocation25 + $0xf8] sm:$0xff] }
 0x7af   :  { %v1757_v63 = vsel %vm1747_vm3, %v1745_v53, %v5317_v61  ;;  %2019 = vmatprep.subr.mxu0 %v1955_v38  ;;  %v5859_v53 = vpack.c.bf16 %v2066_v52, %v2062_v51  ;;  %v2083_v61 = vld [vmem:[#allocation25 + $0xe8] sm:$0xff]  ;;  %v2073_v51 = vld [vmem:[#allocation25 + $0x98] sm:$0xff]  ;;  %vm2616_vm3 = vcmask 1043456  }
 0x7b0   :  { %5318 = vmatprep.mubr.msk.f32.mxu1 %vm769_vm4, %v1757_v63  ;;  %v1756_v4 = vsel %vm1746_vm5, %v1744_v54, %v5316_v62  ;;  %v2071_v54 = vld [vmem:[#allocation25 + $0x88] sm:$0xff]  ;;  %v5865_v62 = vpack.c.bf16 %v2083_v61, %v2079_v60  ;;  %v2078_v63 = vld [vmem:[#allocation25 + $0xc0] sm:$0xff]  ;;  %v2077_v52 = vld [vmem:[#allocation25 + $0xb8] sm:$0xff]  ;;  %v5913_v60 = vpack.c.bf16 %v2085_v58, %v2081_v57 }
 0x7b1   :  { %1888 = vmatmul.mubr.f32.vlgmr.msra.gmra.mrb[8].mxu1 %v1756_v4  ;;  %v5861_v56 = vpack.c.bf16 %v2075_v55, %v2071_v54  ;;  %v2082_v4 = vld [vmem:[#allocation25 + $0xe0] sm:$0xff]  ;;  %v5909_v54 = vpack.c.bf16 %v2077_v52, %v2073_v51  ;;  %v2072_v55 = vld [vmem:[#allocation25 + $0x90] sm:$0xff]  ;;  %v2133_v52 = vld [vmem:[#allocation25 + $0x278] sm:$0xff] }
 0x7b2   :  { %2020 = vmatpush1.msra.mxu0 %v1954_v39  ;;  %5856 = vmatpush1.bf16.msra.mxu1 %v5855_v47  ;;  %v5867_v16 = vpack.c.bf16 %v2082_v4, %v2078_v63  ;;  %v2056_v39 = vld [vmem:[#allocation25 + $0x10] sm:$0xff]  ;;  %v5905_v47 = vpack.c.bf16 %v2069_v46, %v2065_v45  ;;  %v2089_v63 = vld [vmem:[#allocation25 + $0x118] sm:$0xff]  ;;  %v2122_v45 = vld [vmem:[#allocation25 + $0x220] sm:$0xff] }
 0x7b3   :  { %5902 = vmatprep.subr.bf16.mxu0 %v5901_v44  ;;  %5858 = vmatprep.subr.bf16.mxu1 %v5857_v50  ;;  %v5903_v43 = vpack.c.bf16 %v2060_v40, %v2056_v39  ;;  %v2080_v61 = vld [vmem:[#allocation25 + $0xd0] sm:$0xff]  ;;  %v2093_v4 = vld [vmem:[#allocation25 + $0x138] sm:$0xff] }
 0x7b4   :  { %v5917_v0 = vpack.c.bf16 %v2093_v4, %v2089_v63  ;;  %v2121_v39 = vld [vmem:[#allocation25 + $0x218] sm:$0xff]  ;;  %v2128_v57 = vld [vmem:[#allocation25 + $0x250] sm:$0xff] }
 0x7b5   :  { %v2132_v58 = vld [vmem:[#allocation25 + $0x270] sm:$0xff]  ;;  %v2141_v63 = vld [vmem:[#allocation25 + $0x2b8] sm:$0xff] }
 0x7b6   :  { %5860 = vmatpush1.bf16.msra.mxu1 %v5859_v53  ;;  %v5907_v53 = vpack.c.bf16 %v2068_v49, %v2064_v48  ;;  %v2127_v48 = vld [vmem:[#allocation25 + $0x248] sm:$0xff] }
 0x7b7   :  { %5862 = vmatprep.subr.bf16.mxu1 %v5861_v56  ;;  %v2076_v56 = vld [vmem:[#allocation25 + $0xb0] sm:$0xff]  ;;  %v2131_v49 = vld [vmem:[#allocation25 + $0x268] sm:$0xff] }
 0x7b8   :  { %v5889_v51 = vpack.c.bf16 %v2131_v49, %v2127_v48  ;;  %v2346_v48 = vld [vmem:[%s9474_s20 + $0x8] sm:$0xff] }
 0x7ba   :  { %5864 = vmatpush1.bf16.msra.mxu1 %v5863_v59  ;;  %v5911_v59 = vpack.c.bf16 %v2076_v56, %v2072_v55 }
 0x7bb   :  { %5866 = vmatprep.subr.bf16.mxu1 %v5865_v62  ;;  %v2084_v62 = vld [vmem:[#allocation25 + $0xf0] sm:$0xff] }
 0x7be   :  { %5868 = vmatpush1.bf16.msra.mxu1 %v5867_v16  ;;  %v5915_v16 = vpack.c.bf16 %v2084_v62, %v2080_v61  ;;  %v2139_v61 = vld [vmem:[#allocation25 + $0x2a8] sm:$0xff]  ;;  %v2137_v62 = vld [vmem:[#allocation25 + $0x298] sm:$0xff] }
 0x7bf   :  { %5870 = vmatprep.subr.bf16.mxu1 %v5869_v5  ;;  %v2092_v5 = vld [vmem:[#allocation25 + $0x130] sm:$0xff] }
 0x7c2   :  { %5872 = vmatpush1.bf16.msra.mxu1 %v5871_v8  ;;  %v5919_v8 = vpack.c.bf16 %v2092_v5, %v2088_v1  ;;  %v2138_v1 = vld [vmem:[#allocation25 + $0x2a0] sm:$0xff]  ;;  %v2136_v5 = vld [vmem:[#allocation25 + $0x290] sm:$0xff] }
 0x7c3   :  { %5874 = vmatprep.subr.bf16.mxu1 %v5873_v35  ;;  %v2100_v35 = vld [vmem:[#allocation25 + $0x170] sm:$0xff] }
 0x7c6   :  { %5876 = vmatpush1.bf16.msra.mxu1 %v5875_v14  ;;  %v5923_v14 = vpack.c.bf16 %v2100_v35, %v2096_v10  ;;  %v5943_v10 = vpack.c.bf16 %v2140_v7, %v2136_v5  ;;  %v2382_v5 = vld [vmem:[%s9474_s20 + $0x128] sm:$0xff] }
 0x7c7   :  { %5878 = vmatprep.subr.bf16.mxu1 %v5877_v18  ;;  %v2108_v18 = vld [vmem:[#allocation25 + $0x1b0] sm:$0xff] }
 0x7c8   :  { %v5927_v19 = vpack.c.bf16 %v2108_v18, %v2104_v17  ;;  %v2146_v17 = vld [vmem:[#allocation25 + $0x2e0] sm:$0xff]  ;;  %v2144_v18 = vld [vmem:[#allocation25 + $0x2d0] sm:$0xff] }
 0x7ca   :  { %5880 = vmatpush1.bf16.msra.mxu1 %v5879_v23  ;;  %v2115_v23 = vld [vmem:[#allocation25 + $0x1e8] sm:$0xff] }
 0x884   :  { %v1889_v28 = vpop.f32.mrb[8].mxu1 }
 0x885   :  { %v1890_v30 = vadd.f32 %v1889_v28, %v1813_v24  ;;  %v1891_v31 = vpop.f32.mrb[9].mxu1  ;;  %v5881_v24 = vpack.c.bf16 %v2115_v23, %v2111_v21  ;;  %v2110_v28 = vld [vmem:[#allocation25 + $0x1c0] sm:$0xff] }
 0x886   :  { %v1892_v32 = vadd.f32 %v1891_v31, %v1817_v25  ;;  %v2117_v25 = vld [vmem:[#allocation25 + $0x1f8] sm:$0xff] }
 0x887   :  { %v1896_v33 = vmin.f32 %v1890_v30, 0.0  ;;  %vm1894_vm7 = vcmp.gt.f32.partialorder %v1890_v30, 0.0  ;;  %v5929_v31 = vpack.c.bf16 %v2117_v25, %v2113_v13  ;;  %5882 = vmatprep.subr.bf16.mxu1 %v5881_v24  ;;  %v2151_v13 = vld [vmem:[#allocation25 + $0x308] sm:$0xff]  ;;  %v2153_v24 = vld [vmem:[#allocation25 + $0x318] sm:$0xff]  ;;  %v2150_v25 = vld [vmem:[#allocation25 + $0x300] sm:$0xff] }
 0x888   :  { %v1897_v34 = vmin.f32 %v1892_v32, 0.0  ;;  %vm1895_vm6 = vcmp.gt.f32.partialorder %v1892_v32, 0.0 }
 0x889   :  { %v1898_v36 = vmul.f32 1.442695, %v1896_v33  ;;  %v2112_v33 = vld [vmem:[#allocation25 + $0x1d0] sm:$0xff] }
 0x88a   :  { %v1900_v37 = vmul.f32 1.442695, %v1897_v34  ;;  %v2116_v34 = vld [vmem:[#allocation25 + $0x1f0] sm:$0xff] }
 0x88b   :  { %6898 = vpow2.f32 %v1898_v36  ;;  %v5931_v36 = vpack.c.bf16 %v2116_v34, %v2112_v33  ;;  %v1956_v33 = vld [vmem:[#allocation24] sm:$0x3] }
 0x88c   :  { %6900 = vpow2.f32 %v1900_v37  ;;  %v2119_v37 = vld [vmem:[#allocation25 + $0x208] sm:$0xff]  ;;  %v1961_v34 = vrot.slane %v1956_v33, %v8521_v27 }
 0x895   :  { %v6899_v38 = vpop.eup %6898 }
 0x896   :  { %v6901_v26 = vpop.eup %6900  ;;  %v5319_v41 = vadd.f32 -1.0, %v6899_v38  ;;  %v2123_v38 = vld [vmem:[#allocation25 + $0x228] sm:$0xff] }
 0x897   :  { %v5320_v42 = vadd.f32 -1.0, %v6901_v26  ;;  %v5885_v40 = vpack.c.bf16 %v2123_v38, %v2119_v37  ;;  %v2125_v26 = vld [vmem:[#allocation25 + $0x238] sm:$0xff] }
 0x898   :  { %v1904_v50 = vsel %vm1894_vm7, %v1890_v30, %v5319_v41  ;;  %v2114_v30 = vld [vmem:[#allocation25 + $0x1e0] sm:$0xff]  ;;  %v5933_v46 = vpack.c.bf16 %v2125_v26, %v2121_v39 }
 0x899   :  { %v1905_v44 = vsel %vm1895_vm6, %v1892_v32, %v5320_v42  ;;  %v5883_v32 = vpack.c.bf16 %v2114_v30, %v2110_v28  ;;  %v2118_v41 = vld [vmem:[#allocation25 + $0x200] sm:$0xff]  ;;  %v2152_v28 = vld [vmem:[#allocation25 + $0x310] sm:$0xff]  ;;  %v2361_v30 = vld [vmem:[%s9474_s20 + $0x80] sm:$0xff] }
 0x89a   :  { %5321 = vmatprep.mubr.msk.f32.mxu0 %vm769_vm4, %v1905_v44  ;;  %v5887_v42 = vpack.c.bf16 %v2122_v45, %v2118_v41  ;;  %v2124_v44 = vld [vmem:[#allocation25 + $0x230] sm:$0xff] }
 0x89b   :  { %2036 = vmatmul.mubr.f32.vlgmr.msra.gmra.mrb[10].mxu0 %v1904_v50  ;;  %5884 = vmatpush1.bf16.msra.mxu1 %v5883_v32  ;;  %v2129_v50 = vld [vmem:[#allocation25 + $0x258] sm:$0xff] }
 0x89c   :  { %5904 = vmatpush1.bf16.msra.mxu0 %v5903_v43  ;;  %v2120_v43 = vld [vmem:[#allocation25 + $0x210] sm:$0xff]  ;;  %5886 = vmatprep.subr.bf16.mxu1 %v5885_v40  ;;  %v5937_v55 = vpack.c.bf16 %v2133_v52, %v2129_v50  ;;  %v2364_v52 = vld [vmem:[%s9474_s20 + $0x98] sm:$0xff] }
 0x89d   :  { %5906 = vmatprep.subr.bf16.mxu0 %v5905_v47  ;;  %v5935_v47 = vpack.c.bf16 %v2124_v44, %v2120_v43  ;;  %v2378_v44 = vld [vmem:[%s9474_s20 + $0x108] sm:$0xff] }
 0x89f   :  { %5888 = vmatpush1.bf16.msra.mxu1 %v5887_v42  ;;  %v2377_v42 = vld [vmem:[%s9474_s20 + $0x100] sm:$0xff] }
 0x8a0   :  { %5908 = vmatpush1.bf16.msra.mxu0 %v5907_v53  ;;  %v2126_v53 = vld [vmem:[#allocation25 + $0x240] sm:$0xff]  ;;  %5890 = vmatprep.subr.bf16.mxu1 %v5889_v51  ;;  %v2363_v51 = vld [vmem:[%s9474_s20 + $0x90] sm:$0xff] }
 0x8a1   :  { %5910 = vmatprep.subr.bf16.mxu0 %v5909_v54  ;;  %v2130_v54 = vld [vmem:[#allocation25 + $0x260] sm:$0xff] }
 0x8a2   :  { %v5891_v56 = vpack.c.bf16 %v2130_v54, %v2126_v53  ;;  %v5982_v54 = vpack.c.bf16 %v2378_v44, %v2377_v42  ;;  %v2373_v44 = vld [vmem:[%s9474_s20 + $0xe0] sm:$0xff] }
 0x8a4   :  { %5912 = vmatpush1.bf16.msra.mxu0 %v5911_v59  ;;  %v2135_v59 = vld [vmem:[#allocation25 + $0x288] sm:$0xff]  ;;  %5892 = vmatpush1.bf16.msra.mxu1 %v5891_v56  ;;  %v2379_v56 = vld [vmem:[%s9474_s20 + $0x110] sm:$0xff] }
 0x8a5   :  { %5914 = vmatprep.subr.bf16.mxu0 %v5913_v60  ;;  %v5939_v60 = vpack.c.bf16 %v2132_v58, %v2128_v57  ;;  %v5893_v4 = vpack.c.bf16 %v2139_v61, %v2135_v59  ;;  %v2380_v58 = vld [vmem:[%s9474_s20 + $0x118] sm:$0xff]  ;;  %v5953_v59 = vpack.c.bf16 %v2364_v52, %v2363_v51  ;;  %v2391_v51 = vld [vmem:[%s9474_s20 + $0x170] sm:$0xff] }
 0x8a6   :  { %v2348_v61 = vld [vmem:[%s9474_s20 + $0x18] sm:$0xff] }
 0x8a7   :  { %5894 = vmatprep.subr.bf16.mxu1 %v5893_v4  ;;  %v2366_v4 = vld [vmem:[%s9474_s20 + $0xa8] sm:$0xff]  ;;  %v2392_v52 = vld [vmem:[%s9474_s20 + $0x178] sm:$0xff] }
 0x8a8   :  { %5916 = vmatpush1.bf16.msra.mxu0 %v5915_v16  ;;  %v5941_v16 = vpack.c.bf16 %v2141_v63, %v2137_v62  ;;  %v2365_v63 = vld [vmem:[%s9474_s20 + $0xa0] sm:$0xff] }
 0x8a9   :  { %5918 = vmatprep.subr.bf16.mxu0 %v5917_v0  ;;  %v2134_v0 = vld [vmem:[#allocation25 + $0x280] sm:$0xff] }
 0x8aa   :  { %v5895_v6 = vpack.c.bf16 %v2138_v1, %v2134_v0  ;;  %v2381_v1 = vld [vmem:[%s9474_s20 + $0x120] sm:$0xff] }
 0x8ab   :  { %v5988_v7 = vpack.c.bf16 %v2382_v5, %v2381_v1 }
 0x8ac   :  { %5920 = vmatpush1.bf16.msra.mxu0 %v5919_v8  ;;  %v2143_v8 = vld [vmem:[#allocation25 + $0x2c8] sm:$0xff]  ;;  %5896 = vmatpush1.bf16.msra.mxu1 %v5895_v6  ;;  %v5957_v6 = vpack.c.bf16 %v2366_v4, %v2365_v63  ;;  %v2154_v4 = vld [vmem:[#allocation27] sm:$0xf] }
 0x8ad   :  { %5922 = vmatprep.subr.bf16.mxu0 %v5921_v9  ;;  %v2147_v9 = vld [vmem:[#allocation25 + $0x2e8] sm:$0xff]  ;;  %v2163_v1 = vrot.slane %v2154_v4, %v8525_v29  ;;  %v2171_v5 = vrot.slane %v2154_v4, %v8710_v22 }
 0x8ae   :  { %v5897_v35 = vpack.c.bf16 %v2147_v9, %v2143_v8  ;;  %v2349_v8 = vld [vmem:[%s9474_s20 + $0x20] sm:$0xff]  ;;  %v2350_v9 = vld [vmem:[%s9474_s20 + $0x28] sm:$0xff] }
 0x8b0   :  { %5924 = vmatpush1.bf16.msra.mxu0 %v5923_v14  ;;  %v2142_v14 = vld [vmem:[#allocation25 + $0x2c0] sm:$0xff]  ;;  %5898 = vmatprep.subr.bf16.mxu1 %v5897_v35  ;;  %v5959_v35 = vpack.c.bf16 %v2350_v9, %v2349_v8 }
 0x8b1   :  { %5926 = vmatprep.subr.bf16.mxu0 %v5925_v15  ;;  %v5945_v15 = vpack.c.bf16 %v2149_v12, %v2145_v11  ;;  %v5899_v21 = vpack.c.bf16 %v2146_v17, %v2142_v14  ;;  %v2384_v11 = vld [vmem:[%s9474_s20 + $0x138] sm:$0xff]  ;;  %v2367_v14 = vld [vmem:[%s9474_s20 + $0xb0] sm:$0xff] }
 0x8b3   :  { %5900 = vmatpush1.bf16.msra.mxu1 %v5899_v21  ;;  %v2385_v21 = vld [vmem:[%s9474_s20 + $0x140] sm:$0xff] }
 0x8b4   :  { %5928 = vmatpush1.bf16.msra.mxu0 %v5927_v19  ;;  %v2148_v19 = vld [vmem:[#allocation25 + $0x2f0] sm:$0xff]  ;;  %2227 = vmatprep.subr.mxu1 %v2151_v13 }
 0x8b5   :  { %5930 = vmatprep.subr.bf16.mxu0 %v5929_v31  ;;  %v5947_v23 = vpack.c.bf16 %v2148_v19, %v2144_v18  ;;  %v2362_v31 = vld [vmem:[%s9474_s20 + $0x88] sm:$0xff]  ;;  %v2351_v18 = vld [vmem:[%s9474_s20 + $0x30] sm:$0xff]  ;;  %v2352_v19 = vld [vmem:[%s9474_s20 + $0x38] sm:$0xff] }
 0x8b6   :  { %v5949_v32 = vpack.c.bf16 %v2362_v31, %v2361_v30  ;;  %v2386_v13 = vld [vmem:[%s9474_s20 + $0x148] sm:$0xff]  ;;  %v2353_v31 = vld [vmem:[%s9474_s20 + $0x40] sm:$0xff] }
 0x8b7   :  { %2228 = vmatpush1.msra.mxu1 %v2150_v25  ;;  %v2369_v25 = vld [vmem:[%s9474_s20 + $0xc0] sm:$0xff] }
 0x8b8   :  { %5932 = vmatpush1.bf16.msra.mxu0 %v5931_v36  ;;  %5950 = vmatprep.subr.bf16.mxu1 %v5949_v32  ;;  %v1965_v36 = vrot.slane %v1956_v33, %v8525_v29  ;;  %v2354_v32 = vld [vmem:[%s9474_s20 + $0x48] sm:$0xff]  ;;  %v2387_v33 = vld [vmem:[%s9474_s20 + $0x150] sm:$0xff] }
 0x8b9   :  { %5934 = vmatprep.subr.bf16.mxu0 %v5933_v46 }
 0x8bc   :  { %5936 = vmatpush1.bf16.msra.mxu0 %v5935_v47  ;;  %v2345_v47 = vld [vmem:[%s9474_s20] sm:$0xff] }
 0x8bd   :  { %5938 = vmatprep.subr.bf16.mxu0 %v5937_v55  ;;  %v5951_v55 = vpack.c.bf16 %v2346_v48, %v2345_v47  ;;  %v2374_v47 = vld [vmem:[%s9474_s20 + $0xe8] sm:$0xff]  ;;  %v2357_v48 = vld [vmem:[%s9474_s20 + $0x60] sm:$0xff] }
 0x8c0   :  { %5940 = vmatpush1.bf16.msra.mxu0 %v5939_v60  ;;  %v2347_v60 = vld [vmem:[%s9474_s20 + $0x10] sm:$0xff] }
 0x8c1   :  { %5942 = vmatprep.subr.bf16.mxu0 %v5941_v16  ;;  %v5985_v16 = vpack.c.bf16 %v2380_v58, %v2379_v56  ;;  %v5955_v0 = vpack.c.bf16 %v2348_v61, %v2347_v60  ;;  %v6003_v56 = vpack.c.bf16 %v2392_v52, %v2391_v51  ;;  %v2359_v58 = vld [vmem:[%s9474_s20 + $0x70] sm:$0xff]  ;;  %v2393_v60 = vld [vmem:[%s9474_s20 + $0x180] sm:$0xff]  ;;  %v2394_v61 = vld [vmem:[%s9474_s20 + $0x188] sm:$0xff] }
 0x8c2   :  { %v6006_v63 = vpack.c.bf16 %v2394_v61, %v2393_v60 }
 0x8c4   :  { %5944 = vmatpush1.bf16.msra.mxu0 %v5943_v10  ;;  %v2383_v10 = vld [vmem:[%s9474_s20 + $0x130] sm:$0xff] }
 0x8c5   :  { %5946 = vmatprep.subr.bf16.mxu0 %v5945_v15  ;;  %v5991_v12 = vpack.c.bf16 %v2384_v11, %v2383_v10  ;;  %v2368_v15 = vld [vmem:[%s9474_s20 + $0xb8] sm:$0xff] }
 0x8c6   :  { %v5961_v17 = vpack.c.bf16 %v2368_v15, %v2367_v14 }
 0x8c8   :  { %5948 = vmatpush1.bf16.msra.mxu0 %v5947_v23  ;;  %v5963_v23 = vpack.c.bf16 %v2352_v19, %v2351_v18 }
 0x8c9   :  { %2298 = vmatprep.subr.mxu0 %v2153_v24  ;;  %v5994_v24 = vpack.c.bf16 %v2386_v13, %v2385_v21 }
 0x8cc   :  { %2299 = vmatpush1.msra.mxu0 %v2152_v28  ;;  %v2370_v28 = vld [vmem:[%s9474_s20 + $0xc8] sm:$0xff] }
 0x8cd   :  { %5981 = vmatprep.subr.bf16.mxu0 %v7932_v3  ;;  %v5965_v30 = vpack.c.bf16 %v2370_v28, %v2369_v25 }
 0x96e   :  { %v2037_v37 = vpop.f32.mrb[10].mxu0 }
 0x96f   :  { %v2038_v38 = vadd.f32 %v2037_v37, %v1961_v34  ;;  %v2039_v39 = vpop.f32.mrb[11].mxu0  ;;  %v5967_v34 = vpack.c.bf16 %v2354_v32, %v2353_v31 }
 0x970   :  { %v2040_v40 = vadd.f32 %v2039_v39, %v1965_v36  ;;  %v2388_v36 = vld [vmem:[%s9474_s20 + $0x158] sm:$0xff] }
 0x971   :  { %v2044_v26 = vmin.f32 %v2038_v38, 0.0  ;;  %vm2042_vm9 = vcmp.gt.f32.partialorder %v2038_v38, 0.0  ;;  %v5997_v37 = vpack.c.bf16 %v2388_v36, %v2387_v33  ;;  %v2372_v39 = vld [vmem:[%s9474_s20 + $0xd8] sm:$0xff] }
 0x972   :  { %v2045_v41 = vmin.f32 %v2040_v40, 0.0  ;;  %vm2043_vm8 = vcmp.gt.f32.partialorder %v2040_v40, 0.0 }
 0x973   :  { %v2046_v45 = vmul.f32 1.442695, %v2044_v26 }
 0x974   :  { %v2048_v46 = vmul.f32 1.442695, %v2045_v41  ;;  %v2356_v41 = vld [vmem:[%s9474_s20 + $0x58] sm:$0xff] }
 0x975   :  { %6902 = vpow2.f32 %v2046_v45  ;;  %v2389_v45 = vld [vmem:[%s9474_s20 + $0x160] sm:$0xff] }
 0x976   :  { %6904 = vpow2.f32 %v2048_v46  ;;  %v2390_v46 = vld [vmem:[%s9474_s20 + $0x168] sm:$0xff] }
 0x97f   :  { %v6903_v43 = vpop.eup %6902 }
 0x980   :  { %v6905_v49 = vpop.eup %6904  ;;  %v5322_v50 = vadd.f32 -1.0, %v6903_v43  ;;  %v6000_v43 = vpack.c.bf16 %v2390_v46, %v2389_v45 }
 0x981   :  { %v5323_v53 = vadd.f32 -1.0, %v6905_v49  ;;  %v5973_v49 = vpack.c.bf16 %v2374_v47, %v2373_v44 }
 0x982   :  { %v2052_v62 = vsel %vm2042_vm9, %v2038_v38, %v5322_v50  ;;  %v2371_v38 = vld [vmem:[%s9474_s20 + $0xd0] sm:$0xff]  ;;  %v2358_v50 = vld [vmem:[%s9474_s20 + $0x68] sm:$0xff] }
 0x983   :  { %v2053_v57 = vsel %vm2043_vm8, %v2040_v40, %v5323_v53  ;;  %v2355_v40 = vld [vmem:[%s9474_s20 + $0x50] sm:$0xff]  ;;  %v5969_v26 = vpack.c.bf16 %v2372_v39, %v2371_v38  ;;  %v5975_v53 = vpack.c.bf16 %v2358_v50, %v2357_v48 }
 0x984   :  { %5324 = vmatprep.mubr.msk.f32.mxu1 %vm769_vm4, %v2053_v57  ;;  %5325 = vmatprep.mubr.msk.f32.mxu0 %vm769_vm4, %v2053_v57  ;;  %v5971_v42 = vpack.c.bf16 %v2356_v41, %v2355_v40  ;;  %v5330_v41 = vld [vmem:[#allocation28] ss:$0 sm:$0xff] }
 0x985   :  { %2244 = vmatmul.mubr.f32.vlgmr.msra.gmra.mrb[10].mxu1 %v2052_v62  ;;  %2315 = vmatmul.mubr.f32.vlgmr.msra.gmra.mrb[12].mxu0 %v2052_v62 }
 0x986   :  { %5983 = vmatpush1.bf16.msra.mxu0 %v5982_v54  ;;  %5952 = vmatpush3.bf16.msra.mxu1 %v5951_v55  ;;  %v2375_v54 = vld [vmem:[%s9474_s20 + $0xf0] sm:$0xff]  ;;  %v2376_v55 = vld [vmem:[%s9474_s20 + $0xf8] sm:$0xff] }
 0x987   :  { %5984 = vmatprep.subr.bf16.mxu0 %v7932_v3  ;;  %5954 = vmatprep.subr.bf16.mxu1 %v5953_v59  ;;  %v5977_v57 = vpack.c.bf16 %v2376_v55, %v2375_v54  ;;  %v2360_v59 = vld [vmem:[%s9474_s20 + $0x78] sm:$0xff] }
 0x988   :  { %v5979_v62 = vpack.c.bf16 %v2360_v59, %v2359_v58  ;;  %v2557_v59 = vpop.permute.xlu1 %2556 }
 0x98a   :  { %5986 = vmatpush1.bf16.msra.mxu0 %v5985_v16  ;;  %5956 = vmatpush3.bf16.msra.mxu1 %v5955_v0  ;;  %v2159_v16 = vrot.slane %v2154_v4, %v8521_v27  ;;  %v2167_v0 = vrot.slane %v2154_v4, %v8706_v20 }
 0x98b   :  { %5987 = vmatprep.subr.bf16.mxu0 %v7932_v3  ;;  %5958 = vmatprep.subr.bf16.mxu1 %v5957_v6 }
 0x98e   :  { %5989 = vmatpush1.bf16.msra.mxu0 %v5988_v7  ;;  %5960 = vmatpush3.bf16.msra.mxu1 %v5959_v35 }
 0x98f   :  { %5990 = vmatprep.subr.bf16.mxu0 %v7932_v3  ;;  %5962 = vmatprep.subr.bf16.mxu1 %v5961_v17 }
 0x992   :  { %5992 = vmatpush1.bf16.msra.mxu0 %v5991_v12  ;;  %5964 = vmatpush3.bf16.msra.mxu1 %v5963_v23 }
 0x993   :  { %5993 = vmatprep.subr.bf16.mxu0 %v7932_v3  ;;  %5966 = vmatprep.subr.bf16.mxu1 %v5965_v30 }
 0x996   :  { %5995 = vmatpush1.bf16.msra.mxu0 %v5994_v24  ;;  %5968 = vmatpush3.bf16.msra.mxu1 %v5967_v34 }
 0x997   :  { %5996 = vmatprep.subr.bf16.mxu0 %v7932_v3  ;;  %5970 = vmatprep.subr.bf16.mxu1 %v5969_v26 }
 0x99a   :  { %5998 = vmatpush1.bf16.msra.mxu0 %v5997_v37  ;;  %5972 = vmatpush3.bf16.msra.mxu1 %v5971_v42 }
 0x99b   :  { %5999 = vmatprep.subr.bf16.mxu0 %v7932_v3  ;;  %5974 = vmatprep.subr.bf16.mxu1 %v5973_v49 }
 0x99e   :  { %6001 = vmatpush1.bf16.msra.mxu0 %v6000_v43  ;;  %5976 = vmatpush3.bf16.msra.mxu1 %v5975_v53 }
 0x99f   :  { %6002 = vmatprep.subr.bf16.mxu0 %v7932_v3  ;;  %5978 = vmatprep.subr.bf16.mxu1 %v5977_v57 }
 0x9a2   :  { %6004 = vmatpush1.bf16.msra.mxu0 %v6003_v56  ;;  %5980 = vmatpush3.bf16.msra.mxu1 %v5979_v62  ;;  %v2562_v56 = vpop.permute.xlu0 %2561 }
 0x9a3   :  { %6005 = vmatprep.subr.bf16.mxu0 %v7932_v3 }
 0x9a6   :  { %6007 = vmatpush1.bf16.msra.mxu0 %v6006_v63 }
 0xa58   :  { %v2245_v6 = vpop.f32.mrb[10].mxu1  ;;  %v2316_v7 = vpop.f32.mrb[12].mxu0 }
 0xa59   :  { %v2246_v8 = vadd.f32 %v2245_v6, %v2159_v16  ;;  %v2317_v9 = vadd.f32 %v2316_v7, %v2167_v0  ;;  %v2247_v10 = vpop.f32.mrb[11].mxu1  ;;  %v2318_v35 = vpop.f32.mrb[13].mxu0  ;;  %v2595_v0 = vld [vmem:[#allocation30 + $0x8] sm:$0xff]  ;;  %v2596_v7 = vld [vmem:[#allocation30 + $0x10] sm:$0xff] }
 0xa5a   :  { %v2248_v11 = vadd.f32 %v2247_v10, %v2163_v1  ;;  %v2319_v12 = vadd.f32 %v2318_v35, %v2171_v5  ;;  %v2597_v1 = vld [vmem:[#allocation30 + $0x18] sm:$0xff]  ;;  %v2594_v5 = vld [vmem:[#allocation30] sm:$0xff] }
 0xa5b   :  { %v2325_v14 = vmin.f32 %v2246_v8, 0.0  ;;  %v2327_v15 = vmin.f32 %v2317_v9, 0.0  ;;  %vm2321_vm12 = vcmp.gt.f32.partialorder %v2246_v8, 0.0  ;;  %vm2323_vm15 = vcmp.gt.f32.partialorder %v2317_v9, 0.0 }
 0xa5c   :  { %v2326_v17 = vmin.f32 %v2248_v11, 0.0  ;;  %v2328_v18 = vmin.f32 %v2319_v12, 0.0  ;;  %vm2322_vm10 = vcmp.gt.f32.partialorder %v2248_v11, 0.0  ;;  %vm2324_vm13 = vcmp.gt.f32.partialorder %v2319_v12, 0.0 }
 0xa5d   :  { %v2329_v19 = vmul.f32 1.442695, %v2325_v14  ;;  %v2333_v21 = vmul.f32 1.442695, %v2327_v15  ;;  %v6008_v6 = vpack.c.bf16 %v2597_v1, %v2595_v0  ;;  %v2599_v14 = vld [vmem:[#allocation30 + $0x28] sm:$0xf] }
 0xa5e   :  { %v2331_v23 = vmul.f32 1.442695, %v2326_v17  ;;  %v2335_v13 = vmul.f32 1.442695, %v2328_v18  ;;  %v2598_v15 = vld [vmem:[#allocation30 + $0x20] sm:$0xf] }
 0xa5f   :  { %6906 = vpow2.f32 %v2329_v19  ;;  %6009 = vmatprep.subr.bf16.mxu1 %v6008_v6  ;;  %v8829_v18 = vld [vmem:[%s9470_s15] sm:$0xff]  ;;  %v2932_v1 = vld [vmem:[#allocation36 + $0x8] sm:$0xff] }
 0xa60   :  { %6908 = vpow2.f32 %v2333_v21  ;;  %v2706_v21 = vld [vmem:[%s9475_s9] sm:$0xff] }
 0xa61   :  { %6910 = vpow2.f32 %v2331_v23  ;;  %v2707_v23 = vld [vmem:[%s9475_s9 + $0x8] sm:$0xff] }
 0xa62   :  { %6912 = vpow2.f32 %v2335_v13  ;;  %v2931_v6 = vld [vmem:[#allocation36] sm:$0xff] }
 0xa69   :  { %v6907_v24 = vpop.eup %6906 }
 0xa6a   :  { %v6909_v25 = vpop.eup %6908  ;;  %v5326_v30 = vadd.f32 -1.0, %v6907_v24  ;;  %v6013_v24 = vpack.c.bf16 %v2707_v23, %v2706_v21  ;;  %v2939_v23 = vld [vmem:[#allocation36 + $0x40] sm:$0xff] }
 0xa6b   :  { %v6911_v28 = vpop.eup %6910  ;;  %v5328_v33 = vadd.f32 -1.0, %v6909_v25 }
 0xa6c   :  { %v6913_v31 = vpop.eup %6912  ;;  %v5327_v32 = vadd.f32 -1.0, %v6911_v28  ;;  %v2341_v38 = vsel %vm2321_vm12, %v2246_v8, %v5326_v30  ;;  %v6010_v8 = vpack.c.bf16 %v2596_v7, %v2594_v5  ;;  %v2708_v28 = vld [vmem:[%s9475_s9 + $0x10] sm:$0xff]  ;;  %v2709_v30 = vld [vmem:[%s9475_s9 + $0x18] sm:$0xff] }
 0xa6d   :  { %v5329_v34 = vadd.f32 -1.0, %v6913_v31  ;;  %v2343_v39 = vsel %vm2323_vm15, %v2317_v9, %v5328_v33  ;;  %v6016_v31 = vpack.c.bf16 %v2709_v30, %v2708_v28  ;;  %v2711_v33 = vld [vmem:[%s9475_s9 + $0x28] sm:$0xff]  ;;  %v2934_v5 = vld [vmem:[#allocation36 + $0x18] sm:$0xff] }
 0xa6e   :  { %v2342_v36 = vsel %vm2322_vm10, %v2248_v11, %v5327_v32  ;;  %v2710_v32 = vld [vmem:[%s9475_s9 + $0x20] sm:$0xff]  ;;  %v6052_v7 = vpack.c.bf16 %v2934_v5, %v2932_v1  ;;  %v2829_v1 = vld [vmem:[#allocation33 + $0x28] sm:$0xf]  ;;  %v2828_v5 = vld [vmem:[#allocation33 + $0x20] sm:$0xf] }
 0xa6f   :  { %2469 = vmatprep.mubr.f32.mxu1 %v2342_v36  ;;  %v2344_v37 = vsel %vm2324_vm13, %v2319_v12, %v5329_v34  ;;  %v6019_v34 = vpack.c.bf16 %v2711_v33, %v2710_v32  ;;  %v2712_v36 = vld [vmem:[%s9475_s9 + $0x30] sm:$0xff]  ;;  %v2946_v28 = vld [vmem:[#allocation36 + $0x78] sm:$0xff] }
 0xa70   :  { %5331 = vmatprep.mubr.msk.f32.mxu0 %vm1458_vm14, %v2344_v37  ;;  %2470 = vmatmul.mubr.f32.vlgmr.msra.gmra.mrb[12].mxu1 %v2341_v38  ;;  %v2713_v37 = vld [vmem:[%s9475_s9 + $0x38] sm:$0xff]  ;;  %v2948_v33 = vld [vmem:[#allocation36 + $0x88] sm:$0xff] }
 0xa71   :  { %2540 = vmatmul.mubr.f32.vlgmr.msra.gmra.mrb[14].mxu0 %v2343_v39  ;;  %2687 = vmatprep.mubr.f32.mxu1 %v7931_v2  ;;  %v6022_v38 = vpack.c.bf16 %v2713_v37, %v2712_v36  ;;  %v2714_v39 = vld [vmem:[%s9475_s9 + $0x40] sm:$0xff]  ;;  %v2945_v32 = vld [vmem:[#allocation36 + $0x70] sm:$0xff] }
 0xa72   :  { %6011 = vmatpush1.bf16.msra.mxu1 %v6010_v8  ;;  %v2933_v8 = vld [vmem:[#allocation36 + $0x10] sm:$0xff]  ;;  %6053 = vmatprep.subr.bf16.mxu0 %v6052_v7  ;;  %v2958_v7 = vld [vmem:[#allocation36 + $0xd8] sm:$0xff] }
 0xa73   :  { %5332 = vmatprep.subr.msk.mxu1 %vm2616_vm3, %v2599_v14  ;;  %v2937_v14 = vld [vmem:[#allocation36 + $0x30] sm:$0xff] }
 0xa76   :  { %5333 = vmatpush1.msk.msra.mxu1 %vm2616_vm3, %v2598_v15  ;;  %v2940_v15 = vld [vmem:[#allocation36 + $0x48] sm:$0xff] }
 0xa77   :  { %6012 = vmatprep.subr.bf16.mxu1 %v7932_v3 }
 0xb43   :  { %v5450_v40 = vpop.f32.mrb[12].mxu1 }
 0xb44   :  { %v2541_v26 = vpop.f32.mrb[14].mxu0  ;;  %v5451_v45 = vpop.f32.mrb[13].mxu1 }
 0xb45   :  { %v5452_v46 = vadd.f32 %v5451_v45, %v5450_v40  ;;  %v2543_v42 = vpop.f32.mrb[15].mxu0  ;;  %v2715_v40 = vld [vmem:[%s9475_s9 + $0x48] sm:$0xff]  ;;  %v2717_v45 = vld [vmem:[%s9475_s9 + $0x58] sm:$0xff] }
 0xb46   :  { %v2718_v42 = vld [vmem:[%s9475_s9 + $0x60] sm:$0xff] }
 0xb47   :  { %v2472_v43 = vadd.f32 %v5452_v46, %v5330_v41  ;;  %v2716_v41 = vld [vmem:[%s9475_s9 + $0x50] sm:$0xff] }
 0xb48   :  { %v6028_v46 = vpack.c.bf16 %v2717_v45, %v2716_v41 }
 0xb49   :  { %v2542_v44 = vadd.f32 %v2541_v26, %v2472_v43  ;;  %v6025_v26 = vpack.c.bf16 %v2715_v40, %v2714_v39  ;;  %v2719_v43 = vld [vmem:[%s9475_s9 + $0x68] sm:$0xff]  ;;  %v2949_v39 = vld [vmem:[#allocation36 + $0x90] sm:$0xff] }
 0xb4a   :  { %v2952_v40 = vld [vmem:[#allocation36 + $0xa8] sm:$0xff] }
 0xb4b   :  { %v2546_v47 = vand.u32 2147483647, %v2542_v44  ;;  %v2545_v53 = vmax.f32 %v2542_v44, 0.0  ;;  %v2564_v58 = vmul.f32 %v2562_v56, %v2542_v44  ;;  %v2559_v63 = vmul.f32 %v2557_v59, %v2542_v44 }
 0xb4c   :  { %v6031_v44 = vpack.c.bf16 %v2719_v43, %v2718_v42  ;;  %v2953_v42 = vld [vmem:[#allocation36 + $0xb0] sm:$0xff] }
 0xb4d   :  { %v2547_v48 = vsub.f32 0.0, %v2546_v47  ;;  %v2720_v47 = vld [vmem:[%s9475_s9 + $0x70] sm:$0xff] }
 0xb4f   :  { %v2548_v49 = vmul.f32 1.442695, %v2547_v48  ;;  %v2721_v48 = vld [vmem:[%s9475_s9 + $0x78] sm:$0xff] }
 0xb51   :  { %6914 = vpow2.f32 %v2548_v49  ;;  %v6034_v49 = vpack.c.bf16 %v2721_v48, %v2720_v47 }
 0xb5b   :  { %v6915_v50 = vpop.eup %6914 }
 0xb5c   :  { %v2550_v51 = vadd.f32 1.0, %v6915_v50  ;;  %v2722_v50 = vld [vmem:[%s9475_s9 + $0x80] sm:$0xff] }
 0xb5e   :  { %6916 = vlog2.f32 %v2550_v51  ;;  %v2723_v51 = vld [vmem:[%s9475_s9 + $0x88] sm:$0xff] }
 0xb68   :  { %v6917_v52 = vpop.eup %6916 }
 0xb69   :  { %v2552_v54 = vmul.f32 0.6931472, %v6917_v52  ;;  %v6037_v52 = vpack.c.bf16 %v2723_v51, %v2722_v50 }
 0xb6b   :  { %v2553_v55 = vadd.f32 %v2552_v54, %v2545_v53  ;;  %v2724_v53 = vld [vmem:[%s9475_s9 + $0x90] sm:$0xff]  ;;  %v2725_v54 = vld [vmem:[%s9475_s9 + $0x98] sm:$0xff] }
 0xb6d   :  { %v2571_v57 = vmul.f32 %v2562_v56, %v2553_v55  ;;  %v2570_v60 = vmul.f32 %v2557_v59, %v2553_v55  ;;  %v6040_v55 = vpack.c.bf16 %v2725_v54, %v2724_v53  ;;  %v2726_v56 = vld [vmem:[%s9475_s9 + $0xa0] sm:$0xff]  ;;  %v2728_v59 = vld [vmem:[%s9475_s9 + $0xb0] sm:$0xff] }
 0xb6f   :  { %2573 = vrot.lane.b32.xlu1 %v2571_v57, %s7937_s18  ;;  %v2727_v57 = vld [vmem:[%s9475_s9 + $0xa8] sm:$0xff] }
 0xb73   :  { %2566 = vrot.lane.b32.xlu1 %v2564_v58, %s7937_s18  ;;  %v6043_v58 = vpack.c.bf16 %v2727_v57, %v2726_v56 }
 0xb77   :  { %2817 = vrot.lane.b32.xlu1 %v8829_v18, %s7940_s28 }
 0xbe1   :  { %v2574_v61 = vpop.permute.xlu1 %2573 }
 0xbe2   :  { %v8816_v62 = vadd.f32 %v2574_v61, %v2570_v60  ;;  %v2729_v60 = vld [vmem:[%s9475_s9 + $0xb8] sm:$0xff] }
 0xbe3   :  { %v6046_v61 = vpack.c.bf16 %v2729_v60, %v2728_v59  ;;  %v2826_v59 = vld [vmem:[#allocation33 + $0x10] sm:$0xff] }
 0xbe4   :  { %6918 = vrsqrt.f32 %v8816_v62  ;;  %vm2579_vm1 = vcmp.eq.f32.partialorder %v8816_v62, inf  ;;  %v2582_v35 = vand.u32 2147483648, %v8816_v62  ;;  %vm2581_vm2 = vcmp.eq.f32.partialorder %v8816_v62, 0.0 }
 0xbe5   :  { %v2567_v4 = vpop.permute.xlu1 %2566 }
 0xbe6   :  { %v2569_v16 = vadd.f32 %v2567_v4, %v2559_v63  ;;  %v2730_v63 = vld [vmem:[%s9475_s9 + $0xc0] sm:$0xff]  ;;  %v2825_v4 = vld [vmem:[#allocation33 + $0x8] sm:$0xff] }
 0xbe8   :  { %5103 = vst.msk [vmem:[#allocation54] sm:$0xff] %vm2612_vm0, %v2569_v16 }
 0xbee   :  { %v6919_v9 = vpop.eup %6918 }
 0xbef   :  { %v2578_v10 = vmul.f32 %v6919_v9, %v8816_v62  ;;  %v2936_v9 = vld [vmem:[#allocation36 + $0x28] sm:$0xff] }
 0xbf1   :  { %v2580_v11 = vsel %vm2579_vm1, %v8816_v62, %v2578_v10  ;;  %v2938_v10 = vld [vmem:[#allocation36 + $0x38] sm:$0xff] }
 0xbf2   :  { %v2583_v12 = vsel %vm2581_vm2, %v2582_v35, %v2580_v11  ;;  %v6054_v35 = vpack.c.bf16 %v2933_v8, %v2931_v6  ;;  %v6056_v11 = vpack.c.bf16 %v2938_v10, %v2936_v9  ;;  %v2956_v6 = vld [vmem:[#allocation36 + $0xc8] sm:$0xff]  ;;  %v2955_v9 = vld [vmem:[#allocation36 + $0xc0] sm:$0xff]  ;;  %v2957_v10 = vld [vmem:[#allocation36 + $0xd0] sm:$0xff] }
 0xbf3   :  { %2585 = vrot.lane.b32.xlu0 %v2583_v12, %s7938_s8  ;;  %v2935_v12 = vld [vmem:[#allocation36 + $0x20] sm:$0xff]  ;;  %v6076_v8 = vpack.c.bf16 %v2958_v7, %v2956_v6  ;;  %v3087_v7 = vld [vmem:[#allocation39 + $0x40] sm:$0xff] }
 0xbf4   :  { %6055 = vmatpush1.bf16.msra.mxu0 %v6054_v35  ;;  %v6078_v35 = vpack.c.bf16 %v2957_v10, %v2955_v9 }
 0xbf5   :  { %6057 = vmatprep.subr.bf16.mxu0 %v6056_v11  ;;  %v2960_v11 = vld [vmem:[#allocation36 + $0xe8] sm:$0xff] }
 0xc65   :  { %v2586_v17 = vpop.permute.xlu0 %2585 }
 0xc66   :  { %v2588_v19 = vmul.f32 %v8829_v18, %v2586_v17  ;;  %v2942_v17 = vld [vmem:[#allocation36 + $0x58] sm:$0xff] }
 0xc67   :  { %v6060_v21 = vpack.c.bf16 %v2942_v17, %v2940_v15  ;;  %v2959_v15 = vld [vmem:[#allocation36 + $0xe0] sm:$0xff]  ;;  %v2961_v17 = vld [vmem:[#allocation36 + $0xf0] sm:$0xff] }
 0xc68   :  { %2590 = vrot.lane.b32.xlu0 %v2588_v19, %s7939_s27  ;;  %v6058_v19 = vpack.c.bf16 %v2937_v14, %v2935_v12  ;;  %v2962_v12 = vld [vmem:[#allocation36 + $0xf8] sm:$0xff] }
 0xc69   :  { %v6080_v14 = vpack.c.bf16 %v2962_v12, %v2960_v11  ;;  %v3094_v11 = vld [vmem:[#allocation39 + $0x78] sm:$0xff] }
 0xc6a   :  { %6059 = vmatpush1.bf16.msra.mxu0 %v6058_v19  ;;  %v6082_v19 = vpack.c.bf16 %v2961_v17, %v2959_v15 }
 0xc6b   :  { %6061 = vmatprep.subr.bf16.mxu0 %v6060_v21  ;;  %v2964_v21 = vld [vmem:[#allocation36 + $0x108] sm:$0xff] }
 0xcda   :  { %v2591_v13 = vpop.permute.xlu0 %2590 }
 0xcdb   :  { %v8834_v25 = vadd.f32 %v2591_v13, %v2569_v16  ;;  %v2827_v16 = vld [vmem:[#allocation33 + $0x18] sm:$0xff]  ;;  %v2941_v13 = vld [vmem:[#allocation36 + $0x50] sm:$0xff] }
 0xcdc   :  { %v6048_v0 = vpack.c.bf16 %v2827_v16, %v2825_v4  ;;  %v6062_v18 = vpack.c.bf16 %v2941_v13, %v2939_v23  ;;  %v2966_v23 = vld [vmem:[#allocation36 + $0x118] sm:$0xff] }
 0xcdd   :  { %5334 = vmatmul.mubr.msk.f32.vlgmr.msra.gmra.mrb[14].mxu1 %vm2612_vm0, %v8834_v25  ;;  %v6084_v13 = vpack.c.bf16 %v2966_v23, %v2964_v21  ;;  %v3091_v23 = vld [vmem:[#allocation39 + $0x60] sm:$0xff] }
 0xcde   :  { %6014 = vmatpush1.bf16.msra.mxu1 %v6013_v24  ;;  %v2944_v24 = vld [vmem:[#allocation36 + $0x68] sm:$0xff]  ;;  %6063 = vmatpush1.bf16.msra.mxu0 %v6062_v18 }
 0xcdf   :  { %6015 = vmatprep.subr.bf16.mxu1 %v7932_v3  ;;  %v6064_v30 = vpack.c.bf16 %v2946_v28, %v2944_v24  ;;  %v2963_v24 = vld [vmem:[#allocation36 + $0x100] sm:$0xff]  ;;  %v2965_v28 = vld [vmem:[#allocation36 + $0x110] sm:$0xff] }
 0xce0   :  { %v6086_v18 = vpack.c.bf16 %v2965_v28, %v2963_v24  ;;  %v3096_v28 = vld [vmem:[#allocation39 + $0x88] sm:$0xff] }
 0xce1   :  { %6065 = vmatprep.subr.bf16.mxu0 %v6064_v30  ;;  %v2968_v30 = vld [vmem:[#allocation36 + $0x128] sm:$0xff] }
 0xce2   :  { %6017 = vmatpush1.bf16.msra.mxu1 %v6016_v31  ;;  %v2943_v31 = vld [vmem:[#allocation36 + $0x60] sm:$0xff] }
 0xce3   :  { %6018 = vmatprep.subr.bf16.mxu1 %v7932_v3  ;;  %v6066_v36 = vpack.c.bf16 %v2945_v32, %v2943_v31  ;;  %v2970_v31 = vld [vmem:[#allocation36 + $0x138] sm:$0xff] }
 0xce4   :  { %v6088_v32 = vpack.c.bf16 %v2970_v31, %v2968_v30 }
 0xce5   :  { %6067 = vmatpush1.bf16.msra.mxu0 %v6066_v36 }
 0xce6   :  { %6020 = vmatpush1.bf16.msra.mxu1 %v6019_v34  ;;  %v2950_v34 = vld [vmem:[#allocation36 + $0x98] sm:$0xff] }
 0xce7   :  { %6021 = vmatprep.subr.bf16.mxu1 %v7932_v3  ;;  %v6068_v37 = vpack.c.bf16 %v2950_v34, %v2948_v33  ;;  %v2967_v33 = vld [vmem:[#allocation36 + $0x120] sm:$0xff]  ;;  %v2969_v34 = vld [vmem:[#allocation36 + $0x130] sm:$0xff] }
 0xce8   :  { %v6090_v36 = vpack.c.bf16 %v2969_v34, %v2967_v33 }
 0xce9   :  { %6069 = vmatprep.subr.bf16.mxu0 %v6068_v37  ;;  %v2972_v37 = vld [vmem:[#allocation36 + $0x148] sm:$0xff] }
 0xcea   :  { %6023 = vmatpush1.bf16.msra.mxu1 %v6022_v38  ;;  %v2947_v38 = vld [vmem:[#allocation36 + $0x80] sm:$0xff] }
 0xceb   :  { %6024 = vmatprep.subr.bf16.mxu1 %v7932_v3  ;;  %v6070_v41 = vpack.c.bf16 %v2949_v39, %v2947_v38  ;;  %v2974_v38 = vld [vmem:[#allocation36 + $0x158] sm:$0xff] }
 0xcec   :  { %v6092_v39 = vpack.c.bf16 %v2974_v38, %v2972_v37 }
 0xced   :  { %6071 = vmatpush1.bf16.msra.mxu0 %v6070_v41 }
 0xcee   :  { %6026 = vmatpush1.bf16.msra.mxu1 %v6025_v26  ;;  %v2954_v26 = vld [vmem:[#allocation36 + $0xb8] sm:$0xff] }
 0xcef   :  { %6027 = vmatprep.subr.bf16.mxu1 %v7932_v3  ;;  %v6072_v45 = vpack.c.bf16 %v2954_v26, %v2952_v40  ;;  %v2971_v40 = vld [vmem:[#allocation36 + $0x140] sm:$0xff]  ;;  %v2973_v26 = vld [vmem:[#allocation36 + $0x150] sm:$0xff] }
 0xcf0   :  { %v6094_v41 = vpack.c.bf16 %v2973_v26, %v2971_v40  ;;  %v3097_v40 = vld [vmem:[#allocation39 + $0x90] sm:$0xff] }
 0xcf1   :  { %6073 = vmatprep.subr.bf16.mxu0 %v6072_v45  ;;  %v2976_v45 = vld [vmem:[#allocation36 + $0x168] sm:$0xff] }
 0xcf2   :  { %6029 = vmatpush1.bf16.msra.mxu1 %v6028_v46  ;;  %v2951_v46 = vld [vmem:[#allocation36 + $0xa0] sm:$0xff] }
 0xcf3   :  { %6030 = vmatprep.subr.bf16.mxu1 %v7932_v3  ;;  %v6074_v43 = vpack.c.bf16 %v2953_v42, %v2951_v46  ;;  %v2978_v46 = vld [vmem:[#allocation36 + $0x178] sm:$0xff]  ;;  %v2975_v42 = vld [vmem:[#allocation36 + $0x160] sm:$0xff] }
 0xcf5   :  { %6075 = vmatpush1.bf16.msra.mxu0 %v6074_v43  ;;  %v6096_v43 = vpack.c.bf16 %v2978_v46, %v2976_v45  ;;  %v3102_v45 = vld [vmem:[#allocation39 + $0xb8] sm:$0xff] }
 0xcf6   :  { %6032 = vmatpush1.bf16.msra.mxu1 %v6031_v44  ;;  %v2600_v44 = vld [vmem:[#allocation31] sm:$0x3]  ;;  %6077 = vmatprep.subr.bf16.mxu0 %v6076_v8  ;;  %v3089_v8 = vld [vmem:[#allocation39 + $0x50] sm:$0xff] }
 0xcf7   :  { %6033 = vmatprep.subr.bf16.mxu1 %v7932_v3  ;;  %v2605_v47 = vrot.slane %v2600_v44, %v8521_v27  ;;  %v2609_v48 = vrot.slane %v2600_v44, %v8525_v29  ;;  %v2977_v44 = vld [vmem:[#allocation36 + $0x170] sm:$0xff]  ;;  %v6110_v17 = vpack.c.bf16 %v3089_v8, %v3087_v7  ;;  %v3109_v8 = vld [vmem:[#allocation39 + $0xf0] sm:$0xff] }
 0xcf8   :  { %v3107_v7 = vld [vmem:[#allocation39 + $0xe0] sm:$0xff] }
 0xcf9   :  { %6079 = vmatpush1.bf16.msra.mxu0 %v6078_v35  ;;  %v3092_v35 = vld [vmem:[#allocation39 + $0x68] sm:$0xff] }
 0xcfa   :  { %6035 = vmatpush1.bf16.msra.mxu1 %v6034_v49  ;;  %6081 = vmatprep.subr.bf16.mxu0 %v6080_v14  ;;  %v6112_v21 = vpack.c.bf16 %v3094_v11, %v3092_v35  ;;  %v3114_v35 = vld [vmem:[#allocation39 + $0x118] sm:$0xff] }
 0xcfb   :  { %6036 = vmatprep.subr.bf16.mxu1 %v7932_v3 }
 0xcfd   :  { %6083 = vmatpush1.bf16.msra.mxu0 %v6082_v19 }
 0xcfe   :  { %6038 = vmatpush1.bf16.msra.mxu1 %v6037_v52  ;;  %6085 = vmatprep.subr.bf16.mxu0 %v6084_v13  ;;  %v3093_v13 = vld [vmem:[#allocation39 + $0x70] sm:$0xff] }
 0xcff   :  { %6039 = vmatprep.subr.bf16.mxu1 %v7932_v3 }
 0xd01   :  { %6087 = vmatpush1.bf16.msra.mxu0 %v6086_v18  ;;  %v3098_v18 = vld [vmem:[#allocation39 + $0x98] sm:$0xff] }
 0xd02   :  { %6041 = vmatpush1.bf16.msra.mxu1 %v6040_v55  ;;  %6089 = vmatprep.subr.bf16.mxu0 %v6088_v32  ;;  %v6116_v38 = vpack.c.bf16 %v3098_v18, %v3096_v28  ;;  %v3120_v28 = vld [vmem:[#allocation39 + $0x148] sm:$0xff]  ;;  %v3122_v18 = vld [vmem:[#allocation39 + $0x158] sm:$0xff] }
 0xd03   :  { %6042 = vmatprep.subr.bf16.mxu1 %v7932_v3 }
 0xd05   :  { %6091 = vmatpush1.bf16.msra.mxu0 %v6090_v36  ;;  %v6114_v36 = vpack.c.bf16 %v3093_v13, %v3091_v23  ;;  %v3115_v23 = vld [vmem:[#allocation39 + $0x120] sm:$0xff]  ;;  %v3117_v13 = vld [vmem:[#allocation39 + $0x130] sm:$0xff] }
 0xd06   :  { %6044 = vmatpush1.bf16.msra.mxu1 %v6043_v58  ;;  %v2824_v58 = vld [vmem:[#allocation33] sm:$0xff]  ;;  %6093 = vmatprep.subr.bf16.mxu0 %v6092_v39 }
 0xd07   :  { %6045 = vmatprep.subr.bf16.mxu1 %v7932_v3  ;;  %v6050_v4 = vpack.c.bf16 %v2826_v59, %v2824_v58  ;;  %v3083_v59 = vld [vmem:[#allocation39 + $0x20] sm:$0xff] }
 0xd08   :  { %v3095_v39 = vld [vmem:[#allocation39 + $0x80] sm:$0xff] }
 0xd09   :  { %6095 = vmatpush1.bf16.msra.mxu0 %v6094_v41  ;;  %v3100_v41 = vld [vmem:[#allocation39 + $0xa8] sm:$0xff] }
 0xd0a   :  { %6047 = vmatpush1.bf16.msra.mxu1 %v6046_v61  ;;  %6097 = vmatprep.subr.bf16.mxu0 %v6096_v43  ;;  %v6118_v43 = vpack.c.bf16 %v3097_v40, %v3095_v39  ;;  %v3123_v39 = vld [vmem:[#allocation39 + $0x160] sm:$0xff]  ;;  %v3125_v40 = vld [vmem:[#allocation39 + $0x170] sm:$0xff] }
 0xd0b   :  { %2789 = vmatprep.subr.mxu1 %v7931_v2 }
 0xd0e   :  { %2790 = vmatpush1.msra.mxu1 %v2730_v63 }
 0xd0f   :  { %6049 = vmatprep.subr.bf16.mxu1 %v6048_v0 }
 0xdb0   :  { %v2689_v49 = vpop.f32.mrb[14].mxu1 }
 0xdb1   :  { %v2690_v50 = vadd.f32 %v2689_v49, %v2605_v47  ;;  %v2691_v51 = vpop.f32.mrb[15].mxu1  ;;  %v6098_v47 = vpack.c.bf16 %v2977_v44, %v2975_v42  ;;  %v2979_v49 = vld [vmem:[#allocation36 + $0x180] sm:$0xff] }
 0xdb2   :  { %v2692_v52 = vadd.f32 %v2691_v51, %v2609_v48  ;;  %v2980_v48 = vld [vmem:[#allocation36 + $0x188] sm:$0xff] }
 0xdb3   :  { %v2696_v53 = vmin.f32 %v2690_v50, 0.0  ;;  %vm2694_vm6 = vcmp.gt.f32.partialorder %v2690_v50, 0.0  ;;  %6099 = vmatpush1.bf16.msra.mxu0 %v6098_v47  ;;  %v3082_v51 = vld [vmem:[#allocation39 + $0x18] sm:$0xff]  ;;  %v6120_v47 = vpack.c.bf16 %v3102_v45, %v3100_v41  ;;  %v3128_v41 = vld [vmem:[#allocation39 + $0x188] sm:$0xff]  ;;  %v3127_v45 = vld [vmem:[#allocation39 + $0x180] sm:$0xff] }
 0xdb4   :  { %v2697_v54 = vmin.f32 %v2692_v52, 0.0  ;;  %vm2695_vm5 = vcmp.gt.f32.partialorder %v2692_v52, 0.0  ;;  %3044 = vmatprep.subr.mxu0 %v2980_v48  ;;  %v3099_v48 = vld [vmem:[#allocation39 + $0xa0] sm:$0xff] }
 0xdb5   :  { %v2698_v55 = vmul.f32 1.442695, %v2696_v53 }
 0xdb6   :  { %v2700_v56 = vmul.f32 1.442695, %v2697_v54  ;;  %v3081_v54 = vld [vmem:[#allocation39 + $0x10] sm:$0xff] }
 0xdb7   :  { %6920 = vpow2.f32 %v2698_v55  ;;  %3045 = vmatpush1.msra.mxu0 %v2979_v49  ;;  %v3084_v55 = vld [vmem:[#allocation39 + $0x28] sm:$0xff]  ;;  %v3101_v49 = vld [vmem:[#allocation39 + $0xb0] sm:$0xff] }
 0xdb8   :  { %6922 = vpow2.f32 %v2700_v56  ;;  %6148 = vmatprep.subr.bf16.mxu0 %v7932_v3  ;;  %v3086_v56 = vld [vmem:[#allocation39 + $0x38] sm:$0xff] }
 0xdb9   :  { %v6104_v58 = vpack.c.bf16 %v3086_v56, %v3084_v55  ;;  %v3105_v55 = vld [vmem:[#allocation39 + $0xd0] sm:$0xff] }
 0xdc1   :  { %v6921_v57 = vpop.eup %6920 }
 0xdc2   :  { %v6923_v60 = vpop.eup %6922  ;;  %v5335_v61 = vadd.f32 -1.0, %v6921_v57 }
 0xdc3   :  { %v5336_v63 = vadd.f32 -1.0, %v6923_v60  ;;  %v3085_v60 = vld [vmem:[#allocation39 + $0x30] sm:$0xff] }
 0xdc4   :  { %v2704_v0 = vsel %vm2694_vm6, %v2690_v50, %v5335_v61  ;;  %v3080_v50 = vld [vmem:[#allocation39 + $0x8] sm:$0xff] }
 0xdc5   :  { %v2705_v16 = vsel %vm2695_vm5, %v2692_v52, %v5336_v63  ;;  %v3079_v52 = vld [vmem:[#allocation39] sm:$0xff]  ;;  %v6100_v53 = vpack.c.bf16 %v3082_v51, %v3080_v50  ;;  %v3088_v61 = vld [vmem:[#allocation39 + $0x48] sm:$0xff]  ;;  %v3106_v51 = vld [vmem:[#allocation39 + $0xd8] sm:$0xff] }
 0xdc6   :  { %5338 = vmatprep.mubr.msk.f32.mxu1 %vm769_vm4, %v2705_v16  ;;  %v6102_v57 = vpack.c.bf16 %v3081_v54, %v3079_v52  ;;  %v5337_v63 = vld [vmem:[#allocation3] ss:$0 sm:$0xff]  ;;  %v6106_v16 = vpack.c.bf16 %v3085_v60, %v3083_v59  ;;  %v6122_v52 = vpack.c.bf16 %v3101_v49, %v3099_v48  ;;  %v3103_v54 = vld [vmem:[#allocation39 + $0xc0] sm:$0xff] }
 0xdc7   :  { %2806 = vmatmul.mubr.f32.vlgmr.msra.gmra.mrb[16].mxu1 %v2704_v0  ;;  %v3104_v50 = vld [vmem:[#allocation39 + $0xc8] sm:$0xff]  ;;  %v3229_v48 = vld [vmem:[%s9477_s12 + $0x10] sm:$0xff] }
 0xdc8   :  { %6051 = vmatpush1.bf16.msra.mxu1 %v6050_v4  ;;  %2912 = vmatprep.mubr.f32.mxu1 %v7931_v2  ;;  %v3090_v4 = vld [vmem:[#allocation39 + $0x58] sm:$0xff] }
 0xdc9   :  { %5340 = vmatprep.subr.msk.mxu1 %vm2616_vm3, %v2829_v1  ;;  %v2818_v1 = vpop.permute.xlu1 %2817  ;;  %v6108_v6 = vpack.c.bf16 %v3090_v4, %v3088_v61 }
 0xdcc   :  { %5341 = vmatpush1.msk.msra.mxu1 %vm2616_vm3, %v2828_v5  ;;  %v2830_v5 = vld [vmem:[#allocation34] sm:$0x3] }
 0xdcd   :  { %5342 = vmatmul.mubr.msk.f32.vlgmr.msra.gmra.mrb[18].mxu1 %vm2612_vm0, %v8834_v25  ;;  %6101 = vmatprep.subr.bf16.mxu1 %v6100_v53  ;;  %v2835_v15 = vrot.slane %v2830_v5, %v8521_v27  ;;  %v2839_v19 = vrot.slane %v2830_v5, %v8525_v29  ;;  %v6124_v53 = vpack.c.bf16 %v3106_v51, %v3104_v50  ;;  %v3110_v5 = vld [vmem:[#allocation39 + $0xf8] sm:$0xff]  ;;  %v3230_v50 = vld [vmem:[%s9477_s12 + $0x18] sm:$0xff] }
 0xdce   :  { %6103 = vmatpush1.bf16.msra.mxu1 %v6102_v57  ;;  %v6152_v51 = vpack.c.bf16 %v3230_v50, %v3229_v48  ;;  %v3355_v48 = vld [vmem:[#allocation43 + $0x70] sm:$0xff]  ;;  %v3360_v50 = vld [vmem:[#allocation43 + $0x98] sm:$0xff] }
 0xdcf   :  { %6105 = vmatprep.subr.bf16.mxu1 %v6104_v58  ;;  %v6126_v58 = vpack.c.bf16 %v3105_v55, %v3103_v54  ;;  %v3233_v55 = vld [vmem:[%s9477_s12 + $0x30] sm:$0xff] }
 0xdd2   :  { %6107 = vmatpush1.bf16.msra.mxu1 %v6106_v16 }
 0xdd3   :  { %6109 = vmatprep.subr.bf16.mxu1 %v6108_v6 }
 0xdd6   :  { %6111 = vmatpush1.bf16.msra.mxu1 %v6110_v17  ;;  %v3116_v17 = vld [vmem:[#allocation39 + $0x128] sm:$0xff] }
 0xdd7   :  { %6113 = vmatprep.subr.bf16.mxu1 %v6112_v21 }
 0xdda   :  { %6115 = vmatpush1.bf16.msra.mxu1 %v6114_v36  ;;  %v3126_v36 = vld [vmem:[#allocation39 + $0x178] sm:$0xff] }
 0xddb   :  { %6117 = vmatprep.subr.bf16.mxu1 %v6116_v38 }
 0xdde   :  { %6119 = vmatpush1.bf16.msra.mxu1 %v6118_v43 }
 0xddf   :  { %6121 = vmatprep.subr.bf16.mxu1 %v6120_v47  ;;  %v3228_v47 = vld [vmem:[%s9477_s12 + $0x8] sm:$0xff] }
 0xde2   :  { %6123 = vmatpush1.bf16.msra.mxu1 %v6122_v52  ;;  %v3231_v52 = vld [vmem:[%s9477_s12 + $0x20] sm:$0xff] }
 0xde3   :  { %6125 = vmatprep.subr.bf16.mxu1 %v6124_v53  ;;  %v3232_v53 = vld [vmem:[%s9477_s12 + $0x28] sm:$0xff] }
 0xde4   :  { %v6155_v54 = vpack.c.bf16 %v3232_v53, %v3231_v52  ;;  %v3357_v53 = vld [vmem:[#allocation43 + $0x80] sm:$0xff] }
 0xde6   :  { %6127 = vmatpush1.bf16.msra.mxu1 %v6126_v58  ;;  %v3235_v58 = vld [vmem:[%s9477_s12 + $0x40] sm:$0xff] }
 0xe9a   :  { %v2807_v0 = vpop.f32.mrb[16].mxu1 }
 0xe9b   :  { %v2808_v9 = vadd.f32 %v5337_v63, %v2807_v0  ;;  %v2809_v10 = vpop.f32.mrb[17].mxu1 }
 0xe9c   :  { %v3112_v10 = vld [vmem:[#allocation39 + $0x108] sm:$0xff] }
 0xe9d   :  { %v2811_v12 = vsub.f32 0.0, %v2808_v9  ;;  %v2820_v14 = vadd.f32 %v2818_v1, %v2808_v9  ;;  %v3108_v1 = vld [vmem:[#allocation39 + $0xe8] sm:$0xff]  ;;  %v6130_v9 = vpack.c.bf16 %v3109_v8, %v3107_v7  ;;  %v6132_v11 = vpack.c.bf16 %v3114_v35, %v3112_v10 }
 0xe9e   :  { %v6128_v6 = vpack.c.bf16 %v3110_v5, %v3108_v1  ;;  %v2981_v5 = vld [vmem:[#allocation37] sm:$0x3] }
 0xe9f   :  { %v2812_v24 = vmul.f32 1.442695, %v2811_v12  ;;  %vm2821_vm7 = vcmp.gt.f32.partialorder %v2820_v14, 0.0  ;;  %v3111_v12 = vld [vmem:[#allocation39 + $0x100] sm:$0xff]  ;;  %v3113_v14 = vld [vmem:[#allocation39 + $0x110] sm:$0xff]  ;;  %v2990_v7 = vrot.slane %v2981_v5, %v8525_v29 }
 0xea0   :  { %v8886_v30 = vsel %vm2821_vm7, 1.0, %v7931_v2  ;;  %v2914_v31 = vpop.f32.mrb[18].mxu1  ;;  %6129 = vmatprep.subr.bf16.mxu1 %v6128_v6  ;;  %v2986_v6 = vrot.slane %v2981_v5, %v8521_v27  ;;  %v3370_v5 = vld [vmem:[#allocation43 + $0xe8] sm:$0xff]  ;;  %vm5110_vm7 = vcmask 48128  }
 0xea1   :  { %6924 = vpow2.f32 %v2812_v24  ;;  %v5076_v32 = vsub.f32 1.0, %v8886_v30  ;;  %v2915_v33 = vadd.f32 %v2914_v31, %v2835_v15  ;;  %v2916_v34 = vpop.f32.mrb[19].mxu1  ;;  %6131 = vmatpush1.bf16.msra.mxu1 %v6130_v9  ;;  %v6134_v15 = vpack.c.bf16 %v3113_v14, %v3111_v12  ;;  %v3119_v31 = vld [vmem:[#allocation39 + $0x140] sm:$0xff] }
 0xea2   :  { %v2917_v37 = vadd.f32 %v2916_v34, %v2839_v19  ;;  %6133 = vmatprep.subr.bf16.mxu1 %v6132_v11  ;;  %v3118_v19 = vld [vmem:[#allocation39 + $0x138] sm:$0xff]  ;;  %v6138_v24 = vpack.c.bf16 %v3117_v13, %v3115_v23  ;;  %v3124_v34 = vld [vmem:[#allocation39 + $0x168] sm:$0xff] }
 0xea3   :  { %v2921_v26 = vmin.f32 %v2915_v33, 0.0  ;;  %5078 = vrot.lane.b32.xlu0 %v5076_v32, %s7934_s22  ;;  %vm2919_vm9 = vcmp.gt.f32.partialorder %v2915_v33, 0.0  ;;  %v6136_v21 = vpack.c.bf16 %v3118_v19, %v3116_v17  ;;  %v6140_v32 = vpack.c.bf16 %v3122_v18, %v3120_v28  ;;  %v3341_v19 = vld [vmem:[#allocation43] sm:$0xff]  ;;  %v3348_v28 = vld [vmem:[#allocation43 + $0x38] sm:$0xff] }
 0xea4   :  { %v2922_v46 = vmin.f32 %v2917_v37, 0.0  ;;  %vm2920_vm8 = vcmp.gt.f32.partialorder %v2917_v37, 0.0  ;;  %v6144_v38 = vpack.c.bf16 %v3126_v36, %v3124_v34  ;;  %v3345_v34 = vld [vmem:[#allocation43 + $0x20] sm:$0xff]  ;;  %v3347_v36 = vld [vmem:[#allocation43 + $0x30] sm:$0xff] }
 0xea5   :  { %v2923_v42 = vmul.f32 1.442695, %v2921_v26  ;;  %6135 = vmatpush1.bf16.msra.mxu1 %v6134_v15  ;;  %v6146_v26 = vpack.c.bf16 %v3125_v40, %v3123_v39  ;;  %v3352_v39 = vld [vmem:[#allocation43 + $0x58] sm:$0xff]  ;;  %v6190_v40 = vpack.c.bf16 %v3347_v36, %v3345_v34  ;;  %v3381_v34 = vld [vmem:[#allocation43 + $0x140] sm:$0xff]  ;;  %v3383_v36 = vld [vmem:[#allocation43 + $0x150] sm:$0xff] }
 0xea6   :  { %v2925_v44 = vmul.f32 1.442695, %v2922_v46  ;;  %6137 = vmatprep.subr.bf16.mxu1 %v6136_v21  ;;  %v3342_v46 = vld [vmem:[#allocation43 + $0x8] sm:$0xff]  ;;  %v3343_v21 = vld [vmem:[#allocation43 + $0x10] sm:$0xff] }
 0xea7   :  { %6926 = vpow2.f32 %v2923_v42  ;;  %v3344_v42 = vld [vmem:[#allocation43 + $0x18] sm:$0xff] }
 0xea8   :  { %6928 = vpow2.f32 %v2925_v44  ;;  %v6184_v43 = vpack.c.bf16 %v3344_v42, %v3342_v46  ;;  %v3227_v44 = vld [vmem:[%s9477_s12] sm:$0xff]  ;;  %v3354_v46 = vld [vmem:[#allocation43 + $0x68] sm:$0xff] }
 0xea9   :  { %6139 = vmatpush1.bf16.msra.mxu1 %v6138_v24  ;;  %v6149_v49 = vpack.c.bf16 %v3228_v47, %v3227_v44  ;;  %v3346_v24 = vld [vmem:[#allocation43 + $0x28] sm:$0xff]  ;;  %v3356_v42 = vld [vmem:[#allocation43 + $0x78] sm:$0xff]  ;;  %v3353_v47 = vld [vmem:[#allocation43 + $0x60] sm:$0xff] }
 0xeaa   :  { %6141 = vmatprep.subr.bf16.mxu1 %v6140_v32  ;;  %v6196_v44 = vpack.c.bf16 %v3356_v42, %v3354_v46  ;;  %v3390_v42 = vld [vmem:[#allocation43 + $0x188] sm:$0xff] }
 0xeab   :  { %v6925_v56 = vpop.eup %6924 }
 0xeac   :  { %v2814_v57 = vadd.f32 1.0, %v6925_v56  ;;  %v3234_v56 = vld [vmem:[%s9477_s12 + $0x38] sm:$0xff] }
 0xeae   :  { %6930 = vrcp.f32 %v2814_v57  ;;  %v6158_v57 = vpack.c.bf16 %v3234_v56, %v3233_v55  ;;  %v3362_v55 = vld [vmem:[#allocation43 + $0xa8] sm:$0xff]  ;;  %v3364_v56 = vld [vmem:[#allocation43 + $0xb8] sm:$0xff] }
 0xeb1   :  { %v6927_v59 = vpop.eup %6926 }
 0xeb2   :  { %v6929_v60 = vpop.eup %6928  ;;  %v5343_v61 = vadd.f32 -1.0, %v6927_v59  ;;  %v3236_v59 = vld [vmem:[%s9477_s12 + $0x48] sm:$0xff] }
 0xeb3   :  { %v5344_v63 = vadd.f32 -1.0, %v6929_v60  ;;  %v6161_v60 = vpack.c.bf16 %v3236_v59, %v3235_v58  ;;  %v6204_v58 = vpack.c.bf16 %v3364_v56, %v3362_v55  ;;  %v3361_v59 = vld [vmem:[#allocation43 + $0xa0] sm:$0xff]  ;;  %v3599_v55 = vld [vmem:[%s9478_s4 + $0x10] sm:$0xff] }
 0xeb4   :  { %v2929_v16 = vsel %vm2919_vm9, %v2915_v33, %v5343_v61  ;;  %v3121_v33 = vld [vmem:[#allocation39 + $0x150] sm:$0xff]  ;;  %v3237_v61 = vld [vmem:[%s9477_s12 + $0x50] sm:$0xff] }
 0xeb5   :  { %v2930_v4 = vsel %vm2920_vm8, %v2917_v37, %v5344_v63  ;;  %v6142_v37 = vpack.c.bf16 %v3121_v33, %v3119_v31  ;;  %v3238_v63 = vld [vmem:[%s9477_s12 + $0x58] sm:$0xff]  ;;  %v6186_v31 = vpack.c.bf16 %v3343_v21, %v3341_v19  ;;  %v6188_v33 = vpack.c.bf16 %v3348_v28, %v3346_v24  ;;  %v3378_v19 = vld [vmem:[#allocation43 + $0x128] sm:$0xff]  ;;  %v3380_v21 = vld [vmem:[#allocation43 + $0x138] sm:$0xff] }
 0xeb6   :  { %5345 = vmatprep.mubr.msk.f32.mxu0 %vm769_vm4, %v2930_v4  ;;  %v6164_v4 = vpack.c.bf16 %v3238_v63, %v3237_v61  ;;  %v3366_v61 = vld [vmem:[#allocation43 + $0xc8] sm:$0xff]  ;;  %v3368_v63 = vld [vmem:[#allocation43 + $0xd8] sm:$0xff]  ;;  %v3377_v24 = vld [vmem:[#allocation43 + $0x120] sm:$0xff]  ;;  %vm5117_vm8 = vcmask 154624  }
 0xeb7   :  { %3061 = vmatmul.mubr.f32.vlgmr.msra.gmra.mrb[16].mxu0 %v2929_v16  ;;  %6143 = vmatpush1.bf16.msra.mxu1 %v6142_v37  ;;  %v3239_v16 = vld [vmem:[%s9477_s12 + $0x60] sm:$0xff]  ;;  %v3379_v28 = vld [vmem:[#allocation43 + $0x130] sm:$0xff]  ;;  %v3603_v56 = vld [vmem:[%s9478_s4 + $0x30] sm:$0xff] }
 0xeb8   :  { %v6931_v0 = vpop.eup %6930  ;;  %6145 = vmatprep.subr.bf16.mxu1 %v6144_v38  ;;  %6150 = vmatpush1.bf16.msra.mxu0 %v6149_v49  ;;  %v3350_v38 = vld [vmem:[#allocation43 + $0x48] sm:$0xff] }
 0xeb9   :  { %5109 = vst.msk [vmem:[%s9476_s1] sm:$0xff] %vm5100_vm11, %v6931_v0  ;;  %6151 = vmatprep.subr.bf16.mxu0 %v7932_v3  ;;  %v3240_v0 = vld [vmem:[%s9477_s12 + $0x68] sm:$0xff]  ;;  %v3358_v49 = vld [vmem:[#allocation43 + $0x88] sm:$0xff] }
 0xeba   :  { %v6167_v1 = vpack.c.bf16 %v3240_v0, %v3239_v16  ;;  %v6200_v52 = vpack.c.bf16 %v3360_v50, %v3358_v49  ;;  %v6208_v16 = vpack.c.bf16 %v3368_v63, %v3366_v61  ;;  %v3365_v0 = vld [vmem:[#allocation43 + $0xc0] sm:$0xff]  ;;  %v3241_v61 = vld [vmem:[%s9477_s12 + $0x70] sm:$0xff]  ;;  %v3242_v63 = vld [vmem:[%s9477_s12 + $0x78] sm:$0xff] }
 0xebb   :  { %6147 = vmatpush1.bf16.msra.mxu1 %v6146_v26  ;;  %v6192_v26 = vpack.c.bf16 %v3352_v39, %v3350_v38  ;;  %v3386_v38 = vld [vmem:[#allocation43 + $0x168] sm:$0xff]  ;;  %v3388_v39 = vld [vmem:[#allocation43 + $0x178] sm:$0xff]  ;;  %v3389_v49 = vld [vmem:[#allocation43 + $0x180] sm:$0xff] }
 0xebc   :  { %3192 = vmatprep.subr.mxu1 %v3128_v41  ;;  %6153 = vmatpush1.bf16.msra.mxu0 %v6152_v51  ;;  %v3349_v41 = vld [vmem:[#allocation43 + $0x40] sm:$0xff]  ;;  %v6198_v51 = vpack.c.bf16 %v3355_v48, %v3353_v47  ;;  %v3597_v47 = vld [vmem:[%s9478_s4] sm:$0xff] }
 0xebd   :  { %6154 = vmatprep.subr.bf16.mxu0 %v7932_v3  ;;  %v3601_v48 = vld [vmem:[%s9478_s4 + $0x20] sm:$0xff] }
 0xebf   :  { %3193 = vmatpush1.msra.mxu1 %v3127_v45  ;;  %v3351_v45 = vld [vmem:[#allocation43 + $0x50] sm:$0xff] }
 0xec0   :  { %6185 = vmatprep.subr.bf16.mxu1 %v6184_v43  ;;  %6156 = vmatpush1.bf16.msra.mxu0 %v6155_v54  ;;  %v6194_v43 = vpack.c.bf16 %v3351_v45, %v3349_v41  ;;  %v3359_v54 = vld [vmem:[#allocation43 + $0x90] sm:$0xff]  ;;  %v3385_v41 = vld [vmem:[#allocation43 + $0x160] sm:$0xff] }
 0xec1   :  { %6157 = vmatprep.subr.bf16.mxu0 %v7932_v3  ;;  %v3387_v45 = vld [vmem:[#allocation43 + $0x170] sm:$0xff] }
 0xec2   :  { %v6230_v46 = vpack.c.bf16 %v3387_v45, %v3385_v41  ;;  %v3838_v41 = vld [vmem:[%s9479_s17 + $0xe8] sm:$0xff] }
 0xec4   :  { %6159 = vmatpush1.bf16.msra.mxu0 %v6158_v57  ;;  %v6202_v57 = vpack.c.bf16 %v3359_v54, %v3357_v53  ;;  %v3600_v53 = vld [vmem:[%s9478_s4 + $0x18] sm:$0xff] }
 0xec5   :  { %6160 = vmatprep.subr.bf16.mxu0 %v7932_v3  ;;  %v3604_v54 = vld [vmem:[%s9478_s4 + $0x38] sm:$0xff] }
 0xec8   :  { %6162 = vmatpush1.bf16.msra.mxu0 %v6161_v60  ;;  %v3363_v60 = vld [vmem:[#allocation43 + $0xb0] sm:$0xff] }
 0xec9   :  { %6163 = vmatprep.subr.bf16.mxu0 %v7932_v3 }
 0xecc   :  { %6165 = vmatpush1.bf16.msra.mxu0 %v6164_v4  ;;  %v6206_v4 = vpack.c.bf16 %v3363_v60, %v3361_v59  ;;  %v6274_v59 = vpack.c.bf16 %v3603_v56, %v3599_v55  ;;  %v3608_v60 = vld [vmem:[%s9478_s4 + $0x58] sm:$0xf]  ;;  %v3849_v55 = vld [vmem:[%s9479_s17 + $0x140] sm:$0xff] }
 0xecd   :  { %6166 = vmatprep.subr.bf16.mxu0 %v7932_v3  ;;  %v3853_v56 = vld [vmem:[%s9479_s17 + $0x160] sm:$0xff] }
 0xed0   :  { %6168 = vmatpush1.bf16.msra.mxu0 %v6167_v1  ;;  %v3367_v1 = vld [vmem:[#allocation43 + $0xd0] sm:$0xff] }
 0xed1   :  { %6169 = vmatprep.subr.bf16.mxu0 %v7932_v3 }
 0xf8a   :  { %v3062_v8 = vpop.f32.mrb[16].mxu0 }
 0xf8b   :  { %v3063_v9 = vadd.f32 %v3062_v8, %v2986_v6  ;;  %v3064_v10 = vpop.f32.mrb[17].mxu0  ;;  %v3372_v6 = vld [vmem:[#allocation43 + $0xf8] sm:$0xff] }
 0xf8c   :  { %v3065_v35 = vadd.f32 %v3064_v10, %v2990_v7  ;;  %v6210_v7 = vpack.c.bf16 %v3367_v1, %v3365_v0  ;;  %v6212_v8 = vpack.c.bf16 %v3372_v6, %v3370_v5  ;;  %v3371_v10 = vld [vmem:[#allocation43 + $0xf0] sm:$0xff]  ;;  %v3244_v0 = vld [vmem:[%s9477_s12 + $0x88] sm:$0xff] }
 0xf8d   :  { %v3069_v11 = vmin.f32 %v3063_v9, 0.0  ;;  %vm3067_vm12 = vcmp.gt.f32.partialorder %v3063_v9, 0.0  ;;  %v3246_v5 = vld [vmem:[%s9477_s12 + $0x98] sm:$0xff] }
 0xf8e   :  { %v3070_v12 = vmin.f32 %v3065_v35, 0.0  ;;  %vm3068_vm10 = vcmp.gt.f32.partialorder %v3065_v35, 0.0 }
 0xf8f   :  { %v3071_v14 = vmul.f32 1.442695, %v3069_v11  ;;  %v3376_v11 = vld [vmem:[#allocation43 + $0x118] sm:$0xff] }
 0xf90   :  { %v3073_v15 = vmul.f32 1.442695, %v3070_v12 }
 0xf91   :  { %6932 = vpow2.f32 %v3071_v14 }
 0xf92   :  { %6934 = vpow2.f32 %v3073_v15  ;;  %v3373_v15 = vld [vmem:[#allocation43 + $0x100] sm:$0xff] }
 0xf9b   :  { %v6933_v17 = vpop.eup %6932 }
 0xf9c   :  { %v6935_v23 = vpop.eup %6934  ;;  %v5346_v13 = vadd.f32 -1.0, %v6933_v17  ;;  %v3375_v17 = vld [vmem:[#allocation43 + $0x110] sm:$0xff] }
 0xf9d   :  { %v5347_v18 = vadd.f32 -1.0, %v6935_v23  ;;  %v6218_v23 = vpack.c.bf16 %v3375_v17, %v3373_v15  ;;  %v3249_v17 = vld [vmem:[%s9477_s12 + $0xb0] sm:$0xff] }
 0xf9e   :  { %v8917_v37 = vsel %vm3067_vm12, %v3063_v9, %v5346_v13  ;;  %v3369_v9 = vld [vmem:[#allocation43 + $0xe0] sm:$0xff]  ;;  %v6220_v13 = vpack.c.bf16 %v3380_v21, %v3378_v19  ;;  %v3250_v19 = vld [vmem:[%s9477_s12 + $0xb8] sm:$0xff] }
 0xf9f   :  { %v3078_v32 = vsel %vm3068_vm10, %v3065_v35, %v5347_v18  ;;  %v3374_v35 = vld [vmem:[#allocation43 + $0x108] sm:$0xff]  ;;  %v6214_v12 = vpack.c.bf16 %v3371_v10, %v3369_v9  ;;  %v3810_v9 = vld [vmem:[%s9479_s17 + $0x8] sm:$0xff] }
 0xfa0   :  { %5348 = vmatprep.mubr.msk.f32.mxu1 %vm769_vm4, %v3078_v32  ;;  %v6216_v14 = vpack.c.bf16 %v3376_v11, %v3374_v35  ;;  %v3382_v18 = vld [vmem:[#allocation43 + $0x148] sm:$0xff]  ;;  %v3814_v10 = vld [vmem:[%s9479_s17 + $0x28] sm:$0xff]  ;;  %v3809_v35 = vld [vmem:[%s9479_s17] sm:$0xff] }
 0xfa1   :  { %3209 = vmatmul.mubr.f32.vlgmr.msra.gmra.mrb[20].mxu1 %v8917_v37  ;;  %v3813_v11 = vld [vmem:[%s9479_s17 + $0x20] sm:$0xff]  ;;  %v3818_v21 = vld [vmem:[%s9479_s17 + $0x48] sm:$0xff] }
 0xfa2   :  { %6187 = vmatpush1.bf16.msra.mxu1 %v6186_v31  ;;  %5353 = vmatprep.mubr.msk.f32.mxu1 %vm769_vm4, %v3078_v32  ;;  %v3384_v31 = vld [vmem:[#allocation43 + $0x158] sm:$0xff]  ;;  %v6222_v32 = vpack.c.bf16 %v3379_v28, %v3377_v24  ;;  %v6278_v15 = vpack.c.bf16 %v3813_v11, %v3809_v35  ;;  %v3882_v11 = vld [vmem:[%s9479_s17 + $0x248] sm:$0xff] }
 0xfa3   :  { %6189 = vmatprep.subr.bf16.mxu1 %v6188_v33  ;;  %v6224_v33 = vpack.c.bf16 %v3384_v31, %v3382_v18  ;;  %v3821_v24 = vld [vmem:[%s9479_s17 + $0x60] sm:$0xff]  ;;  %v3826_v18 = vld [vmem:[%s9479_s17 + $0x88] sm:$0xff] }
 0xfa4   :  { %v3830_v31 = vld [vmem:[%s9479_s17 + $0xa8] sm:$0xff] }
 0xfa6   :  { %6191 = vmatpush1.bf16.msra.mxu1 %v6190_v40  ;;  %v6226_v40 = vpack.c.bf16 %v3383_v36, %v3381_v34  ;;  %v6284_v34 = vpack.c.bf16 %v3830_v31, %v3826_v18  ;;  %v3251_v36 = vld [vmem:[%s9477_s12 + $0xc0] sm:$0xff]  ;;  %v3898_v31 = vld [vmem:[%s9479_s17 + $0x2c8] sm:$0xff] }
 0xfa7   :  { %6193 = vmatprep.subr.bf16.mxu1 %v6192_v26  ;;  %v6228_v26 = vpack.c.bf16 %v3388_v39, %v3386_v38  ;;  %v3825_v38 = vld [vmem:[%s9479_s17 + $0x80] sm:$0xff] }
 0xfa8   :  { %v3829_v39 = vld [vmem:[%s9479_s17 + $0xa0] sm:$0xff] }
 0xfaa   :  { %6195 = vmatpush1.bf16.msra.mxu1 %v6194_v43  ;;  %v3598_v43 = vld [vmem:[%s9478_s4 + $0x8] sm:$0xff] }
 0xfab   :  { %6197 = vmatprep.subr.bf16.mxu1 %v6196_v44  ;;  %v3602_v44 = vld [vmem:[%s9478_s4 + $0x28] sm:$0xff] }
 0xfac   :  { %v6268_v50 = vpack.c.bf16 %v3602_v44, %v3598_v43  ;;  %v3842_v44 = vld [vmem:[%s9479_s17 + $0x108] sm:$0xff] }
 0xfae   :  { %6199 = vmatpush1.bf16.msra.mxu1 %v6198_v51  ;;  %v6270_v51 = vpack.c.bf16 %v3601_v48, %v3597_v47  ;;  %v3846_v47 = vld [vmem:[%s9479_s17 + $0x128] sm:$0xff] }
 0xfaf   :  { %6201 = vmatprep.subr.bf16.mxu1 %v6200_v52  ;;  %v3606_v52 = vld [vmem:[%s9478_s4 + $0x48] sm:$0xf]  ;;  %v6292_v48 = vpack.c.bf16 %v3846_v47, %v3842_v44  ;;  %v3913_v47 = vld [vmem:[%s9479_s17 + $0x340] sm:$0xff] }
 0xfb2   :  { %6203 = vmatpush1.bf16.msra.mxu1 %v6202_v57  ;;  %v3605_v57 = vld [vmem:[%s9478_s4 + $0x40] sm:$0xf] }
 0xfb3   :  { %6205 = vmatprep.subr.bf16.mxu1 %v6204_v58  ;;  %v6272_v58 = vpack.c.bf16 %v3604_v54, %v3600_v53  ;;  %v3854_v53 = vld [vmem:[%s9479_s17 + $0x168] sm:$0xff] }
 0xfb6   :  { %6207 = vmatpush1.bf16.msra.mxu1 %v6206_v4  ;;  %v6170_v4 = vpack.c.bf16 %v3242_v63, %v3241_v61  ;;  %v3861_v61 = vld [vmem:[%s9479_s17 + $0x1a0] sm:$0xff] }
 0xfb7   :  { %6209 = vmatprep.subr.bf16.mxu1 %v6208_v16  ;;  %v3243_v16 = vld [vmem:[%s9477_s12 + $0x80] sm:$0xff] }
 0xfb8   :  { %6171 = vmatpush1.bf16.msra.mxu0 %v6170_v4  ;;  %v6173_v1 = vpack.c.bf16 %v3244_v0, %v3243_v16  ;;  %v3866_v4 = vld [vmem:[%s9479_s17 + $0x1c8] sm:$0xff] }
 0xfb9   :  { %6172 = vmatprep.subr.bf16.mxu0 %v7932_v3  ;;  %v3870_v16 = vld [vmem:[%s9479_s17 + $0x1e8] sm:$0xff] }
 0xfba   :  { %6211 = vmatpush1.bf16.msra.mxu1 %v6210_v7  ;;  %v3247_v7 = vld [vmem:[%s9477_s12 + $0xa0] sm:$0xff]  ;;  %v6304_v0 = vpack.c.bf16 %v3870_v16, %v3866_v4 }
 0xfbb   :  { %6213 = vmatprep.subr.bf16.mxu1 %v6212_v8  ;;  %v3248_v8 = vld [vmem:[%s9477_s12 + $0xa8] sm:$0xff]  ;;  %v3129_v16 = vld [vmem:[#allocation40] sm:$0x3] }
 0xfbc   :  { %6174 = vmatpush1.bf16.msra.mxu0 %v6173_v1  ;;  %v3865_v1 = vld [vmem:[%s9479_s17 + $0x1c0] sm:$0xff] }
 0xfbd   :  { %6175 = vmatprep.subr.bf16.mxu0 %v7932_v3 }
 0xfbe   :  { %6215 = vmatpush1.bf16.msra.mxu1 %v6214_v12  ;;  %v6179_v12 = vpack.c.bf16 %v3248_v8, %v3247_v7  ;;  %v3878_v7 = vld [vmem:[%s9479_s17 + $0x228] sm:$0xff] }
 0xfbf   :  { %6217 = vmatprep.subr.bf16.mxu1 %v6216_v14  ;;  %v6276_v14 = vpack.c.bf16 %v3814_v10, %v3810_v9  ;;  %v3873_v9 = vld [vmem:[%s9479_s17 + $0x200] sm:$0xff] }
 0xfc0   :  { %v3877_v10 = vld [vmem:[%s9479_s17 + $0x220] sm:$0xff] }
 0xfc1   :  { %v6310_v35 = vpack.c.bf16 %v3877_v10, %v3873_v9 }
 0xfc2   :  { %6219 = vmatpush1.bf16.msra.mxu1 %v6218_v23  ;;  %v3822_v23 = vld [vmem:[%s9479_s17 + $0x68] sm:$0xff] }
 0xfc3   :  { %6221 = vmatprep.subr.bf16.mxu1 %v6220_v13  ;;  %v3817_v13 = vld [vmem:[%s9479_s17 + $0x40] sm:$0xff]  ;;  %v6280_v28 = vpack.c.bf16 %v3822_v23, %v3818_v21  ;;  %v3890_v21 = vld [vmem:[%s9479_s17 + $0x288] sm:$0xff] }
 0xfc4   :  { %v3894_v23 = vld [vmem:[%s9479_s17 + $0x2a8] sm:$0xff] }
 0xfc6   :  { %6223 = vmatpush1.bf16.msra.mxu1 %v6222_v32  ;;  %v6282_v32 = vpack.c.bf16 %v3821_v24, %v3817_v13  ;;  %v6316_v13 = vpack.c.bf16 %v3894_v23, %v3890_v21  ;;  %v3889_v24 = vld [vmem:[%s9479_s17 + $0x280] sm:$0xff] }
 0xfc7   :  { %6225 = vmatprep.subr.bf16.mxu1 %v6224_v33  ;;  %v6182_v33 = vpack.c.bf16 %v3250_v19, %v3249_v17  ;;  %v3885_v17 = vld [vmem:[%s9479_s17 + $0x260] sm:$0xff] }
 0xfca   :  { %6227 = vmatpush1.bf16.msra.mxu1 %v6226_v40  ;;  %v6286_v40 = vpack.c.bf16 %v3829_v39, %v3825_v38  ;;  %v3906_v39 = vld [vmem:[%s9479_s17 + $0x308] sm:$0xff] }
 0xfcb   :  { %6229 = vmatprep.subr.bf16.mxu1 %v6228_v26  ;;  %v3834_v26 = vld [vmem:[%s9479_s17 + $0xc8] sm:$0xff] }
 0xfcc   :  { %v6288_v45 = vpack.c.bf16 %v3838_v41, %v3834_v26  ;;  %v3905_v41 = vld [vmem:[%s9479_s17 + $0x300] sm:$0xff] }
 0xfce   :  { %6231 = vmatpush1.bf16.msra.mxu1 %v6230_v46  ;;  %v3833_v46 = vld [vmem:[%s9479_s17 + $0xc0] sm:$0xff] }
 0xfcf   :  { %3451 = vmatprep.subr.mxu1 %v3390_v42  ;;  %v3837_v42 = vld [vmem:[%s9479_s17 + $0xe0] sm:$0xff] }
 0xfd0   :  { %v6290_v43 = vpack.c.bf16 %v3837_v42, %v3833_v46  ;;  %v3914_v42 = vld [vmem:[%s9479_s17 + $0x348] sm:$0xff] }
 0xfd2   :  { %3452 = vmatpush1.msra.mxu1 %v3389_v49  ;;  %v3841_v49 = vld [vmem:[%s9479_s17 + $0x100] sm:$0xff] }
 0xfd3   :  { %3468 = vmatmul.mubr.f32.vlgmr.msra.gmra.mrb[22].mxu1 %v8917_v37  ;;  %6269 = vmatprep.subr.bf16.mxu1 %v6268_v50  ;;  %v3607_v37 = vld [vmem:[%s9478_s4 + $0x50] sm:$0xf]  ;;  %v3845_v50 = vld [vmem:[%s9479_s17 + $0x120] sm:$0xff] }
 0xfd4   :  { %6271 = vmatpush1.bf16.msra.mxu1 %v6270_v51  ;;  %3707 = vmatprep.mubr.f32.mxu1 %v7931_v2  ;;  %v6294_v51 = vpack.c.bf16 %v3845_v50, %v3841_v49  ;;  %v3922_v50 = vld [vmem:[%s9479_s17 + $0x388] sm:$0xff] }
 0xfd5   :  { %5358 = vmatprep.subr.msk.mxu1 %vm2616_vm3, %v3606_v52  ;;  %v3850_v52 = vld [vmem:[%s9479_s17 + $0x148] sm:$0xff] }
 0xfd6   :  { %v6296_v54 = vpack.c.bf16 %v3854_v53, %v3850_v52  ;;  %v3921_v53 = vld [vmem:[%s9479_s17 + $0x380] sm:$0xff] }
 0xfd8   :  { %5359 = vmatpush1.msk.msra.mxu1 %vm2616_vm3, %v3605_v57  ;;  %v6298_v57 = vpack.c.bf16 %v3853_v56, %v3849_v55  ;;  %v3930_v56 = vld [vmem:[%s9479_s17 + $0x3c8] sm:$0xff] }
 0xfd9   :  { %5360 = vmatmul.mubr.msk.f32.vlgmr.msra.gmra.mrb[24].mxu1 %vm2612_vm0, %v8834_v25  ;;  %6273 = vmatprep.subr.bf16.mxu1 %v6272_v58  ;;  %v3858_v58 = vld [vmem:[%s9479_s17 + $0x188] sm:$0xff] }
 0xfda   :  { %6275 = vmatpush1.bf16.msra.mxu1 %v6274_v59  ;;  %3778 = vmatprep.mubr.f32.mxu1 %v7931_v2  ;;  %v3862_v59 = vld [vmem:[%s9479_s17 + $0x1a8] sm:$0xff] }
 0xfdb   :  { %5361 = vmatprep.subr.msk.mxu1 %vm2616_vm3, %v3608_v60  ;;  %v6300_v60 = vpack.c.bf16 %v3862_v59, %v3858_v58  ;;  %v3929_v59 = vld [vmem:[%s9479_s17 + $0x3c0] sm:$0xff] }
 0xfde   :  { %5362 = vmatpush1.msk.msra.mxu1 %vm2616_vm3, %v3607_v37  ;;  %v3857_v37 = vld [vmem:[%s9479_s17 + $0x180] sm:$0xff] }
 0xfdf   :  { %5363 = vmatmul.mubr.msk.f32.vlgmr.msra.gmra.mrb[26].mxu1 %vm2612_vm0, %v8834_v25  ;;  %v3245_v25 = vld [vmem:[%s9477_s12 + $0x90] sm:$0xff]  ;;  %6277 = vmatprep.subr.bf16.mxu1 %v6276_v14  ;;  %v6302_v63 = vpack.c.bf16 %v3861_v61, %v3857_v37  ;;  %v3938_v61 = vld [vmem:[%s9479_s17 + $0x408] sm:$0xff] }
 0xfe0   :  { %v6176_v6 = vpack.c.bf16 %v3246_v5, %v3245_v25  ;;  %6279 = vmatpush1.bf16.msra.mxu1 %v6278_v15  ;;  %v3869_v25 = vld [vmem:[%s9479_s17 + $0x1e0] sm:$0xff] }
 0xfe1   :  { %6281 = vmatprep.subr.bf16.mxu1 %v6280_v28  ;;  %v6306_v5 = vpack.c.bf16 %v3869_v25, %v3865_v1  ;;  %v3881_v15 = vld [vmem:[%s9479_s17 + $0x240] sm:$0xff]  ;;  %v3138_v1 = vrot.slane %v3129_v16, %v8525_v29 }
 0xfe2   :  { %6177 = vmatpush1.bf16.msra.mxu0 %v6176_v6  ;;  %v3874_v6 = vld [vmem:[%s9479_s17 + $0x208] sm:$0xff]  ;;  %v6314_v19 = vpack.c.bf16 %v3885_v17, %v3881_v15  ;;  %v3893_v28 = vld [vmem:[%s9479_s17 + $0x2a0] sm:$0xff] }
 0xfe3   :  { %6178 = vmatprep.subr.bf16.mxu0 %v7932_v3  ;;  %v6308_v8 = vpack.c.bf16 %v3878_v7, %v3874_v6  ;;  %v6318_v18 = vpack.c.bf16 %v3893_v28, %v3889_v24  ;;  %v3489_v24 = vld [vmem:[%s9480_s13 + $0x18] sm:$0xff] }
 0xfe4   :  { %6283 = vmatpush1.bf16.msra.mxu1 %v6282_v32  ;;  %v3902_v32 = vld [vmem:[%s9479_s17 + $0x2e8] sm:$0xff] }
 0xfe5   :  { %6285 = vmatprep.subr.bf16.mxu1 %v6284_v34  ;;  %v3897_v34 = vld [vmem:[%s9479_s17 + $0x2c0] sm:$0xff] }
 0xfe6   :  { %6180 = vmatpush1.bf16.msra.mxu0 %v6179_v12  ;;  %v3886_v12 = vld [vmem:[%s9479_s17 + $0x268] sm:$0xff] }
 0xfe7   :  { %6181 = vmatprep.subr.bf16.mxu0 %v7932_v3  ;;  %v6312_v14 = vpack.c.bf16 %v3886_v12, %v3882_v11  ;;  %v3486_v12 = vld [vmem:[%s9480_s13] sm:$0xff] }
 0xfe8   :  { %6287 = vmatpush1.bf16.msra.mxu1 %v6286_v40  ;;  %v3910_v40 = vld [vmem:[%s9479_s17 + $0x328] sm:$0xff] }
 0xfe9   :  { %6289 = vmatprep.subr.bf16.mxu1 %v6288_v45  ;;  %v6324_v26 = vpack.c.bf16 %v3910_v40, %v3906_v39  ;;  %v3909_v45 = vld [vmem:[%s9479_s17 + $0x320] sm:$0xff]  ;;  %v3495_v40 = vld [vmem:[%s9480_s13 + $0x48] sm:$0xff] }
 0xfea   :  { %6183 = vmatpush1.bf16.msra.mxu0 %v6182_v33  ;;  %v6320_v33 = vpack.c.bf16 %v3902_v32, %v3898_v31  ;;  %v6326_v46 = vpack.c.bf16 %v3909_v45, %v3905_v41  ;;  %v3490_v31 = vld [vmem:[%s9480_s13 + $0x20] sm:$0xff]  ;;  %v3491_v32 = vld [vmem:[%s9480_s13 + $0x28] sm:$0xff]  ;;  %v3496_v41 = vld [vmem:[%s9480_s13 + $0x50] sm:$0xff] }
 0xfeb   :  { %3310 = vmatprep.subr.mxu0 %v7931_v2  ;;  %v3494_v39 = vld [vmem:[%s9480_s13 + $0x40] sm:$0xff]  ;;  %v3497_v45 = vld [vmem:[%s9480_s13 + $0x58] sm:$0xff] }
 0xfec   :  { %6291 = vmatpush1.bf16.msra.mxu1 %v6290_v43  ;;  %v3918_v43 = vld [vmem:[%s9479_s17 + $0x368] sm:$0xff] }
 0xfed   :  { %6293 = vmatprep.subr.bf16.mxu1 %v6292_v48  ;;  %v6328_v44 = vpack.c.bf16 %v3918_v43, %v3914_v42  ;;  %v3917_v48 = vld [vmem:[%s9479_s17 + $0x360] sm:$0xff]  ;;  %v3499_v43 = vld [vmem:[%s9480_s13 + $0x68] sm:$0xff] }
 0xfee   :  { %3311 = vmatpush1.msra.mxu0 %v3251_v36  ;;  %v3901_v36 = vld [vmem:[%s9479_s17 + $0x2e0] sm:$0xff]  ;;  %v6330_v49 = vpack.c.bf16 %v3917_v48, %v3913_v47  ;;  %v3391_v47 = vld [vmem:[#allocation45] sm:$0x3]  ;;  %v3500_v48 = vld [vmem:[%s9480_s13 + $0x70] sm:$0xff] }
 0xfef   :  { %6232 = vmatprep.subr.bf16.mxu0 %v7932_v3  ;;  %v6322_v38 = vpack.c.bf16 %v3901_v36, %v3897_v34  ;;  %v3492_v34 = vld [vmem:[%s9480_s13 + $0x30] sm:$0xff]  ;;  %v3493_v36 = vld [vmem:[%s9480_s13 + $0x38] sm:$0xff]  ;;  %v3498_v42 = vld [vmem:[%s9480_s13 + $0x60] sm:$0xff] }
 0xff0   :  { %6295 = vmatpush1.bf16.msra.mxu1 %v6294_v51  ;;  %v3926_v51 = vld [vmem:[%s9479_s17 + $0x3a8] sm:$0xff] }
 0xff1   :  { %6297 = vmatprep.subr.bf16.mxu1 %v6296_v54  ;;  %v6332_v52 = vpack.c.bf16 %v3926_v51, %v3922_v50  ;;  %v3925_v54 = vld [vmem:[%s9479_s17 + $0x3a0] sm:$0xff]  ;;  %v3396_v50 = vrot.slane %v3391_v47, %v8521_v27  ;;  %v3400_v51 = vrot.slane %v3391_v47, %v8525_v29 }
 0xff2   :  { %v6334_v55 = vpack.c.bf16 %v3925_v54, %v3921_v53  ;;  %v3502_v53 = vld [vmem:[%s9480_s13 + $0x80] sm:$0xff]  ;;  %v3503_v54 = vld [vmem:[%s9480_s13 + $0x88] sm:$0xff] }
 0xff4   :  { %6299 = vmatpush1.bf16.msra.mxu1 %v6298_v57  ;;  %v3934_v57 = vld [vmem:[%s9479_s17 + $0x3e8] sm:$0xff] }
 0xff5   :  { %6301 = vmatprep.subr.bf16.mxu1 %v6300_v60  ;;  %v6336_v58 = vpack.c.bf16 %v3934_v57, %v3930_v56  ;;  %v3933_v60 = vld [vmem:[%s9479_s17 + $0x3e0] sm:$0xff]  ;;  %v9057_v56 = vld [vmem:[#allocation48] sm:$0xf] }
 0xff6   :  { %v6338_v37 = vpack.c.bf16 %v3933_v60, %v3929_v59  ;;  %v6257_v60 = vpack.c.bf16 %v3503_v54, %v3502_v53  ;;  %v3941_v54 = vld [vmem:[%s9479_s17 + $0x420] sm:$0xff] }
 0xff8   :  { %6303 = vmatpush1.bf16.msra.mxu1 %v6302_v63  ;;  %v3942_v63 = vld [vmem:[%s9479_s17 + $0x428] sm:$0xff] }
 0xff9   :  { %6305 = vmatprep.subr.bf16.mxu1 %v6304_v0  ;;  %v6340_v4 = vpack.c.bf16 %v3942_v63, %v3938_v61  ;;  %v3134_v0 = vrot.slane %v3129_v16, %v8521_v27  ;;  %v3614_v61 = vrot.slane %v9057_v56, %v8521_v27  ;;  %v3504_v63 = vld [vmem:[%s9480_s13 + $0x90] sm:$0xff] }
 0xffc   :  { %6307 = vmatpush1.bf16.msra.mxu1 %v6306_v5 }
 0xffd   :  { %6309 = vmatprep.subr.bf16.mxu1 %v6308_v8 }
0x1000   :  { %6311 = vmatpush1.bf16.msra.mxu1 %v6310_v35 }
0x1001   :  { %6313 = vmatprep.subr.bf16.mxu1 %v6312_v14  ;;  %v3487_v14 = vld [vmem:[%s9480_s13 + $0x8] sm:$0xff] }
0x1002   :  { %v6233_v21 = vpack.c.bf16 %v3487_v14, %v3486_v12  ;;  %v3626_v14 = vrot.slane %v9057_v56, %v8710_v22 }
0x1004   :  { %6315 = vmatpush1.bf16.msra.mxu1 %v6314_v19 }
0x1005   :  { %6317 = vmatprep.subr.bf16.mxu1 %v6316_v13  ;;  %v3488_v13 = vld [vmem:[%s9480_s13 + $0x10] sm:$0xff] }
0x1008   :  { %6319 = vmatpush1.bf16.msra.mxu1 %v6318_v18  ;;  %v6236_v18 = vpack.c.bf16 %v3489_v24, %v3488_v13 }
0x1009   :  { %6321 = vmatprep.subr.bf16.mxu1 %v6320_v33  ;;  %v6239_v33 = vpack.c.bf16 %v3491_v32, %v3490_v31  ;;  %v3812_v32 = vld [vmem:[%s9479_s17 + $0x18] sm:$0xff] }
0x100c   :  { %6323 = vmatpush1.bf16.msra.mxu1 %v6322_v38  ;;  %v6242_v38 = vpack.c.bf16 %v3493_v36, %v3492_v34  ;;  %v3811_v36 = vld [vmem:[%s9479_s17 + $0x10] sm:$0xff] }
0x100d   :  { %6325 = vmatprep.subr.bf16.mxu1 %v6324_v26  ;;  %v6245_v26 = vpack.c.bf16 %v3495_v40, %v3494_v39 }
0x1010   :  { %6327 = vmatpush1.bf16.msra.mxu1 %v6326_v46  ;;  %v6248_v46 = vpack.c.bf16 %v3497_v45, %v3496_v41  ;;  %v3820_v41 = vld [vmem:[%s9479_s17 + $0x58] sm:$0xff] }
0x1011   :  { %6329 = vmatprep.subr.bf16.mxu1 %v6328_v44  ;;  %v6251_v44 = vpack.c.bf16 %v3499_v43, %v3498_v42  ;;  %v3824_v45 = vld [vmem:[%s9479_s17 + $0x78] sm:$0xff] }
0x1014   :  { %6331 = vmatpush1.bf16.msra.mxu1 %v6330_v49  ;;  %v3501_v49 = vld [vmem:[%s9480_s13 + $0x78] sm:$0xff] }
0x1015   :  { %6333 = vmatprep.subr.bf16.mxu1 %v6332_v52  ;;  %v6254_v52 = vpack.c.bf16 %v3501_v49, %v3500_v48  ;;  %v6380_v48 = vpack.c.bf16 %v3824_v45, %v3820_v41  ;;  %v3819_v49 = vld [vmem:[%s9479_s17 + $0x50] sm:$0xff] }
0x1016   :  { %v3847_v41 = vld [vmem:[%s9479_s17 + $0x130] sm:$0xff] }
0x1018   :  { %6335 = vmatpush1.bf16.msra.mxu1 %v6334_v55 }
0x1019   :  { %6337 = vmatprep.subr.bf16.mxu1 %v6336_v58 }
0x101c   :  { %6339 = vmatpush1.bf16.msra.mxu1 %v6338_v37 }
0x101d   :  { %6341 = vmatprep.subr.bf16.mxu1 %v6340_v4  ;;  %v3505_v4 = vld [vmem:[%s9480_s13 + $0x98] sm:$0xff] }
0x1074   :  { %v3210_v25 = vpop.f32.mrb[20].mxu1 }
0x1075   :  { %v3211_v5 = vadd.f32 %v3210_v25, %v3134_v0  ;;  %v3212_v6 = vpop.f32.mrb[21].mxu1  ;;  %v3618_v0 = vrot.slane %v9057_v56, %v8525_v29 }
0x1076   :  { %v3213_v7 = vadd.f32 %v3212_v6, %v3138_v1  ;;  %v6260_v6 = vpack.c.bf16 %v3505_v4, %v3504_v63  ;;  %v3950_v63 = vld [vmem:[%s9479_s17 + $0x468] sm:$0xff]  ;;  %v3827_v4 = vld [vmem:[%s9479_s17 + $0x90] sm:$0xff] }
0x1077   :  { %v3217_v8 = vmin.f32 %v3211_v5, 0.0  ;;  %vm3215_vm15 = vcmp.gt.f32.partialorder %v3211_v5, 0.0 }
0x1078   :  { %v3218_v9 = vmin.f32 %v3213_v7, 0.0  ;;  %vm3216_vm13 = vcmp.gt.f32.partialorder %v3213_v7, 0.0 }
0x1079   :  { %v3219_v10 = vmul.f32 1.442695, %v3217_v8 }
0x107a   :  { %v3221_v35 = vmul.f32 1.442695, %v3218_v9  ;;  %v3506_v9 = vld [vmem:[%s9480_s13 + $0xa0] sm:$0xff] }
0x107b   :  { %6936 = vpow2.f32 %v3219_v10  ;;  %v3507_v10 = vld [vmem:[%s9480_s13 + $0xa8] sm:$0xff] }
0x107c   :  { %6938 = vpow2.f32 %v3221_v35 }
0x1085   :  { %v6937_v11 = vpop.eup %6936 }
0x1086   :  { %v6939_v15 = vpop.eup %6938  ;;  %v5349_v17 = vadd.f32 -1.0, %v6937_v11 }
0x1087   :  { %v5350_v19 = vadd.f32 -1.0, %v6939_v15  ;;  %v6263_v15 = vpack.c.bf16 %v3507_v10, %v3506_v9  ;;  %v3945_v9 = vld [vmem:[%s9479_s17 + $0x440] sm:$0xff] }
0x1088   :  { %v3225_v28 = vsel %vm3215_vm15, %v3211_v5, %v5349_v17  ;;  %v3949_v10 = vld [vmem:[%s9479_s17 + $0x460] sm:$0xff] }
0x1089   :  { %v3226_v23 = vsel %vm3216_vm13, %v3213_v7, %v5350_v19  ;;  %v3508_v19 = vld [vmem:[%s9480_s13 + $0xb0] sm:$0xff] }
0x108a   :  { %5352 = vmatprep.mubr.msk.f32.mxu0 %vm769_vm4, %v3226_v23 }
0x108b   :  { %3327 = vmatmul.mubr.f32.vlgmr.msra.gmra.mrb[18].mxu0 %v3225_v28 }
0x108c   :  { %6234 = vmatpush1.bf16.msra.mxu0 %v6233_v21  ;;  %v3509_v21 = vld [vmem:[%s9480_s13 + $0xb8] sm:$0xff] }
0x108d   :  { %6235 = vmatprep.subr.bf16.mxu0 %v7932_v3 }
0x1090   :  { %6237 = vmatpush1.bf16.msra.mxu0 %v6236_v18  ;;  %v6266_v18 = vpack.c.bf16 %v3509_v21, %v3508_v19  ;;  %v3839_v19 = vld [vmem:[%s9479_s17 + $0xf0] sm:$0xff] }
0x1091   :  { %6238 = vmatprep.subr.bf16.mxu0 %v7932_v3 }
0x1094   :  { %6240 = vmatpush1.bf16.msra.mxu0 %v6239_v33  ;;  %v3816_v33 = vld [vmem:[%s9479_s17 + $0x38] sm:$0xff] }
0x1095   :  { %6241 = vmatprep.subr.bf16.mxu0 %v7932_v3  ;;  %v6376_v43 = vpack.c.bf16 %v3816_v33, %v3812_v32  ;;  %v3953_v33 = vld [vmem:[%s9479_s17 + $0x480] sm:$0xff] }
0x1098   :  { %6243 = vmatpush1.bf16.msra.mxu0 %v6242_v38  ;;  %v3815_v38 = vld [vmem:[%s9479_s17 + $0x30] sm:$0xff] }
0x1099   :  { %6244 = vmatprep.subr.bf16.mxu0 %v7932_v3 }
0x109c   :  { %6246 = vmatpush1.bf16.msra.mxu0 %v6245_v26 }
0x109d   :  { %6247 = vmatprep.subr.bf16.mxu0 %v7932_v3 }
0x10a0   :  { %6249 = vmatpush1.bf16.msra.mxu0 %v6248_v46  ;;  %v3510_v46 = vld [vmem:[%s9480_s13 + $0xc0] sm:$0xff] }
0x10a1   :  { %6250 = vmatprep.subr.bf16.mxu0 %v7932_v3 }
0x10a4   :  { %6252 = vmatpush1.bf16.msra.mxu0 %v6251_v44  ;;  %v6378_v44 = vpack.c.bf16 %v3815_v38, %v3811_v36  ;;  %v3962_v38 = vld [vmem:[%s9479_s17 + $0x4c8] sm:$0xff] }
0x10a5   :  { %6253 = vmatprep.subr.bf16.mxu0 %v7932_v3 }
0x10a6   :  { %v3469_v55 = vpop.f32.mrb[22].mxu1 }
0x10a7   :  { %v9059_v57 = vadd.f32 %v3469_v55, %v3396_v50  ;;  %v3471_v58 = vpop.f32.mrb[23].mxu1  ;;  %v3823_v50 = vld [vmem:[%s9479_s17 + $0x70] sm:$0xff]  ;;  %v3828_v55 = vld [vmem:[%s9479_s17 + $0x98] sm:$0xff] }
0x10a8   :  { %v3472_v59 = vadd.f32 %v3471_v58, %v3400_v51  ;;  %6255 = vmatpush1.bf16.msra.mxu0 %v6254_v52  ;;  %v3937_v52 = vld [vmem:[%s9479_s17 + $0x400] sm:$0xff]  ;;  %v3832_v58 = vld [vmem:[%s9479_s17 + $0xb8] sm:$0xff] }
0x10a9   :  { %v3476_v37 = vmin.f32 %v9059_v57, 0.0  ;;  %6256 = vmatprep.subr.bf16.mxu0 %v7932_v3  ;;  %vm3474_vm2 = vcmp.gt.f32.partialorder %v9059_v57, 0.0 }
0x10aa   :  { %v3477_v16 = vmin.f32 %v3472_v59, 0.0  ;;  %vm3475_vm1 = vcmp.gt.f32.partialorder %v3472_v59, 0.0 }
0x10ab   :  { %v3478_v1 = vmul.f32 1.442695, %v3476_v37 }
0x10ac   :  { %v3480_v25 = vmul.f32 1.442695, %v3477_v16  ;;  %6258 = vmatpush1.bf16.msra.mxu0 %v6257_v60  ;;  %v3709_v5 = vpop.f32.mrb[24].mxu1  ;;  %v6382_v60 = vpack.c.bf16 %v3823_v50, %v3819_v49  ;;  %v3831_v16 = vld [vmem:[%s9479_s17 + $0xb0] sm:$0xff]  ;;  %v3970_v49 = vld [vmem:[%s9479_s17 + $0x508] sm:$0xff] }
0x10ad   :  { %6940 = vpow2.f32 %v3478_v1  ;;  %v9069_v7 = vadd.f32 %v3709_v5, %v3614_v61  ;;  %v3711_v8 = vpop.f32.mrb[25].mxu1  ;;  %6259 = vmatprep.subr.bf16.mxu0 %v7932_v3  ;;  %v3946_v61 = vld [vmem:[%s9479_s17 + $0x448] sm:$0xff]  ;;  %v6384_v1 = vpack.c.bf16 %v3832_v58, %v3828_v55  ;;  %v3840_v5 = vld [vmem:[%s9479_s17 + $0xf8] sm:$0xff] }
0x10ae   :  { %6942 = vpow2.f32 %v3480_v25  ;;  %v9074_v35 = vadd.f32 %v3711_v8, %v3618_v0  ;;  %v6342_v0 = vpack.c.bf16 %v3941_v54, %v3937_v52  ;;  %v3836_v25 = vld [vmem:[%s9479_s17 + $0xd8] sm:$0xff]  ;;  %v6344_v8 = vpack.c.bf16 %v3950_v63, %v3946_v61  ;;  %v3974_v50 = vld [vmem:[%s9479_s17 + $0x528] sm:$0xff]  ;;  %v3851_v52 = vld [vmem:[%s9479_s17 + $0x150] sm:$0xff] }
0x10af   :  { %v3789_v11 = vmin.f32 %v9069_v7, 0.0  ;;  %vm3785_vm3 = vcmp.gt.f32.partialorder %v9069_v7, 0.0  ;;  %v3860_v54 = vld [vmem:[%s9479_s17 + $0x198] sm:$0xff]  ;;  %v3978_v63 = vld [vmem:[%s9479_s17 + $0x548] sm:$0xff] }
0x10b0   :  { %v3790_v12 = vmin.f32 %v9074_v35, 0.0  ;;  %6261 = vmatpush1.bf16.msra.mxu0 %v6260_v6  ;;  %v3864_v55 = vld [vmem:[%s9479_s17 + $0x1b8] sm:$0xff] }
0x10b1   :  { %v3793_v17 = vmul.f32 1.442695, %v3789_v11  ;;  %6262 = vmatprep.subr.bf16.mxu0 %v7932_v3 }
0x10b2   :  { %v3795_v23 = vmul.f32 1.442695, %v3790_v12  ;;  %v9083_v13 = vpop.f32.mrb[26].mxu1  ;;  %v6386_v12 = vpack.c.bf16 %v3831_v16, %v3827_v4  ;;  %v6400_v4 = vpack.c.bf16 %v3864_v55, %v3860_v54  ;;  %v3859_v16 = vld [vmem:[%s9479_s17 + $0x190] sm:$0xff]  ;;  %v4001_v54 = vld [vmem:[%s9479_s17 + $0x600] sm:$0xff] }
0x10b3   :  { %6944 = vpow2.f32 %v3793_v17  ;;  %v3782_v24 = vpop.f32.mrb[27].mxu1  ;;  %v6388_v17 = vpack.c.bf16 %v3840_v5, %v3836_v25  ;;  %v3868_v25 = vld [vmem:[%s9479_s17 + $0x1d8] sm:$0xff]  ;;  %v4005_v55 = vld [vmem:[%s9479_s17 + $0x620] sm:$0xff] }
0x10b4   :  { %6946 = vpow2.f32 %v3795_v23  ;;  %v9085_v28 = vadd.f32 %v3782_v24, %v3626_v14  ;;  %6264 = vmatpush1.bf16.msra.mxu0 %v6263_v15  ;;  %v3954_v14 = vld [vmem:[%s9479_s17 + $0x488] sm:$0xff]  ;;  %v6346_v23 = vpack.c.bf16 %v3949_v10, %v3945_v9  ;;  %v3844_v24 = vld [vmem:[%s9479_s17 + $0x118] sm:$0xff]  ;;  %v3977_v9 = vld [vmem:[%s9479_s17 + $0x540] sm:$0xff] }
0x10b5   :  { %6265 = vmatprep.subr.bf16.mxu0 %v7932_v3  ;;  %v3958_v15 = vld [vmem:[%s9479_s17 + $0x4a8] sm:$0xff]  ;;  %v3872_v5 = vld [vmem:[%s9479_s17 + $0x1f8] sm:$0xff]  ;;  %v3981_v10 = vld [vmem:[%s9479_s17 + $0x560] sm:$0xff] }
0x10b6   :  { %v3792_v31 = vmin.f32 %v9085_v28, 0.0  ;;  %v6348_v32 = vpack.c.bf16 %v3958_v15, %v3954_v14  ;;  %vm3788_vm5 = vcmp.gt.f32.partialorder %v9085_v28, 0.0  ;;  %v3986_v14 = vld [vmem:[%s9479_s17 + $0x588] sm:$0xff] }
0x10b7   :  { %v6941_v34 = vpop.eup %6940  ;;  %v3990_v15 = vld [vmem:[%s9479_s17 + $0x5a8] sm:$0xff] }
0x10b8   :  { %v6943_v39 = vpop.eup %6942  ;;  %v3799_v40 = vmul.f32 1.442695, %v3792_v31  ;;  %6267 = vmatpush1.bf16.msra.mxu0 %v6266_v18  ;;  %v5354_v26 = vadd.f32 -1.0, %v6941_v34  ;;  %v3622_v18 = vrot.slane %v9057_v56, %v8706_v20  ;;  %v3957_v34 = vld [vmem:[%s9479_s17 + $0x4a0] sm:$0xff] }
0x10b9   :  { %3569 = vmatprep.subr.mxu0 %v7931_v2  ;;  %v5355_v42 = vadd.f32 -1.0, %v6943_v39  ;;  %v3966_v39 = vld [vmem:[%s9479_s17 + $0x4e8] sm:$0xff]  ;;  %v6350_v45 = vpack.c.bf16 %v3957_v34, %v3953_v33 }
0x10ba   :  { %6948 = vpow2.f32 %v3799_v40  ;;  %v3484_v51 = vsel %vm3474_vm2, %v9059_v57, %v5354_v26  ;;  %v3843_v26 = vld [vmem:[%s9479_s17 + $0x110] sm:$0xff]  ;;  %v3994_v33 = vld [vmem:[%s9479_s17 + $0x5c8] sm:$0xff] }
0x10bb   :  { %v3485_v47 = vsel %vm3475_vm1, %v3472_v59, %v5355_v42  ;;  %v3856_v42 = vld [vmem:[%s9479_s17 + $0x178] sm:$0xff]  ;;  %v3998_v34 = vld [vmem:[%s9479_s17 + $0x5e8] sm:$0xff] }
0x10bc   :  { %3570 = vmatpush1.msra.mxu0 %v3510_v46  ;;  %5357 = vmatprep.mubr.msk.f32.mxu0 %vm769_vm4, %v3485_v47  ;;  %vm3786_vm4 = vcmp.gt.f32.partialorder %v9074_v35, 0.0  ;;  %v3852_v46 = vld [vmem:[%s9479_s17 + $0x158] sm:$0xff]  ;;  %v3965_v47 = vld [vmem:[%s9479_s17 + $0x4e0] sm:$0xff] }
0x10bd   :  { %v6945_v53 = vpop.eup %6944  ;;  %3586 = vmatmul.mubr.f32.vlgmr.msra.gmra.mrb[20].mxu0 %v3484_v51  ;;  %6377 = vmatprep.subr.bf16.mxu0 %v6376_v43  ;;  %v9144_v43 = vadd.f32 %v9083_v13, %v3622_v18  ;;  %v6396_v51 = vpack.c.bf16 %v3856_v42, %v3852_v46  ;;  %v3985_v18 = vld [vmem:[%s9479_s17 + $0x580] sm:$0xff] }
0x10be   :  { %v6947_v59 = vpop.eup %6946  ;;  %6379 = vmatpush1.bf16.msra.mxu0 %v6378_v44  ;;  %v5364_v37 = vadd.f32 -1.0, %v6945_v53  ;;  %v3961_v44 = vld [vmem:[%s9479_s17 + $0x4c0] sm:$0xff]  ;;  %v3855_v53 = vld [vmem:[%s9479_s17 + $0x170] sm:$0xff] }
0x10bf   :  { %6381 = vmatprep.subr.bf16.mxu0 %v6380_v48  ;;  %v5365_v57 = vadd.f32 -1.0, %v6947_v59  ;;  %v6394_v48 = vpack.c.bf16 %v3847_v41, %v3843_v26  ;;  %v6354_v13 = vpack.c.bf16 %v3965_v47, %v3961_v44  ;;  %v3791_v58 = vmin.f32 %v9144_v43, 0.0  ;;  %v3884_v26 = vld [vmem:[%s9479_s17 + $0x258] sm:$0xff]  ;;  %v3993_v46 = vld [vmem:[%s9479_s17 + $0x5c0] sm:$0xff]  ;;  %v4002_v44 = vld [vmem:[%s9479_s17 + $0x608] sm:$0xff] }
0x10c0   :  { %v9118_v11 = vsel %vm3785_vm3, %v9069_v7, %v5364_v37  ;;  %v3848_v7 = vld [vmem:[%s9479_s17 + $0x138] sm:$0xff]  ;;  %v6356_v59 = vpack.c.bf16 %v3974_v50, %v3970_v49  ;;  %v3973_v37 = vld [vmem:[%s9479_s17 + $0x520] sm:$0xff]  ;;  %v6398_v61 = vpack.c.bf16 %v3855_v53, %v3851_v52  ;;  %v4006_v47 = vld [vmem:[%s9479_s17 + $0x628] sm:$0xff]  ;;  %vm3787_vm6 = vcmp.gt.f32.partialorder %v9144_v43, 0.0 }
0x10c1   :  { %v3806_v6 = vsel %vm3786_vm4, %v9074_v35, %v5365_v57  ;;  %v3835_v35 = vld [vmem:[%s9479_s17 + $0xd0] sm:$0xff]  ;;  %v6392_v56 = vpack.c.bf16 %v3848_v7, %v3844_v24  ;;  %v3982_v57 = vld [vmem:[%s9479_s17 + $0x568] sm:$0xff]  ;;  %v3880_v24 = vld [vmem:[%s9479_s17 + $0x238] sm:$0xff]  ;;  %v6364_v7 = vpack.c.bf16 %v3990_v15, %v3986_v14 }
0x10c2   :  { %4098 = vmatprep.mubr.f32.mxu1 %v3806_v6  ;;  %6383 = vmatpush1.bf16.msra.mxu0 %v6382_v60  ;;  %v6390_v36 = vpack.c.bf16 %v3839_v19, %v3835_v35  ;;  %v3969_v60 = vld [vmem:[%s9479_s17 + $0x500] sm:$0xff]  ;;  %v3867_v35 = vld [vmem:[%s9479_s17 + $0x1d0] sm:$0xff]  ;;  %v3888_v41 = vld [vmem:[%s9479_s17 + $0x278] sm:$0xff] }
0x10c3   :  { %4240 = vmatprep.mubr.f32.mxu0 %v3806_v6  ;;  %4099 = vmatmul.mubr.f32.vlgmr.msra.gmra.mrb[28].mxu1 %v9118_v11  ;;  %v3797_v6 = vmul.f32 1.442695, %v3791_v58  ;;  %v3871_v19 = vld [vmem:[%s9479_s17 + $0x1f0] sm:$0xff]  ;;  %v3997_v42 = vld [vmem:[%s9479_s17 + $0x5e0] sm:$0xff]  ;;  %v3892_v52 = vld [vmem:[%s9479_s17 + $0x298] sm:$0xff] }
0x10c4   :  { %v6949_v21 = vpop.eup %6948  ;;  %6343 = vmatpush1.bf16.msra.mxu1 %v6342_v0  ;;  %6385 = vmatprep.subr.bf16.mxu0 %v6384_v1  ;;  %v3863_v0 = vld [vmem:[%s9479_s17 + $0x1b0] sm:$0xff]  ;;  %v6358_v1 = vpack.c.bf16 %v3973_v37, %v3969_v60  ;;  %v3896_v53 = vld [vmem:[%s9479_s17 + $0x2b8] sm:$0xff] }
0x10c5   :  { %6345 = vmatprep.subr.bf16.mxu1 %v6344_v8  ;;  %v5367_v31 = vadd.f32 -1.0, %v6949_v21  ;;  %v6360_v8 = vpack.c.bf16 %v3982_v57, %v3978_v63  ;;  %v6362_v21 = vpack.c.bf16 %v3981_v10, %v3977_v9  ;;  %6950 = vpow2.f32 %v3797_v6  ;;  %v3883_v49 = vld [vmem:[%s9479_s17 + $0x250] sm:$0xff]  ;;  %v3900_v57 = vld [vmem:[%s9479_s17 + $0x2d8] sm:$0xff] }
0x10c6   :  { %6387 = vmatpush1.bf16.msra.mxu0 %v6386_v12  ;;  %v6402_v12 = vpack.c.bf16 %v3863_v0, %v3859_v16  ;;  %v3887_v50 = vld [vmem:[%s9479_s17 + $0x270] sm:$0xff]  ;;  %v6416_v60 = vpack.c.bf16 %v3896_v53, %v3892_v52  ;;  %v6374_v63 = vpack.c.bf16 %v4005_v55, %v4001_v54  ;;  %v3908_v6 = vld [vmem:[%s9479_s17 + $0x318] sm:$0xff] }
0x10c7   :  { %v9135_v40 = vsel %vm3788_vm5, %v9085_v28, %v5367_v31  ;;  %6389 = vmatprep.subr.bf16.mxu0 %v6388_v17  ;;  %v6352_v28 = vpack.c.bf16 %v3966_v39, %v3962_v38  ;;  %v6404_v17 = vpack.c.bf16 %v3872_v5, %v3868_v25  ;;  %v3989_v31 = vld [vmem:[%s9479_s17 + $0x5a0] sm:$0xff]  ;;  %v3875_v38 = vld [vmem:[%s9479_s17 + $0x210] sm:$0xff]  ;;  %v6414_v58 = vpack.c.bf16 %v3887_v50, %v3883_v49  ;;  %v3956_v53 = vld [vmem:[%s9479_s17 + $0x498] sm:$0xff] }
0x10c8   :  { %6347 = vmatpush1.bf16.msra.mxu1 %v6346_v23  ;;  %5368 = vmatprep.mubr.msk.f32.mxu1 %vm1458_vm14, %v9135_v40  ;;  %v3876_v23 = vld [vmem:[%s9479_s17 + $0x218] sm:$0xff]  ;;  %v3879_v39 = vld [vmem:[%s9479_s17 + $0x230] sm:$0xff] }
0x10c9   :  { %6349 = vmatprep.subr.bf16.mxu1 %v6348_v32  ;;  %v6406_v32 = vpack.c.bf16 %v3871_v19, %v3867_v35  ;;  %v3891_v37 = vld [vmem:[%s9479_s17 + $0x290] sm:$0xff]  ;;  %v3920_v35 = vld [vmem:[%s9479_s17 + $0x378] sm:$0xff] }
0x10ca   :  { %6391 = vmatpush1.bf16.msra.mxu0 %v6390_v36  ;;  %v6408_v36 = vpack.c.bf16 %v3880_v24, %v3876_v23  ;;  %v3899_v25 = vld [vmem:[%s9479_s17 + $0x2d0] sm:$0xff]  ;;  %v3924_v24 = vld [vmem:[%s9479_s17 + $0x398] sm:$0xff] }
0x10cb   :  { %6393 = vmatprep.subr.bf16.mxu0 %v6392_v56  ;;  %v6366_v56 = vpack.c.bf16 %v3989_v31, %v3985_v18  ;;  %v3903_v5 = vld [vmem:[%s9479_s17 + $0x2f0] sm:$0xff] }
0x10cc   :  { %6351 = vmatpush1.bf16.msra.mxu1 %v6350_v45  ;;  %v6368_v45 = vpack.c.bf16 %v3998_v34, %v3994_v33  ;;  %v6422_v10 = vpack.c.bf16 %v3903_v5, %v3899_v25  ;;  %v3907_v14 = vld [vmem:[%s9479_s17 + $0x310] sm:$0xff]  ;;  %v3932_v34 = vld [vmem:[%s9479_s17 + $0x3d8] sm:$0xff] }
0x10cd   :  { %6353 = vmatprep.subr.bf16.mxu1 %v6352_v28  ;;  %v6410_v28 = vpack.c.bf16 %v3879_v39, %v3875_v38  ;;  %v3911_v15 = vld [vmem:[%s9479_s17 + $0x330] sm:$0xff]  ;;  %v3980_v5 = vld [vmem:[%s9479_s17 + $0x558] sm:$0xff] }
0x10ce   :  { %6395 = vmatpush1.bf16.msra.mxu0 %v6394_v48  ;;  %v6412_v48 = vpack.c.bf16 %v3888_v41, %v3884_v26  ;;  %v6426_v19 = vpack.c.bf16 %v3911_v15, %v3907_v14  ;;  %v3919_v23 = vld [vmem:[%s9479_s17 + $0x370] sm:$0xff]  ;;  %v3940_v41 = vld [vmem:[%s9479_s17 + $0x418] sm:$0xff] }
0x10cf   :  { %6397 = vmatprep.subr.bf16.mxu0 %v6396_v51  ;;  %v6370_v51 = vpack.c.bf16 %v3997_v42, %v3993_v46  ;;  %v3927_v33 = vld [vmem:[%s9479_s17 + $0x3b0] sm:$0xff]  ;;  %v3988_v15 = vld [vmem:[%s9479_s17 + $0x598] sm:$0xff] }
0x10d0   :  { %6355 = vmatpush1.bf16.msra.mxu1 %v6354_v13  ;;  %v6372_v13 = vpack.c.bf16 %v4006_v47, %v4002_v44  ;;  %v3935_v26 = vld [vmem:[%s9479_s17 + $0x3f0] sm:$0xff]  ;;  %v3948_v47 = vld [vmem:[%s9479_s17 + $0x458] sm:$0xff] }
0x10d1   :  { %6357 = vmatprep.subr.bf16.mxu1 %v6356_v59  ;;  %v6951_v59 = vpop.eup %6950  ;;  %v3943_v44 = vld [vmem:[%s9479_s17 + $0x430] sm:$0xff] }
0x10d2   :  { %6399 = vmatpush1.bf16.msra.mxu0 %v6398_v61  ;;  %v3895_v61 = vld [vmem:[%s9479_s17 + $0x2b0] sm:$0xff]  ;;  %v5366_v16 = vadd.f32 -1.0, %v6951_v59 }
0x10d3   :  { %6401 = vmatprep.subr.bf16.mxu0 %v6400_v4  ;;  %v3904_v4 = vld [vmem:[%s9479_s17 + $0x2f8] sm:$0xff]  ;;  %v6418_v0 = vpack.c.bf16 %v3895_v61, %v3891_v37  ;;  %v3951_v52 = vld [vmem:[%s9479_s17 + $0x470] sm:$0xff] }
0x10d4   :  { %6359 = vmatpush1.bf16.msra.mxu1 %v6358_v1  ;;  %v6420_v1 = vpack.c.bf16 %v3904_v4, %v3900_v57  ;;  %v9199_v9 = vsel %vm3787_vm6, %v9144_v43, %v5366_v16  ;;  %v3959_v59 = vld [vmem:[%s9479_s17 + $0x4b0] sm:$0xff]  ;;  %v3968_v37 = vld [vmem:[%s9479_s17 + $0x4f8] sm:$0xff] }
0x10d5   :  { %6361 = vmatprep.subr.bf16.mxu1 %v6360_v8  ;;  %v3912_v8 = vld [vmem:[%s9479_s17 + $0x338] sm:$0xff]  ;;  %v3967_v57 = vld [vmem:[%s9479_s17 + $0x4f0] sm:$0xff] }
0x10d6   :  { %6403 = vmatpush1.bf16.msra.mxu0 %v6402_v12  ;;  %v6424_v12 = vpack.c.bf16 %v3912_v8, %v3908_v6  ;;  %v3976_v4 = vld [vmem:[%s9479_s17 + $0x538] sm:$0xff]  ;;  %v3975_v25 = vld [vmem:[%s9479_s17 + $0x530] sm:$0xff] }
0x10d7   :  { %6405 = vmatprep.subr.bf16.mxu0 %v6404_v17  ;;  %v3916_v17 = vld [vmem:[%s9479_s17 + $0x358] sm:$0xff]  ;;  %v3983_v14 = vld [vmem:[%s9479_s17 + $0x570] sm:$0xff] }
0x10d8   :  { %6363 = vmatpush1.bf16.msra.mxu1 %v6362_v21  ;;  %v6428_v43 = vpack.c.bf16 %v3920_v35, %v3916_v17  ;;  %v3915_v21 = vld [vmem:[%s9479_s17 + $0x350] sm:$0xff]  ;;  %v3984_v6 = vld [vmem:[%s9479_s17 + $0x578] sm:$0xff] }
0x10d9   :  { %6365 = vmatprep.subr.bf16.mxu1 %v6364_v7  ;;  %v3928_v7 = vld [vmem:[%s9479_s17 + $0x3b8] sm:$0xff]  ;;  %v6430_v18 = vpack.c.bf16 %v3919_v23, %v3915_v21  ;;  %v4347_v21 = vld [vmem:[#allocation51 + $0x28] sm:$0xff] }
0x10da   :  { %6407 = vmatpush1.bf16.msra.mxu0 %v6406_v32  ;;  %v6432_v31 = vpack.c.bf16 %v3928_v7, %v3924_v24  ;;  %v3923_v32 = vld [vmem:[%s9479_s17 + $0x390] sm:$0xff]  ;;  %v3992_v17 = vld [vmem:[%s9479_s17 + $0x5b8] sm:$0xff] }
0x10db   :  { %6409 = vmatprep.subr.bf16.mxu0 %v6408_v36  ;;  %v3936_v36 = vld [vmem:[%s9479_s17 + $0x3f8] sm:$0xff]  ;;  %v6434_v38 = vpack.c.bf16 %v3927_v33, %v3923_v32  ;;  %v6464_v23 = vpack.c.bf16 %v3992_v17, %v3988_v15  ;;  %v3991_v24 = vld [vmem:[%s9479_s17 + $0x5b0] sm:$0xff] }
0x10dc   :  { %6367 = vmatpush1.bf16.msra.mxu1 %v6366_v56  ;;  %v6436_v39 = vpack.c.bf16 %v3936_v36, %v3932_v34  ;;  %v3931_v56 = vld [vmem:[%s9479_s17 + $0x3d0] sm:$0xff]  ;;  %v3996_v32 = vld [vmem:[%s9479_s17 + $0x5d8] sm:$0xff] }
0x10dd   :  { %6369 = vmatprep.subr.bf16.mxu1 %v6368_v45  ;;  %v3944_v45 = vld [vmem:[%s9479_s17 + $0x438] sm:$0xff]  ;;  %v6438_v46 = vpack.c.bf16 %v3935_v26, %v3931_v56  ;;  %v4355_v56 = vld [vmem:[#allocation51 + $0x68] sm:$0xff] }
0x10de   :  { %6411 = vmatpush1.bf16.msra.mxu0 %v6410_v28  ;;  %v6440_v42 = vpack.c.bf16 %v3944_v45, %v3940_v41  ;;  %v3939_v28 = vld [vmem:[%s9479_s17 + $0x410] sm:$0xff]  ;;  %v4000_v33 = vld [vmem:[%s9479_s17 + $0x5f8] sm:$0xff] }
0x10df   :  { %6413 = vmatprep.subr.bf16.mxu0 %v6412_v48  ;;  %v3952_v48 = vld [vmem:[%s9479_s17 + $0x478] sm:$0xff]  ;;  %v6442_v49 = vpack.c.bf16 %v3943_v44, %v3939_v28  ;;  %v6468_v26 = vpack.c.bf16 %v4000_v33, %v3996_v32  ;;  %v3999_v41 = vld [vmem:[%s9479_s17 + $0x5f0] sm:$0xff] }
0x10e0   :  { %6371 = vmatpush1.bf16.msra.mxu1 %v6370_v51  ;;  %v6444_v50 = vpack.c.bf16 %v3952_v48, %v3948_v47  ;;  %v3947_v51 = vld [vmem:[%s9479_s17 + $0x450] sm:$0xff]  ;;  %v4004_v28 = vld [vmem:[%s9479_s17 + $0x618] sm:$0xff] }
0x10e1   :  { %6373 = vmatprep.subr.bf16.mxu1 %v6372_v13  ;;  %v3960_v13 = vld [vmem:[%s9479_s17 + $0x4b8] sm:$0xff]  ;;  %v6446_v54 = vpack.c.bf16 %v3951_v52, %v3947_v51  ;;  %v4363_v51 = vld [vmem:[#allocation51 + $0xa8] sm:$0xff] }
0x10e2   :  { %6415 = vmatpush1.bf16.msra.mxu0 %v6414_v58  ;;  %v6448_v55 = vpack.c.bf16 %v3960_v13, %v3956_v53  ;;  %v3955_v58 = vld [vmem:[%s9479_s17 + $0x490] sm:$0xff]  ;;  %v4008_v44 = vld [vmem:[%s9479_s17 + $0x638] sm:$0xff] }
0x10e3   :  { %6417 = vmatprep.subr.bf16.mxu0 %v6416_v60  ;;  %v3964_v60 = vld [vmem:[%s9479_s17 + $0x4d8] sm:$0xff]  ;;  %v6450_v61 = vpack.c.bf16 %v3959_v59, %v3955_v58  ;;  %v6472_v52 = vpack.c.bf16 %v4008_v44, %v4004_v28  ;;  %v4007_v53 = vld [vmem:[%s9479_s17 + $0x630] sm:$0xff]  ;;  %v4390_v28 = vld [vmem:[#allocation51 + $0x180] sm:$0xff] }
0x10e4   :  { %6375 = vmatpush1.bf16.msra.mxu1 %v6374_v63  ;;  %v3963_v63 = vld [vmem:[%s9479_s17 + $0x4d0] sm:$0xff]  ;;  %v4345_v58 = vld [vmem:[#allocation51 + $0x18] sm:$0xff]  ;;  %v4394_v44 = vld [vmem:[#allocation51 + $0x1a0] sm:$0xff] }
0x10e5   :  { %v6454_v16 = vpack.c.bf16 %v3967_v57, %v3963_v63  ;;  %v4349_v59 = vld [vmem:[#allocation51 + $0x38] sm:$0xff]  ;;  %v4371_v63 = vld [vmem:[#allocation51 + $0xe8] sm:$0xff]  ;;  %v4356_v15 = vld [vmem:[#allocation51 + $0x70] sm:$0xff] }
0x10e6   :  { %6419 = vmatpush1.bf16.msra.mxu0 %v6418_v0  ;;  %v6576_v57 = vpack.c.bf16 %v4349_v59, %v4345_v58  ;;  %v4364_v33 = vld [vmem:[#allocation51 + $0xb0] sm:$0xff] }
0x10e7   :  { %4170 = vmatmul.mubr.f32.vlgmr.msra.gmra.mrb[28].mxu1 %v9199_v9  ;;  %6421 = vmatprep.subr.bf16.mxu0 %v6420_v1  ;;  %v3971_v1 = vld [vmem:[%s9479_s17 + $0x510] sm:$0xff] }
0x10e8   :  { %v6458_v8 = vpack.c.bf16 %v3975_v25, %v3971_v1  ;;  %v4353_v1 = vld [vmem:[#allocation51 + $0x58] sm:$0xff]  ;;  %v4376_v59 = vld [vmem:[#allocation51 + $0x110] sm:$0xff] }
0x10e9   :  { %v4357_v25 = vld [vmem:[#allocation51 + $0x78] sm:$0xff] }
0x10ea   :  { %6423 = vmatpush1.bf16.msra.mxu0 %v6422_v10  ;;  %v6460_v10 = vpack.c.bf16 %v3984_v6, %v3980_v5 }
0x10eb   :  { %6425 = vmatprep.subr.bf16.mxu0 %v6424_v12  ;;  %v3979_v12 = vld [vmem:[%s9479_s17 + $0x550] sm:$0xff] }
0x10ec   :  { %v6462_v35 = vpack.c.bf16 %v3983_v14, %v3979_v12  ;;  %v4379_v12 = vld [vmem:[#allocation51 + $0x128] sm:$0xff]  ;;  %v6580_v14 = vpack.c.bf16 %v4357_v25, %v4353_v1 }
0x10ed   :  { %v4415_v1 = vld [vmem:[#allocation51 + $0x248] sm:$0xff] }
0x10ee   :  { %6427 = vmatpush1.bf16.msra.mxu0 %v6426_v19  ;;  %v3987_v19 = vld [vmem:[%s9479_s17 + $0x590] sm:$0xff] }
0x10ef   :  { %6429 = vmatprep.subr.bf16.mxu0 %v6428_v43  ;;  %v4343_v43 = vld [vmem:[#allocation51 + $0x8] sm:$0xff]  ;;  %v6466_v36 = vpack.c.bf16 %v3991_v24, %v3987_v19  ;;  %v4378_v19 = vld [vmem:[#allocation51 + $0x120] sm:$0xff] }
0x10f0   :  { %v6476_v7 = vpack.c.bf16 %v4347_v21, %v4343_v43  ;;  %v4361_v43 = vld [vmem:[#allocation51 + $0x98] sm:$0xff]  ;;  %v4419_v25 = vld [vmem:[#allocation51 + $0x268] sm:$0xff] }
0x10f1   :  { %v4365_v21 = vld [vmem:[#allocation51 + $0xb8] sm:$0xff] }
0x10f2   :  { %6431 = vmatpush1.bf16.msra.mxu0 %v6430_v18  ;;  %v4342_v18 = vld [vmem:[#allocation51] sm:$0xff]  ;;  %6477 = vmatprep.subr.bf16.mxu1 %v6476_v7  ;;  %v4360_v7 = vld [vmem:[#allocation51 + $0x90] sm:$0xff]  ;;  %v6584_v32 = vpack.c.bf16 %v4365_v21, %v4361_v43  ;;  %v4423_v43 = vld [vmem:[#allocation51 + $0x288] sm:$0xff] }
0x10f3   :  { %6433 = vmatprep.subr.bf16.mxu0 %v6432_v31  ;;  %v4346_v31 = vld [vmem:[#allocation51 + $0x20] sm:$0xff]  ;;  %v4427_v21 = vld [vmem:[#allocation51 + $0x2a8] sm:$0xff] }
0x10f4   :  { %v6478_v34 = vpack.c.bf16 %v4346_v31, %v4342_v18  ;;  %v4383_v18 = vld [vmem:[#allocation51 + $0x148] sm:$0xff] }
0x10f5   :  { %v4387_v31 = vld [vmem:[#allocation51 + $0x168] sm:$0xff] }
0x10f6   :  { %6435 = vmatpush1.bf16.msra.mxu0 %v6434_v38  ;;  %v3995_v38 = vld [vmem:[%s9479_s17 + $0x5d0] sm:$0xff]  ;;  %6479 = vmatpush1.bf16.msra.mxu1 %v6478_v34  ;;  %v6496_v34 = vpack.c.bf16 %v4387_v31, %v4383_v18 }
0x10f7   :  { %6437 = vmatprep.subr.bf16.mxu0 %v6436_v39  ;;  %v4351_v39 = vld [vmem:[#allocation51 + $0x48] sm:$0xff]  ;;  %v6470_v48 = vpack.c.bf16 %v3999_v41, %v3995_v38  ;;  %v4386_v38 = vld [vmem:[#allocation51 + $0x160] sm:$0xff]  ;;  %v4392_v18 = vld [vmem:[#allocation51 + $0x190] sm:$0xff] }
0x10f8   :  { %v6480_v45 = vpack.c.bf16 %v4355_v56, %v4351_v39  ;;  %v4369_v39 = vld [vmem:[#allocation51 + $0xd8] sm:$0xff]  ;;  %v4391_v41 = vld [vmem:[#allocation51 + $0x188] sm:$0xff]  ;;  %v4396_v31 = vld [vmem:[#allocation51 + $0x1b0] sm:$0xff] }
0x10f9   :  { %v4373_v56 = vld [vmem:[#allocation51 + $0xf8] sm:$0xff] }
0x10fa   :  { %6439 = vmatpush1.bf16.msra.mxu0 %v6438_v46  ;;  %v4350_v46 = vld [vmem:[#allocation51 + $0x40] sm:$0xff]  ;;  %6481 = vmatprep.subr.bf16.mxu1 %v6480_v45  ;;  %v4395_v45 = vld [vmem:[#allocation51 + $0x1a8] sm:$0xff] }
0x10fb   :  { %6441 = vmatprep.subr.bf16.mxu0 %v6440_v42  ;;  %v4354_v42 = vld [vmem:[#allocation51 + $0x60] sm:$0xff] }
0x10fc   :  { %v6482_v47 = vpack.c.bf16 %v4354_v42, %v4350_v46  ;;  %v4368_v46 = vld [vmem:[#allocation51 + $0xd0] sm:$0xff]  ;;  %v6500_v42 = vpack.c.bf16 %v4395_v45, %v4391_v41  ;;  %v4426_v41 = vld [vmem:[#allocation51 + $0x2a0] sm:$0xff]  ;;  %v4409_v45 = vld [vmem:[#allocation51 + $0x218] sm:$0xff] }
0x10fd   :  { %4241 = vmatmul.mubr.f32.vlgmr.msra.gmra.mrb[22].mxu0 %v9118_v11  ;;  %v6452_v11 = vpack.c.bf16 %v3968_v37, %v3964_v60 }
0x10fe   :  { %6443 = vmatpush1.bf16.msra.mxu0 %v6442_v49  ;;  %5369 = vmatprep.mubr.msk.f32.mxu0 %vm1458_vm14, %v9135_v40  ;;  %v3972_v40 = vld [vmem:[%s9479_s17 + $0x518] sm:$0xff]  ;;  %v4003_v49 = vld [vmem:[%s9479_s17 + $0x610] sm:$0xff] }
0x10ff   :  { %6445 = vmatprep.subr.bf16.mxu0 %v6444_v50  ;;  %v6456_v0 = vpack.c.bf16 %v3976_v4, %v3972_v40  ;;  %6483 = vmatpush1.bf16.msra.mxu1 %v6482_v47  ;;  %v4359_v50 = vld [vmem:[#allocation51 + $0x88] sm:$0xff]  ;;  %v6474_v37 = vpack.c.bf16 %v4007_v53, %v4003_v49  ;;  %v4348_v40 = vld [vmem:[#allocation51 + $0x30] sm:$0xff]  ;;  %v6588_v47 = vpack.c.bf16 %v4373_v56, %v4369_v39  ;;  %v4381_v53 = vld [vmem:[#allocation51 + $0x138] sm:$0xff] }
0x1100   :  { %v6484_v13 = vpack.c.bf16 %v4363_v51, %v4359_v50  ;;  %v6502_v49 = vpack.c.bf16 %v4394_v44, %v4390_v28  ;;  %v4399_v50 = vld [vmem:[#allocation51 + $0x1c8] sm:$0xff]  ;;  %v4404_v56 = vld [vmem:[#allocation51 + $0x1f0] sm:$0xff] }
0x1101   :  { %v4403_v51 = vld [vmem:[#allocation51 + $0x1e8] sm:$0xff]  ;;  %v4408_v28 = vld [vmem:[#allocation51 + $0x210] sm:$0xff] }
0x1102   :  { %6447 = vmatpush1.bf16.msra.mxu0 %v6446_v54  ;;  %v4358_v54 = vld [vmem:[#allocation51 + $0x80] sm:$0xff]  ;;  %6485 = vmatprep.subr.bf16.mxu1 %v6484_v13  ;;  %v6504_v13 = vpack.c.bf16 %v4403_v51, %v4399_v50  ;;  %v4431_v44 = vld [vmem:[#allocation51 + $0x2c8] sm:$0xff] }
0x1103   :  { %6449 = vmatprep.subr.bf16.mxu0 %v6448_v55  ;;  %v4362_v55 = vld [vmem:[#allocation51 + $0xa0] sm:$0xff] }
0x1104   :  { %v6486_v60 = vpack.c.bf16 %v4362_v55, %v4358_v54  ;;  %v4398_v54 = vld [vmem:[#allocation51 + $0x1c0] sm:$0xff] }
0x1105   :  { %v4402_v55 = vld [vmem:[#allocation51 + $0x1e0] sm:$0xff] }
0x1106   :  { %6451 = vmatpush1.bf16.msra.mxu0 %v6450_v61  ;;  %v4344_v61 = vld [vmem:[#allocation51 + $0x10] sm:$0xff]  ;;  %6487 = vmatpush1.bf16.msra.mxu1 %v6486_v60  ;;  %v6506_v60 = vpack.c.bf16 %v4402_v55, %v4398_v54  ;;  %v4430_v51 = vld [vmem:[#allocation51 + $0x2c0] sm:$0xff] }
0x1107   :  { %6453 = vmatprep.subr.bf16.mxu0 %v6452_v11  ;;  %v4367_v11 = vld [vmem:[#allocation51 + $0xc8] sm:$0xff]  ;;  %v6578_v6 = vpack.c.bf16 %v4348_v40, %v4344_v61  ;;  %v4406_v40 = vld [vmem:[#allocation51 + $0x200] sm:$0xff] }
0x1108   :  { %v6488_v4 = vpack.c.bf16 %v4371_v63, %v4367_v11  ;;  %v4411_v61 = vld [vmem:[#allocation51 + $0x228] sm:$0xff]  ;;  %v4380_v63 = vld [vmem:[#allocation51 + $0x130] sm:$0xff] }
0x110a   :  { %6455 = vmatpush1.bf16.msra.mxu0 %v6454_v16  ;;  %v4366_v16 = vld [vmem:[#allocation51 + $0xc0] sm:$0xff]  ;;  %6489 = vmatprep.subr.bf16.mxu1 %v6488_v4 }
0x110b   :  { %6457 = vmatprep.subr.bf16.mxu0 %v6456_v0  ;;  %v4370_v0 = vld [vmem:[#allocation51 + $0xe0] sm:$0xff] }
0x110c   :  { %v6490_v5 = vpack.c.bf16 %v4370_v0, %v4366_v16  ;;  %v4410_v4 = vld [vmem:[#allocation51 + $0x220] sm:$0xff]  ;;  %v4385_v16 = vld [vmem:[#allocation51 + $0x158] sm:$0xff] }
0x110d   :  { %v4389_v0 = vld [vmem:[#allocation51 + $0x178] sm:$0xff] }
0x110e   :  { %6459 = vmatpush1.bf16.msra.mxu0 %v6458_v8  ;;  %v4352_v8 = vld [vmem:[#allocation51 + $0x50] sm:$0xff]  ;;  %6491 = vmatpush1.bf16.msra.mxu1 %v6490_v5  ;;  %v6594_v5 = vpack.c.bf16 %v4380_v63, %v4376_v59  ;;  %v4439_v59 = vld [vmem:[#allocation51 + $0x308] sm:$0xff]  ;;  %v4438_v63 = vld [vmem:[#allocation51 + $0x300] sm:$0xff] }
0x110f   :  { %6461 = vmatprep.subr.bf16.mxu0 %v6460_v10  ;;  %v4375_v10 = vld [vmem:[#allocation51 + $0x108] sm:$0xff]  ;;  %v6582_v24 = vpack.c.bf16 %v4356_v15, %v4352_v8  ;;  %v4388_v8 = vld [vmem:[#allocation51 + $0x170] sm:$0xff]  ;;  %v6512_v15 = vpack.c.bf16 %v4419_v25, %v4415_v1 }
0x1110   :  { %v6492_v17 = vpack.c.bf16 %v4379_v12, %v4375_v10  ;;  %v6510_v10 = vpack.c.bf16 %v4410_v4, %v4406_v40  ;;  %v6596_v12 = vpack.c.bf16 %v4389_v0, %v4385_v16  ;;  %v4425_v40 = vld [vmem:[#allocation51 + $0x298] sm:$0xff]  ;;  %v4424_v1 = vld [vmem:[#allocation51 + $0x290] sm:$0xff]  ;;  %v4447_v25 = vld [vmem:[#allocation51 + $0x348] sm:$0xff] }
0x1111   :  { %v4429_v4 = vld [vmem:[#allocation51 + $0x2b8] sm:$0xff] }
0x1112   :  { %6463 = vmatpush1.bf16.msra.mxu0 %v6462_v35  ;;  %v4374_v35 = vld [vmem:[#allocation51 + $0x100] sm:$0xff]  ;;  %6493 = vmatprep.subr.bf16.mxu1 %v6492_v17 }
0x1113   :  { %6465 = vmatprep.subr.bf16.mxu0 %v6464_v23  ;;  %v6494_v23 = vpack.c.bf16 %v4378_v19, %v4374_v35  ;;  %v4414_v17 = vld [vmem:[#allocation51 + $0x240] sm:$0xff]  ;;  %v4397_v19 = vld [vmem:[#allocation51 + $0x1b8] sm:$0xff] }
0x1114   :  { %v4418_v35 = vld [vmem:[#allocation51 + $0x260] sm:$0xff] }
0x1115   :  { %6495 = vmatpush1.bf16.msra.mxu1 %v6494_v23 }
0x1116   :  { %6467 = vmatpush1.bf16.msra.mxu0 %v6466_v36  ;;  %v4382_v36 = vld [vmem:[#allocation51 + $0x140] sm:$0xff]  ;;  %6497 = vmatprep.subr.bf16.mxu1 %v6496_v34  ;;  %v4405_v34 = vld [vmem:[#allocation51 + $0x1f8] sm:$0xff] }
0x1117   :  { %6469 = vmatprep.subr.bf16.mxu0 %v6468_v26  ;;  %v6498_v26 = vpack.c.bf16 %v4386_v38, %v4382_v36  ;;  %v6602_v36 = vpack.c.bf16 %v4396_v31, %v4392_v18  ;;  %v4400_v38 = vld [vmem:[#allocation51 + $0x1d0] sm:$0xff]  ;;  %v4458_v18 = vld [vmem:[#allocation51 + $0x3a0] sm:$0xff] }
0x1119   :  { %6499 = vmatpush1.bf16.msra.mxu1 %v6498_v26  ;;  %v4422_v26 = vld [vmem:[#allocation51 + $0x280] sm:$0xff] }
0x111a   :  { %6471 = vmatpush1.bf16.msra.mxu0 %v6470_v48  ;;  %v4372_v48 = vld [vmem:[#allocation51 + $0xf0] sm:$0xff]  ;;  %6501 = vmatprep.subr.bf16.mxu1 %v6500_v42  ;;  %v6606_v42 = vpack.c.bf16 %v4404_v56, %v4400_v38  ;;  %v4441_v38 = vld [vmem:[#allocation51 + $0x318] sm:$0xff] }
0x111b   :  { %6473 = vmatprep.subr.bf16.mxu0 %v6472_v52  ;;  %v4377_v52 = vld [vmem:[#allocation51 + $0x118] sm:$0xff]  ;;  %v6590_v58 = vpack.c.bf16 %v4372_v48, %v4368_v46  ;;  %v6518_v46 = vpack.c.bf16 %v4426_v41, %v4422_v26  ;;  %v4462_v26 = vld [vmem:[#allocation51 + $0x3c0] sm:$0xff] }
0x111c   :  { %v6592_v11 = vpack.c.bf16 %v4381_v53, %v4377_v52  ;;  %v4434_v52 = vld [vmem:[#allocation51 + $0x2e0] sm:$0xff]  ;;  %v4417_v53 = vld [vmem:[#allocation51 + $0x258] sm:$0xff] }
0x111d   :  { %6503 = vmatpush1.bf16.msra.mxu1 %v6502_v49  ;;  %v4412_v49 = vld [vmem:[#allocation51 + $0x230] sm:$0xff]  ;;  %v6522_v54 = vpack.c.bf16 %v4434_v52, %v4430_v51  ;;  %v4466_v41 = vld [vmem:[#allocation51 + $0x3e0] sm:$0xff]  ;;  %v4457_v52 = vld [vmem:[#allocation51 + $0x398] sm:$0xff] }
0x111e   :  { %6475 = vmatpush1.bf16.msra.mxu0 %v6474_v37  ;;  %v4407_v37 = vld [vmem:[#allocation51 + $0x208] sm:$0xff]  ;;  %6505 = vmatprep.subr.bf16.mxu1 %v6504_v13  ;;  %v4421_v13 = vld [vmem:[#allocation51 + $0x278] sm:$0xff]  ;;  %v6610_v55 = vpack.c.bf16 %v4412_v49, %v4408_v28  ;;  %v4444_v28 = vld [vmem:[#allocation51 + $0x330] sm:$0xff] }
0x111f   :  { %6577 = vmatprep.subr.bf16.mxu0 %v6576_v57  ;;  %v6508_v57 = vpack.c.bf16 %v4411_v61, %v4407_v37  ;;  %v6612_v37 = vpack.c.bf16 %v4421_v13, %v4417_v53  ;;  %v4420_v61 = vld [vmem:[#allocation51 + $0x270] sm:$0xff]  ;;  %v4461_v53 = vld [vmem:[#allocation51 + $0x3b8] sm:$0xff]  ;;  %v4471_v13 = vld [vmem:[#allocation51 + $0x408] sm:$0xff] }
0x1120   :  { %v4452_v51 = vld [vmem:[#allocation51 + $0x370] sm:$0xff] }
0x1121   :  { %4312 = vmatmul.mubr.f32.vlgmr.msra.gmra.mrb[22].mxu0 %v9199_v9  ;;  %v6586_v9 = vpack.c.bf16 %v4364_v33, %v4360_v7  ;;  %6507 = vmatpush1.bf16.msra.mxu1 %v6506_v60  ;;  %v4401_v33 = vld [vmem:[#allocation51 + $0x1d8] sm:$0xff]  ;;  %v4443_v60 = vld [vmem:[#allocation51 + $0x328] sm:$0xff] }
0x1122   :  { %6579 = vmatpush1.bf16.msra.mxu0 %v6578_v6  ;;  %v4384_v6 = vld [vmem:[#allocation51 + $0x150] sm:$0xff]  ;;  %6509 = vmatprep.subr.bf16.mxu1 %v6508_v57  ;;  %v6604_v39 = vpack.c.bf16 %v4405_v34, %v4401_v33  ;;  %v4442_v57 = vld [vmem:[#allocation51 + $0x320] sm:$0xff]  ;;  %v4463_v34 = vld [vmem:[#allocation51 + $0x3c8] sm:$0xff] }
0x1123   :  { %6581 = vmatprep.subr.bf16.mxu0 %v6580_v14  ;;  %v4393_v14 = vld [vmem:[#allocation51 + $0x198] sm:$0xff]  ;;  %v6598_v23 = vpack.c.bf16 %v4388_v8, %v4384_v6  ;;  %v6526_v16 = vpack.c.bf16 %v4442_v57, %v4438_v63  ;;  %v6616_v6 = vpack.c.bf16 %v4429_v4, %v4425_v40  ;;  %v4428_v8 = vld [vmem:[#allocation51 + $0x2b0] sm:$0xff] }
0x1124   :  { %v6600_v7 = vpack.c.bf16 %v4397_v19, %v4393_v14  ;;  %v4450_v14 = vld [vmem:[#allocation51 + $0x360] sm:$0xff]  ;;  %v4455_v19 = vld [vmem:[#allocation51 + $0x388] sm:$0xff]  ;;  %v4464_v40 = vld [vmem:[#allocation51 + $0x3d0] sm:$0xff] }
0x1125   :  { %6511 = vmatpush1.bf16.msra.mxu1 %v6510_v10  ;;  %v4468_v4 = vld [vmem:[#allocation51 + $0x3f0] sm:$0xff] }
0x1126   :  { %6583 = vmatpush1.bf16.msra.mxu0 %v6582_v24  ;;  %v6514_v24 = vpack.c.bf16 %v4418_v35, %v4414_v17  ;;  %6513 = vmatprep.subr.bf16.mxu1 %v6512_v15  ;;  %v4433_v15 = vld [vmem:[#allocation51 + $0x2d8] sm:$0xff] }
0x1127   :  { %6585 = vmatprep.subr.bf16.mxu0 %v6584_v32  ;;  %v6516_v32 = vpack.c.bf16 %v4427_v21, %v4423_v43  ;;  %v4437_v17 = vld [vmem:[#allocation51 + $0x2f8] sm:$0xff]  ;;  %v4459_v43 = vld [vmem:[#allocation51 + $0x3a8] sm:$0xff]  ;;  %v6618_v21 = vpack.c.bf16 %v4428_v8, %v4424_v1  ;;  %v6638_v1 = vpack.c.bf16 %v4468_v4, %v4464_v40 }
0x1128   :  { %v6620_v31 = vpack.c.bf16 %v4437_v17, %v4433_v15 }
0x1129   :  { %6515 = vmatpush1.bf16.msra.mxu1 %v6514_v24  ;;  %v6532_v24 = vpack.c.bf16 %v4459_v43, %v4455_v19 }
0x112a   :  { %6587 = vmatpush1.bf16.msra.mxu0 %v6586_v9  ;;  %6517 = vmatprep.subr.bf16.mxu1 %v6516_v32  ;;  %v4413_v9 = vld [vmem:[#allocation51 + $0x238] sm:$0xff]  ;;  %v4436_v32 = vld [vmem:[#allocation51 + $0x2f0] sm:$0xff] }
0x112b   :  { %6589 = vmatprep.subr.bf16.mxu0 %v6588_v47  ;;  %v4435_v47 = vld [vmem:[#allocation51 + $0x2e8] sm:$0xff]  ;;  %v6608_v48 = vpack.c.bf16 %v4413_v9, %v4409_v45  ;;  %v6538_v9 = vpack.c.bf16 %v4466_v41, %v4462_v26  ;;  %v4470_v26 = vld [vmem:[#allocation51 + $0x400] sm:$0xff] }
0x112c   :  { %v6520_v50 = vpack.c.bf16 %v4435_v47, %v4431_v44  ;;  %v4449_v44 = vld [vmem:[#allocation51 + $0x358] sm:$0xff]  ;;  %v4474_v41 = vld [vmem:[#allocation51 + $0x420] sm:$0xff] }
0x112d   :  { %6519 = vmatpush1.bf16.msra.mxu1 %v6518_v46  ;;  %v4453_v47 = vld [vmem:[#allocation51 + $0x378] sm:$0xff] }
0x112e   :  { %6591 = vmatpush1.bf16.msra.mxu0 %v6590_v58  ;;  %6521 = vmatprep.subr.bf16.mxu1 %v6520_v50  ;;  %v4416_v58 = vld [vmem:[#allocation51 + $0x250] sm:$0xff]  ;;  %v6628_v49 = vpack.c.bf16 %v4453_v47, %v4449_v44  ;;  %v4483_v47 = vld [vmem:[#allocation51 + $0x468] sm:$0xff] }
0x112f   :  { %6593 = vmatprep.subr.bf16.mxu0 %v6592_v11  ;;  %v6524_v11 = vpack.c.bf16 %v4443_v60, %v4439_v59  ;;  %v6614_v0 = vpack.c.bf16 %v4420_v61, %v4416_v58  ;;  %v4448_v50 = vld [vmem:[#allocation51 + $0x350] sm:$0xff]  ;;  %v6632_v59 = vpack.c.bf16 %v4461_v53, %v4457_v52  ;;  %v4465_v61 = vld [vmem:[#allocation51 + $0x3d8] sm:$0xff]  ;;  %v4478_v53 = vld [vmem:[#allocation51 + $0x440] sm:$0xff] }
0x1130   :  { %v4456_v60 = vld [vmem:[#allocation51 + $0x390] sm:$0xff] }
0x1131   :  { %6523 = vmatpush1.bf16.msra.mxu1 %v6522_v54  ;;  %v4475_v54 = vld [vmem:[#allocation51 + $0x428] sm:$0xff] }
0x1132   :  { %6595 = vmatpush1.bf16.msra.mxu0 %v6594_v5  ;;  %6525 = vmatprep.subr.bf16.mxu1 %v6524_v11  ;;  %v4451_v5 = vld [vmem:[#allocation51 + $0x368] sm:$0xff]  ;;  %v6540_v58 = vpack.c.bf16 %v4475_v54, %v4471_v13  ;;  %v4469_v11 = vld [vmem:[#allocation51 + $0x3f8] sm:$0xff]  ;;  %v4482_v13 = vld [vmem:[#allocation51 + $0x460] sm:$0xff] }
0x1133   :  { %6597 = vmatprep.subr.bf16.mxu0 %v6596_v12  ;;  %v6528_v10 = vpack.c.bf16 %v4451_v5, %v4447_v25  ;;  %v4446_v12 = vld [vmem:[#allocation51 + $0x340] sm:$0xff]  ;;  %v6636_v57 = vpack.c.bf16 %v4469_v11, %v4465_v61  ;;  %v4491_v11 = vld [vmem:[#allocation51 + $0x4a8] sm:$0xff]  ;;  %v6546_v40 = vpack.c.bf16 %v4482_v13, %v4478_v53  ;;  %v4512_v53 = vld [vmem:[#allocation51 + $0x550] sm:$0xff] }
0x1134   :  { %v6530_v35 = vpack.c.bf16 %v4450_v14, %v4446_v12  ;;  %v5351_v5 = vld [vmem:[#allocation42] ss:$0 sm:$0xff]  ;;  %v5356_v12 = vld [vmem:[#allocation46] ss:$0 sm:$0xff] }
0x1135   :  { %6527 = vmatpush1.bf16.msra.mxu1 %v6526_v16  ;;  %v4473_v16 = vld [vmem:[#allocation51 + $0x418] sm:$0xff]  ;;  %v4516_v13 = vld [vmem:[#allocation51 + $0x570] sm:$0xff] }
0x1136   :  { %6599 = vmatpush1.bf16.msra.mxu0 %v6598_v23  ;;  %6529 = vmatprep.subr.bf16.mxu1 %v6528_v10  ;;  %v4432_v23 = vld [vmem:[#allocation51 + $0x2d0] sm:$0xff] }
0x1137   :  { %6601 = vmatprep.subr.bf16.mxu0 %v6600_v7  ;;  %v4454_v7 = vld [vmem:[#allocation51 + $0x380] sm:$0xff]  ;;  %v6622_v45 = vpack.c.bf16 %v4436_v32, %v4432_v23 }
0x1138   :  { %v6534_v33 = vpack.c.bf16 %v4458_v18, %v4454_v7 }
0x1139   :  { %6531 = vmatpush1.bf16.msra.mxu1 %v6530_v35 }
0x113a   :  { %6603 = vmatpush1.bf16.msra.mxu0 %v6602_v36  ;;  %v4467_v36 = vld [vmem:[#allocation51 + $0x3e8] sm:$0xff]  ;;  %6533 = vmatprep.subr.bf16.mxu1 %v6532_v24  ;;  %v9260_v24 = vld [vmem:[#allocation49] sm:$0xf] }
0x113b   :  { %6605 = vmatprep.subr.bf16.mxu0 %v6604_v39  ;;  %v4445_v39 = vld [vmem:[#allocation51 + $0x338] sm:$0xff]  ;;  %v6536_v56 = vpack.c.bf16 %v4467_v36, %v4463_v34  ;;  %v4014_v7 = vrot.slane %v9260_v24, %v8521_v27  ;;  %v4018_v18 = vrot.slane %v9260_v24, %v8525_v29 }
0x113c   :  { %v6624_v46 = vpack.c.bf16 %v4445_v39, %v4441_v38 }
0x113d   :  { %6535 = vmatpush1.bf16.msra.mxu1 %v6534_v33 }
0x113e   :  { %6607 = vmatpush1.bf16.msra.mxu0 %v6606_v42  ;;  %v4440_v42 = vld [vmem:[#allocation51 + $0x310] sm:$0xff]  ;;  %6537 = vmatprep.subr.bf16.mxu1 %v6536_v56 }
0x113f   :  { %6609 = vmatprep.subr.bf16.mxu0 %v6608_v48  ;;  %v6626_v48 = vpack.c.bf16 %v4444_v28, %v4440_v42  ;;  %v4479_v42 = vld [vmem:[#allocation51 + $0x448] sm:$0xff] }
0x1141   :  { %6539 = vmatpush1.bf16.msra.mxu1 %v6538_v9  ;;  %v4472_v9 = vld [vmem:[#allocation51 + $0x410] sm:$0xff] }
0x1142   :  { %6611 = vmatpush1.bf16.msra.mxu0 %v6610_v55  ;;  %v6630_v55 = vpack.c.bf16 %v4452_v51, %v4448_v50  ;;  %6541 = vmatprep.subr.bf16.mxu1 %v6540_v58  ;;  %v6542_v51 = vpack.c.bf16 %v4474_v41, %v4470_v26 }
0x1143   :  { %6613 = vmatprep.subr.bf16.mxu0 %v6612_v37  ;;  %v4460_v37 = vld [vmem:[#allocation51 + $0x3b0] sm:$0xff] }
0x1144   :  { %v6634_v63 = vpack.c.bf16 %v4460_v37, %v4456_v60  ;;  %v4484_v60 = vld [vmem:[#allocation51 + $0x470] sm:$0xff]  ;;  %v4487_v37 = vld [vmem:[#allocation51 + $0x488] sm:$0xff] }
0x1146   :  { %6615 = vmatpush1.bf16.msra.mxu0 %v6614_v0  ;;  %v4477_v0 = vld [vmem:[#allocation51 + $0x438] sm:$0xff] }
0x1147   :  { %6617 = vmatprep.subr.bf16.mxu0 %v6616_v6  ;;  %v6640_v25 = vpack.c.bf16 %v4477_v0, %v4473_v16  ;;  %v4486_v16 = vld [vmem:[#allocation51 + $0x480] sm:$0xff] }
0x1148   :  { %v4490_v0 = vld [vmem:[#allocation51 + $0x4a0] sm:$0xff] }
0x114a   :  { %6619 = vmatpush1.bf16.msra.mxu0 %v6618_v21 }
0x114b   :  { %6621 = vmatprep.subr.bf16.mxu0 %v6620_v31 }
0x114e   :  { %6623 = vmatpush1.bf16.msra.mxu0 %v6622_v45 }
0x114f   :  { %6625 = vmatprep.subr.bf16.mxu0 %v6624_v46  ;;  %v4476_v46 = vld [vmem:[#allocation51 + $0x430] sm:$0xff] }
0x1150   :  { %v6642_v52 = vpack.c.bf16 %v4476_v46, %v4472_v9  ;;  %v4508_v9 = vld [vmem:[#allocation51 + $0x530] sm:$0xff]  ;;  %v4511_v46 = vld [vmem:[#allocation51 + $0x548] sm:$0xff] }
0x1152   :  { %6627 = vmatpush1.bf16.msra.mxu0 %v6626_v48  ;;  %v4481_v48 = vld [vmem:[#allocation51 + $0x458] sm:$0xff] }
0x1153   :  { %6629 = vmatprep.subr.bf16.mxu0 %v6628_v49  ;;  %v4485_v49 = vld [vmem:[#allocation51 + $0x478] sm:$0xff] }
0x1154   :  { %v6644_v58 = vpack.c.bf16 %v4485_v49, %v4481_v48  ;;  %v4510_v49 = vld [vmem:[#allocation51 + $0x540] sm:$0xff] }
0x1156   :  { %6631 = vmatpush1.bf16.msra.mxu0 %v6630_v55  ;;  %v6544_v55 = vpack.c.bf16 %v4483_v47, %v4479_v42  ;;  %v4515_v42 = vld [vmem:[#allocation51 + $0x568] sm:$0xff] }
0x1157   :  { %6633 = vmatprep.subr.bf16.mxu0 %v6632_v59  ;;  %v4480_v59 = vld [vmem:[#allocation51 + $0x450] sm:$0xff] }
0x1158   :  { %v6646_v4 = vpack.c.bf16 %v4484_v60, %v4480_v59  ;;  %v4525_v59 = vld [vmem:[#allocation51 + $0x5b8] sm:$0xff] }
0x115a   :  { %6635 = vmatpush1.bf16.msra.mxu0 %v6634_v63  ;;  %v4489_v63 = vld [vmem:[#allocation51 + $0x498] sm:$0xff] }
0x115b   :  { %6637 = vmatprep.subr.bf16.mxu0 %v6636_v57  ;;  %v4493_v57 = vld [vmem:[#allocation51 + $0x4b8] sm:$0xff] }
0x115e   :  { %v3328_v6 = vpop.f32.mrb[18].mxu0  ;;  %6639 = vmatpush1.bf16.msra.mxu0 %v6638_v1  ;;  %v6548_v1 = vpack.c.bf16 %v4491_v11, %v4487_v37  ;;  %v6662_v37 = vpack.c.bf16 %v4516_v13, %v4512_v53  ;;  %v4522_v11 = vld [vmem:[#allocation51 + $0x5a0] sm:$0xff] }
0x115f   :  { %v9256_v8 = vadd.f32 %v5351_v5, %v3328_v6  ;;  %v3330_v10 = vpop.f32.mrb[19].mxu0  ;;  %6641 = vmatprep.subr.bf16.mxu0 %v6640_v25  ;;  %v6648_v25 = vpack.c.bf16 %v4493_v57, %v4489_v63  ;;  %v4488_v5 = vld [vmem:[#allocation51 + $0x490] sm:$0xff]  ;;  %v4908_v53 = vld [vmem:[%s9481_s2 + $0x108] sm:$0xff]  ;;  %v4875_v13 = vld [vmem:[%s9481_s2] sm:$0xff] }
0x1160   :  { %v4492_v6 = vld [vmem:[#allocation51 + $0x4b0] sm:$0xff]  ;;  %v4495_v10 = vld [vmem:[#allocation51 + $0x4c8] sm:$0xff] }
0x1161   :  { %5111 = vst.msk [vmem:[#allocation57] sm:$0xff] %vm5110_vm7, %v9256_v8 }
0x1190   :  { %v3587_v14 = vpop.f32.mrb[20].mxu0 }
0x1191   :  { %v3588_v15 = vadd.f32 %v5356_v12, %v3587_v14  ;;  %v3589_v17 = vpop.f32.mrb[21].mxu0  ;;  %v4499_v12 = vld [vmem:[#allocation51 + $0x4e8] sm:$0xff]  ;;  %v4497_v14 = vld [vmem:[#allocation51 + $0x4d8] sm:$0xff] }
0x1192   :  { %v6550_v17 = vpack.c.bf16 %v4490_v0, %v4486_v16  ;;  %v4527_v16 = vld [vmem:[#allocation51 + $0x5c8] sm:$0xff] }
0x1193   :  { %v3591_v35 = vsub.f32 0.0, %v3588_v15  ;;  %v4501_v15 = vld [vmem:[#allocation51 + $0x4f8] sm:$0xff]  ;;  %v4531_v0 = vld [vmem:[#allocation51 + $0x5e8] sm:$0xff] }
0x1195   :  { %v3592_v19 = vmul.f32 1.442695, %v3591_v35  ;;  %v6650_v35 = vpack.c.bf16 %v4492_v6, %v4488_v5 }
0x1197   :  { %6952 = vpow2.f32 %v3592_v19  ;;  %v4494_v19 = vld [vmem:[#allocation51 + $0x4c0] sm:$0xff] }
0x11a1   :  { %v6953_v43 = vpop.eup %6952 }
0x11a2   :  { %v3594_v21 = vadd.f32 1.0, %v6953_v43  ;;  %v4498_v43 = vld [vmem:[#allocation51 + $0x4e0] sm:$0xff] }
0x11a4   :  { %6954 = vrcp.f32 %v3594_v21  ;;  %v6552_v21 = vpack.c.bf16 %v4499_v12, %v4495_v10  ;;  %v4526_v10 = vld [vmem:[#allocation51 + $0x5c0] sm:$0xff] }
0x11a5   :  { %v4530_v12 = vld [vmem:[#allocation51 + $0x5e0] sm:$0xff] }
0x11ae   :  { %v6955_v23 = vpop.eup %6954 }
0x11af   :  { %5118 = vst.msk [vmem:[#allocation60] sm:$0xff] %vm5117_vm8, %v6955_v23  ;;  %v6652_v23 = vpack.c.bf16 %v4501_v15, %v4497_v14  ;;  %v6568_v14 = vpack.c.bf16 %v4531_v0, %v4527_v16  ;;  %v4877_v16 = vld [vmem:[%s9481_s2 + $0x10] sm:$0xff]  ;;  %v4878_v0 = vld [vmem:[%s9481_s2 + $0x18] sm:$0xff] }
0x11ba   :  { %v4171_v31 = vpop.f32.mrb[28].mxu1 }
0x11bb   :  { %v6735_v32 = vadd.f32 %v4171_v31, %v4014_v7  ;;  %v4173_v33 = vpop.f32.mrb[29].mxu1  ;;  %v4496_v7 = vld [vmem:[#allocation51 + $0x4d0] sm:$0xff]  ;;  %v4503_v31 = vld [vmem:[#allocation51 + $0x508] sm:$0xff] }
0x11bc   :  { %v6736_v34 = vadd.f32 %v4173_v33, %v4018_v18  ;;  %v4500_v18 = vld [vmem:[#allocation51 + $0x4f0] sm:$0xff]  ;;  %v4505_v33 = vld [vmem:[#allocation51 + $0x518] sm:$0xff] }
0x11bd   :  { %v4322_v36 = vmin.f32 %v6735_v32, 0.0  ;;  %vm4318_vm10 = vcmp.gt.f32.partialorder %v6735_v32, 0.0 }
0x11be   :  { %v4323_v38 = vmin.f32 %v6736_v34, 0.0  ;;  %vm4319_vm9 = vcmp.gt.f32.partialorder %v6736_v34, 0.0 }
0x11bf   :  { %v4326_v39 = vmul.f32 1.442695, %v4322_v36  ;;  %v6554_v36 = vpack.c.bf16 %v4498_v43, %v4494_v19  ;;  %v4535_v19 = vld [vmem:[#allocation51 + $0x608] sm:$0xff] }
0x11c0   :  { %v4328_v56 = vmul.f32 1.442695, %v4323_v38  ;;  %v6654_v38 = vpack.c.bf16 %v4500_v18, %v4496_v7  ;;  %v4539_v43 = vld [vmem:[#allocation51 + $0x628] sm:$0xff]  ;;  %v6570_v7 = vpack.c.bf16 %v4530_v12, %v4526_v10  ;;  %v6682_v10 = vpack.c.bf16 %v4878_v0, %v4877_v16  ;;  %v4911_v12 = vld [vmem:[%s9481_s2 + $0x120] sm:$0xff] }
0x11c1   :  { %6956 = vpow2.f32 %v4326_v39  ;;  %v4502_v39 = vld [vmem:[#allocation51 + $0x500] sm:$0xff]  ;;  %v4889_v0 = vld [vmem:[%s9481_s2 + $0x70] sm:$0xff] }
0x11c2   :  { %6958 = vpow2.f32 %v4328_v56  ;;  %v4506_v56 = vld [vmem:[#allocation51 + $0x520] sm:$0xff] }
0x11c3   :  { %v6558_v47 = vpack.c.bf16 %v4506_v56, %v4502_v39  ;;  %v4891_v39 = vld [vmem:[%s9481_s2 + $0x80] sm:$0xff]  ;;  %v4892_v56 = vld [vmem:[%s9481_s2 + $0x88] sm:$0xff] }
0x11cb   :  { %v6957_v45 = vpop.eup %6956 }
0x11cc   :  { %v6959_v28 = vpop.eup %6958  ;;  %v5370_v44 = vadd.f32 -1.0, %v6957_v45  ;;  %v4504_v45 = vld [vmem:[#allocation51 + $0x510] sm:$0xff] }
0x11cd   :  { %v5371_v50 = vadd.f32 -1.0, %v6959_v28  ;;  %v4513_v28 = vld [vmem:[#allocation51 + $0x558] sm:$0xff]  ;;  %v6658_v48 = vpack.c.bf16 %v4508_v9, %v4504_v45  ;;  %v6676_v45 = vpack.c.bf16 %v4892_v56, %v4891_v39  ;;  %v4022_v9 = vrot.slane %v9260_v24, %v8706_v20  ;;  %v4916_v39 = vld [vmem:[%s9481_s2 + $0x148] sm:$0xff] }
0x11ce   :  { %v4338_v61 = vsel %vm4318_vm10, %v6735_v32, %v5370_v44  ;;  %v4507_v32 = vld [vmem:[#allocation51 + $0x528] sm:$0xff]  ;;  %v4517_v44 = vld [vmem:[#allocation51 + $0x578] sm:$0xff] }
0x11cf   :  { %v4339_v54 = vsel %vm4319_vm9, %v6736_v34, %v5371_v50  ;;  %v4509_v34 = vld [vmem:[#allocation51 + $0x538] sm:$0xff]  ;;  %v6556_v26 = vpack.c.bf16 %v4507_v32, %v4503_v31  ;;  %v4514_v50 = vld [vmem:[#allocation51 + $0x560] sm:$0xff]  ;;  %v6572_v32 = vpack.c.bf16 %v4539_v43, %v4535_v19  ;;  %v4913_v43 = vld [vmem:[%s9481_s2 + $0x130] sm:$0xff] }
0x11d0   :  { %4631 = vmatprep.mubr.f32.mxu1 %v4339_v54  ;;  %4773 = vmatprep.mubr.f32.mxu0 %v4339_v54  ;;  %v6656_v41 = vpack.c.bf16 %v4509_v34, %v4505_v33  ;;  %v4519_v54 = vld [vmem:[#allocation51 + $0x588] sm:$0xff]  ;;  %v6562_v60 = vpack.c.bf16 %v4514_v50, %v4510_v49  ;;  %v4534_v31 = vld [vmem:[#allocation51 + $0x600] sm:$0xff] }
0x11d1   :  { %4632 = vmatmul.mubr.f32.vlgmr.msra.gmra.mrb[30].mxu1 %v4338_v61  ;;  %4774 = vmatmul.mubr.f32.vlgmr.msra.gmra.mrb[24].mxu0 %v4338_v61  ;;  %v4518_v61 = vld [vmem:[#allocation51 + $0x580] sm:$0xff] }
0x11d2   :  { %6543 = vmatpush1.bf16.msra.mxu1 %v6542_v51  ;;  %6643 = vmatpush1.bf16.msra.mxu0 %v6642_v52  ;;  %v6560_v51 = vpack.c.bf16 %v4515_v42, %v4511_v46  ;;  %v6660_v52 = vpack.c.bf16 %v4517_v44, %v4513_v28  ;;  %v6566_v5 = vpack.c.bf16 %v4522_v11, %v4518_v61  ;;  %v4538_v34 = vld [vmem:[#allocation51 + $0x620] sm:$0xff] }
0x11d3   :  { %6545 = vmatprep.subr.bf16.mxu1 %v6544_v55  ;;  %6645 = vmatprep.subr.bf16.mxu0 %v6644_v58  ;;  %v4523_v55 = vld [vmem:[#allocation51 + $0x5a8] sm:$0xff]  ;;  %v4521_v58 = vld [vmem:[#allocation51 + $0x598] sm:$0xff]  ;;  %v4026_v46 = vrot.slane %v9260_v24, %v8710_v22 }
0x11d4   :  { %v6564_v63 = vpack.c.bf16 %v4523_v55, %v4519_v54  ;;  %v6664_v57 = vpack.c.bf16 %v4525_v59, %v4521_v58  ;;  %v4907_v24 = vld [vmem:[%s9481_s2 + $0x100] sm:$0xff]  ;;  %v4876_v54 = vld [vmem:[%s9481_s2 + $0x8] sm:$0xff]  ;;  %v4893_v59 = vld [vmem:[%s9481_s2 + $0x90] sm:$0xff] }
0x11d5   :  { %v6709_v61 = vpack.c.bf16 %v4908_v53, %v4907_v24  ;;  %v6678_v11 = vpack.c.bf16 %v4876_v54, %v4875_v13  ;;  %v4880_v19 = vld [vmem:[%s9481_s2 + $0x28] sm:$0xff]  ;;  %v4886_v24 = vld [vmem:[%s9481_s2 + $0x58] sm:$0xff] }
0x11d6   :  { %6547 = vmatpush1.bf16.msra.mxu1 %v6546_v40  ;;  %6647 = vmatpush1.bf16.msra.mxu0 %v6646_v4  ;;  %v4520_v40 = vld [vmem:[#allocation51 + $0x590] sm:$0xff]  ;;  %v4920_v53 = vld [vmem:[%s9481_s2 + $0x168] sm:$0xff] }
0x11d7   :  { %6549 = vmatprep.subr.bf16.mxu1 %v6548_v1  ;;  %6649 = vmatprep.subr.bf16.mxu0 %v6648_v25  ;;  %v4524_v4 = vld [vmem:[#allocation51 + $0x5b0] sm:$0xff]  ;;  %v4529_v1 = vld [vmem:[#allocation51 + $0x5d8] sm:$0xff] }
0x11d8   :  { %v4533_v25 = vld [vmem:[#allocation51 + $0x5f8] sm:$0xff]  ;;  %v6666_v6 = vpack.c.bf16 %v4524_v4, %v4520_v40 }
0x11d9   :  { %v6668_v15 = vpack.c.bf16 %v4533_v25, %v4529_v1  ;;  %v4910_v40 = vld [vmem:[%s9481_s2 + $0x118] sm:$0xff]  ;;  %v4895_v25 = vld [vmem:[%s9481_s2 + $0xa0] sm:$0xff] }
0x11da   :  { %6551 = vmatpush1.bf16.msra.mxu1 %v6550_v17  ;;  %6651 = vmatpush1.bf16.msra.mxu0 %v6650_v35  ;;  %v4528_v17 = vld [vmem:[#allocation51 + $0x5d0] sm:$0xff] }
0x11db   :  { %6553 = vmatprep.subr.bf16.mxu1 %v6552_v21  ;;  %6653 = vmatprep.subr.bf16.mxu0 %v6652_v23  ;;  %v4532_v35 = vld [vmem:[#allocation51 + $0x5f0] sm:$0xff]  ;;  %v4537_v21 = vld [vmem:[#allocation51 + $0x618] sm:$0xff] }
0x11dc   :  { %v4541_v23 = vld [vmem:[#allocation51 + $0x638] sm:$0xff]  ;;  %v6670_v18 = vpack.c.bf16 %v4532_v35, %v4528_v17 }
0x11dd   :  { %v6672_v33 = vpack.c.bf16 %v4541_v23, %v4537_v21  ;;  %v4879_v35 = vld [vmem:[%s9481_s2 + $0x20] sm:$0xff]  ;;  %v4914_v23 = vld [vmem:[%s9481_s2 + $0x138] sm:$0xff] }
0x11de   :  { %6555 = vmatpush1.bf16.msra.mxu1 %v6554_v36  ;;  %6655 = vmatpush1.bf16.msra.mxu0 %v6654_v38  ;;  %v4536_v36 = vld [vmem:[#allocation51 + $0x610] sm:$0xff]  ;;  %v6686_v21 = vpack.c.bf16 %v4880_v19, %v4879_v35 }
0x11df   :  { %6557 = vmatprep.subr.bf16.mxu1 %v6556_v26  ;;  %6657 = vmatprep.subr.bf16.mxu0 %v6656_v41  ;;  %v4540_v38 = vld [vmem:[#allocation51 + $0x630] sm:$0xff]  ;;  %v6574_v26 = vpack.c.bf16 %v4538_v34, %v4534_v31 }
0x11e0   :  { %v6674_v41 = vpack.c.bf16 %v4540_v38, %v4536_v36  ;;  %v4898_v31 = vld [vmem:[%s9481_s2 + $0xb8] sm:$0xff]  ;;  %v4915_v36 = vld [vmem:[%s9481_s2 + $0x140] sm:$0xff] }
0x11e1   :  { %v4882_v34 = vld [vmem:[%s9481_s2 + $0x38] sm:$0xff]  ;;  %v6721_v56 = vpack.c.bf16 %v4916_v39, %v4915_v36 }
0x11e2   :  { %6559 = vmatpush1.bf16.msra.mxu1 %v6558_v47  ;;  %6659 = vmatpush1.bf16.msra.mxu0 %v6658_v48 }
0x11e3   :  { %6561 = vmatprep.subr.bf16.mxu1 %v6560_v51  ;;  %6661 = vmatprep.subr.bf16.mxu0 %v6660_v52 }
0x11e6   :  { %6563 = vmatpush1.bf16.msra.mxu1 %v6562_v60  ;;  %6663 = vmatpush1.bf16.msra.mxu0 %v6662_v37  ;;  %v4894_v60 = vld [vmem:[%s9481_s2 + $0x98] sm:$0xff] }
0x11e7   :  { %6565 = vmatprep.subr.bf16.mxu1 %v6564_v63  ;;  %6665 = vmatprep.subr.bf16.mxu0 %v6664_v57  ;;  %v4909_v63 = vld [vmem:[%s9481_s2 + $0x110] sm:$0xff]  ;;  %v6680_v4 = vpack.c.bf16 %v4894_v60, %v4893_v59  ;;  %v4887_v59 = vld [vmem:[%s9481_s2 + $0x60] sm:$0xff] }
0x11ea   :  { %6567 = vmatpush1.bf16.msra.mxu1 %v6566_v5  ;;  %6667 = vmatpush1.bf16.msra.mxu0 %v6666_v6  ;;  %v4896_v5 = vld [vmem:[%s9481_s2 + $0xa8] sm:$0xff]  ;;  %v6712_v6 = vpack.c.bf16 %v4910_v40, %v4909_v63  ;;  %v4906_v40 = vld [vmem:[%s9481_s2 + $0xf8] sm:$0xff] }
0x11eb   :  { %6569 = vmatprep.subr.bf16.mxu1 %v6568_v14  ;;  %6669 = vmatprep.subr.bf16.mxu0 %v6668_v15  ;;  %v4912_v14 = vld [vmem:[%s9481_s2 + $0x128] sm:$0xff]  ;;  %v6684_v15 = vpack.c.bf16 %v4896_v5, %v4895_v25  ;;  %v4923_v25 = vld [vmem:[%s9481_s2 + $0x180] sm:$0xff] }
0x11ec   :  { %v6715_v17 = vpack.c.bf16 %v4912_v14, %v4911_v12  ;;  %v4924_v5 = vld [vmem:[%s9481_s2 + $0x188] sm:$0xff]  ;;  %v4542_v12 = vld [vmem:[#allocation52] sm:$0xf] }
0x11ed   :  { %v4547_v14 = vrot.slane %v4542_v12, %v8521_v27  ;;  %v4559_v35 = vrot.slane %v4542_v12, %v8710_v22 }
0x11ee   :  { %6571 = vmatpush1.bf16.msra.mxu1 %v6570_v7  ;;  %6671 = vmatpush1.bf16.msra.mxu0 %v6670_v18  ;;  %v6718_v7 = vpack.c.bf16 %v4914_v23, %v4913_v43  ;;  %v4897_v18 = vld [vmem:[%s9481_s2 + $0xb0] sm:$0xff] }
0x11ef   :  { %6573 = vmatprep.subr.bf16.mxu1 %v6572_v32  ;;  %6673 = vmatprep.subr.bf16.mxu0 %v6672_v33  ;;  %v6688_v32 = vpack.c.bf16 %v4898_v31, %v4897_v18  ;;  %v4881_v33 = vld [vmem:[%s9481_s2 + $0x30] sm:$0xff] }
0x11f0   :  { %v6690_v38 = vpack.c.bf16 %v4882_v34, %v4881_v33 }
0x11f2   :  { %6575 = vmatpush1.bf16.msra.mxu1 %v6574_v26  ;;  %6675 = vmatpush1.bf16.msra.mxu0 %v6674_v41  ;;  %v4899_v26 = vld [vmem:[%s9481_s2 + $0xc0] sm:$0xff]  ;;  %v4900_v41 = vld [vmem:[%s9481_s2 + $0xc8] sm:$0xff] }
0x11f3   :  { %6708 = vmatprep.subr.bf16.mxu0 %v7932_v3  ;;  %6677 = vmatprep.subr.bf16.mxu1 %v6676_v45  ;;  %v6692_v45 = vpack.c.bf16 %v4900_v41, %v4899_v26 }
0x11f4   :  { %v4313_v42 = vpop.f32.mrb[22].mxu0 }
0x11f5   :  { %v6737_v28 = vadd.f32 %v4313_v42, %v4022_v9  ;;  %v4315_v44 = vpop.f32.mrb[23].mxu0  ;;  %v4883_v9 = vld [vmem:[%s9481_s2 + $0x40] sm:$0xff]  ;;  %v4917_v42 = vld [vmem:[%s9481_s2 + $0x150] sm:$0xff] }
0x11f6   :  { %v6738_v47 = vadd.f32 %v4315_v44, %v4026_v46  ;;  %v4884_v46 = vld [vmem:[%s9481_s2 + $0x48] sm:$0xff]  ;;  %v4918_v44 = vld [vmem:[%s9481_s2 + $0x158] sm:$0xff] }
0x11f7   :  { %v4324_v48 = vmin.f32 %v6737_v28, 0.0  ;;  %vm4320_vm13 = vcmp.gt.f32.partialorder %v6737_v28, 0.0 }
0x11f8   :  { %v4325_v49 = vmin.f32 %v6738_v47, 0.0  ;;  %vm4321_vm12 = vcmp.gt.f32.partialorder %v6738_v47, 0.0 }
0x11f9   :  { %v4330_v50 = vmul.f32 1.442695, %v4324_v48  ;;  %v4901_v48 = vld [vmem:[%s9481_s2 + $0xd0] sm:$0xff] }
0x11fa   :  { %v4332_v51 = vmul.f32 1.442695, %v4325_v49  ;;  %v4902_v49 = vld [vmem:[%s9481_s2 + $0xd8] sm:$0xff] }
0x11fb   :  { %6960 = vpow2.f32 %v4330_v50  ;;  %v4885_v50 = vld [vmem:[%s9481_s2 + $0x50] sm:$0xff] }
0x11fc   :  { %6962 = vpow2.f32 %v4332_v51  ;;  %v6696_v51 = vpack.c.bf16 %v4902_v49, %v4901_v48  ;;  %v6698_v13 = vpack.c.bf16 %v4886_v24, %v4885_v50  ;;  %v5380_v50 = vld [vmem:[%s9482_s21] ss:$0 sm:$0xff] }
0x1205   :  { %v6961_v52 = vpop.eup %6960 }
0x1206   :  { %v6963_v55 = vpop.eup %6962  ;;  %v5372_v58 = vadd.f32 -1.0, %v6961_v52  ;;  %v4919_v52 = vld [vmem:[%s9481_s2 + $0x160] sm:$0xff] }
0x1207   :  { %v5373_v37 = vadd.f32 -1.0, %v6963_v55  ;;  %v6727_v54 = vpack.c.bf16 %v4920_v53, %v4919_v52  ;;  %v4903_v55 = vld [vmem:[%s9481_s2 + $0xe0] sm:$0xff] }
0x1208   :  { %v4340_v1 = vsel %vm4320_vm13, %v6737_v28, %v5372_v58  ;;  %v6694_v28 = vpack.c.bf16 %v4884_v46, %v4883_v9  ;;  %v4904_v58 = vld [vmem:[%s9481_s2 + $0xe8] sm:$0xff] }
0x1209   :  { %v4341_v57 = vsel %vm4321_vm12, %v6738_v47, %v5373_v37  ;;  %v6724_v47 = vpack.c.bf16 %v4918_v44, %v4917_v42  ;;  %v6700_v60 = vpack.c.bf16 %v4904_v58, %v4903_v55  ;;  %v4888_v37 = vld [vmem:[%s9481_s2 + $0x68] sm:$0xff]  ;;  %v3333_v58 = vand.u32 2147483647, %v9256_v8 }
0x120a   :  { %5374 = vmatprep.mubr.msk.f32.mxu1 %vm1458_vm14, %v4341_v57  ;;  %5375 = vmatprep.mubr.msk.f32.mxu0 %vm1458_vm14, %v4341_v57  ;;  %v6702_v63 = vpack.c.bf16 %v4888_v37, %v4887_v59  ;;  %v4905_v57 = vld [vmem:[%s9481_s2 + $0xf0] sm:$0xff] }
0x120b   :  { %4703 = vmatmul.mubr.f32.vlgmr.msra.gmra.mrb[30].mxu1 %v4340_v1  ;;  %4845 = vmatmul.mubr.f32.vlgmr.msra.gmra.mrb[24].mxu0 %v4340_v1  ;;  %v6704_v16 = vpack.c.bf16 %v4906_v40, %v4905_v57  ;;  %v4890_v1 = vld [vmem:[%s9481_s2 + $0x78] sm:$0xff]  ;;  %v3334_v59 = vsub.f32 0.0, %v3333_v58 }
0x120c   :  { %6710 = vmatpush1.bf16.msra.mxu0 %v6709_v61  ;;  %6679 = vmatpush3.bf16.msra.mxu1 %v6678_v11  ;;  %v4921_v61 = vld [vmem:[%s9481_s2 + $0x170] sm:$0xff]  ;;  %v4922_v11 = vld [vmem:[%s9481_s2 + $0x178] sm:$0xff] }
0x120d   :  { %6711 = vmatprep.subr.bf16.mxu0 %v7932_v3  ;;  %6681 = vmatprep.subr.bf16.mxu1 %v6680_v4  ;;  %v6730_v4 = vpack.c.bf16 %v4922_v11, %v4921_v61 }
0x1210   :  { %6713 = vmatpush1.bf16.msra.mxu0 %v6712_v6  ;;  %6683 = vmatpush3.bf16.msra.mxu1 %v6682_v10  ;;  %v6706_v6 = vpack.c.bf16 %v4890_v1, %v4889_v0  ;;  %v6733_v10 = vpack.c.bf16 %v4924_v5, %v4923_v25 }
0x1211   :  { %6714 = vmatprep.subr.bf16.mxu0 %v7932_v3  ;;  %6685 = vmatprep.subr.bf16.mxu1 %v6684_v15  ;;  %v4555_v15 = vrot.slane %v4542_v12, %v8706_v20 }
0x1214   :  { %6716 = vmatpush1.bf16.msra.mxu0 %v6715_v17  ;;  %6687 = vmatpush3.bf16.msra.mxu1 %v6686_v21  ;;  %v4551_v17 = vrot.slane %v4542_v12, %v8525_v29 }
0x1215   :  { %6717 = vmatprep.subr.bf16.mxu0 %v7932_v3  ;;  %6689 = vmatprep.subr.bf16.mxu1 %v6688_v32 }
0x1218   :  { %6719 = vmatpush1.bf16.msra.mxu0 %v6718_v7  ;;  %6691 = vmatpush3.bf16.msra.mxu1 %v6690_v38 }
0x1219   :  { %6720 = vmatprep.subr.bf16.mxu0 %v7932_v3  ;;  %6693 = vmatprep.subr.bf16.mxu1 %v6692_v45 }
0x121c   :  { %6722 = vmatpush1.bf16.msra.mxu0 %v6721_v56  ;;  %6695 = vmatpush3.bf16.msra.mxu1 %v6694_v28 }
0x121d   :  { %6723 = vmatprep.subr.bf16.mxu0 %v7932_v3  ;;  %6697 = vmatprep.subr.bf16.mxu1 %v6696_v51 }
0x1220   :  { %6725 = vmatpush1.bf16.msra.mxu0 %v6724_v47  ;;  %6699 = vmatpush3.bf16.msra.mxu1 %v6698_v13 }
0x1221   :  { %6726 = vmatprep.subr.bf16.mxu0 %v7932_v3  ;;  %6701 = vmatprep.subr.bf16.mxu1 %v6700_v60  ;;  %v3335_v60 = vmul.f32 1.442695, %v3334_v59 }
0x1224   :  { %6728 = vmatpush1.bf16.msra.mxu0 %v6727_v54  ;;  %6703 = vmatpush3.bf16.msra.mxu1 %v6702_v63  ;;  %v5079_v54 = vpop.permute.xlu0 %5078 }
0x1225   :  { %6729 = vmatprep.subr.bf16.mxu0 %v7932_v3  ;;  %6705 = vmatprep.subr.bf16.mxu1 %v6704_v16 }
0x1228   :  { %6731 = vmatpush1.bf16.msra.mxu0 %v6730_v4  ;;  %6707 = vmatpush3.bf16.msra.mxu1 %v6706_v6 }
0x1229   :  { %6732 = vmatprep.subr.bf16.mxu0 %v7932_v3 }
0x122c   :  { %6734 = vmatpush1.bf16.msra.mxu0 %v6733_v10 }
0x12de   :  { %v4704_v19 = vpop.f32.mrb[30].mxu1  ;;  %v4846_v43 = vpop.f32.mrb[24].mxu0 }
0x12df   :  { %v6739_v21 = vadd.f32 %v4704_v19, %v4547_v14  ;;  %v6741_v23 = vadd.f32 %v4846_v43, %v4555_v15  ;;  %v4706_v7 = vpop.f32.mrb[31].mxu1  ;;  %v4848_v18 = vpop.f32.mrb[25].mxu0 }
0x12e0   :  { %v6740_v31 = vadd.f32 %v4706_v7, %v4551_v17  ;;  %v6742_v32 = vadd.f32 %v4848_v18, %v4559_v35 }
0x12e1   :  { %v4855_v3 = vmin.f32 %v6739_v21, 0.0  ;;  %v4857_v33 = vmin.f32 %v6741_v23, 0.0  ;;  %vm4851_vm1 = vcmp.gt.f32.partialorder %v6739_v21, 0.0  ;;  %vm4853_vm4 = vcmp.gt.f32.partialorder %v6741_v23, 0.0 }
0x12e2   :  { %v4856_v34 = vmin.f32 %v6740_v31, 0.0  ;;  %v4858_v36 = vmin.f32 %v6742_v32, 0.0  ;;  %vm4852_vm15 = vcmp.gt.f32.partialorder %v6740_v31, 0.0  ;;  %vm4854_vm2 = vcmp.gt.f32.partialorder %v6742_v32, 0.0 }
0x12e3   :  { %v4859_v38 = vmul.f32 1.442695, %v4855_v3  ;;  %v4863_v27 = vmul.f32 1.442695, %v4857_v33 }
0x12e4   :  { %v4861_v39 = vmul.f32 1.442695, %v4856_v34  ;;  %v4865_v20 = vmul.f32 1.442695, %v4858_v36 }
0x12e5   :  { %6964 = vpow2.f32 %v4859_v38 }
0x12e6   :  { %6966 = vpow2.f32 %v4863_v27 }
0x12e7   :  { %6968 = vpow2.f32 %v4861_v39 }
0x12e8   :  { %6970 = vpow2.f32 %v4865_v20 }
0x12e9   :  { %6972 = vpow2.f32 %v3335_v60 }
0x12ef   :  { %v6965_v29 = vpop.eup %6964 }
0x12f0   :  { %v6967_v22 = vpop.eup %6966  ;;  %v5376_v26 = vadd.f32 -1.0, %v6965_v29 }
0x12f1   :  { %v6969_v56 = vpop.eup %6968  ;;  %v5378_v9 = vadd.f32 -1.0, %v6967_v22 }
0x12f2   :  { %v6971_v41 = vpop.eup %6970  ;;  %v5377_v45 = vadd.f32 -1.0, %v6969_v56  ;;  %v4871_v44 = vsel %vm4851_vm1, %v6739_v21, %v5376_v26 }
0x12f3   :  { %v5379_v46 = vadd.f32 -1.0, %v6971_v41  ;;  %v4873_v47 = vsel %vm4853_vm4, %v6741_v23, %v5378_v9  ;;  %v6973_v4 = vpop.eup %6972 }
0x12f4   :  { %v4872_v42 = vsel %vm4852_vm15, %v6740_v31, %v5377_v45  ;;  %v3337_v16 = vadd.f32 1.0, %v6973_v4 }
0x12f5   :  { %4999 = vmatprep.mubr.f32.mxu1 %v4872_v42  ;;  %v4874_v28 = vsel %vm4854_vm2, %v6742_v32, %v5379_v46 }
0x12f6   :  { %5381 = vmatprep.mubr.msk.f32.mxu0 %vm1458_vm14, %v4874_v28  ;;  %5000 = vmatmul.mubr.f32.vlgmr.msra.gmra.mrb[32].mxu1 %v4871_v44 }
0x12f7   :  { %5070 = vmatmul.mubr.f32.vlgmr.msra.gmra.mrb[26].mxu0 %v4873_v47 }
0x13c9   :  { %v5485_v48 = vpop.f32.mrb[32].mxu1 }
0x13ca   :  { %v5071_v49 = vpop.f32.mrb[26].mxu0  ;;  %v5486_v51 = vpop.f32.mrb[33].mxu1 }
0x13cb   :  { %v5487_v24 = vadd.f32 %v5486_v51, %v5485_v48  ;;  %v5073_v52 = vpop.f32.mrb[27].mxu0 }
0x13cd   :  { %v5002_v53 = vadd.f32 %v5487_v24, %v5380_v50 }
0x13cf   :  { %v5072_v13 = vadd.f32 %v5071_v49, %v5002_v53 }
0x13d1   :  { %v5081_v55 = vmul.f32 %v5079_v54, %v5072_v13  ;;  %v5075_v37 = vmul.f32 %v8886_v30, %v5072_v13  ;;  %v3332_v30 = vmax.f32 %v9256_v8, 0.0 }
0x13d3   :  { %5083 = vrot.lane.b32.xlu1 %v5081_v55, %s7935_s23 }
0x13d7   :  { %5105 = vrot.lane.b32.xlu1 %v8816_v62, %s7941_s7 }
0x1445   :  { %v5084_v61 = vpop.permute.xlu1 %5083 }
0x1446   :  { %v5086_v11 = vadd.f32 %v5084_v61, %v5075_v37 }
0x1448   :  { %v5087_v63 = vsub.f32 0.0, %v5086_v11 }
0x1449   :  { %v5106_v57 = vpop.permute.xlu1 %5105 }
0x144a   :  { %v5088_v40 = vmul.f32 1.442695, %v5087_v63  ;;  %5108 = vst.msk [vmem:[#allocation55] sm:$0xff] %vm2612_vm0, %v5106_v57 }
0x144c   :  { %6974 = vpow2.f32 %v5088_v40 }
0x144d   :  { %6976 = vlog2.f32 %v3337_v16 }
0x1456   :  { %v6975_v62 = vpop.eup %6974 }
0x1457   :  { %v5090_v0 = vadd.f32 1.0, %v6975_v62  ;;  %v6977_v1 = vpop.eup %6976 }
0x1458   :  { %v3339_v25 = vmul.f32 0.6931472, %v6977_v1 }
0x1459   :  { %6978 = vrcp.f32 %v5090_v0 }
0x145a   :  { %v3340_v6 = vadd.f32 %v3339_v25, %v3332_v30 }
0x1463   :  { %v6979_v5 = vpop.eup %6978 }
0x1464   :  { %5094 = vrot.lane.b32.xlu0 %v6979_v5, %s7942_s24  ;;  %5119 = vst.msk [vmem:[%s8236_s29] sm:$0xff] %vm5100_vm11, %v6979_v5 }
0x1468   :  { %5113 = vrot.lane.b32.xlu0 %v3340_v6, %s7943_s0 }
0x1469   :  { %7698 = shalt.err (!%p7695_p8)
}
0x146a   :  { %s9483_s19 = sld [smem:[#allocation117_spill]] }
0x1470   :  { %s7699_s25 = scalar_lea.hbm %s9483_s19, 128 }
0x1471   :  { %p7700_p9 = scmp.ne.s32.totalorder %s9483_s19, %s7699_s25  ;;  %p7703_p10 = scmp.lt.u32.totalorder %s7699_s25, %s9483_s19 }
0x1473   :  { %p7705_p11 = pnand %p7703_p10, %p7700_p9 }
0x1475   :  { %7708 = shalt.err (!%p7705_p11)
}
0x1476   :  { %5148 = dma.vmem_to_hbm [thread:$0]  %s5146_s10, 128, %s9483_s19, [#allocation56]  }
0x1477   :  { %s7945_s29 = smov [#allocation54]   ;;  %s7946_s22 = smov [#allocation57]  }
0x1478   :  { %s5135_s26 = sshll.u32 %s7945_s29, 4  ;;  %s5157_s6 = sshll.u32 %s7946_s22, 4  ;;  %s5136_s26 = int_to_ptr.vmem [resolvable:$true] %s5135_s26  ;;  %s5158_s6 = int_to_ptr.vmem [resolvable:$true] %s5157_s6 }
0x1479   :  { %s7709_s30 = scalar_lea.vmem %s5136_s26, 128  ;;  %p7714_p13 = scmp.lt.s32.totalorder %s5136_s26, %s5136_s26 }
0x147a   :  { %p7710_p12 = scmp.ne.s32.totalorder %s5136_s26, %s7709_s30  ;;  %p7715_p0 = scmp.lt.s32.totalorder %s7709_s30, %s7709_s30 }
0x147c   :  { %p7716_p1 = por %p7715_p0, %p7714_p13 }
0x147e   :  { %p7717_p2 = pnand %p7716_p1, %p7710_p12 }
0x1480   :  { %7720 = shalt.err (!%p7717_p2)
}
0x1481   :  { %s9484_s23 = sld [smem:[#allocation116_spill]] }
0x1487   :  { %s7721_s16 = scalar_lea.hbm %s9484_s23, 128 }
0x1488   :  { %p7722_p3 = scmp.ne.s32.totalorder %s9484_s23, %s7721_s16  ;;  %p7725_p4 = scmp.lt.u32.totalorder %s7721_s16, %s9484_s23 }
0x148a   :  { %p7727_p5 = pnand %p7725_p4, %p7722_p3 }
0x148c   :  { %7730 = shalt.err (!%p7727_p5)
}
0x148d   :  { %5138 = dma.vmem_to_hbm [thread:$0]  %s5136_s26, 128, %s9484_s23, [#allocation6]  }
0x148e   :  { %s7731_s20 = scalar_lea.vmem %s5158_s6, 128  ;;  %p7736_p7 = scmp.lt.s32.totalorder %s5158_s6, %s5158_s6 }
0x148f   :  { %p7732_p6 = scmp.ne.s32.totalorder %s5158_s6, %s7731_s20  ;;  %p7737_p8 = scmp.lt.s32.totalorder %s7731_s20, %s7731_s20 }
0x1491   :  { %p7738_p9 = por %p7737_p8, %p7736_p7 }
0x1493   :  { %p7739_p10 = pnand %p7738_p9, %p7732_p6 }
0x1495   :  { %7742 = shalt.err (!%p7739_p10)
}
0x1496   :  { %s9485_s18 = sld [smem:[#allocation119_spill]] }
0x149c   :  { %s7743_s9 = scalar_lea.hbm %s9485_s18, 128 }
0x149d   :  { %p7744_p11 = scmp.ne.s32.totalorder %s9485_s18, %s7743_s9  ;;  %p7747_p12 = scmp.lt.u32.totalorder %s7743_s9, %s9485_s18 }
0x149f   :  { %p7749_p13 = pnand %p7747_p12, %p7744_p11 }
0x14a1   :  { %7752 = shalt.err (!%p7749_p13)
}
0x14a2   :  { %5160 = dma.vmem_to_hbm [thread:$0]  %s5158_s6, 128, %s9485_s18, [#allocation56]   ;;  %v6982_v10 = vld [vmem:[%s9470_s15] sm:$0xff] }
0x14a3   :  { %s7947_s8 = smov [#allocation58]   ;;  %s7948_s28 = smov [#allocation60]  }
0x14a4   :  { %s5167_s27 = sshll.u32 %s7947_s8, 4  ;;  %s5177_s1 = sshll.u32 %s7948_s28, 4  ;;  %s5168_s27 = int_to_ptr.vmem [resolvable:$true] %s5167_s27  ;;  %s5178_s1 = int_to_ptr.vmem [resolvable:$true] %s5177_s1 }
0x14a5   :  { %s7949_s12 = smov 125   ;;  %s7753_s4 = scalar_lea.vmem %s5168_s27, 128 }
0x14a6   :  { %p7754_p0 = scmp.ne.s32.totalorder %s5168_s27, %s7753_s4  ;;  %p7758_p1 = scmp.lt.s32.totalorder %s5168_s27, %s5168_s27 }
0x14a7   :  { %p7759_p2 = scmp.lt.s32.totalorder %s7753_s4, %s7753_s4 }
0x14a9   :  { %p7760_p3 = por %p7759_p2, %p7758_p1 }
0x14ab   :  { %p7761_p4 = pnand %p7760_p3, %p7754_p0 }
0x14d6   :  { %v5095_v8 = vpop.permute.xlu0 %5094 }
0x14d7   :  { %vm5097_vm14 = vcmp.lt.f32.partialorder %v6982_v10, %v5095_v8 }
0x14d8   :  { %v5382_v12 = vsel %vm5097_vm14, 1.0, %v7931_v2 }
0x14d9   :  { %5121 = vrot.lane.b32.xlu1 %v5382_v12, %s7949_s12 }
0x14da   :  { %v5114_v14 = vpop.permute.xlu0 %5113 }
0x14db   :  { %5116 = vst.msk [vmem:[#allocation58] sm:$0xff] %vm5110_vm7, %v5114_v14 }
0x14dc   :  { %7764 = shalt.err (!%p7761_p4)
}
0x14dd   :  { %s9486_s15 = sld [smem:[#allocation120_spill]] }
0x14e3   :  { %s7765_s17 = scalar_lea.hbm %s9486_s15, 128 }
0x14e4   :  { %p7766_p5 = scmp.ne.s32.totalorder %s9486_s15, %s7765_s17  ;;  %p7769_p6 = scmp.lt.u32.totalorder %s7765_s17, %s9486_s15 }
0x14e6   :  { %p7771_p7 = pnand %p7769_p6, %p7766_p5 }
0x14e8   :  { %7774 = shalt.err (!%p7771_p7)
}
0x14e9   :  { %5170 = dma.vmem_to_hbm [thread:$0]  %s5168_s27, 128, %s9486_s15, [#allocation59]  }
0x14ea   :  { %s7775_s13 = scalar_lea.vmem %s5178_s1, 128  ;;  %p7780_p9 = scmp.lt.s32.totalorder %s5178_s1, %s5178_s1 }
0x14eb   :  { %p7776_p8 = scmp.ne.s32.totalorder %s5178_s1, %s7775_s13  ;;  %p7781_p10 = scmp.lt.s32.totalorder %s7775_s13, %s7775_s13 }
0x14ed   :  { %p7782_p11 = por %p7781_p10, %p7780_p9 }
0x14ef   :  { %p7783_p12 = pnand %p7782_p11, %p7776_p8 }
0x14f1   :  { %7786 = shalt.err (!%p7783_p12)
}
0x14f2   :  { %s7787_s2 = scalar_lea.hbm %s8231_s5, 128 }
0x14f3   :  { %p7788_p13 = scmp.ne.s32.totalorder %s8231_s5, %s7787_s2  ;;  %p7791_p0 = scmp.lt.u32.totalorder %s7787_s2, %s8231_s5 }
0x14f5   :  { %p7793_p1 = pnand %p7791_p0, %p7788_p13 }
0x14f7   :  { %7796 = shalt.err (!%p7793_p1)
}
0x14f8   :  { %5180 = dma.vmem_to_hbm [thread:$0]  %s5178_s1, 128, %s8231_s5, [#allocation59]  }
0x154b   :  { %v5122_v2 = vpop.permute.xlu1 %5121 }
0x154c   :  { %5124 = vst.msk [vmem:[%s8241_s14] sm:$0xff] %vm5100_vm11, %v5122_v2 }
0x154d   :  { %7831 = dma.done.wait [#allocation6], 128  }
0x154e   :  { %7832 = vsyncadd [#allocation6], 4294967168 }
0x154f   :  { %7833 = dma.done.wait [#allocation56], 256  }
0x1550   :  { %7834 = vsyncadd [#allocation56], 4294967040 }
0x1551   :  { %7835 = dma.done.wait [#allocation59], 256  }
0x1552   :  { %7836 = vsyncadd [#allocation59], 4294967040 }
0x1553   :  { %5210 = vsyncpa [#allocation5], 1 }
0x1554   :  { %5211 = vsyncpa [#allocation8], 1 }
0x1555   :  { %5212 = vsyncpa [#allocation11], 1 }
0x1556   :  { %5213 = vsyncpa [#allocation14], 1 }
0x1557   :  { %5214 = vsyncpa [#allocation17], 1 }
0x1558   :  { %5215 = vsyncpa [#allocation20], 1 }
0x1559   :  { %5216 = vsyncpa [#allocation23], 1 }
0x155a   :  { %5217 = vsyncpa [#allocation26], 1 }
0x155b   :  { %5218 = vsyncpa [#allocation29], 1 }
0x155c   :  { %5219 = vsyncpa [#allocation32], 1 }
0x155d   :  { %5220 = vsyncpa [#allocation35], 1 }
0x155e   :  { %5221 = vsyncpa [#allocation38], 1 }
0x155f   :  { %5222 = vsyncpa [#allocation41], 1 }
0x1560   :  { %5223 = vsyncpa [#allocation44], 1 }
0x1561   :  { %5224 = vsyncpa [#allocation47], 1 }
0x1562   :  { %5225 = vsyncpa [#allocation50], 1 }
0x1563   :  { %5226 = vsyncpa [#allocation53], 1 }
0x1564   :  { %5227 = vsyncpa [#allocation6], 1 }
0x1565   :  { %5228 = vsyncpa [#allocation56], 1 }
0x1566   :  { %5229 = vsyncpa [#allocation59], 1 }

</bundles_post_ra>
